<compile_context>
chip_gen: v5e
topology: v5e:2x2
jax: 0.10.0
libtpu: 0.0.40
codegen_flags: <defaults>
</compile_context>

<pallas_src>
import functools

import jax
import jax.numpy as jnp
from jax.experimental import pallas as pl
from jax.experimental.pallas import tpu as pltpu

EPS_BN = 1e-5      # nn.BatchNorm1d default eps
EPS_NORM = 1e-12   # F.normalize default eps

PARAM_NAMES = ("backbone", "head_w1", "head_w2", "head_w3")


# ---------------------------------------------------------------------------
# Fused kernel: momentum update + forward(both views, both encoders) + loss
# ---------------------------------------------------------------------------
def _twoenc_fused_kernel(m_ref, x1_ref, x2_ref,
                         b_bb, b_h1, b_h2, b_h3,
                         mo_bb, mo_h1, mo_h2, mo_h3,
                         p_w1, p_w2,
                         nm_bb, nm_h1, nm_h2, nm_h3, loss_ref,
                         *, T):
    m = m_ref[0]
    om = 1.0 - m

    # ---- 1. momentum update: p_m <- m * p_m + (1 - m) * p_b (kept in VMEM) ----
    mom_new = []
    for mo, base, out in ((mo_bb, b_bb, nm_bb), (mo_h1, b_h1, nm_h1),
                          (mo_h2, b_h2, nm_h2), (mo_h3, b_h3, nm_h3)):
        w = mo[...] * m + base[...] * om
        out[...] = w
        mom_new.append(w)

    # Linear (no bias) + optional BN(training-mode, identity affine) + optional ReLU.
    def layer(h, w, *, bn, relu):
        y = jnp.dot(h.astype(jnp.bfloat16), w.astype(jnp.bfloat16),
                    preferred_element_type=jnp.float32)
        if bn:
            mean = jnp.mean(y, axis=0, keepdims=True)
            var = jnp.mean((y - mean) ** 2, axis=0, keepdims=True)  # biased variance
            y = (y - mean) * jax.lax.rsqrt(var + EPS_BN)
        if relu:
            y = jnp.maximum(y, 0.0)
        return y

    # q path: backbone + 3-layer projector head + 2-layer predictor
    def q_path(x):
        h = layer(x, b_bb[...], bn=False, relu=False)     # backbone (flatten+Linear)
        h = layer(h, b_h1[...], bn=True, relu=True)        # head L1
        h = layer(h, b_h2[...], bn=True, relu=True)        # head L2
        h = layer(h, b_h3[...], bn=True, relu=False)       # head L3 (BN affine=False)
        h = layer(h, p_w1[...], bn=True, relu=True)        # predictor L1
        return layer(h, p_w2[...], bn=True, relu=False)    # predictor L2 (BN affine=False)

    # k path: momentum encoder (updated weights, still in VMEM; no grad path)
    def k_path(x):
        h = layer(x, mom_new[0], bn=False, relu=False)
        h = layer(h, mom_new[1], bn=True, relu=True)
        h = layer(h, mom_new[2], bn=True, relu=True)
        return layer(h, mom_new[3], bn=True, relu=False)

    x1 = x1_ref[...]
    x2 = x2_ref[...]
    q1, q2 = q_path(x1), q_path(x2)
    k1, k2 = k_path(x1), k_path(x2)

    # ---- 3. contrastive losses: CE(norm(q1)@norm(k2).T/T) + CE(norm(q2)@norm(k1).T/T) ----
    inv_t = 1.0 / T

    def normalize(x):  # F.normalize semantics via clamped rsqrt (EUP)
        ss = jnp.sum(x * x, axis=1, keepdims=True)
        return x * jax.lax.rsqrt(jnp.maximum(ss, EPS_NORM * EPS_NORM))

    def ce(qn, kn):  # mean CE with labels = arange(N); 1/T folded into q
        qs = qn * inv_t
        logits = jax.lax.dot_general(
            qs, kn, (((1,), (1,)), ((), ())), preferred_element_type=jnp.float32)
        diag = jnp.sum(qs * kn, axis=1, keepdims=True)            # positive logits (N,1)
        mx = jnp.max(logits, axis=1, keepdims=True)
        lse = mx + jnp.log(jnp.sum(jnp.exp(logits - mx), axis=1, keepdims=True))
        per = lse - diag
        return jnp.sum(per, axis=0, keepdims=True) * (1.0 / per.shape[0])   # (1,1)

    loss = (ce(normalize(q1), normalize(k2)) +
            ce(normalize(q2), normalize(k1))) * (2.0 * T)
    loss_ref[...] = loss


# ---------------------------------------------------------------------------
# Parameter setup + forward orchestration
# ---------------------------------------------------------------------------
def _lin_init(key, din, dout):
    bound = 1.0 / jnp.sqrt(din)
    return jax.random.uniform(key, (din, dout), jnp.float32, -bound, bound)


def init_encoder_params(key, in_features, dim, mlp_dim):
    k0, k1, k2, k3 = jax.random.split(key, 4)
    return {
        "backbone": _lin_init(k0, in_features, dim),
        # 3-layer head: dim -> mlp_dim -> mlp_dim -> dim
        "head_w1": _lin_init(k1, dim, mlp_dim),
        "head_w2": _lin_init(k2, mlp_dim, mlp_dim),
        "head_w3": _lin_init(k3, mlp_dim, dim),
    }


def init_predictor_params(key, dim, mlp_dim):
    k1, k2 = jax.random.split(key, 2)
    # 2-layer predictor: dim -> mlp_dim -> dim
    return {"pred_w1": _lin_init(k1, dim, mlp_dim),
            "pred_w2": _lin_init(k2, mlp_dim, dim)}


@functools.partial(jax.jit, static_argnames=("T",))
def twoenc_forward(x1, x2, m, base_params, mom_params, pred_params, *, T):
    n = x1.shape[0]
    x1f = x1.reshape(n, -1)
    x2f = x2.reshape(n, -1)
    m_arr = jnp.reshape(jnp.asarray(m, jnp.float32), (1,))

    base = [base_params[name] for name in PARAM_NAMES]
    mom = [mom_params[name] for name in PARAM_NAMES]
    pred = [pred_params["pred_w1"], pred_params["pred_w2"]]

    smem = pl.BlockSpec(memory_space=pltpu.MemorySpace.SMEM)
    vmem = pl.BlockSpec(memory_space=pltpu.MemorySpace.VMEM)

    out_shapes = tuple(jax.ShapeDtypeStruct(p.shape, jnp.float32) for p in mom) + (
        jax.ShapeDtypeStruct((1, 1), jnp.float32),)

    outs = pl.pallas_call(
        functools.partial(_twoenc_fused_kernel, T=float(T)),
        out_shape=out_shapes,
        in_specs=[smem] + [vmem] * 12,
        out_specs=tuple([vmem] * 5),
        # in-place momentum-weight update when the inputs are donatable
        input_output_aliases={7: 0, 8: 1, 9: 2, 10: 3},
    )(m_arr, x1f, x2f, *base, *mom, *pred)

    new_mom = dict(zip(PARAM_NAMES, outs[:4]))
    loss = outs[4][0, 0]
    return loss, new_mom


if __name__ == "__main__":
    N, C, H, W = 8, 4, 16, 16          # batch = 8 sublanes; C*H*W = 1024 (lane-dense)
    DIM, MLP_DIM = 128, 256            # multiples of 128
    T = 1.0
    M = 0.99

    key = jax.random.PRNGKey(0)
    kx1, kx2, kenc, kpred = jax.random.split(key, 4)

    x1 = jax.random.normal(kx1, (N, C, H, W), jnp.float32)
    x2 = jax.random.normal(kx2, (N, C, H, W), jnp.float32)

    base_params = init_encoder_params(kenc, C * H * W, DIM, MLP_DIM)
    # momentum encoder initialized as a copy of the base encoder (as in __init__)
    mom_params = {name: jnp.array(v) for name, v in base_params.items()}
    pred_params = init_predictor_params(kpred, DIM, MLP_DIM)

    loss, new_mom = twoenc_forward(x1, x2, M, base_params, mom_params, pred_params, T=T)
    jax.block_until_ready(loss)
    print("KERNEL_OK")
</pallas_src>

<mosaic_0001>
module attributes {stable_mosaic.version = 11 : i64} {
  func.func @_twoenc_fused_kernel(%arg0: memref<1xf32, #tpu.memory_space<smem>>, %arg1: memref<8x1024xf32, #tpu.memory_space<vmem>>, %arg2: memref<8x1024xf32, #tpu.memory_space<vmem>>, %arg3: memref<1024x128xf32, #tpu.memory_space<vmem>>, %arg4: memref<128x256xf32, #tpu.memory_space<vmem>>, %arg5: memref<256x256xf32, #tpu.memory_space<vmem>>, %arg6: memref<256x128xf32, #tpu.memory_space<vmem>>, %arg7: memref<1024x128xf32, #tpu.memory_space<vmem>>, %arg8: memref<128x256xf32, #tpu.memory_space<vmem>>, %arg9: memref<256x256xf32, #tpu.memory_space<vmem>>, %arg10: memref<256x128xf32, #tpu.memory_space<vmem>>, %arg11: memref<128x256xf32, #tpu.memory_space<vmem>>, %arg12: memref<256x128xf32, #tpu.memory_space<vmem>>, %arg13: memref<1024x128xf32, #tpu.memory_space<vmem>>, %arg14: memref<128x256xf32, #tpu.memory_space<vmem>>, %arg15: memref<256x256xf32, #tpu.memory_space<vmem>>, %arg16: memref<256x128xf32, #tpu.memory_space<vmem>>, %arg17: memref<1x1xf32, #tpu.memory_space<vmem>>) attributes {dimension_semantics = [], scalar_prefetch = 0 : i64, scratch_operands = 0 : i64, tpu.core_type = #tpu.core_type<tc>} {
    %c0 = arith.constant 0 : index
    %0 = memref.load %arg0[%c0] : memref<1xf32, #tpu.memory_space<smem>>
    %cst = arith.constant 1.000000e+00 : f32
    %1 = arith.subf %cst, %0 : f32
    %c0_0 = arith.constant 0 : index
    %c0_1 = arith.constant 0 : index
    %2 = vector.load %arg7[%c0_0, %c0_1] : memref<1024x128xf32, #tpu.memory_space<vmem>>, vector<1024x128xf32>
    %3 = vector.broadcast %0 : f32 to vector<1024x128xf32>
    %4 = arith.mulf %2, %3 : vector<1024x128xf32>
    %c0_2 = arith.constant 0 : index
    %c0_3 = arith.constant 0 : index
    %5 = vector.load %arg3[%c0_2, %c0_3] : memref<1024x128xf32, #tpu.memory_space<vmem>>, vector<1024x128xf32>
    %6 = vector.broadcast %1 : f32 to vector<1024x128xf32>
    %7 = arith.mulf %5, %6 : vector<1024x128xf32>
    %8 = arith.addf %4, %7 : vector<1024x128xf32>
    %c0_4 = arith.constant 0 : index
    %c0_5 = arith.constant 0 : index
    %9 = vector.load %arg13[%c0_4, %c0_5] : memref<1024x128xf32, #tpu.memory_space<vmem>>, vector<1024x128xf32>
    tpu.vector_store %arg13[%c0_4, %c0_5], %8 {strides = array<i32>} : memref<1024x128xf32, #tpu.memory_space<vmem>>, vector<1024x128xf32>,
    %c0_6 = arith.constant 0 : index
    %c0_7 = arith.constant 0 : index
    %10 = vector.load %arg8[%c0_6, %c0_7] : memref<128x256xf32, #tpu.memory_space<vmem>>, vector<128x256xf32>
    %11 = vector.broadcast %0 : f32 to vector<128x256xf32>
    %12 = arith.mulf %10, %11 : vector<128x256xf32>
    %c0_8 = arith.constant 0 : index
    %c0_9 = arith.constant 0 : index
    %13 = vector.load %arg4[%c0_8, %c0_9] : memref<128x256xf32, #tpu.memory_space<vmem>>, vector<128x256xf32>
    %14 = vector.broadcast %1 : f32 to vector<128x256xf32>
    %15 = arith.mulf %13, %14 : vector<128x256xf32>
    %16 = arith.addf %12, %15 : vector<128x256xf32>
    %c0_10 = arith.constant 0 : index
    %c0_11 = arith.constant 0 : index
    %17 = vector.load %arg14[%c0_10, %c0_11] : memref<128x256xf32, #tpu.memory_space<vmem>>, vector<128x256xf32>
    tpu.vector_store %arg14[%c0_10, %c0_11], %16 {strides = array<i32>} : memref<128x256xf32, #tpu.memory_space<vmem>>, vector<128x256xf32>,
    %c0_12 = arith.constant 0 : index
    %c0_13 = arith.constant 0 : index
    %18 = vector.load %arg9[%c0_12, %c0_13] : memref<256x256xf32, #tpu.memory_space<vmem>>, vector<256x256xf32>
    %19 = vector.broadcast %0 : f32 to vector<256x256xf32>
    %20 = arith.mulf %18, %19 : vector<256x256xf32>
    %c0_14 = arith.constant 0 : index
    %c0_15 = arith.constant 0 : index
    %21 = vector.load %arg5[%c0_14, %c0_15] : memref<256x256xf32, #tpu.memory_space<vmem>>, vector<256x256xf32>
    %22 = vector.broadcast %1 : f32 to vector<256x256xf32>
    %23 = arith.mulf %21, %22 : vector<256x256xf32>
    %24 = arith.addf %20, %23 : vector<256x256xf32>
    %c0_16 = arith.constant 0 : index
    %c0_17 = arith.constant 0 : index
    %25 = vector.load %arg15[%c0_16, %c0_17] : memref<256x256xf32, #tpu.memory_space<vmem>>, vector<256x256xf32>
    tpu.vector_store %arg15[%c0_16, %c0_17], %24 {strides = array<i32>} : memref<256x256xf32, #tpu.memory_space<vmem>>, vector<256x256xf32>,
    %c0_18 = arith.constant 0 : index
    %c0_19 = arith.constant 0 : index
    %26 = vector.load %arg10[%c0_18, %c0_19] : memref<256x128xf32, #tpu.memory_space<vmem>>, vector<256x128xf32>
    %27 = vector.broadcast %0 : f32 to vector<256x128xf32>
    %28 = arith.mulf %26, %27 : vector<256x128xf32>
    %c0_20 = arith.constant 0 : index
    %c0_21 = arith.constant 0 : index
    %29 = vector.load %arg6[%c0_20, %c0_21] : memref<256x128xf32, #tpu.memory_space<vmem>>, vector<256x128xf32>
    %30 = vector.broadcast %1 : f32 to vector<256x128xf32>
    %31 = arith.mulf %29, %30 : vector<256x128xf32>
    %32 = arith.addf %28, %31 : vector<256x128xf32>
    %c0_22 = arith.constant 0 : index
    %c0_23 = arith.constant 0 : index
    %33 = vector.load %arg16[%c0_22, %c0_23] : memref<256x128xf32, #tpu.memory_space<vmem>>, vector<256x128xf32>
    tpu.vector_store %arg16[%c0_22, %c0_23], %32 {strides = array<i32>} : memref<256x128xf32, #tpu.memory_space<vmem>>, vector<256x128xf32>,
    %c0_24 = arith.constant 0 : index
    %c0_25 = arith.constant 0 : index
    %34 = vector.load %arg1[%c0_24, %c0_25] : memref<8x1024xf32, #tpu.memory_space<vmem>>, vector<8x1024xf32>
    %c0_26 = arith.constant 0 : index
    %c0_27 = arith.constant 0 : index
    %35 = vector.load %arg2[%c0_26, %c0_27] : memref<8x1024xf32, #tpu.memory_space<vmem>>, vector<8x1024xf32>
    %c0_28 = arith.constant 0 : index
    %c0_29 = arith.constant 0 : index
    %36 = vector.load %arg3[%c0_28, %c0_29] : memref<1024x128xf32, #tpu.memory_space<vmem>>, vector<1024x128xf32>
    %37 = arith.truncf %34 : vector<8x1024xf32> to vector<8x1024xbf16>
    %38 = arith.truncf %36 : vector<1024x128xf32> to vector<1024x128xbf16>
    %cst_30 = arith.constant dense<0.000000e+00> : vector<8x128xf32>
    %39 = tpu.matmul %37, %38, %cst_30 {dimension_numbers = #tpu.dot_dimension_numbers<[1], [0], [0], [1], [0, 0, 1, 1], [], []>} : vector<8x1024xbf16>, vector<1024x128xbf16>, vector<8x128xf32> -> vector<8x128xf32>
    %c0_31 = arith.constant 0 : index
    %c0_32 = arith.constant 0 : index
    %40 = vector.load %arg4[%c0_31, %c0_32] : memref<128x256xf32, #tpu.memory_space<vmem>>, vector<128x256xf32>
    %41 = arith.truncf %39 : vector<8x128xf32> to vector<8x128xbf16>
    %42 = arith.truncf %40 : vector<128x256xf32> to vector<128x256xbf16>
    %cst_33 = arith.constant dense<0.000000e+00> : vector<8x256xf32>
    %43 = tpu.matmul %41, %42, %cst_33 {dimension_numbers = #tpu.dot_dimension_numbers<[1], [0], [0], [1], [0, 0, 1, 1], [], []>} : vector<8x128xbf16>, vector<128x256xbf16>, vector<8x256xf32> -> vector<8x256xf32>
    %cst_34 = arith.constant dense<0.000000e+00> : vector<256xf32>
    %44 = vector.multi_reduction <add>, %43, %cst_34 [0] : vector<8x256xf32> to vector<256xf32>
    %45 = vector.shape_cast %44 : vector<256xf32> to vector<1x256xf32>
    %cst_35 = arith.constant 8.000000e+00 : f32
    %46 = vector.broadcast %cst_35 : f32 to vector<1x256xf32>
    %47 = arith.divf %45, %46 : vector<1x256xf32>
    %48 = vector.broadcast %47 : vector<1x256xf32> to vector<8x256xf32>
    %49 = arith.subf %43, %48 : vector<8x256xf32>
    %50 = arith.mulf %49, %49 : vector<8x256xf32>
    %cst_36 = arith.constant dense<0.000000e+00> : vector<256xf32>
    %51 = vector.multi_reduction <add>, %50, %cst_36 [0] : vector<8x256xf32> to vector<256xf32>
    %52 = vector.shape_cast %51 : vector<256xf32> to vector<1x256xf32>
    %cst_37 = arith.constant 8.000000e+00 : f32
    %53 = vector.broadcast %cst_37 : f32 to vector<1x256xf32>
    %54 = arith.divf %52, %53 : vector<1x256xf32>
    %55 = vector.broadcast %47 : vector<1x256xf32> to vector<8x256xf32>
    %56 = arith.subf %43, %55 : vector<8x256xf32>
    %cst_38 = arith.constant 9.99999974E-6 : f32
    %57 = vector.broadcast %cst_38 : f32 to vector<1x256xf32>
    %58 = arith.addf %54, %57 : vector<1x256xf32>
    %59 = math.rsqrt %58 : vector<1x256xf32>
    %60 = vector.broadcast %59 : vector<1x256xf32> to vector<8x256xf32>
    %61 = arith.mulf %56, %60 : vector<8x256xf32>
    %cst_39 = arith.constant 0.000000e+00 : f32
    %62 = vector.broadcast %cst_39 : f32 to vector<8x256xf32>
    %63 = arith.maximumf %61, %62 : vector<8x256xf32>
    %c0_40 = arith.constant 0 : index
    %c0_41 = arith.constant 0 : index
    %64 = vector.load %arg5[%c0_40, %c0_41] : memref<256x256xf32, #tpu.memory_space<vmem>>, vector<256x256xf32>
    %65 = arith.truncf %63 : vector<8x256xf32> to vector<8x256xbf16>
    %66 = arith.truncf %64 : vector<256x256xf32> to vector<256x256xbf16>
    %cst_42 = arith.constant dense<0.000000e+00> : vector<8x256xf32>
    %67 = tpu.matmul %65, %66, %cst_42 {dimension_numbers = #tpu.dot_dimension_numbers<[1], [0], [0], [1], [0, 0, 1, 1], [], []>} : vector<8x256xbf16>, vector<256x256xbf16>, vector<8x256xf32> -> vector<8x256xf32>
    %cst_43 = arith.constant dense<0.000000e+00> : vector<256xf32>
    %68 = vector.multi_reduction <add>, %67, %cst_43 [0] : vector<8x256xf32> to vector<256xf32>
    %69 = vector.shape_cast %68 : vector<256xf32> to vector<1x256xf32>
    %cst_44 = arith.constant 8.000000e+00 : f32
    %70 = vector.broadcast %cst_44 : f32 to vector<1x256xf32>
    %71 = arith.divf %69, %70 : vector<1x256xf32>
    %72 = vector.broadcast %71 : vector<1x256xf32> to vector<8x256xf32>
    %73 = arith.subf %67, %72 : vector<8x256xf32>
    %74 = arith.mulf %73, %73 : vector<8x256xf32>
    %cst_45 = arith.constant dense<0.000000e+00> : vector<256xf32>
    %75 = vector.multi_reduction <add>, %74, %cst_45 [0] : vector<8x256xf32> to vector<256xf32>
    %76 = vector.shape_cast %75 : vector<256xf32> to vector<1x256xf32>
    %cst_46 = arith.constant 8.000000e+00 : f32
    %77 = vector.broadcast %cst_46 : f32 to vector<1x256xf32>
    %78 = arith.divf %76, %77 : vector<1x256xf32>
    %79 = vector.broadcast %71 : vector<1x256xf32> to vector<8x256xf32>
    %80 = arith.subf %67, %79 : vector<8x256xf32>
    %cst_47 = arith.constant 9.99999974E-6 : f32
    %81 = vector.broadcast %cst_47 : f32 to vector<1x256xf32>
    %82 = arith.addf %78, %81 : vector<1x256xf32>
    %83 = math.rsqrt %82 : vector<1x256xf32>
    %84 = vector.broadcast %83 : vector<1x256xf32> to vector<8x256xf32>
    %85 = arith.mulf %80, %84 : vector<8x256xf32>
    %cst_48 = arith.constant 0.000000e+00 : f32
    %86 = vector.broadcast %cst_48 : f32 to vector<8x256xf32>
    %87 = arith.maximumf %85, %86 : vector<8x256xf32>
    %c0_49 = arith.constant 0 : index
    %c0_50 = arith.constant 0 : index
    %88 = vector.load %arg6[%c0_49, %c0_50] : memref<256x128xf32, #tpu.memory_space<vmem>>, vector<256x128xf32>
    %89 = arith.truncf %87 : vector<8x256xf32> to vector<8x256xbf16>
    %90 = arith.truncf %88 : vector<256x128xf32> to vector<256x128xbf16>
    %cst_51 = arith.constant dense<0.000000e+00> : vector<8x128xf32>
    %91 = tpu.matmul %89, %90, %cst_51 {dimension_numbers = #tpu.dot_dimension_numbers<[1], [0], [0], [1], [0, 0, 1, 1], [], []>} : vector<8x256xbf16>, vector<256x128xbf16>, vector<8x128xf32> -> vector<8x128xf32>
    %cst_52 = arith.constant dense<0.000000e+00> : vector<128xf32>
    %92 = vector.multi_reduction <add>, %91, %cst_52 [0] : vector<8x128xf32> to vector<128xf32>
    %93 = vector.shape_cast %92 : vector<128xf32> to vector<1x128xf32>
    %cst_53 = arith.constant 8.000000e+00 : f32
    %94 = vector.broadcast %cst_53 : f32 to vector<1x128xf32>
    %95 = arith.divf %93, %94 : vector<1x128xf32>
    %96 = vector.broadcast %95 : vector<1x128xf32> to vector<8x128xf32>
    %97 = arith.subf %91, %96 : vector<8x128xf32>
    %98 = arith.mulf %97, %97 : vector<8x128xf32>
    %cst_54 = arith.constant dense<0.000000e+00> : vector<128xf32>
    %99 = vector.multi_reduction <add>, %98, %cst_54 [0] : vector<8x128xf32> to vector<128xf32>
    %100 = vector.shape_cast %99 : vector<128xf32> to vector<1x128xf32>
    %cst_55 = arith.constant 8.000000e+00 : f32
    %101 = vector.broadcast %cst_55 : f32 to vector<1x128xf32>
    %102 = arith.divf %100, %101 : vector<1x128xf32>
    %103 = vector.broadcast %95 : vector<1x128xf32> to vector<8x128xf32>
    %104 = arith.subf %91, %103 : vector<8x128xf32>
    %cst_56 = arith.constant 9.99999974E-6 : f32
    %105 = vector.broadcast %cst_56 : f32 to vector<1x128xf32>
    %106 = arith.addf %102, %105 : vector<1x128xf32>
    %107 = math.rsqrt %106 : vector<1x128xf32>
    %108 = vector.broadcast %107 : vector<1x128xf32> to vector<8x128xf32>
    %109 = arith.mulf %104, %108 : vector<8x128xf32>
    %c0_57 = arith.constant 0 : index
    %c0_58 = arith.constant 0 : index
    %110 = vector.load %arg11[%c0_57, %c0_58] : memref<128x256xf32, #tpu.memory_space<vmem>>, vector<128x256xf32>
    %111 = arith.truncf %109 : vector<8x128xf32> to vector<8x128xbf16>
    %112 = arith.truncf %110 : vector<128x256xf32> to vector<128x256xbf16>
    %cst_59 = arith.constant dense<0.000000e+00> : vector<8x256xf32>
    %113 = tpu.matmul %111, %112, %cst_59 {dimension_numbers = #tpu.dot_dimension_numbers<[1], [0], [0], [1], [0, 0, 1, 1], [], []>} : vector<8x128xbf16>, vector<128x256xbf16>, vector<8x256xf32> -> vector<8x256xf32>
    %cst_60 = arith.constant dense<0.000000e+00> : vector<256xf32>
    %114 = vector.multi_reduction <add>, %113, %cst_60 [0] : vector<8x256xf32> to vector<256xf32>
    %115 = vector.shape_cast %114 : vector<256xf32> to vector<1x256xf32>
    %cst_61 = arith.constant 8.000000e+00 : f32
    %116 = vector.broadcast %cst_61 : f32 to vector<1x256xf32>
    %117 = arith.divf %115, %116 : vector<1x256xf32>
    %118 = vector.broadcast %117 : vector<1x256xf32> to vector<8x256xf32>
    %119 = arith.subf %113, %118 : vector<8x256xf32>
    %120 = arith.mulf %119, %119 : vector<8x256xf32>
    %cst_62 = arith.constant dense<0.000000e+00> : vector<256xf32>
    %121 = vector.multi_reduction <add>, %120, %cst_62 [0] : vector<8x256xf32> to vector<256xf32>
    %122 = vector.shape_cast %121 : vector<256xf32> to vector<1x256xf32>
    %cst_63 = arith.constant 8.000000e+00 : f32
    %123 = vector.broadcast %cst_63 : f32 to vector<1x256xf32>
    %124 = arith.divf %122, %123 : vector<1x256xf32>
    %125 = vector.broadcast %117 : vector<1x256xf32> to vector<8x256xf32>
    %126 = arith.subf %113, %125 : vector<8x256xf32>
    %cst_64 = arith.constant 9.99999974E-6 : f32
    %127 = vector.broadcast %cst_64 : f32 to vector<1x256xf32>
    %128 = arith.addf %124, %127 : vector<1x256xf32>
    %129 = math.rsqrt %128 : vector<1x256xf32>
    %130 = vector.broadcast %129 : vector<1x256xf32> to vector<8x256xf32>
    %131 = arith.mulf %126, %130 : vector<8x256xf32>
    %cst_65 = arith.constant 0.000000e+00 : f32
    %132 = vector.broadcast %cst_65 : f32 to vector<8x256xf32>
    %133 = arith.maximumf %131, %132 : vector<8x256xf32>
    %c0_66 = arith.constant 0 : index
    %c0_67 = arith.constant 0 : index
    %134 = vector.load %arg12[%c0_66, %c0_67] : memref<256x128xf32, #tpu.memory_space<vmem>>, vector<256x128xf32>
    %135 = arith.truncf %133 : vector<8x256xf32> to vector<8x256xbf16>
    %136 = arith.truncf %134 : vector<256x128xf32> to vector<256x128xbf16>
    %cst_68 = arith.constant dense<0.000000e+00> : vector<8x128xf32>
    %137 = tpu.matmul %135, %136, %cst_68 {dimension_numbers = #tpu.dot_dimension_numbers<[1], [0], [0], [1], [0, 0, 1, 1], [], []>} : vector<8x256xbf16>, vector<256x128xbf16>, vector<8x128xf32> -> vector<8x128xf32>
    %cst_69 = arith.constant dense<0.000000e+00> : vector<128xf32>
    %138 = vector.multi_reduction <add>, %137, %cst_69 [0] : vector<8x128xf32> to vector<128xf32>
    %139 = vector.shape_cast %138 : vector<128xf32> to vector<1x128xf32>
    %cst_70 = arith.constant 8.000000e+00 : f32
    %140 = vector.broadcast %cst_70 : f32 to vector<1x128xf32>
    %141 = arith.divf %139, %140 : vector<1x128xf32>
    %142 = vector.broadcast %141 : vector<1x128xf32> to vector<8x128xf32>
    %143 = arith.subf %137, %142 : vector<8x128xf32>
    %144 = arith.mulf %143, %143 : vector<8x128xf32>
    %cst_71 = arith.constant dense<0.000000e+00> : vector<128xf32>
    %145 = vector.multi_reduction <add>, %144, %cst_71 [0] : vector<8x128xf32> to vector<128xf32>
    %146 = vector.shape_cast %145 : vector<128xf32> to vector<1x128xf32>
    %cst_72 = arith.constant 8.000000e+00 : f32
    %147 = vector.broadcast %cst_72 : f32 to vector<1x128xf32>
    %148 = arith.divf %146, %147 : vector<1x128xf32>
    %149 = vector.broadcast %141 : vector<1x128xf32> to vector<8x128xf32>
    %150 = arith.subf %137, %149 : vector<8x128xf32>
    %cst_73 = arith.constant 9.99999974E-6 : f32
    %151 = vector.broadcast %cst_73 : f32 to vector<1x128xf32>
    %152 = arith.addf %148, %151 : vector<1x128xf32>
    %153 = math.rsqrt %152 : vector<1x128xf32>
    %154 = vector.broadcast %153 : vector<1x128xf32> to vector<8x128xf32>
    %155 = arith.mulf %150, %154 : vector<8x128xf32>
    %c0_74 = arith.constant 0 : index
    %c0_75 = arith.constant 0 : index
    %156 = vector.load %arg3[%c0_74, %c0_75] : memref<1024x128xf32, #tpu.memory_space<vmem>>, vector<1024x128xf32>
    %157 = arith.truncf %35 : vector<8x1024xf32> to vector<8x1024xbf16>
    %158 = arith.truncf %156 : vector<1024x128xf32> to vector<1024x128xbf16>
    %cst_76 = arith.constant dense<0.000000e+00> : vector<8x128xf32>
    %159 = tpu.matmul %157, %158, %cst_76 {dimension_numbers = #tpu.dot_dimension_numbers<[1], [0], [0], [1], [0, 0, 1, 1], [], []>} : vector<8x1024xbf16>, vector<1024x128xbf16>, vector<8x128xf32> -> vector<8x128xf32>
    %c0_77 = arith.constant 0 : index
    %c0_78 = arith.constant 0 : index
    %160 = vector.load %arg4[%c0_77, %c0_78] : memref<128x256xf32, #tpu.memory_space<vmem>>, vector<128x256xf32>
    %161 = arith.truncf %159 : vector<8x128xf32> to vector<8x128xbf16>
    %162 = arith.truncf %160 : vector<128x256xf32> to vector<128x256xbf16>
    %cst_79 = arith.constant dense<0.000000e+00> : vector<8x256xf32>
    %163 = tpu.matmul %161, %162, %cst_79 {dimension_numbers = #tpu.dot_dimension_numbers<[1], [0], [0], [1], [0, 0, 1, 1], [], []>} : vector<8x128xbf16>, vector<128x256xbf16>, vector<8x256xf32> -> vector<8x256xf32>
    %cst_80 = arith.constant dense<0.000000e+00> : vector<256xf32>
    %164 = vector.multi_reduction <add>, %163, %cst_80 [0] : vector<8x256xf32> to vector<256xf32>
    %165 = vector.shape_cast %164 : vector<256xf32> to vector<1x256xf32>
    %cst_81 = arith.constant 8.000000e+00 : f32
    %166 = vector.broadcast %cst_81 : f32 to vector<1x256xf32>
    %167 = arith.divf %165, %166 : vector<1x256xf32>
    %168 = vector.broadcast %167 : vector<1x256xf32> to vector<8x256xf32>
    %169 = arith.subf %163, %168 : vector<8x256xf32>
    %170 = arith.mulf %169, %169 : vector<8x256xf32>
    %cst_82 = arith.constant dense<0.000000e+00> : vector<256xf32>
    %171 = vector.multi_reduction <add>, %170, %cst_82 [0] : vector<8x256xf32> to vector<256xf32>
    %172 = vector.shape_cast %171 : vector<256xf32> to vector<1x256xf32>
    %cst_83 = arith.constant 8.000000e+00 : f32
    %173 = vector.broadcast %cst_83 : f32 to vector<1x256xf32>
    %174 = arith.divf %172, %173 : vector<1x256xf32>
    %175 = vector.broadcast %167 : vector<1x256xf32> to vector<8x256xf32>
    %176 = arith.subf %163, %175 : vector<8x256xf32>
    %cst_84 = arith.constant 9.99999974E-6 : f32
    %177 = vector.broadcast %cst_84 : f32 to vector<1x256xf32>
    %178 = arith.addf %174, %177 : vector<1x256xf32>
    %179 = math.rsqrt %178 : vector<1x256xf32>
    %180 = vector.broadcast %179 : vector<1x256xf32> to vector<8x256xf32>
    %181 = arith.mulf %176, %180 : vector<8x256xf32>
    %cst_85 = arith.constant 0.000000e+00 : f32
    %182 = vector.broadcast %cst_85 : f32 to vector<8x256xf32>
    %183 = arith.maximumf %181, %182 : vector<8x256xf32>
    %c0_86 = arith.constant 0 : index
    %c0_87 = arith.constant 0 : index
    %184 = vector.load %arg5[%c0_86, %c0_87] : memref<256x256xf32, #tpu.memory_space<vmem>>, vector<256x256xf32>
    %185 = arith.truncf %183 : vector<8x256xf32> to vector<8x256xbf16>
    %186 = arith.truncf %184 : vector<256x256xf32> to vector<256x256xbf16>
    %cst_88 = arith.constant dense<0.000000e+00> : vector<8x256xf32>
    %187 = tpu.matmul %185, %186, %cst_88 {dimension_numbers = #tpu.dot_dimension_numbers<[1], [0], [0], [1], [0, 0, 1, 1], [], []>} : vector<8x256xbf16>, vector<256x256xbf16>, vector<8x256xf32> -> vector<8x256xf32>
    %cst_89 = arith.constant dense<0.000000e+00> : vector<256xf32>
    %188 = vector.multi_reduction <add>, %187, %cst_89 [0] : vector<8x256xf32> to vector<256xf32>
    %189 = vector.shape_cast %188 : vector<256xf32> to vector<1x256xf32>
    %cst_90 = arith.constant 8.000000e+00 : f32
    %190 = vector.broadcast %cst_90 : f32 to vector<1x256xf32>
    %191 = arith.divf %189, %190 : vector<1x256xf32>
    %192 = vector.broadcast %191 : vector<1x256xf32> to vector<8x256xf32>
    %193 = arith.subf %187, %192 : vector<8x256xf32>
    %194 = arith.mulf %193, %193 : vector<8x256xf32>
    %cst_91 = arith.constant dense<0.000000e+00> : vector<256xf32>
    %195 = vector.multi_reduction <add>, %194, %cst_91 [0] : vector<8x256xf32> to vector<256xf32>
    %196 = vector.shape_cast %195 : vector<256xf32> to vector<1x256xf32>
    %cst_92 = arith.constant 8.000000e+00 : f32
    %197 = vector.broadcast %cst_92 : f32 to vector<1x256xf32>
    %198 = arith.divf %196, %197 : vector<1x256xf32>
    %199 = vector.broadcast %191 : vector<1x256xf32> to vector<8x256xf32>
    %200 = arith.subf %187, %199 : vector<8x256xf32>
    %cst_93 = arith.constant 9.99999974E-6 : f32
    %201 = vector.broadcast %cst_93 : f32 to vector<1x256xf32>
    %202 = arith.addf %198, %201 : vector<1x256xf32>
    %203 = math.rsqrt %202 : vector<1x256xf32>
    %204 = vector.broadcast %203 : vector<1x256xf32> to vector<8x256xf32>
    %205 = arith.mulf %200, %204 : vector<8x256xf32>
    %cst_94 = arith.constant 0.000000e+00 : f32
    %206 = vector.broadcast %cst_94 : f32 to vector<8x256xf32>
    %207 = arith.maximumf %205, %206 : vector<8x256xf32>
    %c0_95 = arith.constant 0 : index
    %c0_96 = arith.constant 0 : index
    %208 = vector.load %arg6[%c0_95, %c0_96] : memref<256x128xf32, #tpu.memory_space<vmem>>, vector<256x128xf32>
    %209 = arith.truncf %207 : vector<8x256xf32> to vector<8x256xbf16>
    %210 = arith.truncf %208 : vector<256x128xf32> to vector<256x128xbf16>
    %cst_97 = arith.constant dense<0.000000e+00> : vector<8x128xf32>
    %211 = tpu.matmul %209, %210, %cst_97 {dimension_numbers = #tpu.dot_dimension_numbers<[1], [0], [0], [1], [0, 0, 1, 1], [], []>} : vector<8x256xbf16>, vector<256x128xbf16>, vector<8x128xf32> -> vector<8x128xf32>
    %cst_98 = arith.constant dense<0.000000e+00> : vector<128xf32>
    %212 = vector.multi_reduction <add>, %211, %cst_98 [0] : vector<8x128xf32> to vector<128xf32>
    %213 = vector.shape_cast %212 : vector<128xf32> to vector<1x128xf32>
    %cst_99 = arith.constant 8.000000e+00 : f32
    %214 = vector.broadcast %cst_99 : f32 to vector<1x128xf32>
    %215 = arith.divf %213, %214 : vector<1x128xf32>
    %216 = vector.broadcast %215 : vector<1x128xf32> to vector<8x128xf32>
    %217 = arith.subf %211, %216 : vector<8x128xf32>
    %218 = arith.mulf %217, %217 : vector<8x128xf32>
    %cst_100 = arith.constant dense<0.000000e+00> : vector<128xf32>
    %219 = vector.multi_reduction <add>, %218, %cst_100 [0] : vector<8x128xf32> to vector<128xf32>
    %220 = vector.shape_cast %219 : vector<128xf32> to vector<1x128xf32>
    %cst_101 = arith.constant 8.000000e+00 : f32
    %221 = vector.broadcast %cst_101 : f32 to vector<1x128xf32>
    %222 = arith.divf %220, %221 : vector<1x128xf32>
    %223 = vector.broadcast %215 : vector<1x128xf32> to vector<8x128xf32>
    %224 = arith.subf %211, %223 : vector<8x128xf32>
    %cst_102 = arith.constant 9.99999974E-6 : f32
    %225 = vector.broadcast %cst_102 : f32 to vector<1x128xf32>
    %226 = arith.addf %222, %225 : vector<1x128xf32>
    %227 = math.rsqrt %226 : vector<1x128xf32>
    %228 = vector.broadcast %227 : vector<1x128xf32> to vector<8x128xf32>
    %229 = arith.mulf %224, %228 : vector<8x128xf32>
    %c0_103 = arith.constant 0 : index
    %c0_104 = arith.constant 0 : index
    %230 = vector.load %arg11[%c0_103, %c0_104] : memref<128x256xf32, #tpu.memory_space<vmem>>, vector<128x256xf32>
    %231 = arith.truncf %229 : vector<8x128xf32> to vector<8x128xbf16>
    %232 = arith.truncf %230 : vector<128x256xf32> to vector<128x256xbf16>
    %cst_105 = arith.constant dense<0.000000e+00> : vector<8x256xf32>
    %233 = tpu.matmul %231, %232, %cst_105 {dimension_numbers = #tpu.dot_dimension_numbers<[1], [0], [0], [1], [0, 0, 1, 1], [], []>} : vector<8x128xbf16>, vector<128x256xbf16>, vector<8x256xf32> -> vector<8x256xf32>
    %cst_106 = arith.constant dense<0.000000e+00> : vector<256xf32>
    %234 = vector.multi_reduction <add>, %233, %cst_106 [0] : vector<8x256xf32> to vector<256xf32>
    %235 = vector.shape_cast %234 : vector<256xf32> to vector<1x256xf32>
    %cst_107 = arith.constant 8.000000e+00 : f32
    %236 = vector.broadcast %cst_107 : f32 to vector<1x256xf32>
    %237 = arith.divf %235, %236 : vector<1x256xf32>
    %238 = vector.broadcast %237 : vector<1x256xf32> to vector<8x256xf32>
    %239 = arith.subf %233, %238 : vector<8x256xf32>
    %240 = arith.mulf %239, %239 : vector<8x256xf32>
    %cst_108 = arith.constant dense<0.000000e+00> : vector<256xf32>
    %241 = vector.multi_reduction <add>, %240, %cst_108 [0] : vector<8x256xf32> to vector<256xf32>
    %242 = vector.shape_cast %241 : vector<256xf32> to vector<1x256xf32>
    %cst_109 = arith.constant 8.000000e+00 : f32
    %243 = vector.broadcast %cst_109 : f32 to vector<1x256xf32>
    %244 = arith.divf %242, %243 : vector<1x256xf32>
    %245 = vector.broadcast %237 : vector<1x256xf32> to vector<8x256xf32>
    %246 = arith.subf %233, %245 : vector<8x256xf32>
    %cst_110 = arith.constant 9.99999974E-6 : f32
    %247 = vector.broadcast %cst_110 : f32 to vector<1x256xf32>
    %248 = arith.addf %244, %247 : vector<1x256xf32>
    %249 = math.rsqrt %248 : vector<1x256xf32>
    %250 = vector.broadcast %249 : vector<1x256xf32> to vector<8x256xf32>
    %251 = arith.mulf %246, %250 : vector<8x256xf32>
    %cst_111 = arith.constant 0.000000e+00 : f32
    %252 = vector.broadcast %cst_111 : f32 to vector<8x256xf32>
    %253 = arith.maximumf %251, %252 : vector<8x256xf32>
    %c0_112 = arith.constant 0 : index
    %c0_113 = arith.constant 0 : index
    %254 = vector.load %arg12[%c0_112, %c0_113] : memref<256x128xf32, #tpu.memory_space<vmem>>, vector<256x128xf32>
    %255 = arith.truncf %253 : vector<8x256xf32> to vector<8x256xbf16>
    %256 = arith.truncf %254 : vector<256x128xf32> to vector<256x128xbf16>
    %cst_114 = arith.constant dense<0.000000e+00> : vector<8x128xf32>
    %257 = tpu.matmul %255, %256, %cst_114 {dimension_numbers = #tpu.dot_dimension_numbers<[1], [0], [0], [1], [0, 0, 1, 1], [], []>} : vector<8x256xbf16>, vector<256x128xbf16>, vector<8x128xf32> -> vector<8x128xf32>
    %cst_115 = arith.constant dense<0.000000e+00> : vector<128xf32>
    %258 = vector.multi_reduction <add>, %257, %cst_115 [0] : vector<8x128xf32> to vector<128xf32>
    %259 = vector.shape_cast %258 : vector<128xf32> to vector<1x128xf32>
    %cst_116 = arith.constant 8.000000e+00 : f32
    %260 = vector.broadcast %cst_116 : f32 to vector<1x128xf32>
    %261 = arith.divf %259, %260 : vector<1x128xf32>
    %262 = vector.broadcast %261 : vector<1x128xf32> to vector<8x128xf32>
    %263 = arith.subf %257, %262 : vector<8x128xf32>
    %264 = arith.mulf %263, %263 : vector<8x128xf32>
    %cst_117 = arith.constant dense<0.000000e+00> : vector<128xf32>
    %265 = vector.multi_reduction <add>, %264, %cst_117 [0] : vector<8x128xf32> to vector<128xf32>
    %266 = vector.shape_cast %265 : vector<128xf32> to vector<1x128xf32>
    %cst_118 = arith.constant 8.000000e+00 : f32
    %267 = vector.broadcast %cst_118 : f32 to vector<1x128xf32>
    %268 = arith.divf %266, %267 : vector<1x128xf32>
    %269 = vector.broadcast %261 : vector<1x128xf32> to vector<8x128xf32>
    %270 = arith.subf %257, %269 : vector<8x128xf32>
    %cst_119 = arith.constant 9.99999974E-6 : f32
    %271 = vector.broadcast %cst_119 : f32 to vector<1x128xf32>
    %272 = arith.addf %268, %271 : vector<1x128xf32>
    %273 = math.rsqrt %272 : vector<1x128xf32>
    %274 = vector.broadcast %273 : vector<1x128xf32> to vector<8x128xf32>
    %275 = arith.mulf %270, %274 : vector<8x128xf32>
    %276 = arith.truncf %34 : vector<8x1024xf32> to vector<8x1024xbf16>
    %277 = arith.truncf %8 : vector<1024x128xf32> to vector<1024x128xbf16>
    %cst_120 = arith.constant dense<0.000000e+00> : vector<8x128xf32>
    %278 = tpu.matmul %276, %277, %cst_120 {dimension_numbers = #tpu.dot_dimension_numbers<[1], [0], [0], [1], [0, 0, 1, 1], [], []>} : vector<8x1024xbf16>, vector<1024x128xbf16>, vector<8x128xf32> -> vector<8x128xf32>
    %279 = arith.truncf %278 : vector<8x128xf32> to vector<8x128xbf16>
    %280 = arith.truncf %16 : vector<128x256xf32> to vector<128x256xbf16>
    %cst_121 = arith.constant dense<0.000000e+00> : vector<8x256xf32>
    %281 = tpu.matmul %279, %280, %cst_121 {dimension_numbers = #tpu.dot_dimension_numbers<[1], [0], [0], [1], [0, 0, 1, 1], [], []>} : vector<8x128xbf16>, vector<128x256xbf16>, vector<8x256xf32> -> vector<8x256xf32>
    %cst_122 = arith.constant dense<0.000000e+00> : vector<256xf32>
    %282 = vector.multi_reduction <add>, %281, %cst_122 [0] : vector<8x256xf32> to vector<256xf32>
    %283 = vector.shape_cast %282 : vector<256xf32> to vector<1x256xf32>
    %cst_123 = arith.constant 8.000000e+00 : f32
    %284 = vector.broadcast %cst_123 : f32 to vector<1x256xf32>
    %285 = arith.divf %283, %284 : vector<1x256xf32>
    %286 = vector.broadcast %285 : vector<1x256xf32> to vector<8x256xf32>
    %287 = arith.subf %281, %286 : vector<8x256xf32>
    %288 = arith.mulf %287, %287 : vector<8x256xf32>
    %cst_124 = arith.constant dense<0.000000e+00> : vector<256xf32>
    %289 = vector.multi_reduction <add>, %288, %cst_124 [0] : vector<8x256xf32> to vector<256xf32>
    %290 = vector.shape_cast %289 : vector<256xf32> to vector<1x256xf32>
    %cst_125 = arith.constant 8.000000e+00 : f32
    %291 = vector.broadcast %cst_125 : f32 to vector<1x256xf32>
    %292 = arith.divf %290, %291 : vector<1x256xf32>
    %293 = vector.broadcast %285 : vector<1x256xf32> to vector<8x256xf32>
    %294 = arith.subf %281, %293 : vector<8x256xf32>
    %cst_126 = arith.constant 9.99999974E-6 : f32
    %295 = vector.broadcast %cst_126 : f32 to vector<1x256xf32>
    %296 = arith.addf %292, %295 : vector<1x256xf32>
    %297 = math.rsqrt %296 : vector<1x256xf32>
    %298 = vector.broadcast %297 : vector<1x256xf32> to vector<8x256xf32>
    %299 = arith.mulf %294, %298 : vector<8x256xf32>
    %cst_127 = arith.constant 0.000000e+00 : f32
    %300 = vector.broadcast %cst_127 : f32 to vector<8x256xf32>
    %301 = arith.maximumf %299, %300 : vector<8x256xf32>
    %302 = arith.truncf %301 : vector<8x256xf32> to vector<8x256xbf16>
    %303 = arith.truncf %24 : vector<256x256xf32> to vector<256x256xbf16>
    %cst_128 = arith.constant dense<0.000000e+00> : vector<8x256xf32>
    %304 = tpu.matmul %302, %303, %cst_128 {dimension_numbers = #tpu.dot_dimension_numbers<[1], [0], [0], [1], [0, 0, 1, 1], [], []>} : vector<8x256xbf16>, vector<256x256xbf16>, vector<8x256xf32> -> vector<8x256xf32>
    %cst_129 = arith.constant dense<0.000000e+00> : vector<256xf32>
    %305 = vector.multi_reduction <add>, %304, %cst_129 [0] : vector<8x256xf32> to vector<256xf32>
    %306 = vector.shape_cast %305 : vector<256xf32> to vector<1x256xf32>
    %cst_130 = arith.constant 8.000000e+00 : f32
    %307 = vector.broadcast %cst_130 : f32 to vector<1x256xf32>
    %308 = arith.divf %306, %307 : vector<1x256xf32>
    %309 = vector.broadcast %308 : vector<1x256xf32> to vector<8x256xf32>
    %310 = arith.subf %304, %309 : vector<8x256xf32>
    %311 = arith.mulf %310, %310 : vector<8x256xf32>
    %cst_131 = arith.constant dense<0.000000e+00> : vector<256xf32>
    %312 = vector.multi_reduction <add>, %311, %cst_131 [0] : vector<8x256xf32> to vector<256xf32>
    %313 = vector.shape_cast %312 : vector<256xf32> to vector<1x256xf32>
    %cst_132 = arith.constant 8.000000e+00 : f32
    %314 = vector.broadcast %cst_132 : f32 to vector<1x256xf32>
    %315 = arith.divf %313, %314 : vector<1x256xf32>
    %316 = vector.broadcast %308 : vector<1x256xf32> to vector<8x256xf32>
    %317 = arith.subf %304, %316 : vector<8x256xf32>
    %cst_133 = arith.constant 9.99999974E-6 : f32
    %318 = vector.broadcast %cst_133 : f32 to vector<1x256xf32>
    %319 = arith.addf %315, %318 : vector<1x256xf32>
    %320 = math.rsqrt %319 : vector<1x256xf32>
    %321 = vector.broadcast %320 : vector<1x256xf32> to vector<8x256xf32>
    %322 = arith.mulf %317, %321 : vector<8x256xf32>
    %cst_134 = arith.constant 0.000000e+00 : f32
    %323 = vector.broadcast %cst_134 : f32 to vector<8x256xf32>
    %324 = arith.maximumf %322, %323 : vector<8x256xf32>
    %325 = arith.truncf %324 : vector<8x256xf32> to vector<8x256xbf16>
    %326 = arith.truncf %32 : vector<256x128xf32> to vector<256x128xbf16>
    %cst_135 = arith.constant dense<0.000000e+00> : vector<8x128xf32>
    %327 = tpu.matmul %325, %326, %cst_135 {dimension_numbers = #tpu.dot_dimension_numbers<[1], [0], [0], [1], [0, 0, 1, 1], [], []>} : vector<8x256xbf16>, vector<256x128xbf16>, vector<8x128xf32> -> vector<8x128xf32>
    %cst_136 = arith.constant dense<0.000000e+00> : vector<128xf32>
    %328 = vector.multi_reduction <add>, %327, %cst_136 [0] : vector<8x128xf32> to vector<128xf32>
    %329 = vector.shape_cast %328 : vector<128xf32> to vector<1x128xf32>
    %cst_137 = arith.constant 8.000000e+00 : f32
    %330 = vector.broadcast %cst_137 : f32 to vector<1x128xf32>
    %331 = arith.divf %329, %330 : vector<1x128xf32>
    %332 = vector.broadcast %331 : vector<1x128xf32> to vector<8x128xf32>
    %333 = arith.subf %327, %332 : vector<8x128xf32>
    %334 = arith.mulf %333, %333 : vector<8x128xf32>
    %cst_138 = arith.constant dense<0.000000e+00> : vector<128xf32>
    %335 = vector.multi_reduction <add>, %334, %cst_138 [0] : vector<8x128xf32> to vector<128xf32>
    %336 = vector.shape_cast %335 : vector<128xf32> to vector<1x128xf32>
    %cst_139 = arith.constant 8.000000e+00 : f32
    %337 = vector.broadcast %cst_139 : f32 to vector<1x128xf32>
    %338 = arith.divf %336, %337 : vector<1x128xf32>
    %339 = vector.broadcast %331 : vector<1x128xf32> to vector<8x128xf32>
    %340 = arith.subf %327, %339 : vector<8x128xf32>
    %cst_140 = arith.constant 9.99999974E-6 : f32
    %341 = vector.broadcast %cst_140 : f32 to vector<1x128xf32>
    %342 = arith.addf %338, %341 : vector<1x128xf32>
    %343 = math.rsqrt %342 : vector<1x128xf32>
    %344 = vector.broadcast %343 : vector<1x128xf32> to vector<8x128xf32>
    %345 = arith.mulf %340, %344 : vector<8x128xf32>
    %346 = arith.truncf %35 : vector<8x1024xf32> to vector<8x1024xbf16>
    %347 = arith.truncf %8 : vector<1024x128xf32> to vector<1024x128xbf16>
    %cst_141 = arith.constant dense<0.000000e+00> : vector<8x128xf32>
    %348 = tpu.matmul %346, %347, %cst_141 {dimension_numbers = #tpu.dot_dimension_numbers<[1], [0], [0], [1], [0, 0, 1, 1], [], []>} : vector<8x1024xbf16>, vector<1024x128xbf16>, vector<8x128xf32> -> vector<8x128xf32>
    %349 = arith.truncf %348 : vector<8x128xf32> to vector<8x128xbf16>
    %350 = arith.truncf %16 : vector<128x256xf32> to vector<128x256xbf16>
    %cst_142 = arith.constant dense<0.000000e+00> : vector<8x256xf32>
    %351 = tpu.matmul %349, %350, %cst_142 {dimension_numbers = #tpu.dot_dimension_numbers<[1], [0], [0], [1], [0, 0, 1, 1], [], []>} : vector<8x128xbf16>, vector<128x256xbf16>, vector<8x256xf32> -> vector<8x256xf32>
    %cst_143 = arith.constant dense<0.000000e+00> : vector<256xf32>
    %352 = vector.multi_reduction <add>, %351, %cst_143 [0] : vector<8x256xf32> to vector<256xf32>
    %353 = vector.shape_cast %352 : vector<256xf32> to vector<1x256xf32>
    %cst_144 = arith.constant 8.000000e+00 : f32
    %354 = vector.broadcast %cst_144 : f32 to vector<1x256xf32>
    %355 = arith.divf %353, %354 : vector<1x256xf32>
    %356 = vector.broadcast %355 : vector<1x256xf32> to vector<8x256xf32>
    %357 = arith.subf %351, %356 : vector<8x256xf32>
    %358 = arith.mulf %357, %357 : vector<8x256xf32>
    %cst_145 = arith.constant dense<0.000000e+00> : vector<256xf32>
    %359 = vector.multi_reduction <add>, %358, %cst_145 [0] : vector<8x256xf32> to vector<256xf32>
    %360 = vector.shape_cast %359 : vector<256xf32> to vector<1x256xf32>
    %cst_146 = arith.constant 8.000000e+00 : f32
    %361 = vector.broadcast %cst_146 : f32 to vector<1x256xf32>
    %362 = arith.divf %360, %361 : vector<1x256xf32>
    %363 = vector.broadcast %355 : vector<1x256xf32> to vector<8x256xf32>
    %364 = arith.subf %351, %363 : vector<8x256xf32>
    %cst_147 = arith.constant 9.99999974E-6 : f32
    %365 = vector.broadcast %cst_147 : f32 to vector<1x256xf32>
    %366 = arith.addf %362, %365 : vector<1x256xf32>
    %367 = math.rsqrt %366 : vector<1x256xf32>
    %368 = vector.broadcast %367 : vector<1x256xf32> to vector<8x256xf32>
    %369 = arith.mulf %364, %368 : vector<8x256xf32>
    %cst_148 = arith.constant 0.000000e+00 : f32
    %370 = vector.broadcast %cst_148 : f32 to vector<8x256xf32>
    %371 = arith.maximumf %369, %370 : vector<8x256xf32>
    %372 = arith.truncf %371 : vector<8x256xf32> to vector<8x256xbf16>
    %373 = arith.truncf %24 : vector<256x256xf32> to vector<256x256xbf16>
    %cst_149 = arith.constant dense<0.000000e+00> : vector<8x256xf32>
    %374 = tpu.matmul %372, %373, %cst_149 {dimension_numbers = #tpu.dot_dimension_numbers<[1], [0], [0], [1], [0, 0, 1, 1], [], []>} : vector<8x256xbf16>, vector<256x256xbf16>, vector<8x256xf32> -> vector<8x256xf32>
    %cst_150 = arith.constant dense<0.000000e+00> : vector<256xf32>
    %375 = vector.multi_reduction <add>, %374, %cst_150 [0] : vector<8x256xf32> to vector<256xf32>
    %376 = vector.shape_cast %375 : vector<256xf32> to vector<1x256xf32>
    %cst_151 = arith.constant 8.000000e+00 : f32
    %377 = vector.broadcast %cst_151 : f32 to vector<1x256xf32>
    %378 = arith.divf %376, %377 : vector<1x256xf32>
    %379 = vector.broadcast %378 : vector<1x256xf32> to vector<8x256xf32>
    %380 = arith.subf %374, %379 : vector<8x256xf32>
    %381 = arith.mulf %380, %380 : vector<8x256xf32>
    %cst_152 = arith.constant dense<0.000000e+00> : vector<256xf32>
    %382 = vector.multi_reduction <add>, %381, %cst_152 [0] : vector<8x256xf32> to vector<256xf32>
    %383 = vector.shape_cast %382 : vector<256xf32> to vector<1x256xf32>
    %cst_153 = arith.constant 8.000000e+00 : f32
    %384 = vector.broadcast %cst_153 : f32 to vector<1x256xf32>
    %385 = arith.divf %383, %384 : vector<1x256xf32>
    %386 = vector.broadcast %378 : vector<1x256xf32> to vector<8x256xf32>
    %387 = arith.subf %374, %386 : vector<8x256xf32>
    %cst_154 = arith.constant 9.99999974E-6 : f32
    %388 = vector.broadcast %cst_154 : f32 to vector<1x256xf32>
    %389 = arith.addf %385, %388 : vector<1x256xf32>
    %390 = math.rsqrt %389 : vector<1x256xf32>
    %391 = vector.broadcast %390 : vector<1x256xf32> to vector<8x256xf32>
    %392 = arith.mulf %387, %391 : vector<8x256xf32>
    %cst_155 = arith.constant 0.000000e+00 : f32
    %393 = vector.broadcast %cst_155 : f32 to vector<8x256xf32>
    %394 = arith.maximumf %392, %393 : vector<8x256xf32>
    %395 = arith.truncf %394 : vector<8x256xf32> to vector<8x256xbf16>
    %396 = arith.truncf %32 : vector<256x128xf32> to vector<256x128xbf16>
    %cst_156 = arith.constant dense<0.000000e+00> : vector<8x128xf32>
    %397 = tpu.matmul %395, %396, %cst_156 {dimension_numbers = #tpu.dot_dimension_numbers<[1], [0], [0], [1], [0, 0, 1, 1], [], []>} : vector<8x256xbf16>, vector<256x128xbf16>, vector<8x128xf32> -> vector<8x128xf32>
    %cst_157 = arith.constant dense<0.000000e+00> : vector<128xf32>
    %398 = vector.multi_reduction <add>, %397, %cst_157 [0] : vector<8x128xf32> to vector<128xf32>
    %399 = vector.shape_cast %398 : vector<128xf32> to vector<1x128xf32>
    %cst_158 = arith.constant 8.000000e+00 : f32
    %400 = vector.broadcast %cst_158 : f32 to vector<1x128xf32>
    %401 = arith.divf %399, %400 : vector<1x128xf32>
    %402 = vector.broadcast %401 : vector<1x128xf32> to vector<8x128xf32>
    %403 = arith.subf %397, %402 : vector<8x128xf32>
    %404 = arith.mulf %403, %403 : vector<8x128xf32>
    %cst_159 = arith.constant dense<0.000000e+00> : vector<128xf32>
    %405 = vector.multi_reduction <add>, %404, %cst_159 [0] : vector<8x128xf32> to vector<128xf32>
    %406 = vector.shape_cast %405 : vector<128xf32> to vector<1x128xf32>
    %cst_160 = arith.constant 8.000000e+00 : f32
    %407 = vector.broadcast %cst_160 : f32 to vector<1x128xf32>
    %408 = arith.divf %406, %407 : vector<1x128xf32>
    %409 = vector.broadcast %401 : vector<1x128xf32> to vector<8x128xf32>
    %410 = arith.subf %397, %409 : vector<8x128xf32>
    %cst_161 = arith.constant 9.99999974E-6 : f32
    %411 = vector.broadcast %cst_161 : f32 to vector<1x128xf32>
    %412 = arith.addf %408, %411 : vector<1x128xf32>
    %413 = math.rsqrt %412 : vector<1x128xf32>
    %414 = vector.broadcast %413 : vector<1x128xf32> to vector<8x128xf32>
    %415 = arith.mulf %410, %414 : vector<8x128xf32>
    %416 = arith.mulf %155, %155 : vector<8x128xf32>
    %cst_162 = arith.constant dense<0.000000e+00> : vector<8xf32>
    %417 = vector.multi_reduction <add>, %416, %cst_162 [1] : vector<8x128xf32> to vector<8xf32>
    %418 = vector.shape_cast %417 : vector<8xf32> to vector<8x1xf32>
    %cst_163 = arith.constant 1.000000e-24 : f32
    %419 = vector.broadcast %cst_163 : f32 to vector<8x1xf32>
    %420 = arith.maximumf %418, %419 : vector<8x1xf32>
    %421 = math.rsqrt %420 : vector<8x1xf32>
    %422 = vector.broadcast %421 : vector<8x1xf32> to vector<8x128xf32>
    %423 = arith.mulf %155, %422 : vector<8x128xf32>
    %424 = arith.mulf %415, %415 : vector<8x128xf32>
    %cst_164 = arith.constant dense<0.000000e+00> : vector<8xf32>
    %425 = vector.multi_reduction <add>, %424, %cst_164 [1] : vector<8x128xf32> to vector<8xf32>
    %426 = vector.shape_cast %425 : vector<8xf32> to vector<8x1xf32>
    %cst_165 = arith.constant 1.000000e-24 : f32
    %427 = vector.broadcast %cst_165 : f32 to vector<8x1xf32>
    %428 = arith.maximumf %426, %427 : vector<8x1xf32>
    %429 = math.rsqrt %428 : vector<8x1xf32>
    %430 = vector.broadcast %429 : vector<8x1xf32> to vector<8x128xf32>
    %431 = arith.mulf %415, %430 : vector<8x128xf32>
    %cst_166 = arith.constant 1.000000e+00 : f32
    %432 = vector.broadcast %cst_166 : f32 to vector<8x128xf32>
    %433 = arith.mulf %423, %432 : vector<8x128xf32>
    %cst_167 = arith.constant dense<0.000000e+00> : vector<8x8xf32>
    %434 = tpu.matmul %433, %431, %cst_167 {dimension_numbers = #tpu.dot_dimension_numbers<[1], [1], [0], [0], [0, 0, 1, 0], [], []>} : vector<8x128xf32>, vector<8x128xf32>, vector<8x8xf32> -> vector<8x8xf32>
    %435 = arith.mulf %433, %431 : vector<8x128xf32>
    %cst_168 = arith.constant dense<0.000000e+00> : vector<8xf32>
    %436 = vector.multi_reduction <add>, %435, %cst_168 [1] : vector<8x128xf32> to vector<8xf32>
    %437 = vector.shape_cast %436 : vector<8xf32> to vector<8x1xf32>
    %cst_169 = arith.constant dense<0xFF800000> : vector<8xf32>
    %438 = vector.multi_reduction <maximumf>, %434, %cst_169 [1] : vector<8x8xf32> to vector<8xf32>
    %439 = vector.shape_cast %438 : vector<8xf32> to vector<8x1xf32>
    %440 = vector.broadcast %439 : vector<8x1xf32> to vector<8x8xf32>
    %441 = arith.subf %434, %440 : vector<8x8xf32>
    %442 = math.exp %441 : vector<8x8xf32>
    %cst_170 = arith.constant dense<0.000000e+00> : vector<8xf32>
    %443 = vector.multi_reduction <add>, %442, %cst_170 [1] : vector<8x8xf32> to vector<8xf32>
    %444 = vector.shape_cast %443 : vector<8xf32> to vector<8x1xf32>
    %445 = math.log %444 : vector<8x1xf32>
    %446 = arith.addf %439, %445 : vector<8x1xf32>
    %447 = arith.subf %446, %437 : vector<8x1xf32>
    %cst_171 = arith.constant dense<0.000000e+00> : vector<1xf32>
    %448 = vector.multi_reduction <add>, %447, %cst_171 [0] : vector<8x1xf32> to vector<1xf32>
    %449 = vector.shape_cast %448 : vector<1xf32> to vector<1x1xf32>
    %cst_172 = arith.constant 1.250000e-01 : f32
    %450 = vector.broadcast %cst_172 : f32 to vector<1x1xf32>
    %451 = arith.mulf %449, %450 : vector<1x1xf32>
    %452 = arith.mulf %275, %275 : vector<8x128xf32>
    %cst_173 = arith.constant dense<0.000000e+00> : vector<8xf32>
    %453 = vector.multi_reduction <add>, %452, %cst_173 [1] : vector<8x128xf32> to vector<8xf32>
    %454 = vector.shape_cast %453 : vector<8xf32> to vector<8x1xf32>
    %cst_174 = arith.constant 1.000000e-24 : f32
    %455 = vector.broadcast %cst_174 : f32 to vector<8x1xf32>
    %456 = arith.maximumf %454, %455 : vector<8x1xf32>
    %457 = math.rsqrt %456 : vector<8x1xf32>
    %458 = vector.broadcast %457 : vector<8x1xf32> to vector<8x128xf32>
    %459 = arith.mulf %275, %458 : vector<8x128xf32>
    %460 = arith.mulf %345, %345 : vector<8x128xf32>
    %cst_175 = arith.constant dense<0.000000e+00> : vector<8xf32>
    %461 = vector.multi_reduction <add>, %460, %cst_175 [1] : vector<8x128xf32> to vector<8xf32>
    %462 = vector.shape_cast %461 : vector<8xf32> to vector<8x1xf32>
    %cst_176 = arith.constant 1.000000e-24 : f32
    %463 = vector.broadcast %cst_176 : f32 to vector<8x1xf32>
    %464 = arith.maximumf %462, %463 : vector<8x1xf32>
    %465 = math.rsqrt %464 : vector<8x1xf32>
    %466 = vector.broadcast %465 : vector<8x1xf32> to vector<8x128xf32>
    %467 = arith.mulf %345, %466 : vector<8x128xf32>
    %cst_177 = arith.constant 1.000000e+00 : f32
    %468 = vector.broadcast %cst_177 : f32 to vector<8x128xf32>
    %469 = arith.mulf %459, %468 : vector<8x128xf32>
    %cst_178 = arith.constant dense<0.000000e+00> : vector<8x8xf32>
    %470 = tpu.matmul %469, %467, %cst_178 {dimension_numbers = #tpu.dot_dimension_numbers<[1], [1], [0], [0], [0, 0, 1, 0], [], []>} : vector<8x128xf32>, vector<8x128xf32>, vector<8x8xf32> -> vector<8x8xf32>
    %471 = arith.mulf %469, %467 : vector<8x128xf32>
    %cst_179 = arith.constant dense<0.000000e+00> : vector<8xf32>
    %472 = vector.multi_reduction <add>, %471, %cst_179 [1] : vector<8x128xf32> to vector<8xf32>
    %473 = vector.shape_cast %472 : vector<8xf32> to vector<8x1xf32>
    %cst_180 = arith.constant dense<0xFF800000> : vector<8xf32>
    %474 = vector.multi_reduction <maximumf>, %470, %cst_180 [1] : vector<8x8xf32> to vector<8xf32>
    %475 = vector.shape_cast %474 : vector<8xf32> to vector<8x1xf32>
    %476 = vector.broadcast %475 : vector<8x1xf32> to vector<8x8xf32>
    %477 = arith.subf %470, %476 : vector<8x8xf32>
    %478 = math.exp %477 : vector<8x8xf32>
    %cst_181 = arith.constant dense<0.000000e+00> : vector<8xf32>
    %479 = vector.multi_reduction <add>, %478, %cst_181 [1] : vector<8x8xf32> to vector<8xf32>
    %480 = vector.shape_cast %479 : vector<8xf32> to vector<8x1xf32>
    %481 = math.log %480 : vector<8x1xf32>
    %482 = arith.addf %475, %481 : vector<8x1xf32>
    %483 = arith.subf %482, %473 : vector<8x1xf32>
    %cst_182 = arith.constant dense<0.000000e+00> : vector<1xf32>
    %484 = vector.multi_reduction <add>, %483, %cst_182 [0] : vector<8x1xf32> to vector<1xf32>
    %485 = vector.shape_cast %484 : vector<1xf32> to vector<1x1xf32>
    %cst_183 = arith.constant 1.250000e-01 : f32
    %486 = vector.broadcast %cst_183 : f32 to vector<1x1xf32>
    %487 = arith.mulf %485, %486 : vector<1x1xf32>
    %488 = arith.addf %451, %487 : vector<1x1xf32>
    %cst_184 = arith.constant 2.000000e+00 : f32
    %489 = vector.broadcast %cst_184 : f32 to vector<1x1xf32>
    %490 = arith.mulf %488, %489 : vector<1x1xf32>
    %c0_185 = arith.constant 0 : index
    %c0_186 = arith.constant 0 : index
    %491 = vector.load %arg17[%c0_185, %c0_186] : memref<1x1xf32, #tpu.memory_space<vmem>>, vector<1x1xf32>
    tpu.vector_store %arg17[%c0_185, %c0_186], %490 {strides = array<i32>} : memref<1x1xf32, #tpu.memory_space<vmem>>, vector<1x1xf32>,
    return
  }
}

</mosaic_0001>

<bundles_post_ra>
// kernel: twoenc_forward.1
= control target key start
LH: loop header
LB: loop body
LE: loop exit
PB: predicated region body
PF: predicated region fallthrough
CT: control target
= control target key end

     0   :  { %s9540_s0 = inlined_call_operand.<no memory space> [shape: f32[1], index: 0, kind: input, shape index: {}]   ;;  %s9541_s1 = inlined_call_operand.vmem [shape: f32[8,1024], index: 1, kind: input, shape index: {}]   ;;  %s9542_s2 = inlined_call_operand.vmem [shape: f32[8,1024], index: 2, kind: input, shape index: {}]   ;;  %s9543_s3 = inlined_call_operand.vmem [shape: f32[1024,128], index: 3, kind: input, shape index: {}]   ;;  %s9544_s4 = inlined_call_operand.vmem [shape: f32[128,256], index: 4, kind: input, shape index: {}]   ;;  %s9545_s5 = inlined_call_operand.vmem [shape: f32[256,256], index: 5, kind: input, shape index: {}]   ;;  %s9546_s6 = inlined_call_operand.vmem [shape: f32[256,128], index: 6, kind: input, shape index: {}]   ;;  %s9547_s7 = inlined_call_operand.vmem [shape: f32[1024,128], index: 7, kind: input, shape index: {}, may-alias: {7,13}]   ;;  %s9548_s8 = inlined_call_operand.vmem [shape: f32[128,256], index: 8, kind: input, shape index: {}, may-alias: {8,14}]   ;;  %s9549_s9 = inlined_call_operand.vmem [shape: f32[256,256], index: 9, kind: input, shape index: {}, may-alias: {9,15}]   ;;  %s9550_s10 = inlined_call_operand.vmem [shape: f32[256,128], index: 10, kind: input, shape index: {}, may-alias: {10,16}]   ;;  %s9551_s11 = inlined_call_operand.hbm [shape: f32[128,256], index: 11, kind: input, shape index: {}]   ;;  %s9552_s12 = inlined_call_operand.hbm [shape: f32[256,128], index: 12, kind: input, shape index: {}]   ;;  %s9553_s13 = inlined_call_operand.vmem [shape: f32[1024,128], index: 13, kind: output, shape index: {0}, may-alias: {7,13}]   ;;  %s9554_s14 = inlined_call_operand.vmem [shape: f32[128,256], index: 14, kind: output, shape index: {1}, may-alias: {8,14}]   ;;  %s9555_s15 = inlined_call_operand.vmem [shape: f32[256,256], index: 15, kind: output, shape index: {2}, may-alias: {9,15}]   ;;  %s9556_s16 = inlined_call_operand.vmem [shape: f32[256,128], index: 16, kind: output, shape index: {3}, may-alias: {10,16}]   ;;  %s9557_s17 = inlined_call_operand.hbm [shape: f32[1,1], index: 17, kind: output, shape index: {4}]  }
   0x1   :  { %9742 = sst [smem:[#allocation114_spill]] %s9540_s0 }
   0x2   :  { %9743 = sst [smem:[#allocation115_spill]] %s9541_s1 }
   0x3   :  { %24 = vsyncpa [#allocation4], 0 }
   0x4   :  { %25 = vsyncpa [#allocation7], 0 }
   0x5   :  { %26 = vsyncpa [#allocation5], 0  ;;  %s53_s26 = sshll.u32 %s9551_s11, 4  ;;  %s4321_s27 = smov [#allocation3]   ;;  %s54_s26 = int_to_ptr.hbm [resolvable:$true] %s53_s26 }
   0x6   :  { %s55_s28 = sshll.u32 %s4321_s27, 4  ;;  %s66_s30 = sshll.u32 %s9552_s12, 4  ;;  %s56_s28 = int_to_ptr.vmem [resolvable:$true] %s55_s28  ;;  %s67_s30 = int_to_ptr.hbm [resolvable:$true] %s66_s30 }
   0x7   :  { %s4322_s18 = smov 256   ;;  %s4323_s19 = smov 16  }
   0x8   :  { %61 = dma.hbm_to_vmem [thread:$0]  %s54_s26, 4096, %s56_s28, [#allocation4], %s4322_s18, %s4322_s18, %s4323_s19  }
   0x9   :  { %s4324_s1 = smov [#allocation6]   ;;  %s4325_s21 = smov 128  }
   0xa   :  { %s68_s20 = sshll.u32 %s4324_s1, 4  ;;  %s4326_s22 = smov 8   ;;  %s69_s20 = int_to_ptr.vmem [resolvable:$true] %s68_s20 }
   0xb   :  { %74 = dma.hbm_to_vmem [thread:$0]  %s67_s30, 4096, %s69_s20, [#allocation7], %s4325_s21, %s4325_s21, %s4326_s22  }
   0xc   :  { %4315 = dma.done.wait [#allocation4], 4096  }
   0xd   :  { %4316 = vsyncadd [#allocation4], 4294963200 }
   0xe   :  { %4317 = dma.done.wait [#allocation7], 4096  }
   0xf   :  { %4318 = vsyncadd [#allocation7], 4294963200  ;;  %v1653_v0 = vld [vmem:[%s9543_s3 + $0x70] sm:$0xff]  ;;  %v1654_v1 = vld [vmem:[%s9543_s3 + $0x78] sm:$0xff]  ;;  %s9750_s30 = sld [smem:[#allocation115_spill]]  ;;  %s4146_s28 = sshll.u32 %s9557_s17, 4  ;;  %s4147_s28 = int_to_ptr.hbm [resolvable:$true] %s4146_s28 }
  0x10   :  { %v1669_v2 = vld [vmem:[%s9543_s3 + $0xf0] sm:$0xff]  ;;  %v4434_v3 = vpack.c.bf16 %v1654_v1, %v1653_v0  ;;  %v1670_v4 = vld [vmem:[%s9543_s3 + $0xf8] sm:$0xff]  ;;  %v1651_v11 = vld [vmem:[%s9543_s3 + $0x60] sm:$0xff]  ;;  %s9947_s29 = sld [smem:[#allocation114_spill]] }
  0x11   :  { %v1685_v5 = vld [vmem:[%s9543_s3 + $0x170] sm:$0xff]  ;;  %v1686_v6 = vld [vmem:[%s9543_s3 + $0x178] sm:$0xff]  ;;  %v4445_v7 = vpack.c.bf16 %v1670_v4, %v1669_v2  ;;  %v1652_v13 = vld [vmem:[%s9543_s3 + $0x68] sm:$0xff] }
  0x12   :  { %v4447_v8 = vpack.c.bf16 %v1686_v6, %v1685_v5  ;;  %v1701_v9 = vld [vmem:[%s9543_s3 + $0x1f0] sm:$0xff]  ;;  %v1702_v10 = vld [vmem:[%s9543_s3 + $0x1f8] sm:$0xff]  ;;  %1839 = vmatpush.bf16.msra.mxu0 %v4434_v3  ;;  %v1667_v14 = vld [vmem:[%s9543_s3 + $0xe0] sm:$0xff]  ;;  %v4472_v16 = vpack.c.bf16 %v1652_v13, %v1651_v11 }
  0x13   :  { %v4459_v12 = vpack.c.bf16 %v1702_v10, %v1701_v9  ;;  %v1668_v15 = vld [vmem:[%s9543_s3 + $0xe8] sm:$0xff]  ;;  %1852 = vmatpush.bf16.msra.mxu1 %v4445_v7  ;;  %v1683_v18 = vld [vmem:[%s9543_s3 + $0x160] sm:$0xff]  ;;  %v1649_v23 = vld [vmem:[%s9543_s3 + $0x50] sm:$0xff] }
  0x14   :  { %1865 = vmatpush.bf16.msra.mxu2 %v4447_v8  ;;  %v4474_v17 = vpack.c.bf16 %v1668_v15, %v1667_v14  ;;  %v1684_v19 = vld [vmem:[%s9543_s3 + $0x168] sm:$0xff]  ;;  %v1699_v20 = vld [vmem:[%s9543_s3 + $0x1e0] sm:$0xff]  ;;  %v1650_v24 = vld [vmem:[%s9543_s3 + $0x58] sm:$0xff] }
  0x15   :  { %1878 = vmatpush.bf16.msra.mxu3 %v4459_v12  ;;  %v4486_v21 = vpack.c.bf16 %v1684_v19, %v1683_v18  ;;  %v1700_v22 = vld [vmem:[%s9543_s3 + $0x1e8] sm:$0xff]  ;;  %v1665_v26 = vld [vmem:[%s9543_s3 + $0xd0] sm:$0xff]  ;;  %v1666_v27 = vld [vmem:[%s9543_s3 + $0xd8] sm:$0xff]  ;;  %v4509_v29 = vpack.c.bf16 %v1650_v24, %v1649_v23 }
  0x16   :  { %v4497_v25 = vpack.c.bf16 %v1700_v22, %v1699_v20  ;;  %v1681_v28 = vld [vmem:[%s9543_s3 + $0x150] sm:$0xff]  ;;  %1840 = vmatpush.bf16.msra.mxu0 %v4472_v16  ;;  %v1682_v30 = vld [vmem:[%s9543_s3 + $0x158] sm:$0xff]  ;;  %v4522_v33 = vpack.c.bf16 %v1666_v27, %v1665_v26  ;;  %v1647_v35 = vld [vmem:[%s9543_s3 + $0x40] sm:$0xff]  ;;  %s84_s0 = ssub.f32 1.0, %s9947_s29 }
  0x17   :  { %v1697_v31 = vld [vmem:[%s9543_s3 + $0x1d0] sm:$0xff]  ;;  %v1698_v32 = vld [vmem:[%s9543_s3 + $0x1d8] sm:$0xff]  ;;  %1853 = vmatpush.bf16.msra.mxu1 %v4474_v17  ;;  %v4524_v34 = vpack.c.bf16 %v1682_v30, %v1681_v28  ;;  %v1648_v36 = vld [vmem:[%s9543_s3 + $0x48] sm:$0xff] }
  0x18   :  { %1866 = vmatpush.bf16.msra.mxu2 %v4486_v21  ;;  %v1663_v37 = vld [vmem:[%s9543_s3 + $0xc0] sm:$0xff]  ;;  %v4536_v38 = vpack.c.bf16 %v1698_v32, %v1697_v31  ;;  %v1664_v39 = vld [vmem:[%s9543_s3 + $0xc8] sm:$0xff]  ;;  %v4554_v44 = vpack.c.bf16 %v1648_v36, %v1647_v35  ;;  %v1645_v47 = vld [vmem:[%s9543_s3 + $0x30] sm:$0xff] }
  0x19   :  { %1879 = vmatpush.bf16.msra.mxu3 %v4497_v25  ;;  %v1679_v40 = vld [vmem:[%s9543_s3 + $0x140] sm:$0xff]  ;;  %v1680_v41 = vld [vmem:[%s9543_s3 + $0x148] sm:$0xff]  ;;  %v4558_v45 = vpack.c.bf16 %v1664_v39, %v1663_v37  ;;  %v1646_v48 = vld [vmem:[%s9543_s3 + $0x38] sm:$0xff] }
  0x1a   :  { %v1695_v42 = vld [vmem:[%s9543_s3 + $0x1c0] sm:$0xff]  ;;  %v1696_v43 = vld [vmem:[%s9543_s3 + $0x1c8] sm:$0xff]  ;;  %1841 = vmatpush.bf16.msra.mxu0 %v4509_v29  ;;  %v4560_v46 = vpack.c.bf16 %v1680_v41, %v1679_v40  ;;  %v1661_v49 = vld [vmem:[%s9543_s3 + $0xb0] sm:$0xff]  ;;  %v4590_v56 = vpack.c.bf16 %v1646_v48, %v1645_v47 }
  0x1b   :  { %1854 = vmatpush.bf16.msra.mxu1 %v4522_v33  ;;  %v4572_v50 = vpack.c.bf16 %v1696_v43, %v1695_v42  ;;  %v1662_v51 = vld [vmem:[%s9543_s3 + $0xb8] sm:$0xff]  ;;  %v1677_v52 = vld [vmem:[%s9543_s3 + $0x130] sm:$0xff]  ;;  %v1643_v59 = vld [vmem:[%s9543_s3 + $0x20] sm:$0xff] }
  0x1c   :  { %1867 = vmatpush.bf16.msra.mxu2 %v4524_v34  ;;  %v1678_v53 = vld [vmem:[%s9543_s3 + $0x138] sm:$0xff]  ;;  %v1693_v54 = vld [vmem:[%s9543_s3 + $0x1b0] sm:$0xff]  ;;  %v4594_v57 = vpack.c.bf16 %v1662_v51, %v1661_v49  ;;  %v1644_v60 = vld [vmem:[%s9543_s3 + $0x28] sm:$0xff] }
  0x1d   :  { %1880 = vmatpush.bf16.msra.mxu3 %v4536_v38  ;;  %v1694_v55 = vld [vmem:[%s9543_s3 + $0x1b8] sm:$0xff]  ;;  %v4596_v58 = vpack.c.bf16 %v1678_v53, %v1677_v52  ;;  %v1659_v61 = vld [vmem:[%s9543_s3 + $0xa0] sm:$0xff]  ;;  %v1660_v63 = vld [vmem:[%s9543_s3 + $0xa8] sm:$0xff]  ;;  %v4626_v5 = vpack.c.bf16 %v1644_v60, %v1643_v59 }
  0x1e   :  { %1842 = vmatpush.bf16.msra.mxu0 %v4554_v44  ;;  %v4608_v62 = vpack.c.bf16 %v1694_v55, %v1693_v54  ;;  %v1675_v0 = vld [vmem:[%s9543_s3 + $0x120] sm:$0xff]  ;;  %v1676_v1 = vld [vmem:[%s9543_s3 + $0x128] sm:$0xff]  ;;  %v4630_v6 = vpack.c.bf16 %v1660_v63, %v1659_v61  ;;  %v1641_v10 = vld [vmem:[%s9543_s3 + $0x10] sm:$0xff] }
  0x1f   :  { %1855 = vmatpush.bf16.msra.mxu1 %v4558_v45  ;;  %v1691_v2 = vld [vmem:[%s9543_s3 + $0x1a0] sm:$0xff]  ;;  %v1692_v4 = vld [vmem:[%s9543_s3 + $0x1a8] sm:$0xff]  ;;  %v4632_v9 = vpack.c.bf16 %v1676_v1, %v1675_v0  ;;  %v1642_v11 = vld [vmem:[%s9543_s3 + $0x18] sm:$0xff] }
  0x20   :  { %1868 = vmatpush.bf16.msra.mxu2 %v4560_v46  ;;  %9744 = vst [vmem:[#allocation12_spill] sm:$0xff] %v4608_v62  ;;  %v1657_v13 = vld [vmem:[%s9543_s3 + $0x90] sm:$0xff]  ;;  %v4644_v14 = vpack.c.bf16 %v1692_v4, %v1691_v2  ;;  %v1658_v15 = vld [vmem:[%s9543_s3 + $0x98] sm:$0xff]  ;;  %v4662_v23 = vpack.c.bf16 %v1642_v11, %v1641_v10  ;;  %v1639_v24 = vld [vmem:[%s9543_s3] sm:$0xff] }
  0x21   :  { %1881 = vmatpush.bf16.msra.mxu3 %v4572_v50  ;;  %9745 = vst [vmem:[#allocation13_spill] sm:$0xff] %v4632_v9  ;;  %v1673_v18 = vld [vmem:[%s9543_s3 + $0x110] sm:$0xff]  ;;  %v1674_v19 = vld [vmem:[%s9543_s3 + $0x118] sm:$0xff]  ;;  %v1640_v26 = vld [vmem:[%s9543_s3 + $0x8] sm:$0xff]  ;;  %v4672_v27 = vpack.c.bf16 %v1658_v15, %v1657_v13 }
  0x22   :  { %1843 = vmatpush.bf16.msra.mxu0 %v4590_v56  ;;  %9746 = vst [vmem:[#allocation14_spill] sm:$0xff] %v4644_v14  ;;  %v1689_v20 = vld [vmem:[%s9543_s3 + $0x190] sm:$0xff]  ;;  %v1690_v22 = vld [vmem:[%s9543_s3 + $0x198] sm:$0xff]  ;;  %v4674_v28 = vpack.c.bf16 %v1674_v19, %v1673_v18  ;;  %v1655_v30 = vld [vmem:[%s9543_s3 + $0x80] sm:$0xff]  ;;  %v4707_v43 = vpack.c.bf16 %v1640_v26, %v1639_v24 }
  0x23   :  { %1856 = vmatpush.bf16.msra.mxu1 %v4594_v57  ;;  %v1656_v31 = vld [vmem:[%s9543_s3 + $0x88] sm:$0xff]  ;;  %v1671_v32 = vld [vmem:[%s9543_s3 + $0x100] sm:$0xff]  ;;  %v4686_v35 = vpack.c.bf16 %v1690_v22, %v1689_v20  ;;  %v1717_v40 = vld [vmem:[%s9543_s3 + $0x270] sm:$0xff] }
  0x24   :  { %1869 = vmatpush.bf16.msra.mxu2 %v4596_v58  ;;  %9747 = vst [vmem:[#allocation15_spill] sm:$0xff] %v4674_v28  ;;  %v1672_v36 = vld [vmem:[%s9543_s3 + $0x108] sm:$0xff]  ;;  %v1687_v37 = vld [vmem:[%s9543_s3 + $0x180] sm:$0xff]  ;;  %v1718_v41 = vld [vmem:[%s9543_s3 + $0x278] sm:$0xff]  ;;  %v4720_v51 = vpack.c.bf16 %v1656_v31, %v1655_v30 }
  0x25   :  { %1882 = vmatpush.bf16.msra.mxu3 %v4608_v62  ;;  %9748 = vst [vmem:[#allocation16_spill] sm:$0xff] %v4686_v35  ;;  %v1688_v39 = vld [vmem:[%s9543_s3 + $0x188] sm:$0xff]  ;;  %v1733_v42 = vld [vmem:[%s9543_s3 + $0x2f0] sm:$0xff]  ;;  %v1734_v47 = vld [vmem:[%s9543_s3 + $0x2f8] sm:$0xff]  ;;  %v4722_v52 = vpack.c.bf16 %v1672_v36, %v1671_v32  ;;  %v4736_v60 = vpack.c.bf16 %v1718_v41, %v1717_v40 }
  0x26   :  { %1844 = vmatpush.bf16.msra.mxu0 %v4626_v5  ;;  %v1749_v48 = vld [vmem:[%s9543_s3 + $0x370] sm:$0xff]  ;;  %v1750_v49 = vld [vmem:[%s9543_s3 + $0x378] sm:$0xff]  ;;  %v4734_v59 = vpack.c.bf16 %v1688_v39, %v1687_v37  ;;  %v1715_v61 = vld [vmem:[%s9543_s3 + $0x260] sm:$0xff]  ;;  %v4747_v1 = vpack.c.bf16 %v1734_v47, %v1733_v42 }
  0x27   :  { %1857 = vmatpush.bf16.msra.mxu1 %v4630_v6  ;;  %9749 = vst [vmem:[#allocation17_spill] sm:$0xff] %v4722_v52  ;;  %v1765_v53 = vld [vmem:[%s9543_s3 + $0x3f0] sm:$0xff]  ;;  %v1766_v54 = vld [vmem:[%s9543_s3 + $0x3f8] sm:$0xff]  ;;  %v1716_v63 = vld [vmem:[%s9543_s3 + $0x268] sm:$0xff]  ;;  %v4749_v2 = vpack.c.bf16 %v1750_v49, %v1749_v48 }
  0x28   :  { %1870 = vmatpush.bf16.msra.mxu2 %v4632_v9  ;;  %v1625_v55 = vld [vmem:[%s9750_s30 + $0x10] sm:$0xff]  ;;  %9751 = vst [vmem:[#allocation18_spill] sm:$0xff] %v4734_v59  ;;  %v1623_v0 = vld [vmem:[%s9750_s30] sm:$0xff]  ;;  %v1626_v10 = vld [vmem:[%s9750_s30 + $0x18] sm:$0xff]  ;;  %v4761_v13 = vpack.c.bf16 %v1766_v54, %v1765_v53  ;;  %v4788_v31 = vpack.c.bf16 %v1716_v63, %v1715_v61 }
  0x29   :  { %1883 = vmatpush.bf16.msra.mxu3 %v4644_v14  ;;  %9752 = vst [vmem:[#allocation19_spill] sm:$0xff] %v4749_v2  ;;  %v1731_v4 = vld [vmem:[%s9543_s3 + $0x2e0] sm:$0xff]  ;;  %v1624_v11 = vld [vmem:[%s9750_s30 + $0x8] sm:$0xff]  ;;  %v4772_v20 = vpack.c.bf16 %v1625_v55, %v1625_v55  ;;  %v4782_v26 = vpack.c.bf16 %v1623_v0, %v1623_v0  ;;  %v4784_v30 = vpack.c.bf16 %v1626_v10, %v1626_v10  ;;  %v1713_v39 = vld [vmem:[%s9543_s3 + $0x250] sm:$0xff] }
  0x2a   :  { %1845 = vmatpush.bf16.msra.mxu0 %v4662_v23  ;;  %9753 = vst [vmem:[#allocation20_spill] sm:$0xff] %v4761_v13  ;;  %v1732_v15 = vld [vmem:[%s9543_s3 + $0x2e8] sm:$0xff]  ;;  %v1747_v18 = vld [vmem:[%s9543_s3 + $0x360] sm:$0xff]  ;;  %v4790_v32 = vpack.c.bf16 %v1624_v11, %v1624_v11  ;;  %v1714_v40 = vld [vmem:[%s9543_s3 + $0x258] sm:$0xff] }
  0x2b   :  { %1858 = vmatpush.bf16.msra.mxu1 %v4672_v27  ;;  %v1748_v19 = vld [vmem:[%s9543_s3 + $0x368] sm:$0xff]  ;;  %9754 = vst [vmem:[#allocation21_spill] sm:$0xff] %v4772_v20  ;;  %v1763_v22 = vld [vmem:[%s9543_s3 + $0x3e0] sm:$0xff]  ;;  %v4794_v36 = vpack.c.bf16 %v1732_v15, %v1731_v4  ;;  %v1729_v41 = vld [vmem:[%s9543_s3 + $0x2d0] sm:$0xff]  ;;  %v4829_v55 = vpack.c.bf16 %v1714_v40, %v1713_v39 }
  0x2c   :  { %1871 = vmatpush.bf16.msra.mxu2 %v4674_v28  ;;  %v1764_v24 = vld [vmem:[%s9543_s3 + $0x3e8] sm:$0xff]  ;;  %9755 = vst [vmem:[#allocation22_spill] sm:$0xff] %v4782_v26  ;;  %v4796_v37 = vpack.c.bf16 %v1748_v19, %v1747_v18  ;;  %v1730_v47 = vld [vmem:[%s9543_s3 + $0x2d8] sm:$0xff]  ;;  %v1745_v48 = vld [vmem:[%s9543_s3 + $0x350] sm:$0xff] }
  0x2d   :  { %1884 = vmatpush.bf16.msra.mxu3 %v4686_v35  ;;  %9756 = vst [vmem:[#allocation23_spill] sm:$0xff] %v4784_v30  ;;  %v4808_v42 = vpack.c.bf16 %v1764_v24, %v1763_v22  ;;  %v1746_v49 = vld [vmem:[%s9543_s3 + $0x358] sm:$0xff]  ;;  %v1761_v53 = vld [vmem:[%s9543_s3 + $0x3d0] sm:$0xff]  ;;  %v4834_v61 = vpack.c.bf16 %v1730_v47, %v1729_v41  ;;  %v1711_v0 = vld [vmem:[%s9543_s3 + $0x240] sm:$0xff] }
  0x2e   :  { %1846 = vmatpush.bf16.msra.mxu0 %v4707_v43  ;;  %9757 = vst [vmem:[#allocation24_spill] sm:$0xff] %v4790_v32  ;;  %v1762_v54 = vld [vmem:[%s9543_s3 + $0x3d8] sm:$0xff]  ;;  %v4836_v63 = vpack.c.bf16 %v1746_v49, %v1745_v48  ;;  %v1712_v4 = vld [vmem:[%s9543_s3 + $0x248] sm:$0xff]  ;;  %v1727_v10 = vld [vmem:[%s9543_s3 + $0x2c0] sm:$0xff] }
  0x2f   :  { %1859 = vmatpush.bf16.msra.mxu1 %v4720_v51  ;;  %9758 = vst [vmem:[#allocation25_spill] sm:$0xff] %v4796_v37  ;;  %v4848_v11 = vpack.c.bf16 %v1762_v54, %v1761_v53  ;;  %v1728_v15 = vld [vmem:[%s9543_s3 + $0x2c8] sm:$0xff]  ;;  %v1743_v18 = vld [vmem:[%s9543_s3 + $0x340] sm:$0xff]  ;;  %v4866_v39 = vpack.c.bf16 %v1712_v4, %v1711_v0  ;;  %v1709_v47 = vld [vmem:[%s9543_s3 + $0x230] sm:$0xff] }
  0x30   :  { %1872 = vmatpush.bf16.msra.mxu2 %v4722_v52  ;;  %9759 = vst [vmem:[#allocation26_spill] sm:$0xff] %v4808_v42  ;;  %v1744_v19 = vld [vmem:[%s9543_s3 + $0x348] sm:$0xff]  ;;  %v1759_v22 = vld [vmem:[%s9543_s3 + $0x3c0] sm:$0xff]  ;;  %v4870_v40 = vpack.c.bf16 %v1728_v15, %v1727_v10  ;;  %v1710_v48 = vld [vmem:[%s9543_s3 + $0x238] sm:$0xff] }
  0x31   :  { %1885 = vmatpush.bf16.msra.mxu3 %v4734_v59  ;;  %1847 = vmatmul.bf16.vlgmr.msra.gmra.mxu0 %v4782_v26  ;;  %9760 = vst [vmem:[#allocation27_spill] sm:$0xff] %v4836_v63  ;;  %v1760_v24 = vld [vmem:[%s9543_s3 + $0x3c8] sm:$0xff]  ;;  %v4872_v41 = vpack.c.bf16 %v1744_v19, %v1743_v18  ;;  %v1725_v49 = vld [vmem:[%s9543_s3 + $0x2b0] sm:$0xff]  ;;  %v1726_v54 = vld [vmem:[%s9543_s3 + $0x2b8] sm:$0xff]  ;;  %v4902_v18 = vpack.c.bf16 %v1710_v48, %v1709_v47 }
  0x32   :  { %1891 = vmatpush.bf16.msrb.mxu0 %v4736_v60  ;;  %1860 = vmatmul.bf16.vlgmr.msra.gmra.mxu1 %v4790_v32  ;;  %9761 = vst [vmem:[#allocation28_spill] sm:$0xff] %v4848_v11  ;;  %v4884_v53 = vpack.c.bf16 %v1760_v24, %v1759_v22  ;;  %v1741_v0 = vld [vmem:[%s9543_s3 + $0x330] sm:$0xff]  ;;  %v1742_v4 = vld [vmem:[%s9543_s3 + $0x338] sm:$0xff]  ;;  %v4906_v19 = vpack.c.bf16 %v1726_v54, %v1725_v49  ;;  %v1707_v24 = vld [vmem:[%s9543_s3 + $0x220] sm:$0xff] }
  0x33   :  { %1904 = vmatpush.bf16.msrb.mxu1 %v4747_v1  ;;  %1873 = vmatmul.bf16.vlgmr.msra.gmra.mxu2 %v4772_v20  ;;  %9762 = vst [vmem:[#allocation29_spill] sm:$0xff] %v4872_v41  ;;  %v1757_v10 = vld [vmem:[%s9543_s3 + $0x3b0] sm:$0xff]  ;;  %v1758_v15 = vld [vmem:[%s9543_s3 + $0x3b8] sm:$0xff]  ;;  %v4908_v22 = vpack.c.bf16 %v1742_v4, %v1741_v0  ;;  %v1723_v47 = vld [vmem:[%s9543_s3 + $0x2a0] sm:$0xff] }
  0x34   :  { %1917 = vmatpush.bf16.msrb.mxu2 %v4749_v2  ;;  %1886 = vmatmul.bf16.vlgmr.msra.gmra.mxu3 %v4784_v30  ;;  %9763 = vst [vmem:[#allocation30_spill] sm:$0xff] %v4884_v53  ;;  %v1708_v30 = vld [vmem:[%s9543_s3 + $0x228] sm:$0xff]  ;;  %v4920_v48 = vpack.c.bf16 %v1758_v15, %v1757_v10  ;;  %v1739_v54 = vld [vmem:[%s9543_s3 + $0x320] sm:$0xff]  ;;  %v1705_v26 = vld [vmem:[%s9543_s3 + $0x210] sm:$0xff] }
  0x35   :  { %1930 = vmatpush.bf16.msrb.mxu3 %v4761_v13  ;;  %9764 = vst [vmem:[#allocation31_spill] sm:$0xff] %v4908_v22  ;;  %v1724_v49 = vld [vmem:[%s9543_s3 + $0x2a8] sm:$0xff]  ;;  %v1755_v4 = vld [vmem:[%s9543_s3 + $0x3a0] sm:$0xff]  ;;  %v4938_v15 = vpack.c.bf16 %v1708_v30, %v1707_v24  ;;  %v1721_v30 = vld [vmem:[%s9543_s3 + $0x290] sm:$0xff] }
  0x36   :  { %1892 = vmatpush.bf16.msrb.mxu0 %v4788_v31  ;;  %9765 = vst [vmem:[#allocation32_spill] sm:$0xff] %v4920_v48  ;;  %v1740_v0 = vld [vmem:[%s9543_s3 + $0x328] sm:$0xff]  ;;  %v4942_v20 = vpack.c.bf16 %v1724_v49, %v1723_v47  ;;  %v1722_v47 = vld [vmem:[%s9543_s3 + $0x298] sm:$0xff]  ;;  %v1737_v49 = vld [vmem:[%s9543_s3 + $0x310] sm:$0xff] }
  0x37   :  { %1905 = vmatpush.bf16.msrb.mxu1 %v4794_v36  ;;  %v1756_v10 = vld [vmem:[%s9543_s3 + $0x3a8] sm:$0xff]  ;;  %v4944_v32 = vpack.c.bf16 %v1740_v0, %v1739_v54  ;;  %v1738_v54 = vld [vmem:[%s9543_s3 + $0x318] sm:$0xff]  ;;  %v1753_v0 = vld [vmem:[%s9543_s3 + $0x390] sm:$0xff] }
  0x38   :  { %1918 = vmatpush.bf16.msrb.mxu2 %v4796_v37  ;;  %v4956_v24 = vpack.c.bf16 %v1756_v10, %v1755_v4  ;;  %v1754_v4 = vld [vmem:[%s9543_s3 + $0x398] sm:$0xff]  ;;  %v1956_v13 = vld [vmem:[%s9544_s4 + $0x68] sm:$0xff]  ;;  %v1953_v2 = vld [vmem:[%s9544_s4 + $0x50] sm:$0xff] }
  0x39   :  { %1931 = vmatpush.bf16.msrb.mxu3 %v4808_v42  ;;  %9766 = vst [vmem:[#allocation33_spill] sm:$0xff] %v4944_v32  ;;  %v1628_v42 = vld [vmem:[%s9750_s30 + $0x28] sm:$0xff] }
  0x3a   :  { %1893 = vmatpush.bf16.msrb.mxu0 %v4829_v55  ;;  %9767 = vst [vmem:[#allocation34_spill] sm:$0xff] %v4956_v24 }
  0x3b   :  { %1906 = vmatpush.bf16.msrb.mxu1 %v4834_v61 }
  0x3c   :  { %1919 = vmatpush.bf16.msrb.mxu2 %v4836_v63 }
  0x3d   :  { %1932 = vmatpush.bf16.msrb.mxu3 %v4848_v11  ;;  %v1704_v11 = vld [vmem:[%s9543_s3 + $0x208] sm:$0xff] }
  0x3e   :  { %1894 = vmatpush.bf16.msrb.mxu0 %v4866_v39 }
  0x3f   :  { %1907 = vmatpush.bf16.msrb.mxu1 %v4870_v40 }
  0x40   :  { %1920 = vmatpush.bf16.msrb.mxu2 %v4872_v41  ;;  %v1703_v41 = vld [vmem:[%s9543_s3 + $0x200] sm:$0xff] }
  0x41   :  { %1933 = vmatpush.bf16.msrb.mxu3 %v4884_v53  ;;  %v1706_v53 = vld [vmem:[%s9543_s3 + $0x218] sm:$0xff] }
  0x42   :  { %1895 = vmatpush.bf16.msrb.mxu0 %v4902_v18  ;;  %v4974_v10 = vpack.c.bf16 %v1706_v53, %v1705_v26  ;;  %v1719_v26 = vld [vmem:[%s9543_s3 + $0x280] sm:$0xff]  ;;  %v4992_v53 = vpack.c.bf16 %v1754_v4, %v1753_v0  ;;  %v1752_v0 = vld [vmem:[%s9543_s3 + $0x388] sm:$0xff]  ;;  %v5010_v4 = vpack.c.bf16 %v1704_v11, %v1703_v41  ;;  %v1629_v11 = vld [vmem:[%s9750_s30 + $0x30] sm:$0xff] }
  0x43   :  { %1908 = vmatpush.bf16.msrb.mxu1 %v4906_v19 }
  0x44   :  { %1921 = vmatpush.bf16.msrb.mxu2 %v4908_v22  ;;  %v4980_v22 = vpack.c.bf16 %v1738_v54, %v1737_v49  ;;  %9769 = vst [vmem:[#allocation36_spill] sm:$0xff] %v4992_v53  ;;  %v1736_v49 = vld [vmem:[%s9543_s3 + $0x308] sm:$0xff]  ;;  %v1751_v54 = vld [vmem:[%s9543_s3 + $0x380] sm:$0xff] }
  0x45   :  { %1934 = vmatpush.bf16.msrb.mxu3 %v4920_v48  ;;  %v4978_v48 = vpack.c.bf16 %v1722_v47, %v1721_v30  ;;  %v1720_v30 = vld [vmem:[%s9543_s3 + $0x288] sm:$0xff]  ;;  %v1735_v47 = vld [vmem:[%s9543_s3 + $0x300] sm:$0xff]  ;;  %v5028_v41 = vpack.c.bf16 %v1752_v0, %v1751_v54  ;;  %v1974_v0 = vld [vmem:[%s9544_s4 + $0xf8] sm:$0xff] }
  0x46   :  { %1896 = vmatpush.bf16.msrb.mxu0 %v4938_v15  ;;  %9768 = vst [vmem:[#allocation35_spill] sm:$0xff] %v4980_v22  ;;  %v5019_v63 = vpack.c.bf16 %v1736_v49, %v1735_v47  ;;  %v5038_v47 = vpack.c.bf16 %v1629_v11, %v1629_v11 }
  0x47   :  { %1909 = vmatpush.bf16.msrb.mxu1 %v4942_v20  ;;  %9771 = vst [vmem:[#allocation38_spill] sm:$0xff] %v5028_v41 }
  0x48   :  { %1922 = vmatpush.bf16.msrb.mxu2 %v4944_v32  ;;  %v5017_v32 = vpack.c.bf16 %v1720_v30, %v1719_v26  ;;  %9770 = vst [vmem:[#allocation37_spill] sm:$0xff] %v5019_v63  ;;  %v5036_v30 = vpack.c.bf16 %v1628_v42, %v1628_v42  ;;  %v1971_v42 = vld [vmem:[%s9544_s4 + $0xe0] sm:$0xff] }
  0x49   :  { %1935 = vmatpush.bf16.msrb.mxu3 %v4956_v24  ;;  %v1627_v24 = vld [vmem:[%s9750_s30 + $0x20] sm:$0xff]  ;;  %9774 = vst [vmem:[#allocation41_spill] sm:$0xff] %v5038_v47 }
  0x4a   :  { %1897 = vmatpush.bf16.msrb.mxu0 %v4974_v10  ;;  %v5033_v26 = vpack.c.bf16 %v1627_v24, %v1627_v24  ;;  %9773 = vst [vmem:[#allocation40_spill] sm:$0xff] %v5036_v30  ;;  %v1973_v24 = vld [vmem:[%s9544_s4 + $0xf0] sm:$0xff] }
  0x4b   :  { %1910 = vmatpush.bf16.msrb.mxu1 %v4978_v48  ;;  %v5058_v54 = vpack.c.bf16 %v1973_v24, %v1971_v42  ;;  %v1970_v24 = vld [vmem:[%s9544_s4 + $0xd8] sm:$0xff] }
  0x4c   :  { %1923 = vmatpush.bf16.msrb.mxu2 %v4980_v22  ;;  %v1630_v22 = vld [vmem:[%s9750_s30 + $0x38] sm:$0xff]  ;;  %9772 = vst [vmem:[#allocation39_spill] sm:$0xff] %v5033_v26 }
  0x4d   :  { %1936 = vmatpush.bf16.msrb.mxu3 %v4992_v53  ;;  %v5042_v49 = vpack.c.bf16 %v1630_v22, %v1630_v22  ;;  %v1972_v22 = vld [vmem:[%s9544_s4 + $0xe8] sm:$0xff]  ;;  %9776 = vst [vmem:[#allocation43_spill] sm:$0xff] %v5058_v54 }
  0x4e   :  { %1898 = vmatpush.bf16.msrb.mxu0 %v5010_v4  ;;  %v5063_v11 = vpack.c.bf16 %v1974_v0, %v1972_v22  ;;  %v1963_v0 = vld [vmem:[%s9544_s4 + $0xa0] sm:$0xff]  ;;  %v1960_v53 = vld [vmem:[%s9544_s4 + $0x88] sm:$0xff] }
  0x4f   :  { %1911 = vmatpush.bf16.msrb.mxu1 %v5017_v32  ;;  %9775 = vst [vmem:[#allocation42_spill] sm:$0xff] %v5042_v49 }
  0x50   :  { %1924 = vmatpush.bf16.msrb.mxu2 %v5019_v63  ;;  %9777 = vst [vmem:[#allocation44_spill] sm:$0xff] %v5063_v11 }
  0x51   :  { %1937 = vmatpush.bf16.msrb.mxu3 %v5028_v41  ;;  %1899 = vmatmul.bf16.vlgmr.msrb.gmra.mxu0 %v5033_v26  ;;  %v1965_v26 = vld [vmem:[%s9544_s4 + $0xb0] sm:$0xff] }
  0x52   :  { %1912 = vmatmul.bf16.vlgmr.msrb.gmra.mxu1 %v5036_v30  ;;  %v1968_v30 = vld [vmem:[%s9544_s4 + $0xc8] sm:$0xff]  ;;  %1992 = vmatpush.bf16.msra.mxu0 %v5058_v54  ;;  %v1961_v41 = vld [vmem:[%s9544_s4 + $0x90] sm:$0xff] }
  0x53   :  { %1925 = vmatmul.bf16.vlgmr.msrb.gmra.mxu2 %v5038_v47  ;;  %v1969_v47 = vld [vmem:[%s9544_s4 + $0xd0] sm:$0xff]  ;;  %2005 = vmatpush.bf16.msra.mxu1 %v5063_v11  ;;  %v5081_v22 = vpack.c.bf16 %v1970_v24, %v1968_v30  ;;  %v1966_v30 = vld [vmem:[%s9544_s4 + $0xb8] sm:$0xff]  ;;  %v1959_v24 = vld [vmem:[%s9544_s4 + $0x80] sm:$0xff] }
  0x54   :  { %1938 = vmatmul.bf16.vlgmr.msrb.gmra.mxu3 %v5042_v49  ;;  %v1967_v49 = vld [vmem:[%s9544_s4 + $0xc0] sm:$0xff] }
  0x55   :  { %v5075_v42 = vpack.c.bf16 %v1969_v47, %v1967_v49  ;;  %9779 = vst [vmem:[#allocation46_spill] sm:$0xff] %v5081_v22  ;;  %v1964_v47 = vld [vmem:[%s9544_s4 + $0xa8] sm:$0xff]  ;;  %v5094_v49 = vpack.c.bf16 %v1965_v26, %v1963_v0  ;;  %v1962_v26 = vld [vmem:[%s9544_s4 + $0x98] sm:$0xff]  ;;  %v5114_v0 = vpack.c.bf16 %v1961_v41, %v1959_v24 }
  0x56   :  { %v5105_v63 = vpack.c.bf16 %v1966_v30, %v1964_v47  ;;  %v5117_v37 = vpack.c.bf16 %v1962_v26, %v1960_v53  ;;  %v1955_v47 = vld [vmem:[%s9544_s4 + $0x60] sm:$0xff]  ;;  %v1957_v30 = vld [vmem:[%s9544_s4 + $0x70] sm:$0xff]  ;;  %v1958_v41 = vld [vmem:[%s9544_s4 + $0x78] sm:$0xff] }
  0x57   :  { %9778 = vst [vmem:[#allocation45_spill] sm:$0xff] %v5075_v42  ;;  %1993 = vmatpush.bf16.msra.mxu0 %v5075_v42  ;;  %2006 = vmatpush.bf16.msra.mxu1 %v5081_v22  ;;  %v5132_v53 = vpack.c.bf16 %v1957_v30, %v1955_v47  ;;  %v5135_v24 = vpack.c.bf16 %v1958_v41, %v1956_v13  ;;  %v1951_v26 = vld [vmem:[%s9544_s4 + $0x40] sm:$0xff]  ;;  %v1952_v47 = vld [vmem:[%s9544_s4 + $0x48] sm:$0xff]  ;;  %v1954_v13 = vld [vmem:[%s9544_s4 + $0x58] sm:$0xff] }
  0x58   :  { %9780 = vst [vmem:[#allocation47_spill] sm:$0xff] %v5094_v49  ;;  %v5148_v30 = vpack.c.bf16 %v1953_v2, %v1951_v26  ;;  %v5153_v41 = vpack.c.bf16 %v1954_v13, %v1952_v47  ;;  %v1949_v2 = vld [vmem:[%s9544_s4 + $0x30] sm:$0xff]  ;;  %v1948_v26 = vld [vmem:[%s9544_s4 + $0x28] sm:$0xff]  ;;  %v1950_v13 = vld [vmem:[%s9544_s4 + $0x38] sm:$0xff] }
  0x59   :  { %9781 = vst [vmem:[#allocation48_spill] sm:$0xff] %v5105_v63 }
  0x5a   :  { %9782 = vst [vmem:[#allocation49_spill] sm:$0xff] %v5114_v0 }
  0x5b   :  { %1994 = vmatpush.bf16.msra.mxu0 %v5094_v49  ;;  %2007 = vmatpush.bf16.msra.mxu1 %v5105_v63  ;;  %9783 = vst [vmem:[#allocation50_spill] sm:$0xff] %v5117_v37 }
  0x5c   :  { %9784 = vst [vmem:[#allocation51_spill] sm:$0xff] %v5132_v53 }
  0x5d   :  { %9785 = vst [vmem:[#allocation52_spill] sm:$0xff] %v5135_v24 }
  0x5e   :  { %9786 = vst [vmem:[#allocation53_spill] sm:$0xff] %v5148_v30 }
  0x5f   :  { %1995 = vmatpush.bf16.msra.mxu0 %v5114_v0  ;;  %2008 = vmatpush.bf16.msra.mxu1 %v5117_v37  ;;  %9787 = vst [vmem:[#allocation54_spill] sm:$0xff] %v5153_v41  ;;  %v1947_v37 = vld [vmem:[%s9544_s4 + $0x20] sm:$0xff] }
  0x60   :  { %v5166_v47 = vpack.c.bf16 %v1949_v2, %v1947_v37  ;;  %v1943_v0 = vld [vmem:[%s9544_s4] sm:$0xff]  ;;  %v1945_v37 = vld [vmem:[%s9544_s4 + $0x10] sm:$0xff]  ;;  %v1944_v2 = vld [vmem:[%s9544_s4 + $0x8] sm:$0xff] }
  0x62   :  { %9788 = vst [vmem:[#allocation55_spill] sm:$0xff] %v5166_v47 }
  0x63   :  { %1996 = vmatpush.bf16.msra.mxu0 %v5132_v53  ;;  %2009 = vmatpush.bf16.msra.mxu1 %v5135_v24 }
  0x67   :  { %1997 = vmatpush.bf16.msra.mxu0 %v5148_v30  ;;  %2010 = vmatpush.bf16.msra.mxu1 %v5153_v41  ;;  %v5171_v30 = vpack.c.bf16 %v1950_v13, %v1948_v26  ;;  %v5184_v26 = vpack.c.bf16 %v1945_v37, %v1943_v0  ;;  %v1946_v13 = vld [vmem:[%s9544_s4 + $0x18] sm:$0xff] }
  0x69   :  { %9789 = vst [vmem:[#allocation56_spill] sm:$0xff] %v5171_v30 }
  0x6a   :  { %9790 = vst [vmem:[#allocation57_spill] sm:$0xff] %v5184_v26 }
  0x6b   :  { %1998 = vmatpush.bf16.msra.mxu0 %v5166_v47  ;;  %2011 = vmatpush.bf16.msra.mxu1 %v5171_v30  ;;  %v5189_v30 = vpack.c.bf16 %v1946_v13, %v1944_v2 }
  0x6d   :  { %9791 = vst [vmem:[#allocation58_spill] sm:$0xff] %v5189_v30 }
  0x6f   :  { %1999 = vmatpush.bf16.msra.mxu0 %v5184_v26  ;;  %2012 = vmatpush.bf16.msra.mxu1 %v5189_v30 }
  0xae   :  { %v1848_v24 = vpop.f32.mrf.mxu0 }
  0xaf   :  { %v1861_v53 = vpop.f32.mrf.mxu1 }
  0xb0   :  { %v1862_v11 = vadd.f32 %v1861_v53, %v1848_v24  ;;  %v2144_v53 = vld [vmem:[%s9545_s5 + $0x1e8] sm:$0xff]  ;;  %v2146_v24 = vld [vmem:[%s9545_s5 + $0x1f8] sm:$0xff] }
  0xb6   :  { %v1874_v41 = vpop.f32.mrf.mxu2  ;;  %v1850_v47 = vpop.f32.mrf.mxu0 }
  0xb7   :  { %v1887_v63 = vpop.f32.mrf.mxu3  ;;  %v1863_v49 = vpop.f32.mrf.mxu1  ;;  %v1875_v54 = vadd.f32 %v1874_v41, %v1862_v11 }
  0xb9   :  { %v1888_v59 = vadd.f32 %v1887_v63, %v1875_v54 }
  0xbe   :  { %v1876_v22 = vpop.f32.mrf.mxu2 }
  0xbf   :  { %v1889_v42 = vpop.f32.mrf.mxu3  ;;  %v4327_v22 = vmov 8.0  }
  0xc0   :  { %4173 = vrcp.f32 %v4327_v22  ;;  %v2110_v22 = vld [vmem:[%s9545_s5 + $0xd8] sm:$0xff] }
  0xc6   :  { %v5193_v42 = vpop.eup %4173 }
  0xc7   :  { %v2031_v63 = vmul.f32 8.0, %v5193_v42  ;;  %vm2035_vm0 = vweird.f32 %v5193_v42 }
  0xc9   :  { %v2032_v41 = vsub.f32 1.0, %v2031_v63 }
  0xce   :  { %v1900_v52 = vpop.f32.mrf.mxu0 }
  0xcf   :  { %v1913_v0 = vpop.f32.mrf.mxu1  ;;  %v1901_v37 = vadd.f32 %v1900_v52, %v1888_v59  ;;  %v2111_v52 = vld [vmem:[%s9545_s5 + $0xe0] sm:$0xff]  ;;  %v2114_v59 = vld [vmem:[%s9545_s5 + $0xf8] sm:$0xff] }
  0xd1   :  { %v1914_v35 = vadd.f32 %v1913_v0, %v1901_v37  ;;  %v2107_v0 = vld [vmem:[%s9545_s5 + $0xc0] sm:$0xff]  ;;  %v2109_v37 = vld [vmem:[%s9545_s5 + $0xd0] sm:$0xff] }
  0xd6   :  { %v1926_v28 = vpop.f32.mrf.mxu2  ;;  %v1902_v2 = vpop.f32.mrf.mxu0 }
  0xd7   :  { %v1927_v14 = vadd.f32 %v1926_v28, %v1914_v35  ;;  %v1939_v9 = vpop.f32.mrf.mxu3  ;;  %v1915_v13 = vpop.f32.mrf.mxu1  ;;  %v2113_v28 = vld [vmem:[%s9545_s5 + $0xf0] sm:$0xff]  ;;  %v2112_v35 = vld [vmem:[%s9545_s5 + $0xe8] sm:$0xff]  ;;  %v2139_v2 = vld [vmem:[%s9545_s5 + $0x1c0] sm:$0xff] }
  0xd8   :  { %v5218_v11 = vpack.c.bf16 %v2114_v59, %v2112_v35  ;;  %v5241_v13 = vpack.c.bf16 %v2109_v37, %v2107_v0  ;;  %v2142_v35 = vld [vmem:[%s9545_s5 + $0x1d8] sm:$0xff]  ;;  %v2033_v0 = vmul.f32 %v5193_v42, %v2032_v41  ;;  %v2103_v37 = vld [vmem:[%s9545_s5 + $0xa0] sm:$0xff] }
  0xd9   :  { %v1940_v47 = vadd.f32 %v1939_v9, %v1927_v14  ;;  %v5205_v9 = vpack.c.bf16 %v2113_v28, %v2111_v52  ;;  %v2145_v14 = vld [vmem:[%s9545_s5 + $0x1f0] sm:$0xff] }
  0xda   :  { %9794 = vst [vmem:[#allocation61_spill] sm:$0xff] %v5218_v11  ;;  %2207 = vmatpush.bf16.msrb.mxu0 %v5218_v11 }
  0xdb   :  { %v1975_v62 = vpack.c.bf16 %v1940_v47, %v1940_v47  ;;  %9792 = vst [vmem:[#allocation59_spill] sm:$0xff] %v5205_v9  ;;  %2181 = vmatpush.bf16.msra.mxu2 %v5205_v9  ;;  %v2141_v47 = vld [vmem:[%s9545_s5 + $0x1d0] sm:$0xff] }
  0xdc   :  { %9796 = vst [vmem:[#allocation63_spill] sm:$0xff] %v5241_v13  ;;  %v5256_v28 = vpack.c.bf16 %v2141_v47, %v2139_v2  ;;  %v2105_v2 = vld [vmem:[%s9545_s5 + $0xb0] sm:$0xff]  ;;  %v2135_v47 = vld [vmem:[%s9545_s5 + $0x1a0] sm:$0xff] }
  0xdd   :  { %2000 = vmatmul.bf16.vlgmr.msra.gmra.mxu0 %v1975_v62  ;;  %2013 = vmatmul.bf16.vlgmr.msra.gmra.mxu1 %v1975_v62  ;;  %v2143_v62 = vld [vmem:[%s9545_s5 + $0x1e0] sm:$0xff] }
  0xde   :  { %v1928_v49 = vpop.f32.mrf.mxu2  ;;  %v5216_v54 = vpack.c.bf16 %v2145_v14, %v2143_v62  ;;  %9797 = vst [vmem:[#allocation64_spill] sm:$0xff] %v5256_v28  ;;  %v2140_v14 = vld [vmem:[%s9545_s5 + $0x1c8] sm:$0xff] }
  0xdf   :  { %v1941_v30 = vpop.f32.mrf.mxu3  ;;  %v2108_v49 = vld [vmem:[%s9545_s5 + $0xc8] sm:$0xff]  ;;  %2182 = vmatpush.bf16.msra.mxu2 %v5241_v13 }
  0xe0   :  { %9793 = vst [vmem:[#allocation60_spill] sm:$0xff] %v5216_v54  ;;  %v5227_v30 = vpack.c.bf16 %v2146_v24, %v2144_v53  ;;  %2194 = vmatpush.bf16.msra.mxu3 %v5216_v54  ;;  %v5258_v62 = vpack.c.bf16 %v2110_v22, %v2108_v49  ;;  %v5269_v24 = vpack.c.bf16 %v2142_v35, %v2140_v14  ;;  %v2137_v14 = vld [vmem:[%s9545_s5 + $0x1b0] sm:$0xff]  ;;  %v2104_v35 = vld [vmem:[%s9545_s5 + $0xa8] sm:$0xff] }
  0xe1   :  { %v5286_v22 = vpack.c.bf16 %v2105_v2, %v2103_v37  ;;  %v5297_v13 = vpack.c.bf16 %v2137_v14, %v2135_v47  ;;  %v2138_v37 = vld [vmem:[%s9545_s5 + $0x1b8] sm:$0xff]  ;;  %v2101_v47 = vld [vmem:[%s9545_s5 + $0x90] sm:$0xff]  ;;  %v2131_v14 = vld [vmem:[%s9545_s5 + $0x180] sm:$0xff] }
  0xe2   :  { %9795 = vst [vmem:[#allocation62_spill] sm:$0xff] %v5227_v30  ;;  %2220 = vmatpush.bf16.msrb.mxu1 %v5227_v30  ;;  %2208 = vmatpush.bf16.msrb.mxu0 %v5258_v62 }
  0xe3   :  { %9798 = vst [vmem:[#allocation65_spill] sm:$0xff] %v5258_v62  ;;  %2183 = vmatpush.bf16.msra.mxu2 %v5286_v22 }
  0xe4   :  { %9799 = vst [vmem:[#allocation66_spill] sm:$0xff] %v5269_v24  ;;  %2195 = vmatpush.bf16.msra.mxu3 %v5256_v28  ;;  %v2106_v28 = vld [vmem:[%s9545_s5 + $0xb8] sm:$0xff] }
  0xe5   :  { %9800 = vst [vmem:[#allocation67_spill] sm:$0xff] %v5286_v22  ;;  %v2102_v22 = vld [vmem:[%s9545_s5 + $0x98] sm:$0xff] }
  0xe6   :  { %2221 = vmatpush.bf16.msrb.mxu1 %v5269_v24  ;;  %9801 = vst [vmem:[#allocation68_spill] sm:$0xff] %v5297_v13  ;;  %v2034_v24 = vadd.f32 %v5193_v42, %v2033_v0 }
  0xe8   :  { %2196 = vmatpush.bf16.msra.mxu3 %v5297_v13  ;;  %v2100_v13 = vld [vmem:[%s9545_s5 + $0x88] sm:$0xff] }
 0x15a   :  { %v5252_v63 = vpop.f32.mrf.mxu0  ;;  %v5254_v52 = vpop.f32.mrf.mxu1 }
 0x15b   :  { %v2018_v59 = vrot.slane %v5252_v63, 4  ;;  %v2024_v53 = vrot.slane %v5254_v52, 4 }
 0x15d   :  { %v2019_v49 = vadd.f32 %v2018_v59, %v5252_v63  ;;  %v2025_v41 = vadd.f32 %v2024_v53, %v5254_v52  ;;  %v5299_v59 = vpack.c.bf16 %v2106_v28, %v2104_v35  ;;  %v2136_v53 = vld [vmem:[%s9545_s5 + $0x1a8] sm:$0xff]  ;;  %v2099_v28 = vld [vmem:[%s9545_s5 + $0x80] sm:$0xff] }
 0x15e   :  { %v5308_v9 = vpack.c.bf16 %v2138_v37, %v2136_v53  ;;  %v5324_v53 = vpack.c.bf16 %v2101_v47, %v2099_v28  ;;  %v2133_v37 = vld [vmem:[%s9545_s5 + $0x190] sm:$0xff]  ;;  %v2134_v28 = vld [vmem:[%s9545_s5 + $0x198] sm:$0xff] }
 0x15f   :  { %9802 = vst [vmem:[#allocation69_spill] sm:$0xff] %v5299_v59  ;;  %v2020_v2 = vrot.slane %v2019_v49, 2  ;;  %v2026_v54 = vrot.slane %v2025_v41, 2  ;;  %2209 = vmatpush.bf16.msrb.mxu0 %v5299_v59  ;;  %v5335_v59 = vpack.c.bf16 %v2133_v37, %v2131_v14  ;;  %v5351_v14 = vsel %vm2035_vm0, %v5193_v42, %v2034_v24  ;;  %v2127_v37 = vld [vmem:[%s9545_s5 + $0x160] sm:$0xff]  ;;  %v2129_v24 = vld [vmem:[%s9545_s5 + $0x170] sm:$0xff] }
 0x160   :  { %9803 = vst [vmem:[#allocation70_spill] sm:$0xff] %v5308_v9  ;;  %2222 = vmatpush.bf16.msrb.mxu1 %v5308_v9  ;;  %2184 = vmatpush.bf16.msra.mxu2 %v5324_v53 }
 0x161   :  { %v2021_v35 = vadd.f32 %v2020_v2, %v2019_v49  ;;  %v2027_v0 = vadd.f32 %v2026_v54, %v2025_v41  ;;  %9804 = vst [vmem:[#allocation71_spill] sm:$0xff] %v5324_v53  ;;  %v5337_v54 = vpack.c.bf16 %v2102_v22, %v2100_v13  ;;  %v2132_v41 = vld [vmem:[%s9545_s5 + $0x188] sm:$0xff]  ;;  %2197 = vmatpush.bf16.msra.mxu3 %v5335_v59  ;;  %v2095_v13 = vld [vmem:[%s9545_s5 + $0x60] sm:$0xff]  ;;  %v2097_v22 = vld [vmem:[%s9545_s5 + $0x70] sm:$0xff] }
 0x162   :  { %v2003_v49 = vpop.f32.mrf.mxu0  ;;  %v2016_v2 = vpop.f32.mrf.mxu1  ;;  %9805 = vst [vmem:[#allocation72_spill] sm:$0xff] %v5335_v59  ;;  %v5346_v62 = vpack.c.bf16 %v2134_v28, %v2132_v41  ;;  %v5365_v42 = vpack.c.bf16 %v2097_v22, %v2095_v13  ;;  %v2096_v41 = vld [vmem:[%s9545_s5 + $0x68] sm:$0xff]  ;;  %v2098_v28 = vld [vmem:[%s9545_s5 + $0x78] sm:$0xff]  ;;  %v5376_v59 = vpack.c.bf16 %v2129_v24, %v2127_v37  ;;  %v2091_v37 = vld [vmem:[%s9545_s5 + $0x40] sm:$0xff] }
 0x163   :  { %9806 = vst [vmem:[#allocation73_spill] sm:$0xff] %v5337_v54  ;;  %v2022_v47 = vrot.slane %v2021_v35, 1  ;;  %v2028_v9 = vrot.slane %v2027_v0, 1  ;;  %2210 = vmatpush.bf16.msrb.mxu0 %v5337_v54  ;;  %v2093_v24 = vld [vmem:[%s9545_s5 + $0x50] sm:$0xff]  ;;  %v2090_v53 = vld [vmem:[%s9545_s5 + $0x38] sm:$0xff] }
 0x164   :  { %9807 = vst [vmem:[#allocation74_spill] sm:$0xff] %v5346_v62  ;;  %2223 = vmatpush.bf16.msrb.mxu1 %v5346_v62  ;;  %2185 = vmatpush.bf16.msra.mxu2 %v5365_v42 }
 0x165   :  { %9808 = vst [vmem:[#allocation75_spill] sm:$0xff] %v5351_v14  ;;  %v2023_v49 = vadd.f32 %v2022_v47, %v2021_v35  ;;  %v2029_v2 = vadd.f32 %v2028_v9, %v2027_v0  ;;  %v5378_v35 = vpack.c.bf16 %v2098_v28, %v2096_v41  ;;  %v2128_v9 = vld [vmem:[%s9545_s5 + $0x168] sm:$0xff]  ;;  %v2130_v0 = vld [vmem:[%s9545_s5 + $0x178] sm:$0xff]  ;;  %2198 = vmatpush.bf16.msra.mxu3 %v5376_v59 }
 0x166   :  { %9809 = vst [vmem:[#allocation76_spill] sm:$0xff] %v5365_v42  ;;  %v5389_v22 = vpack.c.bf16 %v2130_v0, %v2128_v9  ;;  %v5409_v28 = vpack.c.bf16 %v2093_v24, %v2091_v37  ;;  %v2125_v9 = vld [vmem:[%s9545_s5 + $0x150] sm:$0xff]  ;;  %v2092_v0 = vld [vmem:[%s9545_s5 + $0x48] sm:$0xff]  ;;  %v2126_v37 = vld [vmem:[%s9545_s5 + $0x158] sm:$0xff] }
 0x167   :  { %9810 = vst [vmem:[#allocation77_spill] sm:$0xff] %v5376_v59  ;;  %v2037_v47 = vmul.f32 %v5351_v14, %v2023_v49  ;;  %v2038_v13 = vmul.f32 %v5351_v14, %v2029_v2  ;;  %2211 = vmatpush.bf16.msrb.mxu0 %v5378_v35  ;;  %v2123_v49 = vld [vmem:[%s9545_s5 + $0x140] sm:$0xff] }
 0x168   :  { %9811 = vst [vmem:[#allocation78_spill] sm:$0xff] %v5378_v35  ;;  %2224 = vmatpush.bf16.msrb.mxu1 %v5389_v22  ;;  %2186 = vmatpush.bf16.msra.mxu2 %v5409_v28 }
 0x169   :  { %9812 = vst [vmem:[#allocation79_spill] sm:$0xff] %v5389_v22  ;;  %v5403_v2 = vsub.f32 %v5252_v63, %v2037_v47  ;;  %v5406_v41 = vsub.f32 %v5254_v52, %v2038_v13  ;;  %v2094_v63 = vld [vmem:[%s9545_s5 + $0x58] sm:$0xff]  ;;  %v5420_v47 = vpack.c.bf16 %v2125_v9, %v2123_v49  ;;  %v2124_v13 = vld [vmem:[%s9545_s5 + $0x148] sm:$0xff]  ;;  %v2087_v9 = vld [vmem:[%s9545_s5 + $0x20] sm:$0xff] }
 0x16a   :  { %9813 = vst [vmem:[#allocation80_spill] sm:$0xff] %v5409_v28  ;;  %v5422_v52 = vpack.c.bf16 %v2094_v63, %v2092_v0  ;;  %v5435_v49 = vpack.c.bf16 %v2126_v37, %v2124_v13  ;;  %v2089_v0 = vld [vmem:[%s9545_s5 + $0x30] sm:$0xff]  ;;  %v2119_v63 = vld [vmem:[%s9545_s5 + $0x120] sm:$0xff] }
 0x16b   :  { %9814 = vst [vmem:[#allocation81_spill] sm:$0xff] %v5420_v47  ;;  %v2041_v24 = vmul.f32 %v5403_v2, %v5403_v2  ;;  %v2042_v59 = vmul.f32 %v5406_v41, %v5406_v41  ;;  %2199 = vmatpush.bf16.msra.mxu3 %v5420_v47  ;;  %v5449_v13 = vpack.c.bf16 %v2089_v0, %v2087_v9  ;;  %v2121_v37 = vld [vmem:[%s9545_s5 + $0x130] sm:$0xff]  ;;  %v2088_v47 = vld [vmem:[%s9545_s5 + $0x28] sm:$0xff]  ;;  %v2122_v0 = vld [vmem:[%s9545_s5 + $0x138] sm:$0xff] }
 0x16c   :  { %9815 = vst [vmem:[#allocation82_spill] sm:$0xff] %v5422_v52  ;;  %2212 = vmatpush.bf16.msrb.mxu0 %v5422_v52  ;;  %2225 = vmatpush.bf16.msrb.mxu1 %v5435_v49  ;;  %v5460_v52 = vpack.c.bf16 %v2121_v37, %v2119_v63  ;;  %v5462_v22 = vpack.c.bf16 %v2090_v53, %v2088_v47  ;;  %v2120_v9 = vld [vmem:[%s9545_s5 + $0x128] sm:$0xff]  ;;  %v2083_v53 = vld [vmem:[%s9545_s5] sm:$0xff]  ;;  %v2085_v47 = vld [vmem:[%s9545_s5 + $0x10] sm:$0xff] }
 0x16d   :  { %9816 = vst [vmem:[#allocation83_spill] sm:$0xff] %v5435_v49  ;;  %v2043_v42 = vrot.slane %v2041_v24, 4  ;;  %v2049_v28 = vrot.slane %v2042_v59, 4  ;;  %2187 = vmatpush.bf16.msra.mxu2 %v5449_v13  ;;  %v5471_v62 = vpack.c.bf16 %v2122_v0, %v2120_v9  ;;  %v2117_v63 = vld [vmem:[%s9545_s5 + $0x110] sm:$0xff]  ;;  %v2084_v37 = vld [vmem:[%s9545_s5 + $0x8] sm:$0xff]  ;;  %v2086_v9 = vld [vmem:[%s9545_s5 + $0x18] sm:$0xff] }
 0x16e   :  { %9817 = vst [vmem:[#allocation84_spill] sm:$0xff] %v5449_v13 }
 0x16f   :  { %9818 = vst [vmem:[#allocation85_spill] sm:$0xff] %v5460_v52  ;;  %v2044_v49 = vadd.f32 %v2043_v42, %v2041_v24  ;;  %v2050_v35 = vadd.f32 %v2049_v28, %v2042_v59  ;;  %2200 = vmatpush.bf16.msra.mxu3 %v5460_v52  ;;  %v2115_v59 = vld [vmem:[%s9545_s5 + $0x100] sm:$0xff]  ;;  %v5485_v24 = vpack.c.bf16 %v2085_v47, %v2083_v53  ;;  %v2116_v53 = vld [vmem:[%s9545_s5 + $0x108] sm:$0xff]  ;;  %v2118_v47 = vld [vmem:[%s9545_s5 + $0x118] sm:$0xff] }
 0x170   :  { %9819 = vst [vmem:[#allocation86_spill] sm:$0xff] %v5462_v22  ;;  %2213 = vmatpush.bf16.msrb.mxu0 %v5462_v22  ;;  %2226 = vmatpush.bf16.msrb.mxu1 %v5471_v62  ;;  %v5496_v0 = vpack.c.bf16 %v2117_v63, %v2115_v59  ;;  %v5498_v52 = vpack.c.bf16 %v2086_v9, %v2084_v37 }
 0x171   :  { %9820 = vst [vmem:[#allocation87_spill] sm:$0xff] %v5471_v62  ;;  %v2045_v42 = vrot.slane %v2044_v49, 2  ;;  %v2051_v28 = vrot.slane %v2050_v35, 2  ;;  %2188 = vmatpush.bf16.msra.mxu2 %v5485_v24  ;;  %v5507_v22 = vpack.c.bf16 %v2118_v47, %v2116_v53 }
 0x172   :  { %9821 = vst [vmem:[#allocation88_spill] sm:$0xff] %v5485_v24 }
 0x173   :  { %9822 = vst [vmem:[#allocation89_spill] sm:$0xff] %v5496_v0  ;;  %v2046_v13 = vadd.f32 %v2045_v42, %v2044_v49  ;;  %v2052_v62 = vadd.f32 %v2051_v28, %v2050_v35  ;;  %2201 = vmatpush.bf16.msra.mxu3 %v5496_v0 }
 0x174   :  { %9823 = vst [vmem:[#allocation90_spill] sm:$0xff] %v5498_v52  ;;  %2214 = vmatpush.bf16.msrb.mxu0 %v5498_v52  ;;  %2227 = vmatpush.bf16.msrb.mxu1 %v5507_v22 }
 0x175   :  { %v2047_v59 = vrot.slane %v2046_v13, 1  ;;  %v2053_v63 = vrot.slane %v2052_v62, 1 }
 0x177   :  { %v2048_v37 = vadd.f32 %v2047_v59, %v2046_v13  ;;  %v2054_v9 = vadd.f32 %v2053_v63, %v2052_v62 }
 0x179   :  { %v2055_v54 = vmul.f32 %v2048_v37, %v5351_v14  ;;  %v2056_v30 = vmul.f32 %v2054_v9, %v5351_v14 }
 0x17b   :  { %v2057_v49 = vadd.f32 1e-05, %v2055_v54  ;;  %v2058_v35 = vadd.f32 1e-05, %v2056_v30 }
 0x17d   :  { %4175 = vrsqrt.f32 %v2057_v49  ;;  %vm2065_vm3 = vweird.f32 %v2057_v49  ;;  %vm2075_vm5 = vweird.f32 %v2058_v35 }
 0x17e   :  { %4177 = vrsqrt.f32 %v2058_v35 }
 0x183   :  { %v4176_v42 = vpop.eup %4175 }
 0x184   :  { %v4178_v28 = vpop.eup %4177  ;;  %v2060_v53 = vmul.f32 %v4176_v42, %v2057_v49  ;;  %vm2066_vm1 = vweird.f32 %v4176_v42  ;;  %v2320_v49 = vld [vmem:[%s9546_s6 + $0xe8] sm:$0xff] }
 0x185   :  { %v2070_v47 = vmul.f32 %v4178_v28, %v2058_v35  ;;  %vm2076_vm2 = vweird.f32 %v4178_v28  ;;  %vm2067_vm4 = vmor %vm2065_vm3, %vm2066_vm1 }
 0x186   :  { %v2061_v0 = vmul.f32 %v4176_v42, %v2060_v53  ;;  %vm2077_vm6 = vmor %vm2075_vm5, %vm2076_vm2 }
 0x187   :  { %v2071_v24 = vmul.f32 %v4178_v28, %v2070_v47  ;;  %v2305_v47 = vld [vmem:[%s9546_s6 + $0x70] sm:$0xff] }
 0x188   :  { %v2062_v52 = vmul.f32 0.5, %v2061_v0 }
 0x189   :  { %v2072_v11 = vmul.f32 0.5, %v2071_v24 }
 0x18a   :  { %v2063_v26 = vsub.f32 1.5, %v2062_v52  ;;  %v2319_v52 = vld [vmem:[%s9546_s6 + $0xe0] sm:$0xff] }
 0x18b   :  { %v2073_v13 = vsub.f32 1.5, %v2072_v11  ;;  %v2322_v11 = vld [vmem:[%s9546_s6 + $0xf8] sm:$0xff] }
 0x18c   :  { %v2064_v62 = vmul.f32 %v4176_v42, %v2063_v26  ;;  %v2321_v26 = vld [vmem:[%s9546_s6 + $0xf0] sm:$0xff] }
 0x18d   :  { %v2074_v59 = vmul.f32 %v4178_v28, %v2073_v13  ;;  %v2306_v13 = vld [vmem:[%s9546_s6 + $0x78] sm:$0xff] }
 0x18e   :  { %v2068_v30 = vsel %vm2067_vm4, %v4176_v42, %v2064_v62  ;;  %v5531_v42 = vpack.c.bf16 %v2320_v49, %v2319_v52  ;;  %v5540_v62 = vpack.c.bf16 %v2306_v13, %v2305_v47  ;;  %v2315_v49 = vld [vmem:[%s9546_s6 + $0xc0] sm:$0xff] }
 0x18f   :  { %v2079_v54 = vmul.f32 %v2068_v30, %v5403_v2  ;;  %v2078_v63 = vsel %vm2077_vm6, %v4178_v28, %v2074_v59  ;;  %v5522_v2 = vpack.c.bf16 %v2322_v11, %v2321_v26  ;;  %v2317_v30 = vld [vmem:[%s9546_s6 + $0xd0] sm:$0xff] }
 0x190   :  { %v2080_v37 = vmul.f32 %v2078_v63, %v5406_v41  ;;  %9825 = vst [vmem:[#allocation92_spill] sm:$0xff] %v5531_v42  ;;  %2341 = vmatpush.bf16.msrb.mxu2 %v5540_v62 }
 0x191   :  { %v2081_v9 = vmax.f32 %v2079_v54, 0.0  ;;  %9824 = vst [vmem:[#allocation91_spill] sm:$0xff] %v5522_v2  ;;  %2354 = vmatpush.bf16.msrb.mxu3 %v5522_v2  ;;  %v2318_v54 = vld [vmem:[%s9546_s6 + $0xd8] sm:$0xff] }
 0x192   :  { %v2082_v53 = vmax.f32 %v2080_v37, 0.0  ;;  %9826 = vst [vmem:[#allocation93_spill] sm:$0xff] %v5540_v62  ;;  %v5549_v63 = vpack.c.bf16 %v2318_v54, %v2317_v30  ;;  %v2301_v54 = vld [vmem:[%s9546_s6 + $0x50] sm:$0xff] }
 0x193   :  { %v2147_v0 = vpack.c.bf16 %v2081_v9, %v2081_v9 }
 0x194   :  { %v2148_v24 = vpack.c.bf16 %v2082_v53, %v2082_v53  ;;  %9827 = vst [vmem:[#allocation94_spill] sm:$0xff] %v5549_v63  ;;  %v2303_v53 = vld [vmem:[%s9546_s6 + $0x60] sm:$0xff] }
 0x195   :  { %2189 = vmatmul.bf16.vlgmr.msra.gmra.mxu2 %v2147_v0  ;;  %2215 = vmatmul.bf16.vlgmr.msrb.gmra.mxu0 %v2147_v0  ;;  %v2304_v0 = vld [vmem:[%s9546_s6 + $0x68] sm:$0xff] }
 0x196   :  { %2202 = vmatmul.bf16.vlgmr.msra.gmra.mxu3 %v2148_v24  ;;  %2228 = vmatmul.bf16.vlgmr.msrb.gmra.mxu1 %v2148_v24  ;;  %v5558_v26 = vpack.c.bf16 %v2304_v0, %v2303_v53 }
 0x197   :  { %2355 = vmatpush.bf16.msrb.mxu3 %v5531_v42 }
 0x198   :  { %9828 = vst [vmem:[#allocation95_spill] sm:$0xff] %v5558_v26  ;;  %2342 = vmatpush.bf16.msrb.mxu2 %v5558_v26 }
 0x19b   :  { %2356 = vmatpush.bf16.msrb.mxu3 %v5549_v63 }
 0x212   :  { %v2216_v41 = vpop.f32.mrf.mxu0 }
 0x213   :  { %v2229_v35 = vpop.f32.mrf.mxu1 }
 0x214   :  { %v2230_v28 = vadd.f32 %v2229_v35, %v2216_v41  ;;  %v2316_v35 = vld [vmem:[%s9546_s6 + $0xc8] sm:$0xff] }
 0x215   :  { %v5567_v13 = vpack.c.bf16 %v2316_v35, %v2315_v49 }
 0x216   :  { %v2239_v59 = vrot.slane %v2230_v28, 4 }
 0x217   :  { %9829 = vst [vmem:[#allocation96_spill] sm:$0xff] %v5567_v13  ;;  %2357 = vmatpush.bf16.msrb.mxu3 %v5567_v13 }
 0x218   :  { %v2240_v37 = vadd.f32 %v2239_v59, %v2230_v28  ;;  %v2190_v9 = vpop.f32.mrf.mxu2 }
 0x219   :  { %v2203_v24 = vpop.f32.mrf.mxu3 }
 0x21a   :  { %v2241_v11 = vrot.slane %v2240_v37, 2  ;;  %v2204_v41 = vadd.f32 %v2203_v24, %v2190_v9  ;;  %v2218_v52 = vpop.f32.mrf.mxu0  ;;  %v2302_v9 = vld [vmem:[%s9546_s6 + $0x58] sm:$0xff] }
 0x21b   :  { %v2231_v47 = vpop.f32.mrf.mxu1  ;;  %v5576_v53 = vpack.c.bf16 %v2302_v9, %v2301_v54  ;;  %v2313_v52 = vld [vmem:[%s9546_s6 + $0xb0] sm:$0xff]  ;;  %v2299_v54 = vld [vmem:[%s9546_s6 + $0x40] sm:$0xff] }
 0x21c   :  { %v2242_v59 = vadd.f32 %v2241_v11, %v2240_v37  ;;  %v2233_v30 = vrot.slane %v2204_v41, 4  ;;  %v2314_v37 = vld [vmem:[%s9546_s6 + $0xb8] sm:$0xff] }
 0x21d   :  { %9830 = vst [vmem:[#allocation97_spill] sm:$0xff] %v5576_v53  ;;  %2343 = vmatpush.bf16.msrb.mxu2 %v5576_v53  ;;  %v5585_v11 = vpack.c.bf16 %v2314_v37, %v2313_v52 }
 0x21e   :  { %v2243_v0 = vrot.slane %v2242_v59, 1  ;;  %v2234_v24 = vadd.f32 %v2233_v30, %v2204_v41  ;;  %v2300_v30 = vld [vmem:[%s9546_s6 + $0x48] sm:$0xff] }
 0x21f   :  { %9831 = vst [vmem:[#allocation98_spill] sm:$0xff] %v5585_v11  ;;  %2358 = vmatpush.bf16.msrb.mxu3 %v5585_v11  ;;  %v5594_v13 = vpack.c.bf16 %v2300_v30, %v2299_v54 }
 0x220   :  { %v2244_v49 = vadd.f32 %v2243_v0, %v2242_v59  ;;  %v2235_v35 = vrot.slane %v2234_v24, 2  ;;  %v2192_v47 = vpop.f32.mrf.mxu2  ;;  %v2311_v59 = vld [vmem:[%s9546_s6 + $0xa0] sm:$0xff]  ;;  %v2312_v0 = vld [vmem:[%s9546_s6 + $0xa8] sm:$0xff] }
 0x221   :  { %v2205_v9 = vpop.f32.mrf.mxu3  ;;  %9832 = vst [vmem:[#allocation99_spill] sm:$0xff] %v5594_v13  ;;  %2344 = vmatpush.bf16.msrb.mxu2 %v5594_v13  ;;  %v5604_v37 = vpack.c.bf16 %v2312_v0, %v2311_v59 }
 0x222   :  { %v2246_v63 = vmul.f32 %v2244_v49, %v5351_v14  ;;  %v2236_v52 = vadd.f32 %v2235_v35, %v2234_v24  ;;  %v2297_v49 = vld [vmem:[%s9546_s6 + $0x30] sm:$0xff]  ;;  %v2298_v24 = vld [vmem:[%s9546_s6 + $0x38] sm:$0xff] }
 0x223   :  { %9833 = vst [vmem:[#allocation100_spill] sm:$0xff] %v5604_v37  ;;  %2359 = vmatpush.bf16.msrb.mxu3 %v5604_v37  ;;  %v5615_v35 = vpack.c.bf16 %v2298_v24, %v2297_v49  ;;  %v2295_v24 = vld [vmem:[%s9546_s6 + $0x20] sm:$0xff] }
 0x224   :  { %v5606_v47 = vsub.f32 %v2230_v28, %v2246_v63  ;;  %v2237_v9 = vrot.slane %v2236_v52, 1  ;;  %v2309_v28 = vld [vmem:[%s9546_s6 + $0x90] sm:$0xff]  ;;  %v2310_v63 = vld [vmem:[%s9546_s6 + $0x98] sm:$0xff] }
 0x225   :  { %9834 = vst [vmem:[#allocation101_spill] sm:$0xff] %v5615_v35  ;;  %2345 = vmatpush.bf16.msrb.mxu2 %v5615_v35  ;;  %v5626_v59 = vpack.c.bf16 %v2310_v63, %v2309_v28  ;;  %v2307_v28 = vld [vmem:[%s9546_s6 + $0x80] sm:$0xff] }
 0x226   :  { %v2250_v54 = vmul.f32 %v5606_v47, %v5606_v47  ;;  %v2238_v30 = vadd.f32 %v2237_v9, %v2236_v52  ;;  %v2296_v52 = vld [vmem:[%s9546_s6 + $0x28] sm:$0xff] }
 0x227   :  { %9835 = vst [vmem:[#allocation102_spill] sm:$0xff] %v5626_v59  ;;  %2360 = vmatpush.bf16.msrb.mxu3 %v5626_v59  ;;  %v5636_v9 = vpack.c.bf16 %v2296_v52, %v2295_v24  ;;  %v2293_v24 = vld [vmem:[%s9546_s6 + $0x10] sm:$0xff]  ;;  %v2292_v59 = vld [vmem:[%s9546_s6 + $0x8] sm:$0xff] }
 0x228   :  { %v2257_v0 = vrot.slane %v2250_v54, 4  ;;  %v2245_v49 = vmul.f32 %v2238_v30, %v5351_v14  ;;  %v2308_v30 = vld [vmem:[%s9546_s6 + $0x88] sm:$0xff] }
 0x229   :  { %9836 = vst [vmem:[#allocation103_spill] sm:$0xff] %v5636_v9  ;;  %2346 = vmatpush.bf16.msrb.mxu2 %v5636_v9  ;;  %v5645_v63 = vpack.c.bf16 %v2308_v30, %v2307_v28  ;;  %v2291_v30 = vld [vmem:[%s9546_s6] sm:$0xff] }
 0x22a   :  { %v2258_v37 = vadd.f32 %v2257_v0, %v2250_v54  ;;  %v2247_v11 = vsub.f32 %v2204_v41, %v2245_v49  ;;  %v2294_v41 = vld [vmem:[%s9546_s6 + $0x18] sm:$0xff]  ;;  %v5663_v9 = vpack.c.bf16 %v2292_v59, %v2291_v30 }
 0x22b   :  { %9837 = vst [vmem:[#allocation104_spill] sm:$0xff] %v5645_v63  ;;  %2361 = vmatpush.bf16.msrb.mxu3 %v5645_v63  ;;  %v5654_v54 = vpack.c.bf16 %v2294_v41, %v2293_v24 }
 0x22c   :  { %v2259_v35 = vrot.slane %v2258_v37, 2  ;;  %v2249_v13 = vmul.f32 %v2247_v11, %v2247_v11  ;;  %9839 = vst [vmem:[#allocation106_spill] sm:$0xff] %v5663_v9 }
 0x22d   :  { %9838 = vst [vmem:[#allocation105_spill] sm:$0xff] %v5654_v54  ;;  %2347 = vmatpush.bf16.msrb.mxu2 %v5654_v54 }
 0x22e   :  { %v2260_v0 = vadd.f32 %v2259_v35, %v2258_v37  ;;  %v2251_v49 = vrot.slane %v2249_v13, 4 }
 0x230   :  { %v2261_v52 = vrot.slane %v2260_v0, 1  ;;  %v2252_v28 = vadd.f32 %v2251_v49, %v2249_v13 }
 0x231   :  { %2348 = vmatpush.bf16.msrb.mxu2 %v5663_v9 }
 0x232   :  { %v2262_v53 = vadd.f32 %v2261_v52, %v2260_v0  ;;  %v2253_v63 = vrot.slane %v2252_v28, 2 }
 0x234   :  { %v2264_v37 = vmul.f32 %v2262_v53, %v5351_v14  ;;  %v2254_v35 = vadd.f32 %v2253_v63, %v2252_v28 }
 0x236   :  { %v2266_v24 = vadd.f32 1e-05, %v2264_v37  ;;  %v2255_v41 = vrot.slane %v2254_v35, 1 }
 0x238   :  { %4179 = vrsqrt.f32 %v2266_v24  ;;  %v2256_v13 = vadd.f32 %v2255_v41, %v2254_v35  ;;  %vm2283_vm8 = vweird.f32 %v2266_v24 }
 0x23a   :  { %v2263_v49 = vmul.f32 %v2256_v13, %v5351_v14 }
 0x23c   :  { %v2265_v54 = vadd.f32 1e-05, %v2263_v49 }
 0x23e   :  { %v4180_v42 = vpop.eup %4179  ;;  %4181 = vrsqrt.f32 %v2265_v54  ;;  %vm2273_vm11 = vweird.f32 %v2265_v54 }
 0x23f   :  { %v2278_v26 = vmul.f32 %v4180_v42, %v2266_v24  ;;  %vm2284_vm7 = vweird.f32 %v4180_v42  ;;  %v2423_v24 = vld [vmem:[#allocation3 + $0xe0] sm:$0xff] }
 0x240   :  { %vm2285_vm9 = vmor %vm2283_vm8, %vm2284_vm7 }
 0x241   :  { %v2279_v2 = vmul.f32 %v4180_v42, %v2278_v26 }
 0x243   :  { %v2280_v59 = vmul.f32 0.5, %v2279_v2 }
 0x244   :  { %v4182_v30 = vpop.eup %4181 }
 0x245   :  { %v2281_v0 = vsub.f32 1.5, %v2280_v59  ;;  %v2268_v52 = vmul.f32 %v4182_v30, %v2265_v54  ;;  %vm2274_vm10 = vweird.f32 %v4182_v30  ;;  %v2419_v54 = vld [vmem:[#allocation3 + $0xc0] sm:$0xff] }
 0x246   :  { %vm2275_vm12 = vmor %vm2273_vm11, %vm2274_vm10 }
 0x247   :  { %v2282_v9 = vmul.f32 %v4180_v42, %v2281_v0  ;;  %v2269_v53 = vmul.f32 %v4182_v30, %v2268_v52  ;;  %v2425_v0 = vld [vmem:[#allocation3 + $0xf0] sm:$0xff]  ;;  %v2424_v52 = vld [vmem:[#allocation3 + $0xe8] sm:$0xff] }
 0x249   :  { %v2286_v63 = vsel %vm2285_vm9, %v4180_v42, %v2282_v9  ;;  %v2270_v28 = vmul.f32 0.5, %v2269_v53  ;;  %v5669_v9 = vpack.c.bf16 %v2425_v0, %v2423_v24 }
 0x24a   :  { %v2288_v37 = vmul.f32 %v2286_v63, %v5606_v47  ;;  %v2426_v47 = vld [vmem:[#allocation3 + $0xf8] sm:$0xff] }
 0x24b   :  { %v2271_v35 = vsub.f32 1.5, %v2270_v28  ;;  %v5671_v53 = vpack.c.bf16 %v2426_v47, %v2424_v52  ;;  %2444 = vmatpush.bf16.msra.mxu0 %v5669_v9  ;;  %v2422_v28 = vld [vmem:[#allocation3 + $0xd8] sm:$0xff]  ;;  %v2411_v47 = vld [vmem:[#allocation3 + $0x80] sm:$0xff] }
 0x24c   :  { %v2290_v41 = vmax.f32 %v2288_v37, 0.0 }
 0x24d   :  { %v2272_v13 = vmul.f32 %v4182_v30, %v2271_v35  ;;  %2457 = vmatpush.bf16.msra.mxu1 %v5671_v53 }
 0x24e   :  { %v2324_v26 = vpack.c.bf16 %v2290_v41, %v2290_v41  ;;  %v2415_v41 = vld [vmem:[#allocation3 + $0xa0] sm:$0xff] }
 0x24f   :  { %v2276_v2 = vsel %vm2275_vm12, %v4182_v30, %v2272_v13  ;;  %v2421_v30 = vld [vmem:[#allocation3 + $0xd0] sm:$0xff] }
 0x250   :  { %v2287_v49 = vmul.f32 %v2276_v2, %v2247_v11  ;;  %2362 = vmatmul.bf16.vlgmr.msrb.gmra.mxu3 %v2324_v26  ;;  %v2420_v11 = vld [vmem:[#allocation3 + $0xc8] sm:$0xff]  ;;  %v5675_v63 = vpack.c.bf16 %v2421_v30, %v2419_v54  ;;  %v2417_v13 = vld [vmem:[#allocation3 + $0xb0] sm:$0xff] }
 0x251   :  { %v2416_v26 = vld [vmem:[#allocation3 + $0xa8] sm:$0xff]  ;;  %v2413_v54 = vld [vmem:[#allocation3 + $0x90] sm:$0xff] }
 0x252   :  { %v2289_v59 = vmax.f32 %v2287_v49, 0.0  ;;  %2445 = vmatpush.bf16.msra.mxu0 %v5675_v63  ;;  %v5681_v49 = vpack.c.bf16 %v2417_v13, %v2415_v41  ;;  %v5687_v30 = vpack.c.bf16 %v2413_v54, %v2411_v47  ;;  %v2403_v54 = vld [vmem:[#allocation3 + $0x40] sm:$0xff] }
 0x254   :  { %v2323_v62 = vpack.c.bf16 %v2289_v59, %v2289_v59  ;;  %9841 = vst [vmem:[#allocation108_spill] sm:$0xff] %v5681_v49  ;;  %v2418_v59 = vld [vmem:[#allocation3 + $0xb8] sm:$0xff] }
 0x255   :  { %v5683_v0 = vpack.c.bf16 %v2418_v59, %v2416_v26  ;;  %v2407_v26 = vld [vmem:[#allocation3 + $0x60] sm:$0xff]  ;;  %v2408_v59 = vld [vmem:[#allocation3 + $0x68] sm:$0xff] }
 0x256   :  { %2349 = vmatmul.bf16.vlgmr.msrb.gmra.mxu2 %v2323_v62  ;;  %v5677_v62 = vpack.c.bf16 %v2422_v28, %v2420_v11  ;;  %2446 = vmatpush.bf16.msra.mxu0 %v5681_v49  ;;  %v2414_v11 = vld [vmem:[#allocation3 + $0x98] sm:$0xff] }
 0x257   :  { %9842 = vst [vmem:[#allocation109_spill] sm:$0xff] %v5683_v0 }
 0x258   :  { %9840 = vst [vmem:[#allocation107_spill] sm:$0xff] %v5677_v62  ;;  %2458 = vmatpush.bf16.msra.mxu1 %v5677_v62 }
 0x25a   :  { %2447 = vmatpush.bf16.msra.mxu0 %v5687_v30 }
 0x25c   :  { %2459 = vmatpush.bf16.msra.mxu1 %v5683_v0  ;;  %v2410_v0 = vld [vmem:[#allocation3 + $0x78] sm:$0xff] }
 0x25d   :  { %v5695_v62 = vpack.c.bf16 %v2410_v0, %v2408_v59  ;;  %v2399_v0 = vld [vmem:[#allocation3 + $0x20] sm:$0xff]  ;;  %v2402_v59 = vld [vmem:[#allocation3 + $0x38] sm:$0xff] }
 0x25f   :  { %9845 = vst [vmem:[#allocation112_spill] sm:$0xff] %v5695_v62 }
 0x2d3   :  { %v2363_v42 = vpop.f32.mrf.mxu3 }
 0x2d9   :  { %v2350_v37 = vpop.f32.mrf.mxu2 }
 0x2da   :  { %v2364_v35 = vadd.f32 %v2363_v42, %v2350_v37  ;;  %v2412_v42 = vld [vmem:[#allocation3 + $0x88] sm:$0xff] }
 0x2db   :  { %v2365_v2 = vpop.f32.mrf.mxu3  ;;  %v5689_v37 = vpack.c.bf16 %v2414_v11, %v2412_v42  ;;  %v2405_v42 = vld [vmem:[#allocation3 + $0x50] sm:$0xff]  ;;  %v2404_v11 = vld [vmem:[#allocation3 + $0x48] sm:$0xff] }
 0x2dc   :  { %v2367_v24 = vrot.slane %v2364_v35, 4  ;;  %v2409_v2 = vld [vmem:[#allocation3 + $0x70] sm:$0xff] }
 0x2dd   :  { %9843 = vst [vmem:[#allocation110_spill] sm:$0xff] %v5689_v37  ;;  %2460 = vmatpush.bf16.msra.mxu1 %v5689_v37 }
 0x2de   :  { %v2368_v52 = vadd.f32 %v2367_v24, %v2364_v35  ;;  %v5693_v24 = vpack.c.bf16 %v2409_v2, %v2407_v26  ;;  %v2401_v2 = vld [vmem:[#allocation3 + $0x30] sm:$0xff] }
 0x2e0   :  { %v2369_v28 = vrot.slane %v2368_v52, 2  ;;  %9844 = vst [vmem:[#allocation111_spill] sm:$0xff] %v5693_v24  ;;  %2448 = vmatpush.bf16.msra.mxu0 %v5693_v24 }
 0x2e1   :  { %v2352_v41 = vpop.f32.mrf.mxu2  ;;  %2461 = vmatpush.bf16.msra.mxu1 %v5695_v62 }
 0x2e2   :  { %v2370_v13 = vadd.f32 %v2369_v28, %v2368_v52  ;;  %v5699_v52 = vpack.c.bf16 %v2405_v42, %v2403_v54  ;;  %v2406_v28 = vld [vmem:[#allocation3 + $0x58] sm:$0xff]  ;;  %v2397_v42 = vld [vmem:[#allocation3 + $0x10] sm:$0xff] }
 0x2e3   :  { %v5702_v37 = vpack.c.bf16 %v2406_v28, %v2404_v11  ;;  %v2396_v11 = vld [vmem:[#allocation3 + $0x8] sm:$0xff]  ;;  %v2398_v28 = vld [vmem:[#allocation3 + $0x18] sm:$0xff] }
 0x2e4   :  { %v2371_v49 = vrot.slane %v2370_v13, 1  ;;  %2449 = vmatpush.bf16.msra.mxu0 %v5699_v52 }
 0x2e5   :  { %9846 = vst [vmem:[#allocation113_spill] sm:$0xff] %v5702_v37  ;;  %2462 = vmatpush.bf16.msra.mxu1 %v5702_v37  ;;  %v5714_v37 = vpack.c.bf16 %v2398_v28, %v2396_v11  ;;  %v2550_v11 = vld [vmem:[#allocation6 + $0xb0] sm:$0xff] }
 0x2e6   :  { %v2372_v47 = vadd.f32 %v2371_v49, %v2370_v13  ;;  %v2400_v49 = vld [vmem:[#allocation3 + $0x28] sm:$0xff]  ;;  %v5706_v13 = vpack.c.bf16 %v2401_v2, %v2399_v0 }
 0x2e7   :  { %v5708_v24 = vpack.c.bf16 %v2402_v59, %v2400_v49 }
 0x2e8   :  { %v2373_v41 = vmul.f32 %v2372_v47, %v5351_v14  ;;  %2450 = vmatpush.bf16.msra.mxu0 %v5706_v13  ;;  %v2395_v47 = vld [vmem:[#allocation3] sm:$0xff] }
 0x2e9   :  { %2463 = vmatpush.bf16.msra.mxu1 %v5708_v24 }
 0x2ea   :  { %v2374_v26 = vsub.f32 %v2364_v35, %v2373_v41  ;;  %v5712_v35 = vpack.c.bf16 %v2397_v42, %v2395_v47  ;;  %v2534_v47 = vld [vmem:[#allocation6 + $0x30] sm:$0xff]  ;;  %v2535_v42 = vld [vmem:[#allocation6 + $0x38] sm:$0xff] }
 0x2eb   :  { %v5775_v28 = vpack.c.bf16 %v2535_v42, %v2534_v47 }
 0x2ec   :  { %v2375_v62 = vmul.f32 %v2374_v26, %v2374_v26  ;;  %2451 = vmatpush.bf16.msra.mxu0 %v5712_v35 }
 0x2ed   :  { %2464 = vmatpush.bf16.msra.mxu1 %v5714_v37 }
 0x2ee   :  { %v2376_v54 = vrot.slane %v2375_v62, 4 }
 0x2f0   :  { %v2377_v41 = vadd.f32 %v2376_v54, %v2375_v62  ;;  %2640 = vmatpush.bf16.msrb.mxu0 %v4434_v3 }
 0x2f1   :  { %2653 = vmatpush.bf16.msrb.mxu1 %v4445_v7 }
 0x2f2   :  { %v2378_v0 = vrot.slane %v2377_v41, 2 }
 0x2f4   :  { %v2379_v2 = vadd.f32 %v2378_v0, %v2377_v41  ;;  %2641 = vmatpush.bf16.msrb.mxu0 %v4472_v16  ;;  %v2551_v41 = vld [vmem:[#allocation6 + $0xb8] sm:$0xff] }
 0x2f5   :  { %2654 = vmatpush.bf16.msrb.mxu1 %v4474_v17  ;;  %v5777_v0 = vpack.c.bf16 %v2551_v41, %v2550_v11 }
 0x2f6   :  { %v2380_v49 = vrot.slane %v2379_v2, 1 }
 0x2f8   :  { %v2381_v59 = vadd.f32 %v2380_v49, %v2379_v2  ;;  %2642 = vmatpush.bf16.msrb.mxu0 %v4509_v29  ;;  %v2532_v2 = vld [vmem:[#allocation6 + $0x20] sm:$0xff]  ;;  %v2533_v49 = vld [vmem:[#allocation6 + $0x28] sm:$0xff] }
 0x2f9   :  { %2655 = vmatpush.bf16.msrb.mxu1 %v4522_v33 }
 0x2fa   :  { %v2382_v62 = vmul.f32 %v2381_v59, %v5351_v14  ;;  %v2548_v59 = vld [vmem:[#allocation6 + $0xa0] sm:$0xff] }
 0x2fc   :  { %v2383_v54 = vadd.f32 1e-05, %v2382_v62  ;;  %2643 = vmatpush.bf16.msrb.mxu0 %v4554_v44  ;;  %v5781_v62 = vpack.c.bf16 %v2533_v49, %v2532_v2  ;;  %v9847_v2 = vld [vmem:[#allocation12_spill] sm:$0xff] }
 0x2fd   :  { %2656 = vmatpush.bf16.msrb.mxu1 %v4558_v45 }
 0x2fe   :  { %4183 = vrsqrt.f32 %v2383_v54  ;;  %vm2390_vm14 = vweird.f32 %v2383_v54 }
 0x300   :  { %2644 = vmatpush.bf16.msrb.mxu0 %v4590_v56 }
 0x301   :  { %2657 = vmatpush.bf16.msrb.mxu1 %v4594_v57  ;;  %v2542_v57 = vld [vmem:[#allocation6 + $0x70] sm:$0xff] }
 0x304   :  { %v4184_v3 = vpop.eup %4183  ;;  %2645 = vmatpush.bf16.msrb.mxu0 %v4626_v5  ;;  %v2543_v5 = vld [vmem:[#allocation6 + $0x78] sm:$0xff] }
 0x305   :  { %v2385_v7 = vmul.f32 %v4184_v3, %v2383_v54  ;;  %2658 = vmatpush.bf16.msrb.mxu1 %v4630_v6  ;;  %vm2391_vm13 = vweird.f32 %v4184_v3  ;;  %v2558_v6 = vld [vmem:[#allocation6 + $0xf0] sm:$0xff]  ;;  %v2549_v54 = vld [vmem:[#allocation6 + $0xa8] sm:$0xff] }
 0x306   :  { %vm2392_vm15 = vmor %vm2390_vm14, %vm2391_vm13 }
 0x307   :  { %v2386_v16 = vmul.f32 %v4184_v3, %v2385_v7  ;;  %v2530_v7 = vld [vmem:[#allocation6 + $0x10] sm:$0xff] }
 0x308   :  { %2646 = vmatpush.bf16.msrb.mxu0 %v4662_v23  ;;  %v5751_v23 = vpack.c.bf16 %v2543_v5, %v2542_v57  ;;  %v2544_v57 = vld [vmem:[#allocation6 + $0x80] sm:$0xff] }
 0x309   :  { %v2387_v17 = vmul.f32 0.5, %v2386_v16  ;;  %2659 = vmatpush.bf16.msrb.mxu1 %v4672_v27  ;;  %v2559_v27 = vld [vmem:[#allocation6 + $0xf8] sm:$0xff] }
 0x30a   :  { %2578 = vmatpush.bf16.msra.mxu2 %v5751_v23  ;;  %v2531_v16 = vld [vmem:[#allocation6 + $0x18] sm:$0xff] }
 0x30b   :  { %v2388_v29 = vsub.f32 1.5, %v2387_v17  ;;  %v2546_v17 = vld [vmem:[#allocation6 + $0x90] sm:$0xff] }
 0x30c   :  { %2647 = vmatpush.bf16.msrb.mxu0 %v4707_v43  ;;  %v5753_v43 = vpack.c.bf16 %v2559_v27, %v2558_v6  ;;  %v2545_v6 = vld [vmem:[#allocation6 + $0x88] sm:$0xff] }
 0x30d   :  { %v2389_v33 = vmul.f32 %v4184_v3, %v2388_v29  ;;  %2660 = vmatpush.bf16.msrb.mxu1 %v4720_v51  ;;  %v2540_v51 = vld [vmem:[#allocation6 + $0x60] sm:$0xff]  ;;  %v5787_v29 = vpack.c.bf16 %v2531_v16, %v2530_v7  ;;  %v5795_v27 = vpack.c.bf16 %v2545_v6, %v2544_v57  ;;  %v9849_v7 = vld [vmem:[#allocation14_spill] sm:$0xff] }
 0x30e   :  { %2591 = vmatpush.bf16.msra.mxu3 %v5753_v43 }
 0x30f   :  { %v2393_v44 = vsel %vm2392_vm15, %v4184_v3, %v2389_v33  ;;  %v5783_v3 = vpack.c.bf16 %v2549_v54, %v2548_v59  ;;  %v2547_v33 = vld [vmem:[#allocation6 + $0x98] sm:$0xff]  ;;  %v9848_v59 = vld [vmem:[#allocation13_spill] sm:$0xff] }
 0x310   :  { %v2394_v45 = vmul.f32 %v2393_v44, %v2374_v26  ;;  %v5789_v44 = vpack.c.bf16 %v2547_v33, %v2546_v17  ;;  %v9850_v33 = vld [vmem:[#allocation15_spill] sm:$0xff] }
 0x312   :  { %v2427_v56 = vpack.c.bf16 %v2394_v45, %v2394_v45  ;;  %v2528_v45 = vld [vmem:[#allocation6] sm:$0xff] }
 0x314   :  { %2452 = vmatmul.bf16.vlgmr.msra.gmra.mxu0 %v2427_v56  ;;  %2465 = vmatmul.bf16.vlgmr.msra.gmra.mxu1 %v2427_v56  ;;  %v2529_v56 = vld [vmem:[#allocation6 + $0x8] sm:$0xff] }
 0x315   :  { %2692 = vmatpush.bf16.msra.mxu0 %v4736_v60  ;;  %2705 = vmatpush.bf16.msra.mxu1 %v4747_v1  ;;  %v2541_v60 = vld [vmem:[#allocation6 + $0x68] sm:$0xff]  ;;  %v2556_v1 = vld [vmem:[#allocation6 + $0xe0] sm:$0xff]  ;;  %v5793_v5 = vpack.c.bf16 %v2529_v56, %v2528_v45 }
 0x316   :  { %v9851_v56 = vld [vmem:[#allocation16_spill] sm:$0xff] }
 0x319   :  { %2693 = vmatpush.bf16.msra.mxu0 %v4788_v31  ;;  %2706 = vmatpush.bf16.msra.mxu1 %v4794_v36  ;;  %v2557_v31 = vld [vmem:[#allocation6 + $0xe8] sm:$0xff] }
 0x31a   :  { %v5759_v36 = vpack.c.bf16 %v2557_v31, %v2556_v1 }
 0x31c   :  { %2592 = vmatpush.bf16.msra.mxu3 %v5759_v36 }
 0x31d   :  { %2694 = vmatpush.bf16.msra.mxu0 %v4829_v55  ;;  %2707 = vmatpush.bf16.msra.mxu1 %v4834_v61  ;;  %v2539_v55 = vld [vmem:[#allocation6 + $0x58] sm:$0xff]  ;;  %v2554_v61 = vld [vmem:[#allocation6 + $0xd0] sm:$0xff] }
 0x321   :  { %2695 = vmatpush.bf16.msra.mxu0 %v4866_v39  ;;  %2708 = vmatpush.bf16.msra.mxu1 %v4870_v40  ;;  %v2555_v40 = vld [vmem:[#allocation6 + $0xd8] sm:$0xff] }
 0x325   :  { %2696 = vmatpush.bf16.msra.mxu0 %v4902_v18  ;;  %2709 = vmatpush.bf16.msra.mxu1 %v4906_v19  ;;  %v5765_v18 = vpack.c.bf16 %v2555_v40, %v2554_v61  ;;  %v2536_v19 = vld [vmem:[#allocation6 + $0x40] sm:$0xff] }
 0x327   :  { %2593 = vmatpush.bf16.msra.mxu3 %v5765_v18 }
 0x329   :  { %2697 = vmatpush.bf16.msra.mxu0 %v4938_v15  ;;  %2710 = vmatpush.bf16.msra.mxu1 %v4942_v20  ;;  %v5757_v20 = vpack.c.bf16 %v2541_v60, %v2540_v51  ;;  %v2552_v15 = vld [vmem:[#allocation6 + $0xc0] sm:$0xff] }
 0x32b   :  { %2579 = vmatpush.bf16.msra.mxu2 %v5757_v20 }
 0x32d   :  { %2698 = vmatpush.bf16.msra.mxu0 %v4974_v10  ;;  %2711 = vmatpush.bf16.msra.mxu1 %v4978_v48  ;;  %v2537_v48 = vld [vmem:[#allocation6 + $0x48] sm:$0xff] }
 0x32e   :  { %v5769_v10 = vpack.c.bf16 %v2537_v48, %v2536_v19 }
 0x331   :  { %2699 = vmatpush.bf16.msra.mxu0 %v5010_v4  ;;  %2712 = vmatpush.bf16.msra.mxu1 %v5017_v32  ;;  %v2538_v32 = vld [vmem:[#allocation6 + $0x50] sm:$0xff]  ;;  %v2553_v4 = vld [vmem:[#allocation6 + $0xc8] sm:$0xff] }
 0x332   :  { %v5763_v39 = vpack.c.bf16 %v2539_v55, %v2538_v32  ;;  %v5771_v26 = vpack.c.bf16 %v2553_v4, %v2552_v15 }
 0x334   :  { %2580 = vmatpush.bf16.msra.mxu2 %v5763_v39  ;;  %2594 = vmatpush.bf16.msra.mxu3 %v5771_v26 }
 0x338   :  { %2581 = vmatpush.bf16.msra.mxu2 %v5769_v10  ;;  %2595 = vmatpush.bf16.msra.mxu3 %v5777_v0 }
 0x33c   :  { %2582 = vmatpush.bf16.msra.mxu2 %v5775_v28  ;;  %2596 = vmatpush.bf16.msra.mxu3 %v5783_v3 }
 0x340   :  { %2583 = vmatpush.bf16.msra.mxu2 %v5781_v62  ;;  %2597 = vmatpush.bf16.msra.mxu3 %v5789_v44 }
 0x344   :  { %2584 = vmatpush.bf16.msra.mxu2 %v5787_v29  ;;  %2598 = vmatpush.bf16.msra.mxu3 %v5795_v27 }
 0x348   :  { %2585 = vmatpush.bf16.msra.mxu2 %v5793_v5  ;;  %2679 = vmatpush.bf16.msrb.mxu3 %v4459_v12 }
 0x34c   :  { %2666 = vmatpush.bf16.msrb.mxu2 %v4447_v8  ;;  %2680 = vmatpush.bf16.msrb.mxu3 %v4497_v25 }
 0x350   :  { %2667 = vmatpush.bf16.msrb.mxu2 %v4486_v21  ;;  %2681 = vmatpush.bf16.msrb.mxu3 %v4536_v38 }
 0x354   :  { %2668 = vmatpush.bf16.msrb.mxu2 %v4524_v34  ;;  %2682 = vmatpush.bf16.msrb.mxu3 %v4572_v50 }
 0x358   :  { %2669 = vmatpush.bf16.msrb.mxu2 %v4560_v46  ;;  %2683 = vmatpush.bf16.msrb.mxu3 %v9847_v2 }
 0x35c   :  { %2670 = vmatpush.bf16.msrb.mxu2 %v4596_v58  ;;  %2684 = vmatpush.bf16.msrb.mxu3 %v9849_v7 }
 0x360   :  { %2671 = vmatpush.bf16.msrb.mxu2 %v9848_v59  ;;  %2685 = vmatpush.bf16.msrb.mxu3 %v9851_v56 }
 0x364   :  { %2672 = vmatpush.bf16.msrb.mxu2 %v9850_v33 }
 0x391   :  { %v2453_v51 = vpop.f32.mrf.mxu0  ;;  %v2466_v60 = vpop.f32.mrf.mxu1 }
 0x392   :  { %v2470_v1 = vrot.slane %v2453_v51, 4  ;;  %v2476_v31 = vrot.slane %v2466_v60, 4 }
 0x394   :  { %v2471_v32 = vadd.f32 %v2470_v1, %v2453_v51  ;;  %v2477_v55 = vadd.f32 %v2476_v31, %v2466_v60  ;;  %v9853_v31 = vld [vmem:[#allocation18_spill] sm:$0xff] }
 0x395   :  { %2686 = vmatpush.bf16.msrb.mxu3 %v9853_v31 }
 0x396   :  { %v2472_v61 = vrot.slane %v2471_v32, 2  ;;  %v2478_v40 = vrot.slane %v2477_v55, 2 }
 0x398   :  { %v2473_v19 = vadd.f32 %v2472_v61, %v2471_v32  ;;  %v2479_v48 = vadd.f32 %v2478_v40, %v2477_v55 }
 0x399   :  { %v2455_v15 = vpop.f32.mrf.mxu0  ;;  %v2468_v4 = vpop.f32.mrf.mxu1 }
 0x39a   :  { %v2474_v47 = vrot.slane %v2473_v19, 1  ;;  %v2480_v8 = vrot.slane %v2479_v48, 1  ;;  %v1632_v15 = vld [vmem:[%s9542_s2 + $0x8] sm:$0xff] }
 0x39b   :  { %v5836_v4 = vpack.c.bf16 %v1632_v15, %v1632_v15 }
 0x39c   :  { %v2475_v42 = vadd.f32 %v2474_v47, %v2473_v19  ;;  %v2481_v12 = vadd.f32 %v2480_v8, %v2479_v48  ;;  %v1631_v19 = vld [vmem:[%s9542_s2] sm:$0xff] }
 0x39d   :  { %v5830_v48 = vpack.c.bf16 %v1631_v19, %v1631_v19  ;;  %v9854_v47 = vld [vmem:[#allocation43_spill] sm:$0xff]  ;;  %2661 = vmatmul.bf16.vlgmr.msrb.gmra.mxu1 %v5836_v4  ;;  %v9865_v19 = vld [vmem:[#allocation52_spill] sm:$0xff] }
 0x39e   :  { %v2482_v21 = vmul.f32 %v2475_v42, %v5351_v14  ;;  %v2483_v11 = vmul.f32 %v2481_v12, %v5351_v14  ;;  %v9855_v42 = vld [vmem:[#allocation44_spill] sm:$0xff] }
 0x39f   :  { %2648 = vmatmul.bf16.vlgmr.msrb.gmra.mxu0 %v5830_v48  ;;  %2758 = vmatpush.bf16.msrb.mxu1 %v9855_v42  ;;  %v9869_v42 = vld [vmem:[#allocation54_spill] sm:$0xff] }
 0x3a0   :  { %v5809_v25 = vsub.f32 %v2453_v51, %v2482_v21  ;;  %v5811_v41 = vsub.f32 %v2466_v60, %v2483_v11  ;;  %v9852_v51 = vld [vmem:[#allocation17_spill] sm:$0xff]  ;;  %2745 = vmatpush.bf16.msrb.mxu0 %v9854_v47 }
 0x3a1   :  { %2673 = vmatpush.bf16.msrb.mxu2 %v9852_v51  ;;  %v9866_v47 = vld [vmem:[#allocation53_spill] sm:$0xff] }
 0x3a2   :  { %v2486_v34 = vmul.f32 %v5809_v25, %v5809_v25  ;;  %v2487_v38 = vmul.f32 %v5811_v41, %v5811_v41 }
 0x3a4   :  { %v2488_v46 = vrot.slane %v2486_v34, 4  ;;  %v2494_v49 = vrot.slane %v2487_v38, 4 }
 0x3a6   :  { %v2489_v54 = vadd.f32 %v2488_v46, %v2486_v34  ;;  %v2495_v50 = vadd.f32 %v2494_v49, %v2487_v38  ;;  %v9856_v34 = vld [vmem:[#allocation45_spill] sm:$0xff]  ;;  %v9857_v46 = vld [vmem:[#allocation46_spill] sm:$0xff] }
 0x3a7   :  { %2746 = vmatpush.bf16.msrb.mxu0 %v9856_v34  ;;  %2759 = vmatpush.bf16.msrb.mxu1 %v9857_v46  ;;  %v9873_v34 = vld [vmem:[#allocation56_spill] sm:$0xff]  ;;  %v1633_v46 = vld [vmem:[%s9542_s2 + $0x10] sm:$0xff] }
 0x3a8   :  { %v2490_v16 = vrot.slane %v2489_v54, 2  ;;  %v2496_v17 = vrot.slane %v2495_v50, 2 }
 0x3aa   :  { %v2491_v58 = vadd.f32 %v2490_v16, %v2489_v54  ;;  %v2497_v45 = vadd.f32 %v2496_v17, %v2495_v50  ;;  %v9858_v54 = vld [vmem:[#allocation47_spill] sm:$0xff]  ;;  %v9859_v16 = vld [vmem:[#allocation48_spill] sm:$0xff] }
 0x3ab   :  { %2747 = vmatpush.bf16.msrb.mxu0 %v9858_v54  ;;  %2760 = vmatpush.bf16.msrb.mxu1 %v9859_v16  ;;  %v1634_v54 = vld [vmem:[%s9542_s2 + $0x18] sm:$0xff]  ;;  %v5883_v16 = vpack.c.bf16 %v1633_v46, %v1633_v46 }
 0x3ac   :  { %v2492_v57 = vrot.slane %v2491_v58, 1  ;;  %v2498_v6 = vrot.slane %v2497_v45, 1  ;;  %v9905_v46 = vld [vmem:[#allocation83_spill] sm:$0xff] }
 0x3ad   :  { %9880 = vst [vmem:[#allocation14_spill] sm:$0xff] %v5883_v16 }
 0x3ae   :  { %v2493_v60 = vadd.f32 %v2492_v57, %v2491_v58  ;;  %v2499_v1 = vadd.f32 %v2498_v6, %v2497_v45  ;;  %v1635_v58 = vld [vmem:[%s9542_s2 + $0x20] sm:$0xff]  ;;  %v9860_v45 = vld [vmem:[#allocation49_spill] sm:$0xff] }
 0x3af   :  { %2748 = vmatpush.bf16.msrb.mxu0 %v9860_v45  ;;  %v5849_v57 = vpack.c.bf16 %v1635_v58, %v1635_v58  ;;  %v9883_v58 = vld [vmem:[#allocation65_spill] sm:$0xff]  ;;  %v9884_v45 = vld [vmem:[#allocation30_spill] sm:$0xff] }
 0x3b0   :  { %v2500_v32 = vmul.f32 %v2493_v60, %v5351_v14  ;;  %v2501_v55 = vmul.f32 %v2499_v1, %v5351_v14  ;;  %v1636_v60 = vld [vmem:[%s9542_s2 + $0x28] sm:$0xff]  ;;  %v9862_v1 = vld [vmem:[#allocation50_spill] sm:$0xff] }
 0x3b1   :  { %9861 = vst [vmem:[#allocation12_spill] sm:$0xff] %v5849_v57  ;;  %2761 = vmatpush.bf16.msrb.mxu1 %v9862_v1  ;;  %2700 = vmatmul.bf16.vlgmr.msra.gmra.mxu0 %v5849_v57  ;;  %v9889_v1 = vld [vmem:[#allocation70_spill] sm:$0xff] }
 0x3b2   :  { %v2502_v61 = vadd.f32 1e-05, %v2500_v32  ;;  %v2503_v40 = vadd.f32 1e-05, %v2501_v55  ;;  %v5858_v32 = vpack.c.bf16 %v1636_v60, %v1636_v60  ;;  %v9888_v60 = vld [vmem:[#allocation69_spill] sm:$0xff] }
 0x3b4   :  { %4185 = vrsqrt.f32 %v2502_v61  ;;  %vm2510_vm2 = vweird.f32 %v2502_v61  ;;  %vm2520_vm4 = vweird.f32 %v2503_v40  ;;  %9863 = vst [vmem:[#allocation13_spill] sm:$0xff] %v5858_v32  ;;  %2713 = vmatmul.bf16.vlgmr.msra.gmra.mxu1 %v5858_v32 }
 0x3b5   :  { %4187 = vrsqrt.f32 %v2503_v40  ;;  %2762 = vmatpush.bf16.msrb.mxu1 %v9865_v19  ;;  %v1637_v19 = vld [vmem:[%s9542_s2 + $0x30] sm:$0xff] }
 0x3b9   :  { %2763 = vmatpush.bf16.msrb.mxu1 %v9869_v42  ;;  %v5911_v42 = vpack.c.bf16 %v1637_v19, %v1637_v19  ;;  %v9925_v19 = vld [vmem:[#allocation95_spill] sm:$0xff] }
 0x3ba   :  { %v4186_v8 = vpop.eup %4185 }
 0x3bb   :  { %v4188_v12 = vpop.eup %4187  ;;  %v2505_v21 = vmul.f32 %v4186_v8, %v2502_v61  ;;  %vm2511_vm0 = vweird.f32 %v4186_v8  ;;  %v9864_v61 = vld [vmem:[#allocation51_spill] sm:$0xff]  ;;  %9898 = vst [vmem:[#allocation16_spill] sm:$0xff] %v5911_v42 }
 0x3bc   :  { %v2515_v11 = vmul.f32 %v4188_v12, %v2503_v40  ;;  %vm2521_vm1 = vweird.f32 %v4188_v12  ;;  %vm2512_vm3 = vmor %vm2510_vm2, %vm2511_vm0  ;;  %2749 = vmatpush.bf16.msrb.mxu0 %v9864_v61  ;;  %v9892_v61 = vld [vmem:[#allocation73_spill] sm:$0xff] }
 0x3bd   :  { %v2506_v38 = vmul.f32 %v4186_v8, %v2505_v21  ;;  %vm2522_vm5 = vmor %vm2520_vm4, %vm2521_vm1  ;;  %v9871_v21 = vld [vmem:[#allocation25_spill] sm:$0xff]  ;;  %2764 = vmatpush.bf16.msrb.mxu1 %v9873_v34  ;;  %v9902_v34 = vld [vmem:[#allocation59_spill] sm:$0xff] }
 0x3be   :  { %v2516_v2 = vmul.f32 %v4188_v12, %v2515_v11  ;;  %v9872_v11 = vld [vmem:[#allocation26_spill] sm:$0xff] }
 0x3bf   :  { %v2507_v49 = vmul.f32 0.5, %v2506_v38  ;;  %v9874_v38 = vld [vmem:[#allocation57_spill] sm:$0xff] }
 0x3c0   :  { %v2517_v59 = vmul.f32 0.5, %v2516_v2  ;;  %2750 = vmatpush.bf16.msrb.mxu0 %v9866_v47  ;;  %v9875_v2 = vld [vmem:[#allocation27_spill] sm:$0xff] }
 0x3c1   :  { %v2508_v50 = vsub.f32 1.5, %v2507_v49  ;;  %v9876_v49 = vld [vmem:[#allocation61_spill] sm:$0xff]  ;;  %v1638_v47 = vld [vmem:[%s9542_s2 + $0x38] sm:$0xff] }
 0x3c2   :  { %v2518_v7 = vsub.f32 1.5, %v2517_v59  ;;  %v9877_v59 = vld [vmem:[#allocation28_spill] sm:$0xff] }
 0x3c3   :  { %v2509_v17 = vmul.f32 %v4186_v8, %v2508_v50  ;;  %v9878_v50 = vld [vmem:[#allocation58_spill] sm:$0xff] }
 0x3c4   :  { %v2519_v33 = vmul.f32 %v4188_v12, %v2518_v7  ;;  %2765 = vmatpush.bf16.msrb.mxu1 %v9878_v50  ;;  %v9879_v7 = vld [vmem:[#allocation62_spill] sm:$0xff]  ;;  %v9909_v50 = vld [vmem:[#allocation87_spill] sm:$0xff] }
 0x3c5   :  { %v2513_v56 = vsel %vm2512_vm3, %v4186_v8, %v2509_v17  ;;  %v9867_v8 = vld [vmem:[#allocation19_spill] sm:$0xff]  ;;  %v9881_v17 = vld [vmem:[#allocation29_spill] sm:$0xff] }
 0x3c6   :  { %v2524_v6 = vmul.f32 %v2513_v56, %v5809_v25  ;;  %v2523_v51 = vsel %vm2522_vm5, %v4188_v12, %v2519_v33  ;;  %v9870_v12 = vld [vmem:[#allocation55_spill] sm:$0xff]  ;;  %v5886_v33 = vpack.c.bf16 %v1634_v54, %v1634_v54  ;;  %v9885_v56 = vld [vmem:[#allocation66_spill] sm:$0xff] }
 0x3c7   :  { %v2525_v31 = vmul.f32 %v2523_v51, %v5811_v41  ;;  %v9868_v41 = vld [vmem:[#allocation20_spill] sm:$0xff]  ;;  %2751 = vmatpush.bf16.msrb.mxu0 %v9870_v12  ;;  %v9899_v12 = vld [vmem:[#allocation37_spill] sm:$0xff]  ;;  %v9908_v54 = vld [vmem:[#allocation86_spill] sm:$0xff] }
 0x3c8   :  { %v2526_v55 = vmax.f32 %v2524_v6, 0.0  ;;  %2870 = vmatpush.bf16.msra.mxu1 %v9879_v7  ;;  %9882 = vst [vmem:[#allocation15_spill] sm:$0xff] %v5886_v33  ;;  %v9886_v6 = vld [vmem:[#allocation31_spill] sm:$0xff]  ;;  %v9887_v51 = vld [vmem:[#allocation32_spill] sm:$0xff] }
 0x3c9   :  { %v2527_v40 = vmax.f32 %v2525_v31, 0.0  ;;  %v9890_v31 = vld [vmem:[#allocation33_spill] sm:$0xff]  ;;  %v9910_v7 = vld [vmem:[#allocation67_spill] sm:$0xff] }
 0x3ca   :  { %v2560_v25 = vpack.c.bf16 %v2526_v55, %v2526_v55  ;;  %v9891_v55 = vld [vmem:[#allocation34_spill] sm:$0xff] }
 0x3cb   :  { %v2561_v15 = vpack.c.bf16 %v2527_v40, %v2527_v40  ;;  %2752 = vmatpush.bf16.msrb.mxu0 %v9874_v38  ;;  %v9893_v40 = vld [vmem:[#allocation74_spill] sm:$0xff]  ;;  %v9903_v38 = vld [vmem:[#allocation60_spill] sm:$0xff] }
 0x3cc   :  { %2586 = vmatmul.bf16.vlgmr.msra.gmra.mxu2 %v2560_v25  ;;  %2871 = vmatpush.bf16.msra.mxu1 %v9885_v56  ;;  %v9894_v25 = vld [vmem:[#allocation35_spill] sm:$0xff]  ;;  %v9914_v56 = vld [vmem:[#allocation72_spill] sm:$0xff] }
 0x3cd   :  { %2599 = vmatmul.bf16.vlgmr.msra.gmra.mxu3 %v2561_v15  ;;  %2718 = vmatpush.bf16.msra.mxu2 %v9867_v8  ;;  %v9895_v15 = vld [vmem:[#allocation36_spill] sm:$0xff]  ;;  %v9896_v8 = vld [vmem:[#allocation78_spill] sm:$0xff] }
 0x3ce   :  { %2731 = vmatpush.bf16.msra.mxu3 %v9868_v41  ;;  %v9897_v41 = vld [vmem:[#allocation79_spill] sm:$0xff] }
 0x3cf   :  { %2857 = vmatpush.bf16.msra.mxu0 %v9876_v49  ;;  %v9906_v49 = vld [vmem:[#allocation63_spill] sm:$0xff] }
 0x3d0   :  { %2872 = vmatpush.bf16.msra.mxu1 %v9889_v1  ;;  %v9918_v1 = vld [vmem:[#allocation81_spill] sm:$0xff] }
 0x3d1   :  { %2719 = vmatpush.bf16.msra.mxu2 %v9871_v21  ;;  %v5914_v21 = vpack.c.bf16 %v1638_v47, %v1638_v47  ;;  %v9927_v47 = vld [vmem:[#allocation97_spill] sm:$0xff] }
 0x3d2   :  { %2732 = vmatpush.bf16.msra.mxu3 %v9872_v11  ;;  %v9901_v11 = vld [vmem:[#allocation38_spill] sm:$0xff] }
 0x3d3   :  { %2858 = vmatpush.bf16.msra.mxu0 %v9883_v58  ;;  %9900 = vst [vmem:[#allocation17_spill] sm:$0xff] %v5914_v21  ;;  %v9912_v58 = vld [vmem:[#allocation90_spill] sm:$0xff] }
 0x3d4   :  { %2873 = vmatpush.bf16.msra.mxu1 %v9893_v40  ;;  %v9922_v40 = vld [vmem:[#allocation89_spill] sm:$0xff] }
 0x3d5   :  { %2720 = vmatpush.bf16.msra.mxu2 %v9875_v2  ;;  %v9904_v2 = vld [vmem:[#allocation82_spill] sm:$0xff] }
 0x3d6   :  { %2733 = vmatpush.bf16.msra.mxu3 %v9877_v59  ;;  %v9907_v59 = vld [vmem:[#allocation64_spill] sm:$0xff] }
 0x3d7   :  { %2859 = vmatpush.bf16.msra.mxu0 %v9888_v60  ;;  %v9917_v60 = vld [vmem:[#allocation80_spill] sm:$0xff] }
 0x3d8   :  { %2874 = vmatpush.bf16.msra.mxu1 %v9897_v41  ;;  %v9929_v41 = vld [vmem:[#allocation99_spill] sm:$0xff] }
 0x3d9   :  { %2721 = vmatpush.bf16.msra.mxu2 %v9881_v17  ;;  %v9911_v17 = vld [vmem:[#allocation68_spill] sm:$0xff] }
 0x3da   :  { %2734 = vmatpush.bf16.msra.mxu3 %v9884_v45  ;;  %v9913_v45 = vld [vmem:[#allocation71_spill] sm:$0xff] }
 0x3db   :  { %2860 = vmatpush.bf16.msra.mxu0 %v9892_v61  ;;  %v9921_v61 = vld [vmem:[#allocation88_spill] sm:$0xff] }
 0x3dc   :  { %2674 = vmatmul.bf16.vlgmr.msrb.gmra.mxu2 %v5883_v16  ;;  %2875 = vmatpush.bf16.msra.mxu1 %v9905_v46  ;;  %v9935_v46 = vld [vmem:[#allocation105_spill] sm:$0xff] }
 0x3dd   :  { %2687 = vmatmul.bf16.vlgmr.msrb.gmra.mxu3 %v5886_v33  ;;  %2722 = vmatpush.bf16.msra.mxu2 %v9886_v6  ;;  %v9915_v6 = vld [vmem:[#allocation76_spill] sm:$0xff] }
 0x3de   :  { %2735 = vmatpush.bf16.msra.mxu3 %v9887_v51  ;;  %v9916_v51 = vld [vmem:[#allocation77_spill] sm:$0xff]  ;;  %v450_v33 = vld [vmem:[%s9543_s3 + $0x360] sm:$0xff] }
 0x3df   :  { %2861 = vmatpush.bf16.msra.mxu0 %v9896_v8  ;;  %v9928_v8 = vld [vmem:[#allocation94_spill] sm:$0xff] }
 0x3e0   :  { %2876 = vmatpush.bf16.msra.mxu1 %v9909_v50 }
 0x3e1   :  { %2723 = vmatpush.bf16.msra.mxu2 %v9890_v31  ;;  %v9919_v31 = vld [vmem:[#allocation84_spill] sm:$0xff] }
 0x3e2   :  { %2736 = vmatpush.bf16.msra.mxu3 %v9891_v55  ;;  %v9920_v55 = vld [vmem:[#allocation85_spill] sm:$0xff] }
 0x3e3   :  { %2862 = vmatpush.bf16.msra.mxu0 %v9904_v2  ;;  %v9934_v2 = vld [vmem:[#allocation100_spill] sm:$0xff] }
 0x3e4   :  { %2877 = vmatpush.bf16.msra.mxu1 %v5507_v22  ;;  %v9923_v22 = vld [vmem:[#allocation93_spill] sm:$0xff] }
 0x3e5   :  { %2724 = vmatpush.bf16.msra.mxu2 %v9894_v25  ;;  %v9924_v25 = vld [vmem:[#allocation91_spill] sm:$0xff] }
 0x3e6   :  { %2737 = vmatpush.bf16.msra.mxu3 %v9895_v15  ;;  %v9926_v15 = vld [vmem:[#allocation92_spill] sm:$0xff] }
 0x3e7   :  { %2863 = vmatpush.bf16.msra.mxu0 %v9908_v54  ;;  %v9938_v54 = vld [vmem:[#allocation104_spill] sm:$0xff] }
 0x3e9   :  { %2725 = vmatpush.bf16.msra.mxu2 %v9899_v12  ;;  %v9930_v12 = vld [vmem:[#allocation96_spill] sm:$0xff] }
 0x3ea   :  { %2738 = vmatpush.bf16.msra.mxu3 %v9901_v11  ;;  %v9931_v11 = vld [vmem:[#allocation101_spill] sm:$0xff] }
 0x3eb   :  { %2864 = vmatpush.bf16.msra.mxu0 %v9912_v58 }
 0x3ec   :  { %2726 = vmatmul.bf16.vlgmr.msra.gmra.mxu2 %v5911_v42 }
 0x3ed   :  { %2831 = vmatpush.bf16.msrb.mxu2 %v9902_v34  ;;  %2739 = vmatmul.bf16.vlgmr.msra.gmra.mxu3 %v5914_v21  ;;  %v9932_v34 = vld [vmem:[#allocation98_spill] sm:$0xff] }
 0x3ee   :  { %2844 = vmatpush.bf16.msrb.mxu3 %v9903_v38  ;;  %v9933_v38 = vld [vmem:[#allocation103_spill] sm:$0xff] }
 0x3f1   :  { %2832 = vmatpush.bf16.msrb.mxu2 %v9906_v49  ;;  %v9936_v49 = vld [vmem:[#allocation102_spill] sm:$0xff] }
 0x3f2   :  { %2845 = vmatpush.bf16.msrb.mxu3 %v9907_v59  ;;  %v9937_v59 = vld [vmem:[#allocation106_spill] sm:$0xff] }
 0x3f5   :  { %2833 = vmatpush.bf16.msrb.mxu2 %v9910_v7 }
 0x3f6   :  { %2846 = vmatpush.bf16.msrb.mxu3 %v9911_v17 }
 0x3f9   :  { %2834 = vmatpush.bf16.msrb.mxu2 %v9913_v45 }
 0x3fa   :  { %2847 = vmatpush.bf16.msrb.mxu3 %v9914_v56 }
 0x3fd   :  { %2835 = vmatpush.bf16.msrb.mxu2 %v9915_v6 }
 0x3fe   :  { %2848 = vmatpush.bf16.msrb.mxu3 %v9916_v51 }
 0x401   :  { %2836 = vmatpush.bf16.msrb.mxu2 %v9917_v60 }
 0x402   :  { %2849 = vmatpush.bf16.msrb.mxu3 %v9918_v1 }
 0x405   :  { %2837 = vmatpush.bf16.msrb.mxu2 %v9919_v31 }
 0x406   :  { %2850 = vmatpush.bf16.msrb.mxu3 %v9920_v55 }
 0x409   :  { %2838 = vmatpush.bf16.msrb.mxu2 %v9921_v61 }
 0x40a   :  { %2851 = vmatpush.bf16.msrb.mxu3 %v9922_v40 }
 0x40d   :  { %2943 = vmatpush.bf16.msra.mxu2 %v9923_v22 }
 0x40e   :  { %2956 = vmatpush.bf16.msra.mxu3 %v9924_v25 }
 0x411   :  { %2944 = vmatpush.bf16.msra.mxu2 %v9925_v19 }
 0x412   :  { %2957 = vmatpush.bf16.msra.mxu3 %v9926_v15 }
 0x415   :  { %2945 = vmatpush.bf16.msra.mxu2 %v9927_v47 }
 0x416   :  { %2958 = vmatpush.bf16.msra.mxu3 %v9928_v8 }
 0x419   :  { %2946 = vmatpush.bf16.msra.mxu2 %v9929_v41 }
 0x41a   :  { %2959 = vmatpush.bf16.msra.mxu3 %v9930_v12  ;;  %v2662_v7 = vpop.f32.mrf.mxu1 }
 0x41c   :  { %v2649_v50 = vpop.f32.mrf.mxu0 }
 0x41d   :  { %2947 = vmatpush.bf16.msra.mxu2 %v9931_v11  ;;  %v2663_v12 = vadd.f32 %v2662_v7, %v2649_v50 }
 0x41e   :  { %2960 = vmatpush.bf16.msra.mxu3 %v9932_v34 }
 0x421   :  { %2948 = vmatpush.bf16.msra.mxu2 %v9933_v38 }
 0x422   :  { %2961 = vmatpush.bf16.msra.mxu3 %v9934_v2  ;;  %v2664_v58 = vpop.f32.mrf.mxu1 }
 0x424   :  { %v2651_v17 = vpop.f32.mrf.mxu0 }
 0x425   :  { %2949 = vmatpush.bf16.msra.mxu2 %v9935_v46 }
 0x426   :  { %2962 = vmatpush.bf16.msra.mxu3 %v9936_v49 }
 0x429   :  { %2950 = vmatpush.bf16.msra.mxu2 %v9937_v59 }
 0x42a   :  { %2963 = vmatpush.bf16.msra.mxu3 %v9938_v54 }
 0x42e   :  { %v2701_v45 = vpop.f32.mrf.mxu0 }
 0x431   :  { %v2714_v56 = vpop.f32.mrf.mxu1 }
 0x436   :  { %v2703_v6 = vpop.f32.mrf.mxu0 }
 0x439   :  { %v2716_v51 = vpop.f32.mrf.mxu1 }
 0x44f   :  { %v2587_v60 = vpop.f32.mrf.mxu2 }
 0x450   :  { %v2600_v1 = vpop.f32.mrf.mxu3 }
 0x451   :  { %v2601_v31 = vadd.f32 %v2600_v1, %v2587_v60 }
 0x453   :  { %v2604_v55 = vrot.slane %v2601_v31, 4 }
 0x455   :  { %v2605_v61 = vadd.f32 %v2604_v55, %v2601_v31 }
 0x457   :  { %v2606_v40 = vrot.slane %v2605_v61, 2  ;;  %v2589_v22 = vpop.f32.mrf.mxu2 }
 0x458   :  { %v2602_v25 = vpop.f32.mrf.mxu3 }
 0x459   :  { %v2607_v19 = vadd.f32 %v2606_v40, %v2605_v61 }
 0x45b   :  { %v2608_v15 = vrot.slane %v2607_v19, 1 }
 0x45d   :  { %v2609_v47 = vadd.f32 %v2608_v15, %v2607_v19 }
 0x45f   :  { %v2675_v8 = vpop.f32.mrf.mxu2  ;;  %v2610_v41 = vmul.f32 %v2609_v47, %v5351_v14 }
 0x460   :  { %v2688_v11 = vpop.f32.mrf.mxu3  ;;  %v2676_v38 = vadd.f32 %v2675_v8, %v2663_v12  ;;  %v9941_v12 = vld [vmem:[#allocation109_spill] sm:$0xff] }
 0x461   :  { %v2611_v34 = vsub.f32 %v2601_v31, %v2610_v41  ;;  %v9940_v41 = vld [vmem:[#allocation108_spill] sm:$0xff] }
 0x462   :  { %v2689_v49 = vadd.f32 %v2688_v11, %v2676_v38 }
 0x463   :  { %v2612_v2 = vmul.f32 %v2611_v34, %v2611_v34 }
 0x464   :  { %v2702_v6 = vadd.f32 %v2701_v45, %v2689_v49  ;;  %v9945_v49 = vld [vmem:[#allocation112_spill] sm:$0xff] }
 0x465   :  { %v2613_v46 = vrot.slane %v2612_v2, 4 }
 0x466   :  { %v2715_v1 = vadd.f32 %v2714_v56, %v2702_v6  ;;  %v9939_v56 = vld [vmem:[#allocation107_spill] sm:$0xff] }
 0x467   :  { %v2677_v59 = vpop.f32.mrf.mxu2  ;;  %v2614_v54 = vadd.f32 %v2613_v46, %v2612_v2  ;;  %v9944_v46 = vld [vmem:[#allocation111_spill] sm:$0xff] }
 0x468   :  { %v2690_v17 = vpop.f32.mrf.mxu3 }
 0x469   :  { %v2615_v58 = vrot.slane %v2614_v54, 2 }
 0x46b   :  { %v2616_v51 = vadd.f32 %v2615_v58, %v2614_v54  ;;  %v9946_v54 = vld [vmem:[#allocation113_spill] sm:$0xff] }
 0x46d   :  { %v2617_v60 = vrot.slane %v2616_v51, 1 }
 0x46f   :  { %v2727_v55 = vpop.f32.mrf.mxu2  ;;  %v2618_v61 = vadd.f32 %v2617_v60, %v2616_v51 }
 0x470   :  { %v2728_v40 = vadd.f32 %v2727_v55, %v2715_v1  ;;  %v2740_v22 = vpop.f32.mrf.mxu3 }
 0x471   :  { %v2619_v50 = vmul.f32 %v2618_v61, %v5351_v14 }
 0x472   :  { %v2741_v7 = vadd.f32 %v2740_v22, %v2728_v40 }
 0x473   :  { %v2620_v31 = vadd.f32 1e-05, %v2619_v50 }
 0x474   :  { %v2744_v25 = vpack.c.bf16 %v2741_v7, %v2741_v7 }
 0x475   :  { %4189 = vrsqrt.f32 %v2620_v31  ;;  %vm2627_vm7 = vweird.f32 %v2620_v31 }
 0x476   :  { %2753 = vmatmul.bf16.vlgmr.msrb.gmra.mxu0 %v2744_v25  ;;  %2766 = vmatmul.bf16.vlgmr.msrb.gmra.mxu1 %v2744_v25 }
 0x477   :  { %v2729_v19 = vpop.f32.mrf.mxu2  ;;  %2998 = vmatpush.bf16.msrb.mxu0 %v5669_v9  ;;  %3011 = vmatpush.bf16.msrb.mxu1 %v5671_v53  ;;  %v9942_v9 = vld [vmem:[#allocation110_spill] sm:$0xff] }
 0x478   :  { %v2742_v45 = vpop.f32.mrf.mxu3 }
 0x47b   :  { %v4190_v15 = vpop.eup %4189  ;;  %2999 = vmatpush.bf16.msrb.mxu0 %v5675_v63  ;;  %3012 = vmatpush.bf16.msrb.mxu1 %v9939_v56 }
 0x47c   :  { %v2622_v47 = vmul.f32 %v4190_v15, %v2620_v31  ;;  %vm2628_vm6 = vweird.f32 %v4190_v15 }
 0x47d   :  { %vm2629_vm8 = vmor %vm2627_vm7, %vm2628_vm6 }
 0x47e   :  { %v2623_v8 = vmul.f32 %v4190_v15, %v2622_v47 }
 0x47f   :  { %3000 = vmatpush.bf16.msrb.mxu0 %v9940_v41  ;;  %3013 = vmatpush.bf16.msrb.mxu1 %v9941_v12 }
 0x480   :  { %v2624_v11 = vmul.f32 0.5, %v2623_v8 }
 0x482   :  { %v2625_v38 = vsub.f32 1.5, %v2624_v11 }
 0x483   :  { %3001 = vmatpush.bf16.msrb.mxu0 %v5687_v30  ;;  %3014 = vmatpush.bf16.msrb.mxu1 %v9942_v9 }
 0x484   :  { %v2626_v53 = vmul.f32 %v4190_v15, %v2625_v38 }
 0x486   :  { %v2630_v2 = vsel %vm2629_vm8, %v4190_v15, %v2626_v53 }
 0x487   :  { %v5967_v63 = vmul.f32 %v2630_v2, %v2611_v34  ;;  %3002 = vmatpush.bf16.msrb.mxu0 %v9944_v46  ;;  %3015 = vmatpush.bf16.msrb.mxu1 %v9945_v49 }
 0x489   :  { %9943 = vst [vmem:[#allocation18_spill] sm:$0xff] %v5967_v63  ;;  %v3980_v59 = vmul.f32 %v5967_v63, %v5967_v63 }
 0x48b   :  { %3981 = vadd.xlane.f32.xlu1 %v3980_v59  ;;  %3003 = vmatpush.bf16.msrb.mxu0 %v5699_v52 }
 0x48c   :  { %3016 = vmatpush.bf16.msrb.mxu1 %v9946_v54 }
 0x48f   :  { %3004 = vmatpush.bf16.msrb.mxu0 %v5706_v13 }
 0x490   :  { %3017 = vmatpush.bf16.msrb.mxu1 %v5708_v24 }
 0x493   :  { %3005 = vmatpush.bf16.msrb.mxu0 %v5712_v35 }
 0x494   :  { %3018 = vmatpush.bf16.msrb.mxu1 %v5714_v37 }
 0x4f3   :  { %v2754_v30 = vpop.f32.mrf.mxu0  ;;  %v2767_v34 = vpop.f32.mrf.mxu1 }
 0x4f4   :  { %v2771_v17 = vrot.slane %v2754_v30, 4  ;;  %v2777_v58 = vrot.slane %v2767_v34, 4 }
 0x4f6   :  { %v2772_v6 = vadd.f32 %v2771_v17, %v2754_v30  ;;  %v2778_v51 = vadd.f32 %v2777_v58, %v2767_v34 }
 0x4f8   :  { %v2773_v60 = vrot.slane %v2772_v6, 2  ;;  %v2779_v1 = vrot.slane %v2778_v51, 2 }
 0x4fa   :  { %v2774_v55 = vadd.f32 %v2773_v60, %v2772_v6  ;;  %v2780_v52 = vadd.f32 %v2779_v1, %v2778_v51 }
 0x4fb   :  { %v2756_v61 = vpop.f32.mrf.mxu0  ;;  %v2769_v40 = vpop.f32.mrf.mxu1 }
 0x4fc   :  { %v2775_v22 = vrot.slane %v2774_v55, 1  ;;  %v2781_v13 = vrot.slane %v2780_v52, 1 }
 0x4fe   :  { %v2776_v50 = vadd.f32 %v2775_v22, %v2774_v55  ;;  %v2782_v24 = vadd.f32 %v2781_v13, %v2780_v52 }
 0x500   :  { %v2783_v35 = vmul.f32 %v2776_v50, %v5351_v14  ;;  %v2784_v37 = vmul.f32 %v2782_v24, %v5351_v14 }
 0x502   :  { %v2785_v7 = vsub.f32 %v2754_v30, %v2783_v35  ;;  %v2786_v31 = vsub.f32 %v2767_v34, %v2784_v37 }
 0x504   :  { %v2787_v25 = vmul.f32 %v2785_v7, %v2785_v7  ;;  %v2788_v19 = vmul.f32 %v2786_v31, %v2786_v31 }
 0x506   :  { %v2789_v45 = vrot.slane %v2787_v25, 4  ;;  %v2795_v15 = vrot.slane %v2788_v19, 4 }
 0x508   :  { %v2790_v56 = vadd.f32 %v2789_v45, %v2787_v25  ;;  %v2796_v47 = vadd.f32 %v2795_v15, %v2788_v19 }
 0x50a   :  { %v2791_v8 = vrot.slane %v2790_v56, 2  ;;  %v2797_v41 = vrot.slane %v2796_v47, 2 }
 0x50c   :  { %v2792_v12 = vadd.f32 %v2791_v8, %v2790_v56  ;;  %v2798_v11 = vadd.f32 %v2797_v41, %v2796_v47 }
 0x50e   :  { %v2793_v38 = vrot.slane %v2792_v12, 1  ;;  %v2799_v9 = vrot.slane %v2798_v11, 1 }
 0x510   :  { %v2794_v53 = vadd.f32 %v2793_v38, %v2792_v12  ;;  %v2800_v2 = vadd.f32 %v2799_v9, %v2798_v11 }
 0x512   :  { %v2801_v46 = vmul.f32 %v2794_v53, %v5351_v14  ;;  %v2802_v49 = vmul.f32 %v2800_v2, %v5351_v14 }
 0x514   :  { %v2803_v59 = vadd.f32 1e-05, %v2801_v46  ;;  %v2804_v54 = vadd.f32 1e-05, %v2802_v49 }
 0x516   :  { %4191 = vrsqrt.f32 %v2803_v59  ;;  %vm2811_vm11 = vweird.f32 %v2803_v59  ;;  %vm2821_vm13 = vweird.f32 %v2804_v54 }
 0x517   :  { %4193 = vrsqrt.f32 %v2804_v54 }
 0x51c   :  { %v4192_v30 = vpop.eup %4191 }
 0x51d   :  { %v4194_v34 = vpop.eup %4193  ;;  %v2806_v17 = vmul.f32 %v4192_v30, %v2803_v59  ;;  %vm2812_vm9 = vweird.f32 %v4192_v30 }
 0x51e   :  { %v2816_v58 = vmul.f32 %v4194_v34, %v2804_v54  ;;  %vm2822_vm10 = vweird.f32 %v4194_v34  ;;  %vm2813_vm12 = vmor %vm2811_vm11, %vm2812_vm9 }
 0x51f   :  { %v2807_v6 = vmul.f32 %v4192_v30, %v2806_v17  ;;  %vm2823_vm14 = vmor %vm2821_vm13, %vm2822_vm10 }
 0x520   :  { %v2817_v51 = vmul.f32 %v4194_v34, %v2816_v58 }
 0x521   :  { %v2808_v60 = vmul.f32 0.5, %v2807_v6 }
 0x522   :  { %v2818_v1 = vmul.f32 0.5, %v2817_v51 }
 0x523   :  { %v2809_v55 = vsub.f32 1.5, %v2808_v60 }
 0x524   :  { %v2819_v52 = vsub.f32 1.5, %v2818_v1 }
 0x525   :  { %v2810_v61 = vmul.f32 %v4192_v30, %v2809_v55 }
 0x526   :  { %v2820_v40 = vmul.f32 %v4194_v34, %v2819_v52 }
 0x527   :  { %v2814_v22 = vsel %vm2813_vm12, %v4192_v30, %v2810_v61 }
 0x528   :  { %v2825_v13 = vmul.f32 %v2814_v22, %v2785_v7  ;;  %v2824_v50 = vsel %vm2823_vm14, %v4194_v34, %v2820_v40 }
 0x529   :  { %v2826_v24 = vmul.f32 %v2824_v50, %v2786_v31 }
 0x52a   :  { %v2827_v35 = vmax.f32 %v2825_v13, 0.0 }
 0x52b   :  { %v2828_v37 = vmax.f32 %v2826_v24, 0.0 }
 0x52c   :  { %v2829_v25 = vpack.c.bf16 %v2827_v35, %v2827_v35 }
 0x52d   :  { %v2830_v19 = vpack.c.bf16 %v2828_v37, %v2828_v37 }
 0x52e   :  { %2839 = vmatmul.bf16.vlgmr.msrb.gmra.mxu2 %v2829_v25  ;;  %2865 = vmatmul.bf16.vlgmr.msra.gmra.mxu0 %v2829_v25 }
 0x52f   :  { %2852 = vmatmul.bf16.vlgmr.msrb.gmra.mxu3 %v2830_v19  ;;  %2878 = vmatmul.bf16.vlgmr.msra.gmra.mxu1 %v2830_v19 }
 0x530   :  { %3084 = vmatpush.bf16.msrb.mxu2 %v5751_v23  ;;  %3097 = vmatpush.bf16.msrb.mxu3 %v5753_v43 }
 0x534   :  { %3085 = vmatpush.bf16.msrb.mxu2 %v5757_v20  ;;  %3098 = vmatpush.bf16.msrb.mxu3 %v5759_v36 }
 0x538   :  { %3086 = vmatpush.bf16.msrb.mxu2 %v5763_v39  ;;  %3099 = vmatpush.bf16.msrb.mxu3 %v5765_v18 }
 0x53c   :  { %3087 = vmatpush.bf16.msrb.mxu2 %v5769_v10  ;;  %3100 = vmatpush.bf16.msrb.mxu3 %v5771_v26 }
 0x540   :  { %3088 = vmatpush.bf16.msrb.mxu2 %v5775_v28  ;;  %3101 = vmatpush.bf16.msrb.mxu3 %v5777_v0 }
 0x544   :  { %3089 = vmatpush.bf16.msrb.mxu2 %v5781_v62  ;;  %3102 = vmatpush.bf16.msrb.mxu3 %v5783_v3 }
 0x548   :  { %3090 = vmatpush.bf16.msrb.mxu2 %v5787_v29  ;;  %3103 = vmatpush.bf16.msrb.mxu3 %v5789_v44 }
 0x54c   :  { %3091 = vmatpush.bf16.msrb.mxu2 %v5793_v5  ;;  %3104 = vmatpush.bf16.msrb.mxu3 %v5795_v27 }
 0x5ab   :  { %v2866_v23 = vpop.f32.mrf.mxu0 }
 0x5ac   :  { %v2879_v43 = vpop.f32.mrf.mxu1 }
 0x5ad   :  { %v2880_v20 = vadd.f32 %v2879_v43, %v2866_v23 }
 0x5af   :  { %v2889_v36 = vrot.slane %v2880_v20, 4 }
 0x5b1   :  { %v2890_v39 = vadd.f32 %v2889_v36, %v2880_v20  ;;  %v2840_v18 = vpop.f32.mrf.mxu2 }
 0x5b2   :  { %v2853_v10 = vpop.f32.mrf.mxu3 }
 0x5b3   :  { %v2891_v26 = vrot.slane %v2890_v39, 2  ;;  %v2854_v28 = vadd.f32 %v2853_v10, %v2840_v18  ;;  %v2868_v0 = vpop.f32.mrf.mxu0 }
 0x5b4   :  { %v2881_v62 = vpop.f32.mrf.mxu1 }
 0x5b5   :  { %v2892_v3 = vadd.f32 %v2891_v26, %v2890_v39  ;;  %v2883_v7 = vrot.slane %v2854_v28, 4 }
 0x5b7   :  { %v2893_v29 = vrot.slane %v2892_v3, 1  ;;  %v2884_v31 = vadd.f32 %v2883_v7, %v2854_v28 }
 0x5b9   :  { %v2894_v44 = vadd.f32 %v2893_v29, %v2892_v3  ;;  %v2885_v45 = vrot.slane %v2884_v31, 2  ;;  %v2842_v5 = vpop.f32.mrf.mxu2 }
 0x5ba   :  { %v2855_v15 = vpop.f32.mrf.mxu3 }
 0x5bb   :  { %v2896_v27 = vmul.f32 %v2894_v44, %v5351_v14  ;;  %v2886_v56 = vadd.f32 %v2885_v45, %v2884_v31 }
 0x5bd   :  { %v2898_v47 = vsub.f32 %v2880_v20, %v2896_v27  ;;  %v2887_v8 = vrot.slane %v2886_v56, 1 }
 0x5bf   :  { %v2900_v41 = vmul.f32 %v2898_v47, %v2898_v47  ;;  %v2888_v12 = vadd.f32 %v2887_v8, %v2886_v56 }
 0x5c1   :  { %v2907_v11 = vrot.slane %v2900_v41, 4  ;;  %v2895_v38 = vmul.f32 %v2888_v12, %v5351_v14 }
 0x5c3   :  { %v2908_v9 = vadd.f32 %v2907_v11, %v2900_v41  ;;  %v2897_v53 = vsub.f32 %v2854_v28, %v2895_v38 }
 0x5c5   :  { %v2909_v2 = vrot.slane %v2908_v9, 2  ;;  %v2899_v46 = vmul.f32 %v2897_v53, %v2897_v53 }
 0x5c7   :  { %v2910_v49 = vadd.f32 %v2909_v2, %v2908_v9  ;;  %v2901_v59 = vrot.slane %v2899_v46, 4 }
 0x5c9   :  { %v2911_v54 = vrot.slane %v2910_v49, 1  ;;  %v2902_v30 = vadd.f32 %v2901_v59, %v2899_v46 }
 0x5cb   :  { %v2912_v34 = vadd.f32 %v2911_v54, %v2910_v49  ;;  %v2903_v17 = vrot.slane %v2902_v30, 2 }
 0x5cd   :  { %v2914_v58 = vmul.f32 %v2912_v34, %v5351_v14  ;;  %v2904_v6 = vadd.f32 %v2903_v17, %v2902_v30 }
 0x5cf   :  { %v2916_v51 = vadd.f32 1e-05, %v2914_v58  ;;  %v2905_v60 = vrot.slane %v2904_v6, 1 }
 0x5d1   :  { %4195 = vrsqrt.f32 %v2916_v51  ;;  %v2906_v1 = vadd.f32 %v2905_v60, %v2904_v6  ;;  %vm2933_vm0 = vweird.f32 %v2916_v51 }
 0x5d3   :  { %v2913_v55 = vmul.f32 %v2906_v1, %v5351_v14  ;;  %v99_v1 = vld [vmem:[%s9547_s7 + $0x70] sm:$0xff] }
 0x5d5   :  { %v2915_v52 = vadd.f32 1e-05, %v2913_v55  ;;  %v100_v55 = vld [vmem:[%s9547_s7 + $0x78] sm:$0xff] }
 0x5d7   :  { %v4196_v61 = vpop.eup %4195  ;;  %4197 = vrsqrt.f32 %v2915_v52  ;;  %vm2923_vm3 = vweird.f32 %v2915_v52 }
 0x5d8   :  { %v2928_v40 = vmul.f32 %v4196_v61, %v2916_v51  ;;  %vm2934_vm15 = vweird.f32 %v4196_v61 }
 0x5d9   :  { %vm2935_vm1 = vmor %vm2933_vm0, %vm2934_vm15 }
 0x5da   :  { %v2929_v22 = vmul.f32 %v4196_v61, %v2928_v40 }
 0x5dc   :  { %v2930_v13 = vmul.f32 0.5, %v2929_v22 }
 0x5dd   :  { %v4198_v50 = vpop.eup %4197 }
 0x5de   :  { %v2931_v24 = vsub.f32 1.5, %v2930_v13  ;;  %v2918_v35 = vmul.f32 %v4198_v50, %v2915_v52  ;;  %vm2924_vm2 = vweird.f32 %v4198_v50  ;;  %v6017_v52 = vstv %s9947_s29  ;;  %v357_v13 = vld [vmem:[%s9543_s3 + $0x78] sm:$0xff] }
 0x5df   :  { %vm2925_vm4 = vmor %vm2923_vm3, %vm2924_vm2  ;;  %v228_v40 = vmul.f32 %v6017_v52, %v99_v1  ;;  %v229_v22 = vmul.f32 %v6017_v52, %v100_v55 }
 0x5e0   :  { %v2932_v37 = vmul.f32 %v4196_v61, %v2931_v24  ;;  %v2919_v25 = vmul.f32 %v4198_v50, %v2918_v35 }
 0x5e2   :  { %v2936_v19 = vsel %vm2935_vm1, %v4196_v61, %v2932_v37  ;;  %v2920_v23 = vmul.f32 0.5, %v2919_v25  ;;  %v356_v61 = vld [vmem:[%s9543_s3 + $0x70] sm:$0xff]  ;;  %v116_v25 = vld [vmem:[%s9547_s7 + $0xf8] sm:$0xff] }
 0x5e3   :  { %v2938_v43 = vmul.f32 %v2936_v19, %v2898_v47  ;;  %v115_v37 = vld [vmem:[%s9547_s7 + $0xf0] sm:$0xff] }
 0x5e4   :  { %v2921_v20 = vsub.f32 1.5, %v2920_v23  ;;  %v372_v19 = vld [vmem:[%s9543_s3 + $0xf0] sm:$0xff]  ;;  %v244_v23 = vmul.f32 %v6017_v52, %v115_v37 }
 0x5e5   :  { %v2940_v36 = vmax.f32 %v2938_v43, 0.0  ;;  %v245_v43 = vmul.f32 %v6017_v52, %v116_v25 }
 0x5e6   :  { %v2922_v39 = vmul.f32 %v4198_v50, %v2921_v20  ;;  %v373_v20 = vld [vmem:[%s9543_s3 + $0xf8] sm:$0xff] }
 0x5e7   :  { %v2942_v18 = vpack.c.bf16 %v2940_v36, %v2940_v36 }
 0x5e8   :  { %v2926_v10 = vsel %vm2925_vm4, %v4198_v50, %v2922_v39  ;;  %v6027_v50 = vstv %s84_s0 }
 0x5e9   :  { %v2937_v26 = vmul.f32 %v2926_v10, %v2897_v53  ;;  %2964 = vmatmul.bf16.vlgmr.msra.gmra.mxu3 %v2942_v18  ;;  %v485_v24 = vmul.f32 %v6027_v50, %v356_v61  ;;  %v486_v35 = vmul.f32 %v6027_v50, %v357_v13  ;;  %v501_v36 = vmul.f32 %v6027_v50, %v372_v19  ;;  %v352_v13 = vld [vmem:[%s9543_s3 + $0x50] sm:$0xff] }
 0x5ea   :  { %v502_v10 = vmul.f32 %v6027_v50, %v373_v20  ;;  %v353_v20 = vld [vmem:[%s9543_s3 + $0x58] sm:$0xff] }
 0x5eb   :  { %v2939_v28 = vmax.f32 %v2937_v26, 0.0  ;;  %v613_v39 = vadd.f32 %v485_v24, %v228_v40  ;;  %v614_v18 = vadd.f32 %v486_v35, %v229_v22  ;;  %v97_v26 = vld [vmem:[%s9547_s7 + $0x60] sm:$0xff] }
 0x5ed   :  { %v2941_v0 = vpack.c.bf16 %v2939_v28, %v2939_v28  ;;  %v98_v28 = vld [vmem:[%s9547_s7 + $0x68] sm:$0xff] }
 0x5ee   :  { %741 = vst [vmem:[%s9553_s13 + $0x70] sm:$0xff] %v613_v39 }
 0x5ef   :  { %2951 = vmatmul.bf16.vlgmr.msra.gmra.mxu2 %v2941_v0  ;;  %v354_v0 = vld [vmem:[%s9543_s3 + $0x60] sm:$0xff] }
 0x66c   :  { %v2965_v62 = vpop.f32.mrf.mxu3 }
 0x672   :  { %v2952_v3 = vpop.f32.mrf.mxu2 }
 0x673   :  { %v2966_v7 = vadd.f32 %v2965_v62, %v2952_v3  ;;  %v629_v62 = vadd.f32 %v501_v36, %v244_v23  ;;  %v226_v3 = vmul.f32 %v6017_v52, %v97_v26 }
 0x674   :  { %v2967_v29 = vpop.f32.mrf.mxu3 }
 0x675   :  { %v2969_v31 = vrot.slane %v2966_v7, 4  ;;  %v355_v29 = vld [vmem:[%s9543_s3 + $0x68] sm:$0xff] }
 0x677   :  { %v2970_v44 = vadd.f32 %v2969_v31, %v2966_v7  ;;  %v483_v31 = vmul.f32 %v6027_v50, %v354_v0 }
 0x679   :  { %v2971_v45 = vrot.slane %v2970_v44, 2 }
 0x67a   :  { %v2954_v5 = vpop.f32.mrf.mxu2 }
 0x67b   :  { %v2972_v15 = vadd.f32 %v2971_v45, %v2970_v44  ;;  %v6065_v44 = vpack.c.bf16 %v614_v18, %v613_v39  ;;  %v630_v45 = vadd.f32 %v502_v10, %v245_v43  ;;  %v484_v5 = vmul.f32 %v6027_v50, %v355_v29 }
 0x67d   :  { %v2973_v27 = vrot.slane %v2972_v15, 1  ;;  %3202 = vmatpush.bf16.msra.mxu0 %v6065_v44 }
 0x67f   :  { %v2974_v56 = vadd.f32 %v2973_v27, %v2972_v15  ;;  %v113_v15 = vld [vmem:[%s9547_s7 + $0xe0] sm:$0xff]  ;;  %v114_v27 = vld [vmem:[%s9547_s7 + $0xe8] sm:$0xff] }
 0x680   :  { %742 = vst [vmem:[%s9553_s13 + $0x78] sm:$0xff] %v614_v18 }
 0x681   :  { %v2975_v47 = vmul.f32 %v2974_v56, %v5351_v14  ;;  %v370_v56 = vld [vmem:[%s9543_s3 + $0xe0] sm:$0xff] }
 0x683   :  { %v2976_v8 = vsub.f32 %v2966_v7, %v2975_v47  ;;  %v227_v7 = vmul.f32 %v6017_v52, %v98_v28  ;;  %v611_v47 = vadd.f32 %v483_v31, %v226_v3 }
 0x685   :  { %v2977_v41 = vmul.f32 %v2976_v8, %v2976_v8 }
 0x687   :  { %v2978_v12 = vrot.slane %v2977_v41, 4 }
 0x689   :  { %v2979_v11 = vadd.f32 %v2978_v12, %v2977_v41  ;;  %v243_v41 = vmul.f32 %v6017_v52, %v114_v27  ;;  %v371_v12 = vld [vmem:[%s9543_s3 + $0xe8] sm:$0xff]  ;;  %v482_v27 = vmul.f32 %v6027_v50, %v353_v20 }
 0x68b   :  { %v2980_v38 = vrot.slane %v2979_v11, 2 }
 0x68d   :  { %v2981_v9 = vadd.f32 %v2980_v38, %v2979_v11  ;;  %v499_v11 = vmul.f32 %v6027_v50, %v370_v56  ;;  %v131_v38 = vld [vmem:[%s9547_s7 + $0x170] sm:$0xff] }
 0x68f   :  { %v2982_v53 = vrot.slane %v2981_v9, 1 }
 0x691   :  { %v2983_v2 = vadd.f32 %v2982_v53, %v2981_v9  ;;  %v132_v9 = vld [vmem:[%s9547_s7 + $0x178] sm:$0xff]  ;;  %v6096_v53 = vpack.c.bf16 %v630_v45, %v629_v62 }
 0x692   :  { %757 = vst [vmem:[%s9553_s13 + $0xf0] sm:$0xff] %v629_v62  ;;  %v481_v62 = vmul.f32 %v6027_v50, %v352_v13  ;;  %v403_v13 = vld [vmem:[%s9543_s3 + $0x1e8] sm:$0xff] }
 0x693   :  { %v2984_v46 = vmul.f32 %v2983_v2, %v5351_v14  ;;  %v612_v2 = vadd.f32 %v484_v5, %v227_v7  ;;  %3215 = vmatpush.bf16.msra.mxu1 %v6096_v53  ;;  %v369_v5 = vld [vmem:[%s9543_s3 + $0xd8] sm:$0xff] }
 0x695   :  { %v2985_v49 = vadd.f32 1e-05, %v2984_v46  ;;  %v500_v46 = vmul.f32 %v6027_v50, %v371_v12  ;;  %v6127_v1 = vpack.c.bf16 %v612_v2, %v611_v47  ;;  %v386_v12 = vld [vmem:[%s9543_s3 + $0x160] sm:$0xff] }
 0x697   :  { %4199 = vrsqrt.f32 %v2985_v49  ;;  %vm2992_vm6 = vweird.f32 %v2985_v49  ;;  %v628_v55 = vadd.f32 %v500_v46, %v243_v41  ;;  %3203 = vmatpush.bf16.msra.mxu0 %v6127_v1 }
 0x69d   :  { %v4200_v59 = vpop.eup %4199 }
 0x69e   :  { %v2987_v54 = vmul.f32 %v4200_v59, %v2985_v49  ;;  %vm2993_vm5 = vweird.f32 %v4200_v59  ;;  %v388_v49 = vld [vmem:[%s9543_s3 + $0x170] sm:$0xff] }
 0x69f   :  { %vm2994_vm7 = vmor %vm2992_vm6, %vm2993_vm5 }
 0x6a0   :  { %v2988_v30 = vmul.f32 %v4200_v59, %v2987_v54  ;;  %v147_v54 = vld [vmem:[%s9547_s7 + $0x1f0] sm:$0xff] }
 0x6a1   :  { %758 = vst [vmem:[%s9553_s13 + $0xf8] sm:$0xff] %v630_v45  ;;  %v276_v35 = vmul.f32 %v6017_v52, %v147_v54  ;;  %v368_v45 = vld [vmem:[%s9543_s3 + $0xd0] sm:$0xff] }
 0x6a2   :  { %v2989_v34 = vmul.f32 0.5, %v2988_v30 }
 0x6a4   :  { %v2990_v17 = vsub.f32 1.5, %v2989_v34  ;;  %v260_v34 = vmul.f32 %v6017_v52, %v131_v38 }
 0x6a6   :  { %v2991_v58 = vmul.f32 %v4200_v59, %v2990_v17  ;;  %v261_v17 = vmul.f32 %v6017_v52, %v132_v9 }
 0x6a8   :  { %v2995_v6 = vsel %vm2994_vm7, %v4200_v59, %v2991_v58  ;;  %v389_v59 = vld [vmem:[%s9543_s3 + $0x178] sm:$0xff]  ;;  %v517_v58 = vmul.f32 %v6027_v50, %v388_v49  ;;  %v497_v49 = vmul.f32 %v6027_v50, %v368_v45  ;;  %v351_v45 = vld [vmem:[%s9543_s3 + $0x48] sm:$0xff] }
 0x6a9   :  { %v2996_v51 = vmul.f32 %v2995_v6, %v2976_v8  ;;  %v242_v8 = vmul.f32 %v6017_v52, %v113_v15  ;;  %v148_v6 = vld [vmem:[%s9547_s7 + $0x1f8] sm:$0xff]  ;;  %v518_v61 = vmul.f32 %v6027_v50, %v389_v59  ;;  %v498_v59 = vmul.f32 %v6027_v50, %v369_v5 }
 0x6aa   :  { %739 = vst [vmem:[%s9553_s13 + $0x60] sm:$0xff] %v611_v47  ;;  %v645_v24 = vadd.f32 %v517_v58, %v260_v34  ;;  %v277_v37 = vmul.f32 %v6017_v52, %v148_v6  ;;  %v515_v6 = vmul.f32 %v6027_v50, %v386_v12 }
 0x6ab   :  { %v2997_v60 = vpack.c.bf16 %v2996_v51, %v2996_v51  ;;  %v627_v30 = vadd.f32 %v499_v11, %v242_v8  ;;  %v404_v51 = vld [vmem:[%s9543_s3 + $0x1f0] sm:$0xff]  ;;  %v646_v23 = vadd.f32 %v518_v61, %v261_v17 }
 0x6ac   :  { %v533_v25 = vmul.f32 %v6027_v50, %v404_v51 }
 0x6ad   :  { %3006 = vmatmul.bf16.vlgmr.msrb.gmra.mxu0 %v2997_v60  ;;  %3019 = vmatmul.bf16.vlgmr.msrb.gmra.mxu1 %v2997_v60  ;;  %v405_v60 = vld [vmem:[%s9543_s3 + $0x1f8] sm:$0xff]  ;;  %v6149_v19 = vpack.c.bf16 %v628_v55, %v627_v30  ;;  %v6177_v29 = vpack.c.bf16 %v646_v23, %v645_v24 }
 0x6ae   :  { %v534_v43 = vmul.f32 %v6027_v50, %v405_v60  ;;  %v661_v26 = vadd.f32 %v533_v25, %v276_v35 }
 0x6af   :  { %3216 = vmatpush.bf16.msra.mxu1 %v6149_v19  ;;  %9948 = vst [vmem:[#allocation43_spill] sm:$0xff] %v6177_v29  ;;  %3228 = vmatpush.bf16.msra.mxu2 %v6177_v29 }
 0x6b0   :  { %v662_v31 = vadd.f32 %v534_v43, %v277_v37 }
 0x6b1   :  { %v95_v40 = vld [vmem:[%s9547_s7 + $0x50] sm:$0xff]  ;;  %v96_v22 = vld [vmem:[%s9547_s7 + $0x58] sm:$0xff] }
 0x6b2   :  { %740 = vst [vmem:[%s9553_s13 + $0x68] sm:$0xff] %v612_v2  ;;  %v224_v28 = vmul.f32 %v6017_v52, %v95_v40  ;;  %v225_v0 = vmul.f32 %v6017_v52, %v96_v22  ;;  %v6206_v9 = vpack.c.bf16 %v662_v31, %v661_v26  ;;  %v387_v2 = vld [vmem:[%s9543_s3 + $0x168] sm:$0xff]  ;;  %v402_v22 = vld [vmem:[%s9543_s3 + $0x1e0] sm:$0xff] }
 0x6b3   :  { %755 = vst [vmem:[%s9553_s13 + $0xe0] sm:$0xff] %v627_v30  ;;  %v516_v40 = vmul.f32 %v6027_v50, %v387_v2  ;;  %v367_v2 = vld [vmem:[%s9543_s3 + $0xc8] sm:$0xff] }
 0x6b4   :  { %v609_v56 = vadd.f32 %v481_v62, %v224_v28  ;;  %9949 = vst [vmem:[#allocation44_spill] sm:$0xff] %v6206_v9  ;;  %v610_v46 = vadd.f32 %v482_v27, %v225_v0  ;;  %3241 = vmatpush.bf16.msra.mxu3 %v6206_v9  ;;  %v350_v0 = vld [vmem:[%s9543_s3 + $0x40] sm:$0xff] }
 0x6b6   :  { %v6232_v60 = vpack.c.bf16 %v610_v46, %v609_v56 }
 0x6b8   :  { %3204 = vmatpush.bf16.msra.mxu0 %v6232_v60 }
 0x6ba   :  { %v111_v36 = vld [vmem:[%s9547_s7 + $0xd0] sm:$0xff]  ;;  %v112_v39 = vld [vmem:[%s9547_s7 + $0xd8] sm:$0xff] }
 0x6bb   :  { %756 = vst [vmem:[%s9553_s13 + $0xe8] sm:$0xff] %v628_v55  ;;  %v240_v47 = vmul.f32 %v6017_v52, %v111_v36  ;;  %v241_v8 = vmul.f32 %v6017_v52, %v112_v39 }
 0x6bc   :  { %773 = vst [vmem:[%s9553_s13 + $0x170] sm:$0xff] %v645_v24 }
 0x6bd   :  { %v625_v55 = vadd.f32 %v497_v49, %v240_v47  ;;  %v626_v61 = vadd.f32 %v498_v59, %v241_v8  ;;  %v366_v8 = vld [vmem:[%s9543_s3 + $0xc0] sm:$0xff]  ;;  %v479_v49 = vmul.f32 %v6027_v50, %v350_v0  ;;  %v480_v59 = vmul.f32 %v6027_v50, %v351_v45  ;;  %v401_v0 = vld [vmem:[%s9543_s3 + $0x1d8] sm:$0xff] }
 0x6bf   :  { %v6252_v39 = vpack.c.bf16 %v626_v61, %v625_v55 }
 0x6c1   :  { %3217 = vmatpush.bf16.msra.mxu1 %v6252_v39 }
 0x6c3   :  { %v129_v15 = vld [vmem:[%s9547_s7 + $0x160] sm:$0xff] }
 0x6c4   :  { %774 = vst [vmem:[%s9553_s13 + $0x178] sm:$0xff] %v646_v23  ;;  %v258_v54 = vmul.f32 %v6017_v52, %v129_v15 }
 0x6c6   :  { %v643_v37 = vadd.f32 %v515_v6, %v258_v54 }
 0x6cb   :  { %v130_v41 = vld [vmem:[%s9547_s7 + $0x168] sm:$0xff] }
 0x6cc   :  { %789 = vst [vmem:[%s9553_s13 + $0x1f0] sm:$0xff] %v661_v26  ;;  %v259_v58 = vmul.f32 %v6017_v52, %v130_v41 }
 0x6cd   :  { %790 = vst [vmem:[%s9553_s13 + $0x1f8] sm:$0xff] %v662_v31  ;;  %v532_v31 = vmul.f32 %v6027_v50, %v403_v13  ;;  %v496_v13 = vmul.f32 %v6027_v50, %v367_v2  ;;  %v349_v2 = vld [vmem:[%s9543_s3 + $0x38] sm:$0xff] }
 0x6ce   :  { %v644_v26 = vadd.f32 %v516_v40, %v259_v58 }
 0x6d0   :  { %v6276_v27 = vpack.c.bf16 %v644_v26, %v643_v37 }
 0x6d2   :  { %9950 = vst [vmem:[#allocation45_spill] sm:$0xff] %v6276_v27  ;;  %3229 = vmatpush.bf16.msra.mxu2 %v6276_v27 }
 0x6d4   :  { %v145_v30 = vld [vmem:[%s9547_s7 + $0x1e0] sm:$0xff] }
 0x6d5   :  { %737 = vst [vmem:[%s9553_s13 + $0x50] sm:$0xff] %v609_v56  ;;  %v274_v25 = vmul.f32 %v6017_v52, %v145_v30 }
 0x6dc   :  { %v146_v51 = vld [vmem:[%s9547_s7 + $0x1e8] sm:$0xff] }
 0x6dd   :  { %738 = vst [vmem:[%s9553_s13 + $0x58] sm:$0xff] %v610_v46  ;;  %v275_v28 = vmul.f32 %v6017_v52, %v146_v51  ;;  %v495_v51 = vmul.f32 %v6027_v50, %v366_v8  ;;  %v348_v8 = vld [vmem:[%s9543_s3 + $0x30] sm:$0xff] }
 0x6e4   :  { %v93_v23 = vld [vmem:[%s9547_s7 + $0x40] sm:$0xff]  ;;  %v94_v43 = vld [vmem:[%s9547_s7 + $0x48] sm:$0xff] }
 0x6e5   :  { %753 = vst [vmem:[%s9553_s13 + $0xd0] sm:$0xff] %v625_v55  ;;  %v222_v56 = vmul.f32 %v6017_v52, %v93_v23  ;;  %v223_v47 = vmul.f32 %v6017_v52, %v94_v43  ;;  %v384_v55 = vld [vmem:[%s9543_s3 + $0x150] sm:$0xff] }
 0x6e6   :  { %754 = vst [vmem:[%s9553_s13 + $0xd8] sm:$0xff] %v626_v61  ;;  %v385_v61 = vld [vmem:[%s9543_s3 + $0x158] sm:$0xff] }
 0x6e7   :  { %v607_v40 = vadd.f32 %v479_v49, %v222_v56 }
 0x6ed   :  { %v109_v5 = vld [vmem:[%s9547_s7 + $0xc0] sm:$0xff]  ;;  %v110_v15 = vld [vmem:[%s9547_s7 + $0xc8] sm:$0xff] }
 0x6ee   :  { %771 = vst [vmem:[%s9553_s13 + $0x160] sm:$0xff] %v643_v37  ;;  %v238_v54 = vmul.f32 %v6017_v52, %v109_v5  ;;  %v239_v30 = vmul.f32 %v6017_v52, %v110_v15 }
 0x6ef   :  { %772 = vst [vmem:[%s9553_s13 + $0x168] sm:$0xff] %v644_v26 }
 0x6f0   :  { %v623_v43 = vadd.f32 %v495_v51, %v238_v54  ;;  %v624_v26 = vadd.f32 %v496_v13, %v239_v30  ;;  %v478_v13 = vmul.f32 %v6027_v50, %v349_v2  ;;  %v398_v2 = vld [vmem:[%s9543_s3 + $0x1c0] sm:$0xff] }
 0x6f2   :  { %v6365_v15 = vpack.c.bf16 %v624_v26, %v623_v43 }
 0x6f4   :  { %3218 = vmatpush.bf16.msra.mxu1 %v6365_v15 }
 0x6f6   :  { %v127_v46 = vld [vmem:[%s9547_s7 + $0x150] sm:$0xff] }
 0x72a   :  { %v6161_v18 = vpop.f32.mrf.mxu0  ;;  %v6163_v10 = vpop.f32.mrf.mxu1 }
 0x72b   :  { %v3024_v3 = vrot.slane %v6161_v18, 4  ;;  %v3030_v7 = vrot.slane %v6163_v10, 4 }
 0x72d   :  { %v3025_v11 = vadd.f32 %v3024_v3, %v6161_v18  ;;  %v3031_v38 = vadd.f32 %v3030_v7, %v6163_v10  ;;  %v531_v7 = vmul.f32 %v6027_v50, %v402_v22  ;;  %v608_v22 = vadd.f32 %v480_v59, %v223_v47 }
 0x72f   :  { %v3026_v34 = vrot.slane %v3025_v11, 2  ;;  %v3032_v17 = vrot.slane %v3031_v38, 2 }
 0x731   :  { %v3027_v24 = vadd.f32 %v3026_v34, %v3025_v11  ;;  %v3033_v35 = vadd.f32 %v3032_v17, %v3031_v38  ;;  %v659_v11 = vadd.f32 %v531_v7, %v274_v25  ;;  %v660_v38 = vadd.f32 %v532_v31, %v275_v28  ;;  %v128_v34 = vld [vmem:[%s9547_s7 + $0x158] sm:$0xff] }
 0x732   :  { %v3009_v20 = vpop.f32.mrf.mxu0  ;;  %v3022_v36 = vpop.f32.mrf.mxu1  ;;  %v513_v28 = vmul.f32 %v6027_v50, %v384_v55 }
 0x733   :  { %v3028_v62 = vrot.slane %v3027_v24, 1  ;;  %v3034_v3 = vrot.slane %v3033_v35, 1  ;;  %787 = vst [vmem:[%s9553_s13 + $0x1e0] sm:$0xff] %v659_v11  ;;  %v6305_v6 = vpack.c.bf16 %v660_v38, %v659_v11  ;;  %v257_v20 = vmul.f32 %v6017_v52, %v128_v34  ;;  %v364_v34 = vld [vmem:[%s9543_s3 + $0xb0] sm:$0xff] }
 0x734   :  { %788 = vst [vmem:[%s9553_s13 + $0x1e8] sm:$0xff] %v660_v38  ;;  %v6336_v36 = vpack.c.bf16 %v608_v22, %v607_v40  ;;  %v530_v38 = vmul.f32 %v6027_v50, %v401_v0 }
 0x735   :  { %v3029_v41 = vadd.f32 %v3028_v62, %v3027_v24  ;;  %v3035_v12 = vadd.f32 %v3034_v3, %v3033_v35  ;;  %9951 = vst [vmem:[#allocation46_spill] sm:$0xff] %v6305_v6  ;;  %v256_v24 = vmul.f32 %v6017_v52, %v127_v46  ;;  %3242 = vmatpush.bf16.msra.mxu3 %v6305_v6 }
 0x736   :  { %3205 = vmatpush.bf16.msra.mxu0 %v6336_v36 }
 0x737   :  { %v3036_v17 = vmul.f32 %v3029_v41, %v5351_v14  ;;  %v3037_v58 = vmul.f32 %v3035_v12, %v5351_v14  ;;  %v641_v56 = vadd.f32 %v513_v28, %v256_v24  ;;  %v493_v28 = vmul.f32 %v6027_v50, %v364_v34 }
 0x739   :  { %v6326_v25 = vsub.f32 %v6161_v18, %v3036_v17  ;;  %v6329_v23 = vsub.f32 %v6163_v10, %v3037_v58  ;;  %v514_v18 = vmul.f32 %v6027_v50, %v385_v61  ;;  %v400_v10 = vld [vmem:[%s9543_s3 + $0x1d0] sm:$0xff]  ;;  %v365_v61 = vld [vmem:[%s9543_s3 + $0xb8] sm:$0xff] }
 0x73a   :  { %v529_v11 = vmul.f32 %v6027_v50, %v400_v10  ;;  %v383_v10 = vld [vmem:[%s9543_s3 + $0x148] sm:$0xff] }
 0x73b   :  { %v143_v35 = vld [vmem:[%s9547_s7 + $0x1d0] sm:$0xff]  ;;  %v144_v37 = vld [vmem:[%s9547_s7 + $0x1d8] sm:$0xff]  ;;  %v3040_v62 = vmul.f32 %v6326_v25, %v6326_v25  ;;  %v3041_v3 = vmul.f32 %v6329_v23, %v6329_v23  ;;  %v642_v47 = vadd.f32 %v514_v18, %v257_v20  ;;  %v382_v18 = vld [vmem:[%s9543_s3 + $0x140] sm:$0xff] }
 0x73c   :  { %735 = vst [vmem:[%s9553_s13 + $0x40] sm:$0xff] %v607_v40  ;;  %v272_v7 = vmul.f32 %v6017_v52, %v143_v35  ;;  %v273_v31 = vmul.f32 %v6017_v52, %v144_v37 }
 0x73d   :  { %736 = vst [vmem:[%s9553_s13 + $0x48] sm:$0xff] %v608_v22  ;;  %v3042_v41 = vrot.slane %v3040_v62, 4  ;;  %v3048_v12 = vrot.slane %v3041_v3, 4  ;;  %v6388_v59 = vpack.c.bf16 %v642_v47, %v641_v56  ;;  %v477_v22 = vmul.f32 %v6027_v50, %v348_v8 }
 0x73e   :  { %v657_v51 = vadd.f32 %v529_v11, %v272_v7  ;;  %v658_v55 = vadd.f32 %v530_v38, %v273_v31  ;;  %v511_v11 = vmul.f32 %v6027_v50, %v382_v18  ;;  %v512_v38 = vmul.f32 %v6027_v50, %v383_v10 }
 0x73f   :  { %9952 = vst [vmem:[#allocation47_spill] sm:$0xff] %v6388_v59  ;;  %v3043_v17 = vadd.f32 %v3042_v41, %v3040_v62  ;;  %v3049_v58 = vadd.f32 %v3048_v12, %v3041_v3  ;;  %3230 = vmatpush.bf16.msra.mxu2 %v6388_v59  ;;  %v494_v3 = vmul.f32 %v6027_v50, %v365_v61 }
 0x741   :  { %v3050_v20 = vrot.slane %v3049_v58, 2 }
 0x744   :  { %v91_v45 = vld [vmem:[%s9547_s7 + $0x30] sm:$0xff]  ;;  %v92_v5 = vld [vmem:[%s9547_s7 + $0x38] sm:$0xff] }
 0x745   :  { %751 = vst [vmem:[%s9553_s13 + $0xc0] sm:$0xff] %v623_v43  ;;  %v220_v54 = vmul.f32 %v6017_v52, %v91_v45  ;;  %v221_v30 = vmul.f32 %v6017_v52, %v92_v5  ;;  %v3044_v43 = vrot.slane %v3043_v17, 2 }
 0x746   :  { %752 = vst [vmem:[%s9553_s13 + $0xc8] sm:$0xff] %v624_v26  ;;  %v6415_v26 = vpack.c.bf16 %v658_v55, %v657_v51 }
 0x747   :  { %v605_v0 = vadd.f32 %v477_v22, %v220_v54  ;;  %v606_v62 = vadd.f32 %v478_v13, %v221_v30  ;;  %v3045_v5 = vadd.f32 %v3044_v43, %v3043_v17 }
 0x748   :  { %9953 = vst [vmem:[#allocation48_spill] sm:$0xff] %v6415_v26  ;;  %3243 = vmatpush.bf16.msra.mxu3 %v6415_v26 }
 0x749   :  { %v6440_v41 = vpack.c.bf16 %v606_v62, %v605_v0 }
 0x74b   :  { %3206 = vmatpush.bf16.msra.mxu0 %v6440_v41 }
 0x74d   :  { %v107_v46 = vld [vmem:[%s9547_s7 + $0xb0] sm:$0xff]  ;;  %v108_v49 = vld [vmem:[%s9547_s7 + $0xb8] sm:$0xff] }
 0x74e   :  { %769 = vst [vmem:[%s9553_s13 + $0x150] sm:$0xff] %v641_v56  ;;  %v236_v24 = vmul.f32 %v6017_v52, %v107_v46  ;;  %v237_v35 = vmul.f32 %v6017_v52, %v108_v49  ;;  %v3051_v56 = vadd.f32 %v3050_v20, %v3049_v58  ;;  %v399_v46 = vld [vmem:[%s9543_s3 + $0x1c8] sm:$0xff]  ;;  %v3046_v49 = vrot.slane %v3045_v5, 1 }
 0x74f   :  { %770 = vst [vmem:[%s9553_s13 + $0x158] sm:$0xff] %v642_v47 }
 0x750   :  { %v621_v47 = vadd.f32 %v493_v28, %v236_v24  ;;  %v622_v12 = vadd.f32 %v494_v3, %v237_v35  ;;  %v3052_v54 = vrot.slane %v3051_v56, 1  ;;  %v3047_v22 = vadd.f32 %v3046_v49, %v3045_v5 }
 0x751   :  { %v527_v24 = vmul.f32 %v6027_v50, %v398_v2  ;;  %v528_v35 = vmul.f32 %v6027_v50, %v399_v46 }
 0x752   :  { %v3053_v13 = vadd.f32 %v3052_v54, %v3051_v56  ;;  %v380_v54 = vld [vmem:[%s9543_s3 + $0x130] sm:$0xff] }
 0x754   :  { %v3055_v3 = vmul.f32 %v3053_v13, %v5351_v14  ;;  %v396_v13 = vld [vmem:[%s9543_s3 + $0x1b0] sm:$0xff] }
 0x756   :  { %v125_v40 = vld [vmem:[%s9547_s7 + $0x140] sm:$0xff]  ;;  %v126_v37 = vld [vmem:[%s9547_s7 + $0x148] sm:$0xff]  ;;  %v6516_v2 = vadd.f32 1e-05, %v3055_v3 }
 0x757   :  { %785 = vst [vmem:[%s9553_s13 + $0x1d0] sm:$0xff] %v657_v51  ;;  %v254_v7 = vmul.f32 %v6017_v52, %v125_v40  ;;  %v255_v8 = vmul.f32 %v6017_v52, %v126_v37  ;;  %v6465_v51 = vpack.c.bf16 %v622_v12, %v621_v47  ;;  %v346_v40 = vld [vmem:[%s9543_s3 + $0x20] sm:$0xff]  ;;  %v347_v37 = vld [vmem:[%s9543_s3 + $0x28] sm:$0xff] }
 0x758   :  { %786 = vst [vmem:[%s9553_s13 + $0x1d8] sm:$0xff] %v658_v55  ;;  %v475_v5 = vmul.f32 %v6027_v50, %v346_v40  ;;  %v476_v56 = vmul.f32 %v6027_v50, %v347_v37  ;;  %vm3074_vm10 = vweird.f32 %v6516_v2 }
 0x759   :  { %v639_v55 = vadd.f32 %v511_v11, %v254_v7  ;;  %v640_v61 = vadd.f32 %v512_v38, %v255_v8  ;;  %3219 = vmatpush.bf16.msra.mxu1 %v6465_v51 }
 0x75b   :  { %v6488_v28 = vpack.c.bf16 %v640_v61, %v639_v55 }
 0x75d   :  { %9954 = vst [vmem:[#allocation49_spill] sm:$0xff] %v6488_v28  ;;  %3231 = vmatpush.bf16.msra.mxu2 %v6488_v28 }
 0x75f   :  { %v141_v31 = vld [vmem:[%s9547_s7 + $0x1c0] sm:$0xff]  ;;  %v142_v45 = vld [vmem:[%s9547_s7 + $0x1c8] sm:$0xff] }
 0x760   :  { %733 = vst [vmem:[%s9553_s13 + $0x30] sm:$0xff] %v605_v0  ;;  %v270_v30 = vmul.f32 %v6017_v52, %v141_v31  ;;  %v271_v34 = vmul.f32 %v6017_v52, %v142_v45  ;;  %v362_v0 = vld [vmem:[%s9543_s3 + $0xa0] sm:$0xff]  ;;  %v363_v45 = vld [vmem:[%s9543_s3 + $0xa8] sm:$0xff] }
 0x761   :  { %734 = vst [vmem:[%s9553_s13 + $0x38] sm:$0xff] %v606_v62  ;;  %v3054_v62 = vmul.f32 %v3047_v22, %v5351_v14  ;;  %v491_v49 = vmul.f32 %v6027_v50, %v362_v0 }
 0x762   :  { %v655_v7 = vadd.f32 %v527_v24, %v270_v30  ;;  %v656_v31 = vadd.f32 %v528_v35, %v271_v34  ;;  %v397_v24 = vld [vmem:[%s9543_s3 + $0x1b8] sm:$0xff] }
 0x763   :  { %v6514_v38 = vadd.f32 1e-05, %v3054_v62 }
 0x764   :  { %v6521_v46 = vpack.c.bf16 %v656_v31, %v655_v7 }
 0x765   :  { %4201 = vrsqrt.f32 %v6514_v38  ;;  %vm3064_vm8 = vweird.f32 %v6514_v38 }
 0x766   :  { %9955 = vst [vmem:[#allocation50_spill] sm:$0xff] %v6521_v46  ;;  %3244 = vmatpush.bf16.msra.mxu3 %v6521_v46  ;;  %4203 = vrsqrt.f32 %v6516_v2 }
 0x768   :  { %v89_v17 = vld [vmem:[%s9547_s7 + $0x20] sm:$0xff]  ;;  %v90_v58 = vld [vmem:[%s9547_s7 + $0x28] sm:$0xff] }
 0x769   :  { %749 = vst [vmem:[%s9553_s13 + $0xb0] sm:$0xff] %v621_v47  ;;  %v218_v18 = vmul.f32 %v6017_v52, %v89_v17  ;;  %v219_v10 = vmul.f32 %v6017_v52, %v90_v58  ;;  %v492_v17 = vmul.f32 %v6027_v50, %v363_v45  ;;  %v381_v58 = vld [vmem:[%s9543_s3 + $0x138] sm:$0xff] }
 0x76a   :  { %750 = vst [vmem:[%s9553_s13 + $0xb8] sm:$0xff] %v622_v12  ;;  %v510_v0 = vmul.f32 %v6027_v50, %v381_v58 }
 0x76b   :  { %v603_v30 = vadd.f32 %v475_v5, %v218_v18  ;;  %v604_v34 = vadd.f32 %v476_v56, %v219_v10  ;;  %v509_v10 = vmul.f32 %v6027_v50, %v380_v54  ;;  %v525_v5 = vmul.f32 %v6027_v50, %v396_v13 }
 0x76c   :  { %v526_v56 = vmul.f32 %v6027_v50, %v397_v24 }
 0x76d   :  { %v6553_v35 = vpack.c.bf16 %v604_v34, %v603_v30 }
 0x76f   :  { %3207 = vmatpush.bf16.msra.mxu0 %v6553_v35 }
 0x771   :  { %v105_v43 = vld [vmem:[%s9547_s7 + $0xa0] sm:$0xff]  ;;  %v106_v20 = vld [vmem:[%s9547_s7 + $0xa8] sm:$0xff] }
 0x772   :  { %767 = vst [vmem:[%s9553_s13 + $0x140] sm:$0xff] %v639_v55  ;;  %v234_v47 = vmul.f32 %v6017_v52, %v105_v43  ;;  %v235_v8 = vmul.f32 %v6017_v52, %v106_v20 }
 0x773   :  { %768 = vst [vmem:[%s9553_s13 + $0x148] sm:$0xff] %v640_v61 }
 0x774   :  { %v619_v40 = vadd.f32 %v491_v49, %v234_v47  ;;  %v620_v37 = vadd.f32 %v492_v17, %v235_v8 }
 0x776   :  { %v6579_v45 = vpack.c.bf16 %v620_v37, %v619_v40 }
 0x778   :  { %3220 = vmatpush.bf16.msra.mxu1 %v6579_v45 }
 0x77a   :  { %v123_v12 = vld [vmem:[%s9547_s7 + $0x130] sm:$0xff]  ;;  %v124_v11 = vld [vmem:[%s9547_s7 + $0x138] sm:$0xff] }
 0x77b   :  { %783 = vst [vmem:[%s9553_s13 + $0x1c0] sm:$0xff] %v655_v7  ;;  %v252_v22 = vmul.f32 %v6017_v52, %v123_v12  ;;  %v253_v43 = vmul.f32 %v6017_v52, %v124_v11  ;;  %v344_v7 = vld [vmem:[%s9543_s3 + $0x10] sm:$0xff] }
 0x77c   :  { %784 = vst [vmem:[%s9553_s13 + $0x1c8] sm:$0xff] %v656_v31  ;;  %v345_v31 = vld [vmem:[%s9543_s3 + $0x18] sm:$0xff]  ;;  %v360_v12 = vld [vmem:[%s9543_s3 + $0x90] sm:$0xff]  ;;  %v473_v58 = vmul.f32 %v6027_v50, %v344_v7 }
 0x77d   :  { %v637_v11 = vadd.f32 %v509_v10, %v252_v22  ;;  %v638_v49 = vadd.f32 %v510_v0, %v253_v43 }
 0x77f   :  { %v6608_v22 = vpack.c.bf16 %v638_v49, %v637_v11 }
 0x781   :  { %9956 = vst [vmem:[#allocation51_spill] sm:$0xff] %v6608_v22  ;;  %3232 = vmatpush.bf16.msra.mxu2 %v6608_v22 }
 0x783   :  { %v139_v55 = vld [vmem:[%s9547_s7 + $0x1b0] sm:$0xff]  ;;  %v140_v61 = vld [vmem:[%s9547_s7 + $0x1b8] sm:$0xff] }
 0x784   :  { %731 = vst [vmem:[%s9553_s13 + $0x20] sm:$0xff] %v603_v30  ;;  %v268_v62 = vmul.f32 %v6017_v52, %v139_v55  ;;  %v269_v3 = vmul.f32 %v6017_v52, %v140_v61  ;;  %v474_v55 = vmul.f32 %v6027_v50, %v345_v31  ;;  %v361_v61 = vld [vmem:[%s9543_s3 + $0x98] sm:$0xff] }
 0x785   :  { %v490_v31 = vmul.f32 %v6027_v50, %v361_v61 }
 0x786   :  { %v654_v17 = vadd.f32 %v526_v56, %v269_v3  ;;  %v379_v56 = vld [vmem:[%s9543_s3 + $0x128] sm:$0xff] }
 0x78b   :  { %v87_v20 = vld [vmem:[%s9547_s7 + $0x10] sm:$0xff]  ;;  %v88_v18 = vld [vmem:[%s9547_s7 + $0x18] sm:$0xff] }
 0x78c   :  { %732 = vst [vmem:[%s9553_s13 + $0x28] sm:$0xff] %v604_v34  ;;  %v216_v54 = vmul.f32 %v6017_v52, %v87_v20  ;;  %v217_v30 = vmul.f32 %v6017_v52, %v88_v18  ;;  %v653_v34 = vadd.f32 %v525_v5, %v268_v62  ;;  %v378_v5 = vld [vmem:[%s9543_s3 + $0x120] sm:$0xff] }
 0x78d   :  { %747 = vst [vmem:[%s9553_s13 + $0xa0] sm:$0xff] %v619_v40  ;;  %v6603_v40 = vpop.eup %4201 }
 0x78e   :  { %v6616_v20 = vpop.eup %4203  ;;  %v3059_v18 = vmul.f32 %v6603_v40, %v6514_v38  ;;  %v6624_v10 = vpack.c.bf16 %v654_v17, %v653_v34  ;;  %v601_v0 = vadd.f32 %v473_v58, %v216_v54  ;;  %vm3065_vm9 = vweird.f32 %v6603_v40  ;;  %v394_v54 = vld [vmem:[%s9543_s3 + $0x1a0] sm:$0xff] }
 0x78f   :  { %v3069_v3 = vmul.f32 %v6616_v20, %v6516_v2  ;;  %v602_v7 = vadd.f32 %v474_v55, %v217_v30  ;;  %vm3075_vm11 = vweird.f32 %v6616_v20  ;;  %v395_v55 = vld [vmem:[%s9543_s3 + $0x1a8] sm:$0xff]  ;;  %vm3066_vm12 = vmor %vm3064_vm8, %vm3065_vm9 }
 0x790   :  { %9957 = vst [vmem:[#allocation52_spill] sm:$0xff] %v6624_v10  ;;  %3245 = vmatpush.bf16.msra.mxu3 %v6624_v10  ;;  %vm3076_vm13 = vmor %vm3074_vm10, %vm3075_vm11 }
 0x791   :  { %v3070_v30 = vmul.f32 %v6616_v20, %v3069_v3 }
 0x794   :  { %v103_v47 = vld [vmem:[%s9547_s7 + $0x90] sm:$0xff]  ;;  %v104_v8 = vld [vmem:[%s9547_s7 + $0x98] sm:$0xff] }
 0x795   :  { %748 = vst [vmem:[%s9553_s13 + $0xa8] sm:$0xff] %v620_v37  ;;  %v232_v13 = vmul.f32 %v6017_v52, %v103_v47  ;;  %v233_v24 = vmul.f32 %v6017_v52, %v104_v8  ;;  %v489_v37 = vmul.f32 %v6027_v50, %v360_v12  ;;  %v3060_v8 = vmul.f32 %v6603_v40, %v3059_v18 }
 0x796   :  { %765 = vst [vmem:[%s9553_s13 + $0x130] sm:$0xff] %v637_v11 }
 0x797   :  { %v617_v12 = vadd.f32 %v489_v37, %v232_v13  ;;  %v3061_v61 = vmul.f32 0.5, %v3060_v8  ;;  %v507_v13 = vmul.f32 %v6027_v50, %v378_v5  ;;  %v508_v37 = vmul.f32 %v6027_v50, %v379_v56 }
 0x798   :  { %v524_v8 = vmul.f32 %v6027_v50, %v395_v55 }
 0x799   :  { %v3062_v5 = vsub.f32 1.5, %v3061_v61 }
 0x79b   :  { %v3063_v55 = vmul.f32 %v6603_v40, %v3062_v5 }
 0x79d   :  { %v121_v43 = vld [vmem:[%s9547_s7 + $0x120] sm:$0xff] }
 0x79e   :  { %766 = vst [vmem:[%s9553_s13 + $0x138] sm:$0xff] %v638_v49  ;;  %v250_v11 = vmul.f32 %v6017_v52, %v121_v43 }
 0x7a0   :  { %v635_v56 = vadd.f32 %v507_v13, %v250_v11 }
 0x7a5   :  { %v122_v62 = vld [vmem:[%s9547_s7 + $0x128] sm:$0xff] }
 0x7a6   :  { %781 = vst [vmem:[%s9553_s13 + $0x1b0] sm:$0xff] %v653_v34  ;;  %v6664_v34 = vpack.c.bf16 %v602_v7, %v601_v0  ;;  %v251_v58 = vmul.f32 %v6017_v52, %v122_v62 }
 0x7a8   :  { %3208 = vmatpush.bf16.msra.mxu0 %v6664_v34 }
 0x7ad   :  { %v137_v47 = vld [vmem:[%s9547_s7 + $0x1a0] sm:$0xff] }
 0x7ae   :  { %782 = vst [vmem:[%s9553_s13 + $0x1b8] sm:$0xff] %v654_v17  ;;  %v618_v17 = vadd.f32 %v490_v31, %v233_v24  ;;  %v266_v43 = vmul.f32 %v6017_v52, %v137_v47  ;;  %v342_v31 = vld [vmem:[%s9543_s3] sm:$0xff]  ;;  %v636_v47 = vadd.f32 %v508_v37, %v251_v58 }
 0x7af   :  { %v471_v37 = vmul.f32 %v6027_v50, %v342_v31  ;;  %v3067_v31 = vsel %vm3066_vm12, %v6603_v40, %v3063_v55 }
 0x7b0   :  { %v6686_v62 = vpack.c.bf16 %v618_v17, %v617_v12  ;;  %v6713_v61 = vpack.c.bf16 %v636_v47, %v635_v56  ;;  %v3078_v40 = vmul.f32 %v3067_v31, %v6326_v25 }
 0x7b2   :  { %3221 = vmatpush.bf16.msra.mxu1 %v6686_v62  ;;  %9958 = vst [vmem:[#allocation53_spill] sm:$0xff] %v6713_v61  ;;  %3233 = vmatpush.bf16.msra.mxu2 %v6713_v61 }
 0x7b5   :  { %v138_v49 = vld [vmem:[%s9547_s7 + $0x1a8] sm:$0xff] }
 0x7b6   :  { %729 = vst [vmem:[%s9553_s13 + $0x10] sm:$0xff] %v601_v0  ;;  %v3071_v0 = vmul.f32 0.5, %v3070_v30  ;;  %v267_v3 = vmul.f32 %v6017_v52, %v138_v49 }
 0x7b7   :  { %730 = vst [vmem:[%s9553_s13 + $0x18] sm:$0xff] %v602_v7  ;;  %v523_v7 = vmul.f32 %v6027_v50, %v394_v54 }
 0x7b8   :  { %v3072_v30 = vsub.f32 1.5, %v3071_v0  ;;  %v652_v13 = vadd.f32 %v524_v8, %v267_v3  ;;  %v420_v0 = vld [vmem:[%s9543_s3 + $0x270] sm:$0xff] }
 0x7be   :  { %v85_v24 = vld [vmem:[%s9547_s7] sm:$0xff]  ;;  %v86_v18 = vld [vmem:[%s9547_s7 + $0x8] sm:$0xff] }
 0x7bf   :  { %745 = vst [vmem:[%s9553_s13 + $0x90] sm:$0xff] %v617_v12  ;;  %v343_v12 = vld [vmem:[%s9543_s3 + $0x8] sm:$0xff]  ;;  %v214_v11 = vmul.f32 %v6017_v52, %v85_v24  ;;  %v215_v58 = vmul.f32 %v6017_v52, %v86_v18 }
 0x7c0   :  { %746 = vst [vmem:[%s9553_s13 + $0x98] sm:$0xff] %v618_v17  ;;  %v651_v17 = vadd.f32 %v523_v7, %v266_v43  ;;  %v3073_v43 = vmul.f32 %v6616_v20, %v3072_v30  ;;  %v472_v24 = vmul.f32 %v6027_v50, %v343_v12  ;;  %v421_v7 = vld [vmem:[%s9543_s3 + $0x278] sm:$0xff]  ;;  %v549_v12 = vmul.f32 %v6027_v50, %v420_v0 }
 0x7c1   :  { %v550_v25 = vmul.f32 %v6027_v50, %v421_v7 }
 0x7c2   :  { %v6745_v5 = vpack.c.bf16 %v652_v13, %v651_v17  ;;  %v3077_v8 = vsel %vm3076_vm13, %v6616_v20, %v3073_v43  ;;  %v600_v2 = vadd.f32 %v472_v24, %v215_v58  ;;  %v3080_v58 = vmax.f32 %v3078_v40, 0.0  ;;  %v392_v40 = vld [vmem:[%s9543_s3 + $0x190] sm:$0xff] }
 0x7c3   :  { %v3079_v30 = vmul.f32 %v3077_v8, %v6329_v23  ;;  %v393_v8 = vld [vmem:[%s9543_s3 + $0x198] sm:$0xff] }
 0x7c4   :  { %9959 = vst [vmem:[#allocation19_spill] sm:$0xff] %v6745_v5  ;;  %3246 = vmatpush.bf16.msra.mxu3 %v6745_v5 }
 0x7c5   :  { %v3081_v0 = vmax.f32 %v3079_v30, 0.0 }
 0x7c7   :  { %v163_v49 = vld [vmem:[%s9547_s7 + $0x270] sm:$0xff]  ;;  %v164_v54 = vld [vmem:[%s9547_s7 + $0x278] sm:$0xff] }
 0x7c8   :  { %763 = vst [vmem:[%s9553_s13 + $0x120] sm:$0xff] %v635_v56  ;;  %v292_v18 = vmul.f32 %v6017_v52, %v163_v49  ;;  %v293_v3 = vmul.f32 %v6017_v52, %v164_v54  ;;  %v599_v56 = vadd.f32 %v471_v37, %v214_v11  ;;  %v358_v49 = vld [vmem:[%s9543_s3 + $0x80] sm:$0xff]  ;;  %v359_v54 = vld [vmem:[%s9543_s3 + $0x88] sm:$0xff]  ;;  %v376_v37 = vld [vmem:[%s9543_s3 + $0x110] sm:$0xff] }
 0x7c9   :  { %764 = vst [vmem:[%s9553_s13 + $0x128] sm:$0xff] %v636_v47  ;;  %v487_v24 = vmul.f32 %v6027_v50, %v358_v49  ;;  %v488_v7 = vmul.f32 %v6027_v50, %v359_v54 }
 0x7ca   :  { %v6778_v23 = vpack.c.bf16 %v600_v2, %v599_v56  ;;  %v677_v55 = vadd.f32 %v549_v12, %v292_v18  ;;  %v678_v43 = vadd.f32 %v550_v25, %v293_v3 }
 0x7cc   :  { %3209 = vmatpush.bf16.msra.mxu0 %v6778_v23  ;;  %v6810_v12 = vpack.c.bf16 %v678_v43, %v677_v55 }
 0x7d0   :  { %v101_v38 = vld [vmem:[%s9547_s7 + $0x80] sm:$0xff]  ;;  %3254 = vmatpush.bf16.msrb.mxu0 %v6810_v12 }
 0x7d1   :  { %779 = vst [vmem:[%s9553_s13 + $0x1a0] sm:$0xff] %v651_v17  ;;  %v230_v20 = vmul.f32 %v6017_v52, %v101_v38  ;;  %v377_v38 = vld [vmem:[%s9543_s3 + $0x118] sm:$0xff] }
 0x7d3   :  { %v615_v49 = vadd.f32 %v487_v24, %v230_v20  ;;  %v436_v20 = vld [vmem:[%s9543_s3 + $0x2f0] sm:$0xff] }
 0x7d8   :  { %v102_v47 = vld [vmem:[%s9547_s7 + $0x88] sm:$0xff] }
 0x7d9   :  { %780 = vst [vmem:[%s9553_s13 + $0x1a8] sm:$0xff] %v652_v13  ;;  %v231_v13 = vmul.f32 %v6017_v52, %v102_v47 }
 0x7da   :  { %727 = vst [vmem:[%s9553_s13] sm:$0xff] %v599_v56  ;;  %v3082_v56 = vpack.c.bf16 %v3080_v58, %v3080_v58 }
 0x7db   :  { %v616_v54 = vadd.f32 %v488_v7, %v231_v13 }
 0x7dc   :  { %3092 = vmatmul.bf16.vlgmr.msrb.gmra.mxu2 %v3082_v56 }
 0x7dd   :  { %v6832_v13 = vpack.c.bf16 %v616_v54, %v615_v49 }
 0x7df   :  { %3222 = vmatpush.bf16.msra.mxu1 %v6832_v13 }
 0x7e1   :  { %v119_v17 = vld [vmem:[%s9547_s7 + $0x110] sm:$0xff]  ;;  %v120_v11 = vld [vmem:[%s9547_s7 + $0x118] sm:$0xff] }
 0x7e2   :  { %728 = vst [vmem:[%s9553_s13 + $0x8] sm:$0xff] %v600_v2  ;;  %v248_v3 = vmul.f32 %v6017_v52, %v119_v17  ;;  %v249_v47 = vmul.f32 %v6017_v52, %v120_v11  ;;  %v3083_v2 = vpack.c.bf16 %v3081_v0, %v3081_v0  ;;  %v505_v17 = vmul.f32 %v6027_v50, %v376_v37 }
 0x7e3   :  { %v506_v11 = vmul.f32 %v6027_v50, %v377_v38  ;;  %v521_v37 = vmul.f32 %v6027_v50, %v392_v40  ;;  %v418_v38 = vld [vmem:[%s9543_s3 + $0x260] sm:$0xff] }
 0x7e4   :  { %3105 = vmatmul.bf16.vlgmr.msrb.gmra.mxu3 %v3083_v2  ;;  %v565_v2 = vmul.f32 %v6027_v50, %v436_v20 }
 0x7e9   :  { %v135_v18 = vld [vmem:[%s9547_s7 + $0x190] sm:$0xff]  ;;  %v136_v31 = vld [vmem:[%s9547_s7 + $0x198] sm:$0xff] }
 0x7ea   :  { %805 = vst [vmem:[%s9553_s13 + $0x270] sm:$0xff] %v677_v55  ;;  %v264_v58 = vmul.f32 %v6017_v52, %v135_v18  ;;  %v265_v0 = vmul.f32 %v6017_v52, %v136_v31  ;;  %v437_v55 = vld [vmem:[%s9543_s3 + $0x2f8] sm:$0xff]  ;;  %v633_v18 = vadd.f32 %v505_v17, %v248_v3  ;;  %v634_v31 = vadd.f32 %v506_v11, %v249_v47  ;;  %v374_v11 = vld [vmem:[%s9543_s3 + $0x100] sm:$0xff] }
 0x7eb   :  { %806 = vst [vmem:[%s9553_s13 + $0x278] sm:$0xff] %v678_v43  ;;  %v522_v43 = vmul.f32 %v6027_v50, %v393_v8  ;;  %v419_v8 = vld [vmem:[%s9543_s3 + $0x268] sm:$0xff]  ;;  %v566_v42 = vmul.f32 %v6027_v50, %v437_v55  ;;  %v547_v17 = vmul.f32 %v6027_v50, %v418_v38 }
 0x7ed   :  { %v650_v63 = vadd.f32 %v522_v43, %v265_v0 }
 0x7f2   :  { %v179_v30 = vld [vmem:[%s9547_s7 + $0x2f0] sm:$0xff]  ;;  %v180_v25 = vld [vmem:[%s9547_s7 + $0x2f8] sm:$0xff] }
 0x7f3   :  { %743 = vst [vmem:[%s9553_s13 + $0x80] sm:$0xff] %v615_v49  ;;  %v308_v56 = vmul.f32 %v6017_v52, %v179_v30  ;;  %v309_v40 = vmul.f32 %v6017_v52, %v180_v25  ;;  %v649_v49 = vadd.f32 %v521_v37, %v264_v58  ;;  %v375_v58 = vld [vmem:[%s9543_s3 + $0x108] sm:$0xff]  ;;  %v548_v37 = vmul.f32 %v6027_v50, %v419_v8 }
 0x7f5   :  { %v6879_v0 = vpack.c.bf16 %v650_v63, %v649_v49  ;;  %v693_v20 = vadd.f32 %v565_v2, %v308_v56  ;;  %v694_v55 = vadd.f32 %v566_v42, %v309_v40  ;;  %v9962_v56 = vld [vmem:[#allocation22_spill] sm:$0xff] }
 0x7f6   :  { %3210 = vmatmul.bf16.vlgmr.msra.gmra.mxu0 %v9962_v56  ;;  %v452_v56 = vld [vmem:[%s9543_s3 + $0x370] sm:$0xff] }
 0x7f7   :  { %9961 = vst [vmem:[#allocation54_spill] sm:$0xff] %v6879_v0  ;;  %3247 = vmatpush.bf16.msra.mxu3 %v6879_v0  ;;  %v6905_v40 = vpack.c.bf16 %v694_v55, %v693_v20 }
 0x7f9   :  { %3267 = vmatpush.bf16.msrb.mxu1 %v6905_v40 }
 0x7fa   :  { %v161_v24 = vld [vmem:[%s9547_s7 + $0x260] sm:$0xff]  ;;  %v162_v7 = vld [vmem:[%s9547_s7 + $0x268] sm:$0xff] }
 0x7fb   :  { %744 = vst [vmem:[%s9553_s13 + $0x88] sm:$0xff] %v616_v54  ;;  %v6865_v54 = vpack.c.bf16 %v634_v31, %v633_v18  ;;  %v290_v30 = vmul.f32 %v6017_v52, %v161_v24  ;;  %v291_v25 = vmul.f32 %v6017_v52, %v162_v7  ;;  %v390_v7 = vld [vmem:[%s9543_s3 + $0x180] sm:$0xff] }
 0x7fd   :  { %9960 = vst [vmem:[#allocation20_spill] sm:$0xff] %v6865_v54  ;;  %3234 = vmatpush.bf16.msra.mxu2 %v6865_v54  ;;  %v675_v42 = vadd.f32 %v547_v17, %v290_v30  ;;  %v676_v8 = vadd.f32 %v548_v37, %v291_v25  ;;  %v519_v17 = vmul.f32 %v6027_v50, %v390_v7  ;;  %v435_v37 = vld [vmem:[%s9543_s3 + $0x2e8] sm:$0xff] }
 0x7fe   :  { %v451_v54 = vld [vmem:[%s9543_s3 + $0x368] sm:$0xff] }
 0x802   :  { %v117_v3 = vld [vmem:[%s9547_s7 + $0x100] sm:$0xff]  ;;  %v118_v47 = vld [vmem:[%s9547_s7 + $0x108] sm:$0xff] }
 0x803   :  { %761 = vst [vmem:[%s9553_s13 + $0x110] sm:$0xff] %v633_v18  ;;  %v246_v38 = vmul.f32 %v6017_v52, %v117_v3  ;;  %v247_v18 = vmul.f32 %v6017_v52, %v118_v47  ;;  %v9963_v47 = vld [vmem:[#allocation24_spill] sm:$0xff] }
 0x804   :  { %762 = vst [vmem:[%s9553_s13 + $0x118] sm:$0xff] %v634_v31  ;;  %v391_v31 = vld [vmem:[%s9543_s3 + $0x188] sm:$0xff]  ;;  %3223 = vmatmul.bf16.vlgmr.msra.gmra.mxu1 %v9963_v47  ;;  %v453_v47 = vld [vmem:[%s9543_s3 + $0x378] sm:$0xff] }
 0x80b   :  { %v133_v43 = vld [vmem:[%s9547_s7 + $0x180] sm:$0xff]  ;;  %v134_v24 = vld [vmem:[%s9547_s7 + $0x188] sm:$0xff] }
 0x80c   :  { %777 = vst [vmem:[%s9553_s13 + $0x190] sm:$0xff] %v649_v49  ;;  %v503_v49 = vmul.f32 %v6027_v50, %v374_v11  ;;  %v262_v30 = vmul.f32 %v6017_v52, %v133_v43  ;;  %v263_v25 = vmul.f32 %v6017_v52, %v134_v24  ;;  %v434_v11 = vld [vmem:[%s9543_s3 + $0x2e0] sm:$0xff]  ;;  %v520_v43 = vmul.f32 %v6027_v50, %v391_v31 }
 0x80d   :  { %778 = vst [vmem:[%s9553_s13 + $0x198] sm:$0xff] %v650_v63  ;;  %v504_v63 = vmul.f32 %v6027_v50, %v375_v58  ;;  %v6932_v58 = vpack.c.bf16 %v676_v8, %v675_v42  ;;  %v563_v16 = vmul.f32 %v6027_v50, %v434_v11 }
 0x80e   :  { %v648_v21 = vadd.f32 %v520_v43, %v263_v25  ;;  %v468_v25 = vld [vmem:[%s9543_s3 + $0x3f0] sm:$0xff]  ;;  %v582_v43 = vmul.f32 %v6027_v50, %v453_v47 }
 0x80f   :  { %3255 = vmatpush.bf16.msrb.mxu0 %v6932_v58 }
 0x814   :  { %v177_v2 = vld [vmem:[%s9547_s7 + $0x2e0] sm:$0xff]  ;;  %v178_v3 = vld [vmem:[%s9547_s7 + $0x2e8] sm:$0xff] }
 0x815   :  { %821 = vst [vmem:[%s9553_s13 + $0x2f0] sm:$0xff] %v693_v20  ;;  %v631_v20 = vadd.f32 %v503_v49, %v246_v38  ;;  %v647_v38 = vadd.f32 %v519_v17, %v262_v30  ;;  %v306_v31 = vmul.f32 %v6017_v52, %v177_v2  ;;  %v307_v49 = vmul.f32 %v6017_v52, %v178_v3  ;;  %v469_v17 = vld [vmem:[%s9543_s3 + $0x3f8] sm:$0xff] }
 0x816   :  { %822 = vst [vmem:[%s9553_s13 + $0x2f8] sm:$0xff] %v694_v55  ;;  %v632_v55 = vadd.f32 %v504_v63, %v247_v18  ;;  %v581_v30 = vmul.f32 %v6027_v50, %v452_v56  ;;  %v416_v56 = vld [vmem:[%s9543_s3 + $0x250] sm:$0xff] }
 0x817   :  { %v6981_v11 = vpack.c.bf16 %v648_v21, %v647_v38 }
 0x819   :  { %9965 = vst [vmem:[#allocation25_spill] sm:$0xff] %v6981_v11  ;;  %3248 = vmatpush.bf16.msra.mxu3 %v6981_v11 }
 0x81d   :  { %v195_v24 = vld [vmem:[%s9547_s7 + $0x370] sm:$0xff]  ;;  %v196_v7 = vld [vmem:[%s9547_s7 + $0x378] sm:$0xff] }
 0x81e   :  { %803 = vst [vmem:[%s9553_s13 + $0x260] sm:$0xff] %v675_v42  ;;  %v564_v42 = vmul.f32 %v6027_v50, %v435_v37  ;;  %v324_v3 = vmul.f32 %v6017_v52, %v195_v24  ;;  %v325_v63 = vmul.f32 %v6017_v52, %v196_v7  ;;  %v691_v37 = vadd.f32 %v563_v16, %v306_v31 }
 0x81f   :  { %804 = vst [vmem:[%s9553_s13 + $0x268] sm:$0xff] %v676_v8  ;;  %v6967_v8 = vpack.c.bf16 %v632_v55, %v631_v20 }
 0x820   :  { %v709_v16 = vadd.f32 %v581_v30, %v324_v3  ;;  %v545_v30 = vmul.f32 %v6027_v50, %v416_v56 }
 0x821   :  { %9964 = vst [vmem:[#allocation55_spill] sm:$0xff] %v6967_v8  ;;  %3235 = vmatpush.bf16.msra.mxu2 %v6967_v8 }
 0x826   :  { %v211_v18 = vld [vmem:[%s9547_s7 + $0x3f0] sm:$0xff]  ;;  %v212_v2 = vld [vmem:[%s9547_s7 + $0x3f8] sm:$0xff] }
 0x827   :  { %759 = vst [vmem:[%s9553_s13 + $0x100] sm:$0xff] %v631_v20  ;;  %v692_v20 = vadd.f32 %v564_v42, %v307_v49  ;;  %v341_v31 = vmul.f32 %v6017_v52, %v212_v2  ;;  %v417_v49 = vld [vmem:[%s9543_s3 + $0x258] sm:$0xff]  ;;  %v710_v42 = vadd.f32 %v582_v43, %v325_v63 }
 0x828   :  { %760 = vst [vmem:[%s9553_s13 + $0x108] sm:$0xff] %v632_v55  ;;  %v340_v55 = vmul.f32 %v6017_v52, %v211_v18  ;;  %v433_v43 = vld [vmem:[%s9543_s3 + $0x2d8] sm:$0xff] }
 0x829   :  { %v7006_v47 = vpack.c.bf16 %v692_v20, %v691_v37 }
 0x82b   :  { %3268 = vmatpush.bf16.msrb.mxu1 %v7006_v47 }
 0x82f   :  { %v159_v24 = vld [vmem:[%s9547_s7 + $0x250] sm:$0xff]  ;;  %v160_v7 = vld [vmem:[%s9547_s7 + $0x258] sm:$0xff] }
 0x830   :  { %775 = vst [vmem:[%s9553_s13 + $0x180] sm:$0xff] %v647_v38  ;;  %v597_v38 = vmul.f32 %v6027_v50, %v468_v25  ;;  %v288_v3 = vmul.f32 %v6017_v52, %v159_v24  ;;  %v289_v63 = vmul.f32 %v6017_v52, %v160_v7  ;;  %v432_v25 = vld [vmem:[%s9543_s3 + $0x2d0] sm:$0xff]  ;;  %v546_v24 = vmul.f32 %v6027_v50, %v417_v49 }
 0x831   :  { %776 = vst [vmem:[%s9553_s13 + $0x188] sm:$0xff] %v648_v21  ;;  %v598_v21 = vmul.f32 %v6027_v50, %v469_v17  ;;  %v7032_v17 = vpack.c.bf16 %v710_v42, %v709_v16  ;;  %v561_v11 = vmul.f32 %v6027_v50, %v432_v25  ;;  %v467_v25 = vld [vmem:[%s9543_s3 + $0x3e8] sm:$0xff] }
 0x832   :  { %v673_v49 = vadd.f32 %v545_v30, %v288_v3  ;;  %v466_v30 = vld [vmem:[%s9543_s3 + $0x3e0] sm:$0xff] }
 0x833   :  { %9966 = vst [vmem:[#allocation26_spill] sm:$0xff] %v7032_v17  ;;  %3280 = vmatpush.bf16.msrb.mxu2 %v7032_v17  ;;  %v448_v17 = vld [vmem:[%s9543_s3 + $0x350] sm:$0xff] }
 0x838   :  { %v175_v18 = vld [vmem:[%s9547_s7 + $0x2d0] sm:$0xff]  ;;  %v176_v2 = vld [vmem:[%s9547_s7 + $0x2d8] sm:$0xff] }
 0x839   :  { %819 = vst [vmem:[%s9553_s13 + $0x2e0] sm:$0xff] %v691_v37  ;;  %v725_v37 = vadd.f32 %v597_v38, %v340_v55  ;;  %v726_v55 = vadd.f32 %v598_v21, %v341_v31  ;;  %v304_v38 = vmul.f32 %v6017_v52, %v175_v18  ;;  %v305_v8 = vmul.f32 %v6017_v52, %v176_v2  ;;  %v9968_v2 = vld [vmem:[#allocation23_spill] sm:$0xff] }
 0x83a   :  { %820 = vst [vmem:[%s9553_s13 + $0x2e8] sm:$0xff] %v692_v20  ;;  %v9967_v20 = vld [vmem:[#allocation21_spill] sm:$0xff]  ;;  %3249 = vmatmul.bf16.vlgmr.msra.gmra.mxu3 %v9968_v2  ;;  %v414_v2 = vld [vmem:[%s9543_s3 + $0x240] sm:$0xff] }
 0x83b   :  { %3236 = vmatmul.bf16.vlgmr.msra.gmra.mxu2 %v9967_v20  ;;  %v674_v20 = vadd.f32 %v546_v24, %v289_v63  ;;  %v579_v63 = vmul.f32 %v6027_v50, %v450_v33 }
 0x841   :  { %v193_v7 = vld [vmem:[%s9547_s7 + $0x360] sm:$0xff]  ;;  %v194_v56 = vld [vmem:[%s9547_s7 + $0x368] sm:$0xff] }
 0x842   :  { %837 = vst [vmem:[%s9553_s13 + $0x370] sm:$0xff] %v709_v16  ;;  %v562_v16 = vmul.f32 %v6027_v50, %v433_v43  ;;  %v322_v21 = vmul.f32 %v6017_v52, %v193_v7  ;;  %v323_v3 = vmul.f32 %v6017_v52, %v194_v56  ;;  %v7083_v43 = vpack.c.bf16 %v674_v20, %v673_v49 }
 0x843   :  { %838 = vst [vmem:[%s9553_s13 + $0x378] sm:$0xff] %v710_v42  ;;  %v7069_v42 = vpack.c.bf16 %v726_v55, %v725_v37  ;;  %v580_v7 = vmul.f32 %v6027_v50, %v451_v54 }
 0x844   :  { %v690_v24 = vadd.f32 %v562_v16, %v305_v8  ;;  %v707_v8 = vadd.f32 %v579_v63, %v322_v21  ;;  %3256 = vmatpush.bf16.msrb.mxu0 %v7083_v43  ;;  %v543_v63 = vmul.f32 %v6027_v50, %v414_v2 }
 0x845   :  { %9969 = vst [vmem:[#allocation56_spill] sm:$0xff] %v7069_v42  ;;  %3293 = vmatpush.bf16.msrb.mxu3 %v7069_v42  ;;  %v708_v16 = vadd.f32 %v580_v7, %v323_v3  ;;  %v431_v7 = vld [vmem:[%s9543_s3 + $0x2c8] sm:$0xff]  ;;  %v449_v42 = vld [vmem:[%s9543_s3 + $0x358] sm:$0xff] }
 0x84a   :  { %v209_v31 = vld [vmem:[%s9547_s7 + $0x3e0] sm:$0xff]  ;;  %v210_v18 = vld [vmem:[%s9547_s7 + $0x3e8] sm:$0xff] }
 0x84b   :  { %853 = vst [vmem:[%s9553_s13 + $0x3f0] sm:$0xff] %v725_v37  ;;  %v689_v37 = vadd.f32 %v561_v11, %v304_v38  ;;  %v338_v54 = vmul.f32 %v6017_v52, %v209_v31  ;;  %v339_v11 = vmul.f32 %v6017_v52, %v210_v18 }
 0x84c   :  { %854 = vst [vmem:[%s9553_s13 + $0x3f8] sm:$0xff] %v726_v55  ;;  %v415_v55 = vld [vmem:[%s9543_s3 + $0x248] sm:$0xff] }
 0x84d   :  { %v7108_v38 = vpack.c.bf16 %v690_v24, %v689_v37 }
 0x84f   :  { %3269 = vmatpush.bf16.msrb.mxu1 %v7108_v38 }
 0x853   :  { %v157_v33 = vld [vmem:[%s9547_s7 + $0x240] sm:$0xff]  ;;  %v158_v56 = vld [vmem:[%s9547_s7 + $0x248] sm:$0xff] }
 0x854   :  { %801 = vst [vmem:[%s9553_s13 + $0x250] sm:$0xff] %v673_v49  ;;  %v595_v49 = vmul.f32 %v6027_v50, %v466_v30  ;;  %v286_v21 = vmul.f32 %v6017_v52, %v157_v33  ;;  %v287_v3 = vmul.f32 %v6017_v52, %v158_v56  ;;  %v430_v30 = vld [vmem:[%s9543_s3 + $0x2c0] sm:$0xff]  ;;  %v544_v33 = vmul.f32 %v6027_v50, %v415_v55 }
 0x855   :  { %802 = vst [vmem:[%s9553_s13 + $0x258] sm:$0xff] %v674_v20  ;;  %v596_v20 = vmul.f32 %v6027_v50, %v467_v25  ;;  %v7134_v25 = vpack.c.bf16 %v708_v16, %v707_v8  ;;  %v559_v0 = vmul.f32 %v6027_v50, %v430_v30 }
 0x856   :  { %v672_v61 = vadd.f32 %v544_v33, %v287_v3  ;;  %v464_v3 = vld [vmem:[%s9543_s3 + $0x3d0] sm:$0xff]  ;;  %v578_v33 = vmul.f32 %v6027_v50, %v449_v42 }
 0x857   :  { %9970 = vst [vmem:[#allocation57_spill] sm:$0xff] %v7134_v25  ;;  %3281 = vmatpush.bf16.msrb.mxu2 %v7134_v25  ;;  %v446_v25 = vld [vmem:[%s9543_s3 + $0x340] sm:$0xff] }
 0x85c   :  { %v173_v31 = vld [vmem:[%s9547_s7 + $0x2c0] sm:$0xff]  ;;  %v174_v18 = vld [vmem:[%s9547_s7 + $0x2c8] sm:$0xff] }
 0x85d   :  { %817 = vst [vmem:[%s9553_s13 + $0x2d0] sm:$0xff] %v689_v37  ;;  %v723_v37 = vadd.f32 %v595_v49, %v338_v54  ;;  %v671_v54 = vadd.f32 %v543_v63, %v286_v21  ;;  %v302_v55 = vmul.f32 %v6017_v52, %v173_v31  ;;  %v303_v49 = vmul.f32 %v6017_v52, %v174_v18  ;;  %v465_v63 = vld [vmem:[%s9543_s3 + $0x3d8] sm:$0xff] }
 0x85e   :  { %818 = vst [vmem:[%s9553_s13 + $0x2d8] sm:$0xff] %v690_v24  ;;  %v724_v24 = vadd.f32 %v596_v20, %v339_v11  ;;  %v577_v21 = vmul.f32 %v6027_v50, %v448_v17 }
 0x85f   :  { %v7183_v30 = vpack.c.bf16 %v672_v61, %v671_v54 }
 0x861   :  { %3257 = vmatpush.bf16.msrb.mxu0 %v7183_v30 }
 0x865   :  { %v191_v56 = vld [vmem:[%s9547_s7 + $0x350] sm:$0xff]  ;;  %v192_v2 = vld [vmem:[%s9547_s7 + $0x358] sm:$0xff] }
 0x866   :  { %835 = vst [vmem:[%s9553_s13 + $0x360] sm:$0xff] %v707_v8  ;;  %v560_v8 = vmul.f32 %v6027_v50, %v431_v7  ;;  %v320_v18 = vmul.f32 %v6017_v52, %v191_v56  ;;  %v321_v20 = vmul.f32 %v6017_v52, %v192_v2  ;;  %v687_v7 = vadd.f32 %v559_v0, %v302_v55  ;;  %v412_v2 = vld [vmem:[%s9543_s3 + $0x230] sm:$0xff]  ;;  %v413_v55 = vld [vmem:[%s9543_s3 + $0x238] sm:$0xff] }
 0x867   :  { %836 = vst [vmem:[%s9553_s13 + $0x368] sm:$0xff] %v708_v16  ;;  %v7169_v16 = vpack.c.bf16 %v724_v24, %v723_v37 }
 0x868   :  { %v705_v0 = vadd.f32 %v577_v21, %v320_v18  ;;  %v541_v21 = vmul.f32 %v6027_v50, %v412_v2 }
 0x869   :  { %9971 = vst [vmem:[#allocation27_spill] sm:$0xff] %v7169_v16  ;;  %3294 = vmatpush.bf16.msrb.mxu3 %v7169_v16  ;;  %v447_v16 = vld [vmem:[%s9543_s3 + $0x348] sm:$0xff] }
 0x86e   :  { %v207_v11 = vld [vmem:[%s9547_s7 + $0x3d0] sm:$0xff]  ;;  %v208_v31 = vld [vmem:[%s9547_s7 + $0x3d8] sm:$0xff] }
 0x86f   :  { %851 = vst [vmem:[%s9553_s13 + $0x3e0] sm:$0xff] %v723_v37  ;;  %v688_v37 = vadd.f32 %v560_v8, %v303_v49  ;;  %v336_v42 = vmul.f32 %v6017_v52, %v207_v11  ;;  %v706_v8 = vadd.f32 %v578_v33, %v321_v20  ;;  %v429_v33 = vld [vmem:[%s9543_s3 + $0x2b8] sm:$0xff] }
 0x870   :  { %852 = vst [vmem:[%s9553_s13 + $0x3e8] sm:$0xff] %v724_v24  ;;  %v337_v24 = vmul.f32 %v6017_v52, %v208_v31 }
 0x871   :  { %v7208_v49 = vpack.c.bf16 %v688_v37, %v687_v7 }
 0x873   :  { %3270 = vmatpush.bf16.msrb.mxu1 %v7208_v49 }
 0x877   :  { %v155_v17 = vld [vmem:[%s9547_s7 + $0x230] sm:$0xff]  ;;  %v156_v56 = vld [vmem:[%s9547_s7 + $0x238] sm:$0xff] }
 0x878   :  { %799 = vst [vmem:[%s9553_s13 + $0x240] sm:$0xff] %v671_v54  ;;  %v593_v54 = vmul.f32 %v6027_v50, %v464_v3  ;;  %v284_v18 = vmul.f32 %v6017_v52, %v155_v17  ;;  %v285_v20 = vmul.f32 %v6017_v52, %v156_v56  ;;  %v428_v3 = vld [vmem:[%s9543_s3 + $0x2b0] sm:$0xff]  ;;  %v542_v17 = vmul.f32 %v6027_v50, %v413_v55 }
 0x879   :  { %800 = vst [vmem:[%s9553_s13 + $0x248] sm:$0xff] %v672_v61  ;;  %v594_v61 = vmul.f32 %v6027_v50, %v465_v63  ;;  %v7234_v63 = vpack.c.bf16 %v706_v8, %v705_v0  ;;  %v557_v5 = vmul.f32 %v6027_v50, %v428_v3 }
 0x87a   :  { %v670_v22 = vadd.f32 %v542_v17, %v285_v20  ;;  %v462_v20 = vld [vmem:[%s9543_s3 + $0x3c0] sm:$0xff]  ;;  %v576_v17 = vmul.f32 %v6027_v50, %v447_v16 }
 0x87b   :  { %9972 = vst [vmem:[#allocation61_spill] sm:$0xff] %v7234_v63  ;;  %3282 = vmatpush.bf16.msrb.mxu2 %v7234_v63  ;;  %v444_v63 = vld [vmem:[%s9543_s3 + $0x330] sm:$0xff] }
 0x880   :  { %v171_v11 = vld [vmem:[%s9547_s7 + $0x2b0] sm:$0xff]  ;;  %v172_v31 = vld [vmem:[%s9547_s7 + $0x2b8] sm:$0xff] }
 0x881   :  { %815 = vst [vmem:[%s9553_s13 + $0x2c0] sm:$0xff] %v687_v7  ;;  %v721_v7 = vadd.f32 %v593_v54, %v336_v42  ;;  %v669_v42 = vadd.f32 %v541_v21, %v284_v18  ;;  %v300_v55 = vmul.f32 %v6017_v52, %v171_v11  ;;  %v301_v54 = vmul.f32 %v6017_v52, %v172_v31  ;;  %v463_v21 = vld [vmem:[%s9543_s3 + $0x3c8] sm:$0xff] }
 0x882   :  { %816 = vst [vmem:[%s9553_s13 + $0x2c8] sm:$0xff] %v688_v37  ;;  %v722_v37 = vadd.f32 %v594_v61, %v337_v24  ;;  %v575_v18 = vmul.f32 %v6027_v50, %v446_v25 }
 0x883   :  { %v7283_v3 = vpack.c.bf16 %v670_v22, %v669_v42 }
 0x885   :  { %3258 = vmatpush.bf16.msrb.mxu0 %v7283_v3 }
 0x889   :  { %v189_v56 = vld [vmem:[%s9547_s7 + $0x340] sm:$0xff]  ;;  %v190_v2 = vld [vmem:[%s9547_s7 + $0x348] sm:$0xff] }
 0x88a   :  { %833 = vst [vmem:[%s9553_s13 + $0x350] sm:$0xff] %v705_v0  ;;  %v558_v0 = vmul.f32 %v6027_v50, %v429_v33  ;;  %v318_v31 = vmul.f32 %v6017_v52, %v189_v56  ;;  %v319_v61 = vmul.f32 %v6017_v52, %v190_v2  ;;  %v685_v33 = vadd.f32 %v557_v5, %v300_v55  ;;  %v410_v2 = vld [vmem:[%s9543_s3 + $0x220] sm:$0xff]  ;;  %v411_v55 = vld [vmem:[%s9543_s3 + $0x228] sm:$0xff] }
 0x88b   :  { %834 = vst [vmem:[%s9553_s13 + $0x358] sm:$0xff] %v706_v8  ;;  %v7269_v8 = vpack.c.bf16 %v722_v37, %v721_v7 }
 0x88c   :  { %v703_v5 = vadd.f32 %v575_v18, %v318_v31  ;;  %v539_v18 = vmul.f32 %v6027_v50, %v410_v2 }
 0x88d   :  { %9973 = vst [vmem:[#allocation28_spill] sm:$0xff] %v7269_v8  ;;  %3295 = vmatpush.bf16.msrb.mxu3 %v7269_v8  ;;  %v445_v8 = vld [vmem:[%s9543_s3 + $0x338] sm:$0xff] }
 0x892   :  { %v205_v24 = vld [vmem:[%s9547_s7 + $0x3c0] sm:$0xff]  ;;  %v206_v11 = vld [vmem:[%s9547_s7 + $0x3c8] sm:$0xff] }
 0x893   :  { %849 = vst [vmem:[%s9553_s13 + $0x3d0] sm:$0xff] %v721_v7  ;;  %v686_v7 = vadd.f32 %v558_v0, %v301_v54  ;;  %v334_v16 = vmul.f32 %v6017_v52, %v205_v24  ;;  %v704_v0 = vadd.f32 %v576_v17, %v319_v61  ;;  %v427_v17 = vld [vmem:[%s9543_s3 + $0x2a8] sm:$0xff] }
 0x894   :  { %850 = vst [vmem:[%s9553_s13 + $0x3d8] sm:$0xff] %v722_v37  ;;  %v335_v37 = vmul.f32 %v6017_v52, %v206_v11 }
 0x895   :  { %v7308_v54 = vpack.c.bf16 %v686_v7, %v685_v33 }
 0x897   :  { %3271 = vmatpush.bf16.msrb.mxu1 %v7308_v54 }
 0x89b   :  { %v153_v25 = vld [vmem:[%s9547_s7 + $0x220] sm:$0xff]  ;;  %v154_v56 = vld [vmem:[%s9547_s7 + $0x228] sm:$0xff] }
 0x89c   :  { %797 = vst [vmem:[%s9553_s13 + $0x230] sm:$0xff] %v669_v42  ;;  %v591_v42 = vmul.f32 %v6027_v50, %v462_v20  ;;  %v282_v31 = vmul.f32 %v6017_v52, %v153_v25  ;;  %v283_v61 = vmul.f32 %v6017_v52, %v154_v56  ;;  %v426_v20 = vld [vmem:[%s9543_s3 + $0x2a0] sm:$0xff]  ;;  %v540_v25 = vmul.f32 %v6027_v50, %v411_v55 }
 0x89d   :  { %798 = vst [vmem:[%s9553_s13 + $0x238] sm:$0xff] %v670_v22  ;;  %v592_v22 = vmul.f32 %v6027_v50, %v463_v21  ;;  %v7334_v21 = vpack.c.bf16 %v704_v0, %v703_v5  ;;  %v555_v10 = vmul.f32 %v6027_v50, %v426_v20 }
 0x89e   :  { %v668_v28 = vadd.f32 %v540_v25, %v283_v61  ;;  %v460_v61 = vld [vmem:[%s9543_s3 + $0x3b0] sm:$0xff]  ;;  %v574_v25 = vmul.f32 %v6027_v50, %v445_v8 }
 0x89f   :  { %9974 = vst [vmem:[#allocation58_spill] sm:$0xff] %v7334_v21  ;;  %3283 = vmatpush.bf16.msrb.mxu2 %v7334_v21  ;;  %v442_v21 = vld [vmem:[%s9543_s3 + $0x320] sm:$0xff] }
 0x8a4   :  { %v169_v24 = vld [vmem:[%s9547_s7 + $0x2a0] sm:$0xff]  ;;  %v170_v11 = vld [vmem:[%s9547_s7 + $0x2a8] sm:$0xff] }
 0x8a5   :  { %813 = vst [vmem:[%s9553_s13 + $0x2b0] sm:$0xff] %v685_v33  ;;  %v719_v33 = vadd.f32 %v591_v42, %v334_v16  ;;  %v667_v16 = vadd.f32 %v539_v18, %v282_v31  ;;  %v298_v55 = vmul.f32 %v6017_v52, %v169_v24  ;;  %v299_v42 = vmul.f32 %v6017_v52, %v170_v11  ;;  %v461_v18 = vld [vmem:[%s9543_s3 + $0x3b8] sm:$0xff] }
 0x8a6   :  { %814 = vst [vmem:[%s9553_s13 + $0x2b8] sm:$0xff] %v686_v7  ;;  %v720_v7 = vadd.f32 %v592_v22, %v335_v37  ;;  %v573_v31 = vmul.f32 %v6027_v50, %v444_v63 }
 0x8a7   :  { %v7383_v20 = vpack.c.bf16 %v668_v28, %v667_v16 }
 0x8a9   :  { %3259 = vmatpush.bf16.msrb.mxu0 %v7383_v20 }
 0x8ad   :  { %v187_v56 = vld [vmem:[%s9547_s7 + $0x330] sm:$0xff]  ;;  %v188_v2 = vld [vmem:[%s9547_s7 + $0x338] sm:$0xff] }
 0x8ae   :  { %831 = vst [vmem:[%s9553_s13 + $0x340] sm:$0xff] %v703_v5  ;;  %v556_v5 = vmul.f32 %v6027_v50, %v427_v17  ;;  %v316_v11 = vmul.f32 %v6017_v52, %v187_v56  ;;  %v317_v22 = vmul.f32 %v6017_v52, %v188_v2  ;;  %v683_v17 = vadd.f32 %v555_v10, %v298_v55  ;;  %v408_v2 = vld [vmem:[%s9543_s3 + $0x210] sm:$0xff]  ;;  %v409_v55 = vld [vmem:[%s9543_s3 + $0x218] sm:$0xff] }
 0x8af   :  { %832 = vst [vmem:[%s9553_s13 + $0x348] sm:$0xff] %v704_v0  ;;  %v7369_v0 = vpack.c.bf16 %v720_v7, %v719_v33 }
 0x8b0   :  { %v701_v10 = vadd.f32 %v573_v31, %v316_v11  ;;  %v537_v31 = vmul.f32 %v6027_v50, %v408_v2 }
 0x8b1   :  { %9975 = vst [vmem:[#allocation62_spill] sm:$0xff] %v7369_v0  ;;  %3296 = vmatpush.bf16.msrb.mxu3 %v7369_v0  ;;  %v443_v0 = vld [vmem:[%s9543_s3 + $0x328] sm:$0xff] }
 0x8b6   :  { %v203_v37 = vld [vmem:[%s9547_s7 + $0x3b0] sm:$0xff]  ;;  %v204_v24 = vld [vmem:[%s9547_s7 + $0x3b8] sm:$0xff] }
 0x8b7   :  { %847 = vst [vmem:[%s9553_s13 + $0x3c0] sm:$0xff] %v719_v33  ;;  %v684_v33 = vadd.f32 %v556_v5, %v299_v42  ;;  %v332_v8 = vmul.f32 %v6017_v52, %v203_v37  ;;  %v702_v5 = vadd.f32 %v574_v25, %v317_v22  ;;  %v425_v25 = vld [vmem:[%s9543_s3 + $0x298] sm:$0xff] }
 0x8b8   :  { %848 = vst [vmem:[%s9553_s13 + $0x3c8] sm:$0xff] %v720_v7  ;;  %v333_v7 = vmul.f32 %v6017_v52, %v204_v24 }
 0x8b9   :  { %v7408_v42 = vpack.c.bf16 %v684_v33, %v683_v17 }
 0x8bb   :  { %3272 = vmatpush.bf16.msrb.mxu1 %v7408_v42 }
 0x8bf   :  { %v151_v63 = vld [vmem:[%s9547_s7 + $0x210] sm:$0xff]  ;;  %v152_v56 = vld [vmem:[%s9547_s7 + $0x218] sm:$0xff] }
 0x8c0   :  { %795 = vst [vmem:[%s9553_s13 + $0x220] sm:$0xff] %v667_v16  ;;  %v589_v16 = vmul.f32 %v6027_v50, %v460_v61  ;;  %v280_v11 = vmul.f32 %v6017_v52, %v151_v63  ;;  %v281_v22 = vmul.f32 %v6017_v52, %v152_v56  ;;  %v424_v61 = vld [vmem:[%s9543_s3 + $0x290] sm:$0xff]  ;;  %v538_v63 = vmul.f32 %v6027_v50, %v409_v55 }
 0x8c1   :  { %796 = vst [vmem:[%s9553_s13 + $0x228] sm:$0xff] %v668_v28  ;;  %v590_v28 = vmul.f32 %v6027_v50, %v461_v18  ;;  %v7434_v18 = vpack.c.bf16 %v702_v5, %v701_v10  ;;  %v553_v46 = vmul.f32 %v6027_v50, %v424_v61 }
 0x8c2   :  { %v666_v59 = vadd.f32 %v538_v63, %v281_v22  ;;  %v458_v22 = vld [vmem:[%s9543_s3 + $0x3a0] sm:$0xff]  ;;  %v572_v63 = vmul.f32 %v6027_v50, %v443_v0 }
 0x8c3   :  { %9976 = vst [vmem:[#allocation29_spill] sm:$0xff] %v7434_v18  ;;  %3284 = vmatpush.bf16.msrb.mxu2 %v7434_v18  ;;  %v440_v18 = vld [vmem:[%s9543_s3 + $0x310] sm:$0xff] }
 0x8c8   :  { %v167_v37 = vld [vmem:[%s9547_s7 + $0x290] sm:$0xff]  ;;  %v168_v24 = vld [vmem:[%s9547_s7 + $0x298] sm:$0xff] }
 0x8c9   :  { %811 = vst [vmem:[%s9553_s13 + $0x2a0] sm:$0xff] %v683_v17  ;;  %v717_v17 = vadd.f32 %v589_v16, %v332_v8  ;;  %v665_v8 = vadd.f32 %v537_v31, %v280_v11  ;;  %v296_v55 = vmul.f32 %v6017_v52, %v167_v37  ;;  %v297_v16 = vmul.f32 %v6017_v52, %v168_v24  ;;  %v459_v31 = vld [vmem:[%s9543_s3 + $0x3a8] sm:$0xff] }
 0x8ca   :  { %812 = vst [vmem:[%s9553_s13 + $0x2a8] sm:$0xff] %v684_v33  ;;  %v718_v33 = vadd.f32 %v590_v28, %v333_v7  ;;  %v571_v11 = vmul.f32 %v6027_v50, %v442_v21 }
 0x8cb   :  { %v7483_v61 = vpack.c.bf16 %v666_v59, %v665_v8 }
 0x8cd   :  { %3260 = vmatpush.bf16.msrb.mxu0 %v7483_v61 }
 0x8d1   :  { %v185_v56 = vld [vmem:[%s9547_s7 + $0x320] sm:$0xff]  ;;  %v186_v2 = vld [vmem:[%s9547_s7 + $0x328] sm:$0xff] }
 0x8d2   :  { %829 = vst [vmem:[%s9553_s13 + $0x330] sm:$0xff] %v701_v10  ;;  %v554_v10 = vmul.f32 %v6027_v50, %v425_v25  ;;  %v314_v24 = vmul.f32 %v6017_v52, %v185_v56  ;;  %v315_v28 = vmul.f32 %v6017_v52, %v186_v2  ;;  %v681_v25 = vadd.f32 %v553_v46, %v296_v55  ;;  %v406_v2 = vld [vmem:[%s9543_s3 + $0x200] sm:$0xff]  ;;  %v407_v55 = vld [vmem:[%s9543_s3 + $0x208] sm:$0xff] }
 0x8d3   :  { %830 = vst [vmem:[%s9553_s13 + $0x338] sm:$0xff] %v702_v5  ;;  %v7469_v5 = vpack.c.bf16 %v718_v33, %v717_v17 }
 0x8d4   :  { %v699_v46 = vadd.f32 %v571_v11, %v314_v24  ;;  %v535_v11 = vmul.f32 %v6027_v50, %v406_v2 }
 0x8d5   :  { %9977 = vst [vmem:[#allocation65_spill] sm:$0xff] %v7469_v5  ;;  %3297 = vmatpush.bf16.msrb.mxu3 %v7469_v5  ;;  %v441_v5 = vld [vmem:[%s9543_s3 + $0x318] sm:$0xff] }
 0x8da   :  { %v201_v7 = vld [vmem:[%s9547_s7 + $0x3a0] sm:$0xff]  ;;  %v202_v37 = vld [vmem:[%s9547_s7 + $0x3a8] sm:$0xff] }
 0x8db   :  { %845 = vst [vmem:[%s9553_s13 + $0x3b0] sm:$0xff] %v717_v17  ;;  %v682_v17 = vadd.f32 %v554_v10, %v297_v16  ;;  %v330_v0 = vmul.f32 %v6017_v52, %v201_v7  ;;  %v700_v10 = vadd.f32 %v572_v63, %v315_v28  ;;  %v423_v63 = vld [vmem:[%s9543_s3 + $0x288] sm:$0xff] }
 0x8dc   :  { %846 = vst [vmem:[%s9553_s13 + $0x3b8] sm:$0xff] %v718_v33  ;;  %v331_v33 = vmul.f32 %v6017_v52, %v202_v37 }
 0x8dd   :  { %v7508_v16 = vpack.c.bf16 %v682_v17, %v681_v25 }
 0x8df   :  { %3273 = vmatpush.bf16.msrb.mxu1 %v7508_v16 }
 0x8e3   :  { %v149_v21 = vld [vmem:[%s9547_s7 + $0x200] sm:$0xff]  ;;  %v150_v56 = vld [vmem:[%s9547_s7 + $0x208] sm:$0xff] }
 0x8e4   :  { %793 = vst [vmem:[%s9553_s13 + $0x210] sm:$0xff] %v665_v8  ;;  %v587_v8 = vmul.f32 %v6027_v50, %v458_v22  ;;  %v278_v24 = vmul.f32 %v6017_v52, %v149_v21  ;;  %v279_v28 = vmul.f32 %v6017_v52, %v150_v56  ;;  %v422_v22 = vld [vmem:[%s9543_s3 + $0x280] sm:$0xff]  ;;  %v536_v21 = vmul.f32 %v6027_v50, %v407_v55 }
 0x8e5   :  { %794 = vst [vmem:[%s9553_s13 + $0x218] sm:$0xff] %v666_v59  ;;  %v588_v59 = vmul.f32 %v6027_v50, %v459_v31  ;;  %v7534_v31 = vpack.c.bf16 %v700_v10, %v699_v46  ;;  %v551_v26 = vmul.f32 %v6027_v50, %v422_v22 }
 0x8e6   :  { %v664_v27 = vadd.f32 %v536_v21, %v279_v28  ;;  %v456_v28 = vld [vmem:[%s9543_s3 + $0x390] sm:$0xff]  ;;  %v570_v21 = vmul.f32 %v6027_v50, %v441_v5 }
 0x8e7   :  { %9978 = vst [vmem:[#allocation30_spill] sm:$0xff] %v7534_v31  ;;  %3285 = vmatpush.bf16.msrb.mxu2 %v7534_v31 }
 0x8ec   :  { %v165_v7 = vld [vmem:[%s9547_s7 + $0x280] sm:$0xff]  ;;  %v166_v37 = vld [vmem:[%s9547_s7 + $0x288] sm:$0xff] }
 0x8ed   :  { %809 = vst [vmem:[%s9553_s13 + $0x290] sm:$0xff] %v681_v25  ;;  %v715_v25 = vadd.f32 %v587_v8, %v330_v0  ;;  %v663_v0 = vadd.f32 %v535_v11, %v278_v24  ;;  %v294_v55 = vmul.f32 %v6017_v52, %v165_v7  ;;  %v295_v8 = vmul.f32 %v6017_v52, %v166_v37  ;;  %v457_v11 = vld [vmem:[%s9543_s3 + $0x398] sm:$0xff] }
 0x8ee   :  { %810 = vst [vmem:[%s9553_s13 + $0x298] sm:$0xff] %v682_v17  ;;  %v716_v17 = vadd.f32 %v588_v59, %v331_v33  ;;  %v569_v24 = vmul.f32 %v6027_v50, %v440_v18 }
 0x8ef   :  { %v7583_v22 = vpack.c.bf16 %v664_v27, %v663_v0 }
 0x8f1   :  { %9980 = vst [vmem:[#allocation31_spill] sm:$0xff] %v7583_v22  ;;  %3261 = vmatpush.bf16.msrb.mxu0 %v7583_v22 }
 0x8f5   :  { %v183_v56 = vld [vmem:[%s9547_s7 + $0x310] sm:$0xff]  ;;  %v184_v2 = vld [vmem:[%s9547_s7 + $0x318] sm:$0xff] }
 0x8f6   :  { %827 = vst [vmem:[%s9553_s13 + $0x320] sm:$0xff] %v699_v46  ;;  %v552_v46 = vmul.f32 %v6027_v50, %v423_v63  ;;  %v312_v37 = vmul.f32 %v6017_v52, %v183_v56  ;;  %v313_v59 = vmul.f32 %v6017_v52, %v184_v2  ;;  %v679_v63 = vadd.f32 %v551_v26, %v294_v55  ;;  %v438_v2 = vld [vmem:[%s9543_s3 + $0x300] sm:$0xff]  ;;  %v439_v55 = vld [vmem:[%s9543_s3 + $0x308] sm:$0xff] }
 0x8f7   :  { %828 = vst [vmem:[%s9553_s13 + $0x328] sm:$0xff] %v700_v10  ;;  %v7569_v10 = vpack.c.bf16 %v716_v17, %v715_v25 }
 0x8f8   :  { %v697_v26 = vadd.f32 %v569_v24, %v312_v37  ;;  %v567_v24 = vmul.f32 %v6027_v50, %v438_v2  ;;  %v9983_v2 = vld [vmem:[#allocation39_spill] sm:$0xff] }
 0x8f9   :  { %9979 = vst [vmem:[#allocation66_spill] sm:$0xff] %v7569_v10  ;;  %3298 = vmatpush.bf16.msrb.mxu3 %v7569_v10  ;;  %3262 = vmatmul.bf16.vlgmr.msrb.gmra.mxu0 %v9983_v2  ;;  %v3224_v2 = vpop.f32.mrf.mxu1 }
 0x8fe   :  { %v199_v33 = vld [vmem:[%s9547_s7 + $0x390] sm:$0xff]  ;;  %v200_v7 = vld [vmem:[%s9547_s7 + $0x398] sm:$0xff] }
 0x8ff   :  { %843 = vst [vmem:[%s9553_s13 + $0x3a0] sm:$0xff] %v715_v25  ;;  %v680_v25 = vadd.f32 %v552_v46, %v295_v8  ;;  %v328_v5 = vmul.f32 %v6017_v52, %v199_v33  ;;  %v698_v46 = vadd.f32 %v570_v21, %v313_v59  ;;  %v568_v21 = vmul.f32 %v6027_v50, %v439_v55 }
 0x900   :  { %844 = vst [vmem:[%s9553_s13 + $0x3a8] sm:$0xff] %v716_v17  ;;  %v329_v17 = vmul.f32 %v6017_v52, %v200_v7  ;;  %v586_v7 = vmul.f32 %v6027_v50, %v457_v11 }
 0x901   :  { %v7608_v8 = vpack.c.bf16 %v680_v25, %v679_v63  ;;  %v7631_v11 = vpack.c.bf16 %v698_v46, %v697_v26 }
 0x903   :  { %9981 = vst [vmem:[#allocation32_spill] sm:$0xff] %v7608_v8  ;;  %3274 = vmatpush.bf16.msrb.mxu1 %v7608_v8  ;;  %3286 = vmatpush.bf16.msrb.mxu2 %v7631_v11 }
 0x904   :  { %9982 = vst [vmem:[#allocation69_spill] sm:$0xff] %v7631_v11  ;;  %v944_v11 = vld [vmem:[%s9544_s4 + $0xc8] sm:$0xff] }
 0x905   :  { %v976_v9 = vmul.f32 %v944_v11, %v6027_v50 }
 0x907   :  { %v181_v18 = vld [vmem:[%s9547_s7 + $0x300] sm:$0xff]  ;;  %v182_v56 = vld [vmem:[%s9547_s7 + $0x308] sm:$0xff] }
 0x908   :  { %791 = vst [vmem:[%s9553_s13 + $0x200] sm:$0xff] %v663_v0  ;;  %v585_v0 = vmul.f32 %v6027_v50, %v456_v28  ;;  %v310_v37 = vmul.f32 %v6017_v52, %v181_v18  ;;  %v454_v28 = vld [vmem:[%s9543_s3 + $0x380] sm:$0xff]  ;;  %v455_v18 = vld [vmem:[%s9543_s3 + $0x388] sm:$0xff] }
 0x909   :  { %792 = vst [vmem:[%s9553_s13 + $0x208] sm:$0xff] %v664_v27  ;;  %v311_v27 = vmul.f32 %v6017_v52, %v182_v56  ;;  %v714_v56 = vadd.f32 %v586_v7, %v329_v17  ;;  %v9985_v17 = vld [vmem:[#allocation40_spill] sm:$0xff] }
 0x90a   :  { %v695_v31 = vadd.f32 %v567_v24, %v310_v37  ;;  %3275 = vmatmul.bf16.vlgmr.msrb.gmra.mxu1 %v9985_v17  ;;  %v9989_v24 = vld [vmem:[#allocation42_spill] sm:$0xff]  ;;  %v884_v17 = vld [vmem:[%s9548_s8 + $0xe8] sm:$0xff] }
 0x910   :  { %v197_v33 = vld [vmem:[%s9547_s7 + $0x380] sm:$0xff] }
 0x911   :  { %807 = vst [vmem:[%s9553_s13 + $0x280] sm:$0xff] %v679_v63  ;;  %v713_v63 = vadd.f32 %v585_v0, %v328_v5  ;;  %v696_v5 = vadd.f32 %v568_v21, %v311_v27  ;;  %v583_v0 = vmul.f32 %v6027_v50, %v454_v28  ;;  %v3211_v28 = vpop.f32.mrf.mxu0  ;;  %v885_v21 = vld [vmem:[%s9548_s8 + $0xf0] sm:$0xff] }
 0x918   :  { %v198_v59 = vld [vmem:[%s9547_s7 + $0x388] sm:$0xff] }
 0x919   :  { %808 = vst [vmem:[%s9553_s13 + $0x288] sm:$0xff] %v680_v25  ;;  %v326_v25 = vmul.f32 %v6017_v52, %v197_v33  ;;  %v327_v55 = vmul.f32 %v6017_v52, %v198_v59  ;;  %v584_v33 = vmul.f32 %v6027_v50, %v455_v18  ;;  %v3093_v59 = vpop.f32.mrf.mxu2  ;;  %v947_v18 = vld [vmem:[%s9544_s4 + $0xe0] sm:$0xff] }
 0x91a   :  { %825 = vst [vmem:[%s9553_s13 + $0x310] sm:$0xff] %v697_v26  ;;  %v7651_v26 = vpack.c.bf16 %v714_v56, %v713_v63 }
 0x91b   :  { %826 = vst [vmem:[%s9553_s13 + $0x318] sm:$0xff] %v698_v46  ;;  %v7658_v46 = vpack.c.bf16 %v696_v5, %v695_v31  ;;  %v711_v7 = vadd.f32 %v583_v0, %v326_v25  ;;  %v712_v37 = vadd.f32 %v584_v33, %v327_v55  ;;  %v949_v55 = vld [vmem:[%s9544_s4 + $0xf0] sm:$0xff]  ;;  %v979_v0 = vmul.f32 %v947_v18, %v6027_v50  ;;  %v886_v33 = vld [vmem:[%s9548_s8 + $0xf8] sm:$0xff]  ;;  %v879_v18 = vld [vmem:[%s9548_s8 + $0xc0] sm:$0xff] }
 0x91c   :  { %841 = vst [vmem:[%s9553_s13 + $0x390] sm:$0xff] %v713_v63  ;;  %3299 = vmatpush.bf16.msrb.mxu3 %v7651_v26  ;;  %v883_v63 = vld [vmem:[%s9548_s8 + $0xe0] sm:$0xff] }
 0x91d   :  { %9984 = vst [vmem:[#allocation70_spill] sm:$0xff] %v7651_v26  ;;  %3287 = vmatpush.bf16.msrb.mxu2 %v7658_v46  ;;  %v7671_v27 = vpack.c.bf16 %v712_v37, %v711_v7  ;;  %v915_v25 = vmul.f32 %v883_v63, %v6017_v52  ;;  %v948_v63 = vld [vmem:[%s9544_s4 + $0xe8] sm:$0xff]  ;;  %v946_v26 = vld [vmem:[%s9544_s4 + $0xd8] sm:$0xff] }
 0x91e   :  { %842 = vst [vmem:[%s9553_s13 + $0x398] sm:$0xff] %v714_v56  ;;  %v3106_v56 = vpop.f32.mrf.mxu3 }
 0x91f   :  { %9986 = vst [vmem:[#allocation33_spill] sm:$0xff] %v7658_v46  ;;  %v945_v46 = vld [vmem:[%s9544_s4 + $0xd0] sm:$0xff] }
 0x920   :  { %823 = vst [vmem:[%s9553_s13 + $0x300] sm:$0xff] %v695_v31  ;;  %3300 = vmatpush.bf16.msrb.mxu3 %v7671_v27  ;;  %v9988_v31 = vld [vmem:[#allocation41_spill] sm:$0xff] }
 0x921   :  { %824 = vst [vmem:[%s9553_s13 + $0x308] sm:$0xff] %v696_v5  ;;  %3288 = vmatmul.bf16.vlgmr.msrb.gmra.mxu2 %v9988_v31  ;;  %v917_v5 = vmul.f32 %v885_v21, %v6017_v52  ;;  %v981_v31 = vmul.f32 %v949_v55, %v6027_v50  ;;  %v950_v21 = vld [vmem:[%s9544_s4 + $0xf8] sm:$0xff]  ;;  %v881_v55 = vld [vmem:[%s9548_s8 + $0xd0] sm:$0xff] }
 0x922   :  { %839 = vst [vmem:[%s9553_s13 + $0x380] sm:$0xff] %v711_v7  ;;  %v7700_v7 = vadd.f32 %v3106_v56, %v3093_v59  ;;  %v1011_v59 = vadd.f32 %v979_v0, %v915_v25  ;;  %v980_v56 = vmul.f32 %v948_v63, %v6027_v50  ;;  %v913_v63 = vmul.f32 %v881_v55, %v6017_v52 }
 0x923   :  { %9987 = vst [vmem:[#allocation34_spill] sm:$0xff] %v7671_v27  ;;  %3301 = vmatmul.bf16.vlgmr.msrb.gmra.mxu3 %v9989_v24  ;;  %v916_v24 = vmul.f32 %v884_v17, %v6017_v52  ;;  %v943_v17 = vld [vmem:[%s9544_s4 + $0xc0] sm:$0xff]  ;;  %v1013_v0 = vadd.f32 %v981_v31, %v917_v5  ;;  %v882_v27 = vld [vmem:[%s9548_s8 + $0xd8] sm:$0xff]  ;;  %v977_v55 = vmul.f32 %v945_v46, %v6027_v50 }
 0x924   :  { %840 = vst [vmem:[%s9553_s13 + $0x388] sm:$0xff] %v712_v37  ;;  %v7702_v37 = vadd.f32 %v3224_v2, %v3211_v28  ;;  %v918_v28 = vmul.f32 %v886_v33, %v6017_v52  ;;  %v982_v2 = vmul.f32 %v950_v21, %v6027_v50  ;;  %v3110_v25 = vrot.slane %v7700_v7, 4  ;;  %v880_v21 = vld [vmem:[%s9548_s8 + $0xc8] sm:$0xff] }
 0x925   :  { %v911_v33 = vmul.f32 %v879_v18, %v6017_v52  ;;  %1043 = vst [vmem:[%s9554_s14 + $0xe0] sm:$0xff] %v1011_v59  ;;  %v1012_v5 = vadd.f32 %v980_v56, %v916_v24  ;;  %v975_v18 = vmul.f32 %v943_v17, %v6027_v50  ;;  %v7757_v24 = vpack.c.bf16 %v1013_v0, %v1011_v59  ;;  %v939_v56 = vld [vmem:[%s9544_s4 + $0xa0] sm:$0xff]  ;;  %v941_v59 = vld [vmem:[%s9544_s4 + $0xb0] sm:$0xff] }
 0x926   :  { %v1014_v31 = vadd.f32 %v982_v2, %v918_v28  ;;  %v3111_v6 = vadd.f32 %v3110_v25, %v7700_v7  ;;  %v912_v46 = vmul.f32 %v880_v21, %v6017_v52  ;;  %v914_v28 = vmul.f32 %v882_v27, %v6017_v52  ;;  %v3095_v21 = vpop.f32.mrf.mxu2 }
 0x927   :  { %9990 = vst [vmem:[#allocation73_spill] sm:$0xff] %v7757_v24  ;;  %v1007_v17 = vadd.f32 %v975_v18, %v911_v33  ;;  %v1009_v25 = vadd.f32 %v977_v55, %v913_v63  ;;  %3323 = vmatpush.bf16.msra.mxu0 %v7757_v24  ;;  %v3213_v33 = vpop.f32.mrf.mxu0  ;;  %v978_v63 = vmul.f32 %v946_v26, %v6027_v50  ;;  %v940_v55 = vld [vmem:[%s9544_s4 + $0xa8] sm:$0xff]  ;;  %v942_v21 = vld [vmem:[%s9544_s4 + $0xb8] sm:$0xff]  ;;  %v3226_v26 = vpop.f32.mrf.mxu1 }
 0x928   :  { %v7767_v2 = vpack.c.bf16 %v1014_v31, %v1012_v5  ;;  %v971_v33 = vmul.f32 %v939_v56, %v6027_v50 }
 0x929   :  { %v1010_v57 = vadd.f32 %v978_v63, %v914_v28 }
 0x92a   :  { %9991 = vst [vmem:[#allocation74_spill] sm:$0xff] %v7767_v2  ;;  %3336 = vmatpush.bf16.msra.mxu1 %v7767_v2 }
 0x92c   :  { %v875_v10 = vld [vmem:[%s9548_s8 + $0xa0] sm:$0xff]  ;;  %v877_v29 = vld [vmem:[%s9548_s8 + $0xb0] sm:$0xff] }
 0x92d   :  { %1045 = vst [vmem:[%s9554_s14 + $0xf0] sm:$0xff] %v1013_v0  ;;  %v3112_v0 = vrot.slane %v3111_v6, 2  ;;  %v907_v11 = vmul.f32 %v875_v10, %v6017_v52  ;;  %v1008_v10 = vadd.f32 %v976_v9, %v912_v46  ;;  %v972_v46 = vmul.f32 %v940_v55, %v6027_v50 }
 0x92e   :  { %1044 = vst [vmem:[%s9554_s14 + $0xe8] sm:$0xff] %v1012_v5  ;;  %v909_v5 = vmul.f32 %v877_v29, %v6017_v52  ;;  %v7796_v29 = vpack.c.bf16 %v1009_v25, %v1007_v17 }
 0x92f   :  { %v3113_v32 = vadd.f32 %v3112_v0, %v3111_v6  ;;  %v974_v6 = vmul.f32 %v942_v21, %v6027_v50  ;;  %v7814_v28 = vpack.c.bf16 %v1010_v57, %v1008_v10 }
 0x930   :  { %9992 = vst [vmem:[#allocation35_spill] sm:$0xff] %v7796_v29  ;;  %3324 = vmatpush.bf16.msra.mxu0 %v7796_v29 }
 0x931   :  { %v3114_v56 = vrot.slane %v3113_v32, 1  ;;  %9993 = vst [vmem:[#allocation36_spill] sm:$0xff] %v7814_v28  ;;  %3337 = vmatpush.bf16.msra.mxu1 %v7814_v28 }
 0x933   :  { %v3115_v0 = vadd.f32 %v3114_v56, %v3113_v32  ;;  %v7835_v32 = vpop.f32.mrf.mxu2 }
 0x935   :  { %v876_v27 = vld [vmem:[%s9548_s8 + $0xa8] sm:$0xff] }
 0x936   :  { %1046 = vst [vmem:[%s9554_s14 + $0xf8] sm:$0xff] %v1014_v31  ;;  %v3108_v31 = vpop.f32.mrf.mxu3  ;;  %v908_v2 = vmul.f32 %v876_v27, %v6017_v52 }
 0x937   :  { %v973_v31 = vmul.f32 %v941_v59, %v6027_v50 }
 0x938   :  { %v1004_v59 = vadd.f32 %v972_v46, %v908_v2  ;;  %v937_v46 = vld [vmem:[%s9544_s4 + $0x90] sm:$0xff] }
 0x93d   :  { %v878_v18 = vld [vmem:[%s9548_s8 + $0xb8] sm:$0xff] }
 0x93e   :  { %1039 = vst [vmem:[%s9554_s14 + $0xc0] sm:$0xff] %v1007_v17  ;;  %v1003_v17 = vadd.f32 %v971_v33, %v907_v11  ;;  %v910_v9 = vmul.f32 %v878_v18, %v6017_v52  ;;  %v3116_v11 = vmul.f32 %v3115_v0, %v5351_v14 }
 0x93f   :  { %1041 = vst [vmem:[%s9554_s14 + $0xd0] sm:$0xff] %v1009_v25  ;;  %v1005_v25 = vadd.f32 %v973_v31, %v909_v5  ;;  %v7841_v5 = vpop.f32.mrf.mxu3  ;;  %v935_v31 = vld [vmem:[%s9544_s4 + $0x80] sm:$0xff] }
 0x940   :  { %1040 = vst [vmem:[%s9554_s14 + $0xc8] sm:$0xff] %v1008_v10  ;;  %v1006_v27 = vadd.f32 %v974_v6, %v910_v9  ;;  %v7838_v2 = vsub.f32 %v7700_v7, %v3116_v11  ;;  %v3239_v10 = vpop.f32.mrf.mxu2  ;;  %v967_v6 = vmul.f32 %v935_v31, %v6027_v50 }
 0x941   :  { %1042 = vst [vmem:[%s9554_s14 + $0xd8] sm:$0xff] %v1010_v57  ;;  %v7823_v63 = vpack.c.bf16 %v1005_v25, %v1003_v17 }
 0x942   :  { %1035 = vst [vmem:[%s9554_s14 + $0xa0] sm:$0xff] %v1003_v17  ;;  %v7828_v57 = vpack.c.bf16 %v1006_v27, %v1004_v59  ;;  %v3118_v18 = vmul.f32 %v7838_v2, %v7838_v2 }
 0x943   :  { %1037 = vst [vmem:[%s9554_s14 + $0xb0] sm:$0xff] %v1005_v25  ;;  %3325 = vmatpush.bf16.msra.mxu0 %v7823_v63 }
 0x944   :  { %9994 = vst [vmem:[#allocation78_spill] sm:$0xff] %v7823_v63  ;;  %3338 = vmatpush.bf16.msra.mxu1 %v7828_v57  ;;  %v3119_v55 = vrot.slane %v3118_v18, 4 }
 0x945   :  { %1036 = vst [vmem:[%s9554_s14 + $0xa8] sm:$0xff] %v1004_v59 }
 0x946   :  { %9995 = vst [vmem:[#allocation79_spill] sm:$0xff] %v7828_v57  ;;  %v3120_v21 = vadd.f32 %v3119_v55, %v3118_v18  ;;  %v936_v18 = vld [vmem:[%s9544_s4 + $0x88] sm:$0xff]  ;;  %v938_v55 = vld [vmem:[%s9544_s4 + $0x98] sm:$0xff] }
 0x947   :  { %1038 = vst [vmem:[%s9554_s14 + $0xb8] sm:$0xff] %v1006_v27  ;;  %v3252_v59 = vpop.f32.mrf.mxu3  ;;  %v969_v27 = vmul.f32 %v937_v46, %v6027_v50 }
 0x948   :  { %v3121_v26 = vrot.slane %v3120_v21, 2 }
 0x94a   :  { %v3122_v31 = vadd.f32 %v3121_v26, %v3120_v21 }
 0x94e   :  { %v871_v33 = vld [vmem:[%s9548_s8 + $0x80] sm:$0xff]  ;;  %v873_v7 = vld [vmem:[%s9548_s8 + $0x90] sm:$0xff]  ;;  %v872_v56 = vld [vmem:[%s9548_s8 + $0x88] sm:$0xff] }
 0x94f   :  { %v903_v17 = vmul.f32 %v871_v33, %v6017_v52  ;;  %v905_v9 = vmul.f32 %v873_v7, %v6017_v52  ;;  %v874_v25 = vld [vmem:[%s9548_s8 + $0x98] sm:$0xff]  ;;  %v904_v0 = vmul.f32 %v872_v56, %v6017_v52  ;;  %v968_v33 = vmul.f32 %v936_v18, %v6027_v50  ;;  %v867_v46 = vld [vmem:[%s9548_s8 + $0x60] sm:$0xff]  ;;  %v869_v56 = vld [vmem:[%s9548_s8 + $0x70] sm:$0xff] }
 0x950   :  { %v906_v11 = vmul.f32 %v874_v25, %v6017_v52  ;;  %v970_v7 = vmul.f32 %v938_v55, %v6027_v50  ;;  %v931_v25 = vld [vmem:[%s9544_s4 + $0x60] sm:$0xff]  ;;  %v899_v21 = vmul.f32 %v867_v46, %v6017_v52  ;;  %v901_v26 = vmul.f32 %v869_v56, %v6017_v52 }
 0x951   :  { %v999_v10 = vadd.f32 %v967_v6, %v903_v17  ;;  %v1001_v59 = vadd.f32 %v969_v27, %v905_v9  ;;  %v1000_v17 = vadd.f32 %v968_v33, %v904_v0  ;;  %v933_v9 = vld [vmem:[%s9544_s4 + $0x70] sm:$0xff]  ;;  %v932_v33 = vld [vmem:[%s9544_s4 + $0x68] sm:$0xff] }
 0x952   :  { %v1002_v6 = vadd.f32 %v970_v7, %v906_v11  ;;  %v963_v11 = vmul.f32 %v931_v25, %v6027_v50  ;;  %v965_v55 = vmul.f32 %v933_v9, %v6027_v50  ;;  %v934_v7 = vld [vmem:[%s9544_s4 + $0x78] sm:$0xff]  ;;  %v964_v56 = vmul.f32 %v932_v33, %v6027_v50 }
 0x953   :  { %1031 = vst [vmem:[%s9554_s14 + $0x80] sm:$0xff] %v999_v10  ;;  %v7903_v0 = vpack.c.bf16 %v1001_v59, %v999_v10  ;;  %v3123_v25 = vrot.slane %v3122_v31, 1  ;;  %v966_v63 = vmul.f32 %v934_v7, %v6027_v50 }
 0x954   :  { %v7916_v46 = vpack.c.bf16 %v1002_v6, %v1000_v17  ;;  %v995_v9 = vadd.f32 %v963_v11, %v899_v21  ;;  %v997_v57 = vadd.f32 %v965_v55, %v901_v26  ;;  %v929_v26 = vld [vmem:[%s9544_s4 + $0x50] sm:$0xff] }
 0x955   :  { %9996 = vst [vmem:[#allocation37_spill] sm:$0xff] %v7903_v0  ;;  %3326 = vmatpush.bf16.msra.mxu0 %v7903_v0 }
 0x956   :  { %9997 = vst [vmem:[#allocation38_spill] sm:$0xff] %v7916_v46  ;;  %3339 = vmatpush.bf16.msra.mxu1 %v7916_v46  ;;  %v930_v46 = vld [vmem:[%s9544_s4 + $0x58] sm:$0xff] }
 0x95a   :  { %v868_v27 = vld [vmem:[%s9548_s8 + $0x68] sm:$0xff]  ;;  %v870_v18 = vld [vmem:[%s9548_s8 + $0x78] sm:$0xff] }
 0x95b   :  { %1033 = vst [vmem:[%s9554_s14 + $0x90] sm:$0xff] %v1001_v59  ;;  %v900_v10 = vmul.f32 %v868_v27, %v6017_v52  ;;  %v902_v59 = vmul.f32 %v870_v18, %v6017_v52  ;;  %v927_v18 = vld [vmem:[%s9544_s4 + $0x40] sm:$0xff] }
 0x95c   :  { %1032 = vst [vmem:[%s9554_s14 + $0x88] sm:$0xff] %v1000_v17  ;;  %v959_v11 = vmul.f32 %v927_v18, %v6027_v50  ;;  %v928_v18 = vld [vmem:[%s9544_s4 + $0x48] sm:$0xff] }
 0x95d   :  { %1034 = vst [vmem:[%s9554_s14 + $0x98] sm:$0xff] %v1002_v6  ;;  %v996_v33 = vadd.f32 %v964_v56, %v900_v10  ;;  %v7951_v10 = vpack.c.bf16 %v997_v57, %v995_v9  ;;  %v998_v56 = vadd.f32 %v966_v63, %v902_v59  ;;  %v960_v63 = vmul.f32 %v928_v18, %v6027_v50 }
 0x95e   :  { %v962_v59 = vmul.f32 %v930_v46, %v6027_v50 }
 0x95f   :  { %9998 = vst [vmem:[#allocation59_spill] sm:$0xff] %v7951_v10  ;;  %3327 = vmatpush.bf16.msra.mxu0 %v7951_v10 }
 0x964   :  { %v863_v17 = vld [vmem:[%s9548_s8 + $0x40] sm:$0xff]  ;;  %v865_v27 = vld [vmem:[%s9548_s8 + $0x50] sm:$0xff]  ;;  %v864_v55 = vld [vmem:[%s9548_s8 + $0x48] sm:$0xff] }
 0x965   :  { %v895_v6 = vmul.f32 %v863_v17, %v6017_v52  ;;  %v897_v21 = vmul.f32 %v865_v27, %v6017_v52  ;;  %v866_v7 = vld [vmem:[%s9548_s8 + $0x58] sm:$0xff]  ;;  %v961_v17 = vmul.f32 %v929_v26, %v6027_v50  ;;  %v896_v27 = vmul.f32 %v864_v55, %v6017_v52 }
 0x966   :  { %1027 = vst [vmem:[%s9554_s14 + $0x60] sm:$0xff] %v995_v9  ;;  %v898_v9 = vmul.f32 %v866_v7, %v6017_v52  ;;  %v7967_v26 = vadd.f32 %v3123_v25, %v3122_v31  ;;  %v7973_v55 = vpack.c.bf16 %v998_v56, %v996_v33  ;;  %v923_v31 = vld [vmem:[%s9544_s4 + $0x20] sm:$0xff] }
 0x967   :  { %1029 = vst [vmem:[%s9554_s14 + $0x70] sm:$0xff] %v997_v57  ;;  %v991_v0 = vadd.f32 %v959_v11, %v895_v6  ;;  %v993_v28 = vadd.f32 %v961_v17, %v897_v21  ;;  %v992_v46 = vadd.f32 %v960_v63, %v896_v27  ;;  %v925_v11 = vld [vmem:[%s9544_s4 + $0x30] sm:$0xff]  ;;  %v955_v27 = vmul.f32 %v923_v31, %v6027_v50  ;;  %v926_v63 = vld [vmem:[%s9544_s4 + $0x38] sm:$0xff] }
 0x968   :  { %1028 = vst [vmem:[%s9554_s14 + $0x68] sm:$0xff] %v996_v33  ;;  %v994_v25 = vadd.f32 %v962_v59, %v898_v9  ;;  %3340 = vmatpush.bf16.msra.mxu1 %v7973_v55  ;;  %v957_v18 = vmul.f32 %v925_v11, %v6027_v50  ;;  %v924_v9 = vld [vmem:[%s9544_s4 + $0x28] sm:$0xff] }
 0x969   :  { %9999 = vst [vmem:[#allocation60_spill] sm:$0xff] %v7973_v55  ;;  %v958_v55 = vmul.f32 %v926_v63, %v6027_v50 }
 0x96a   :  { %v8015_v59 = vpack.c.bf16 %v994_v25, %v992_v46 }
 0x96c   :  { %10001 = vst [vmem:[#allocation83_spill] sm:$0xff] %v8015_v59  ;;  %3341 = vmatpush.bf16.msra.mxu1 %v8015_v59 }
 0x96f   :  { %v859_v57 = vld [vmem:[%s9548_s8 + $0x20] sm:$0xff]  ;;  %v861_v6 = vld [vmem:[%s9548_s8 + $0x30] sm:$0xff] }
 0x970   :  { %1030 = vst [vmem:[%s9554_s14 + $0x78] sm:$0xff] %v998_v56  ;;  %v891_v33 = vmul.f32 %v859_v57, %v6017_v52  ;;  %v893_v21 = vmul.f32 %v861_v6, %v6017_v52  ;;  %v8002_v56 = vpack.c.bf16 %v993_v28, %v991_v0  ;;  %v956_v6 = vmul.f32 %v924_v9, %v6027_v50 }
 0x972   :  { %10000 = vst [vmem:[#allocation82_spill] sm:$0xff] %v8002_v56  ;;  %3328 = vmatpush.bf16.msra.mxu0 %v8002_v56  ;;  %v987_v31 = vadd.f32 %v955_v27, %v891_v33  ;;  %v989_v11 = vadd.f32 %v957_v18, %v893_v21  ;;  %v921_v27 = vld [vmem:[%s9544_s4 + $0x10] sm:$0xff] }
 0x977   :  { %v860_v7 = vld [vmem:[%s9548_s8 + $0x28] sm:$0xff]  ;;  %v862_v17 = vld [vmem:[%s9548_s8 + $0x38] sm:$0xff] }
 0x978   :  { %1023 = vst [vmem:[%s9554_s14 + $0x40] sm:$0xff] %v991_v0  ;;  %v892_v0 = vmul.f32 %v860_v7, %v6017_v52  ;;  %v894_v57 = vmul.f32 %v862_v17, %v6017_v52  ;;  %v919_v17 = vld [vmem:[%s9544_s4] sm:$0xff] }
 0x979   :  { %1025 = vst [vmem:[%s9554_s14 + $0x50] sm:$0xff] %v993_v28  ;;  %v951_v18 = vmul.f32 %v919_v17, %v6027_v50 }
 0x97a   :  { %1024 = vst [vmem:[%s9554_s14 + $0x48] sm:$0xff] %v992_v46  ;;  %v988_v46 = vadd.f32 %v956_v6, %v892_v0  ;;  %v990_v0 = vadd.f32 %v958_v55, %v894_v57  ;;  %v953_v6 = vmul.f32 %v921_v27, %v6027_v50 }
 0x97c   :  { %v8072_v57 = vpack.c.bf16 %v990_v0, %v988_v46 }
 0x97e   :  { %10003 = vst [vmem:[#allocation64_spill] sm:$0xff] %v8072_v57  ;;  %3342 = vmatpush.bf16.msra.mxu1 %v8072_v57 }
 0x981   :  { %v855_v28 = vld [vmem:[%s9548_s8] sm:$0xff]  ;;  %v857_v7 = vld [vmem:[%s9548_s8 + $0x10] sm:$0xff] }
 0x982   :  { %1026 = vst [vmem:[%s9554_s14 + $0x58] sm:$0xff] %v994_v25  ;;  %v887_v33 = vmul.f32 %v855_v28, %v6017_v52  ;;  %v889_v21 = vmul.f32 %v857_v7, %v6017_v52  ;;  %v8053_v25 = vpack.c.bf16 %v989_v11, %v987_v31  ;;  %v920_v28 = vld [vmem:[%s9544_s4 + $0x8] sm:$0xff]  ;;  %v922_v7 = vld [vmem:[%s9544_s4 + $0x18] sm:$0xff] }
 0x983   :  { %v952_v55 = vmul.f32 %v920_v28, %v6027_v50  ;;  %v954_v56 = vmul.f32 %v922_v7, %v6027_v50 }
 0x984   :  { %10002 = vst [vmem:[#allocation63_spill] sm:$0xff] %v8053_v25  ;;  %v983_v17 = vadd.f32 %v951_v18, %v887_v33  ;;  %3329 = vmatpush.bf16.msra.mxu0 %v8053_v25  ;;  %v985_v27 = vadd.f32 %v953_v6, %v889_v21  ;;  %v3125_v33 = vmul.f32 %v7967_v26, %v5351_v14 }
 0x986   :  { %v8084_v18 = vpack.c.bf16 %v985_v27, %v983_v17  ;;  %v3126_v21 = vadd.f32 1e-05, %v3125_v33 }
 0x987   :  { %v3276_v6 = vpop.f32.mrf.mxu1 }
 0x988   :  { %10004 = vst [vmem:[#allocation86_spill] sm:$0xff] %v8084_v18  ;;  %3330 = vmatpush.bf16.msra.mxu0 %v8084_v18  ;;  %4205 = vrsqrt.f32 %v3126_v21  ;;  %vm3133_vm15 = vweird.f32 %v3126_v21 }
 0x989   :  { %v856_v9 = vld [vmem:[%s9548_s8 + $0x8] sm:$0xff]  ;;  %v858_v63 = vld [vmem:[%s9548_s8 + $0x18] sm:$0xff] }
 0x98a   :  { %1019 = vst [vmem:[%s9554_s14 + $0x20] sm:$0xff] %v987_v31  ;;  %v888_v59 = vmul.f32 %v856_v9, %v6017_v52  ;;  %v890_v31 = vmul.f32 %v858_v63, %v6017_v52  ;;  %v3263_v9 = vpop.f32.mrf.mxu0 }
 0x98b   :  { %1021 = vst [vmem:[%s9554_s14 + $0x30] sm:$0xff] %v989_v11 }
 0x98c   :  { %1020 = vst [vmem:[%s9554_s14 + $0x28] sm:$0xff] %v988_v46  ;;  %v984_v11 = vadd.f32 %v952_v55, %v888_v59  ;;  %v986_v46 = vadd.f32 %v954_v56, %v890_v31 }
 0x98d   :  { %1022 = vst [vmem:[%s9554_s14 + $0x38] sm:$0xff] %v990_v0  ;;  %v3238_v0 = vadd.f32 %v7835_v32, %v7702_v37 }
 0x98e   :  { %1015 = vst [vmem:[%s9554_s14] sm:$0xff] %v983_v17  ;;  %v8093_v26 = vpack.c.bf16 %v986_v46, %v984_v11  ;;  %v4206_v56 = vpop.eup %4205 }
 0x98f   :  { %1017 = vst [vmem:[%s9554_s14 + $0x10] sm:$0xff] %v985_v27  ;;  %v3128_v59 = vmul.f32 %v4206_v56, %v3126_v21  ;;  %vm3134_vm14 = vweird.f32 %v4206_v56  ;;  %v3251_v17 = vadd.f32 %v7841_v5, %v3238_v0 }
 0x990   :  { %1016 = vst [vmem:[%s9554_s14 + $0x8] sm:$0xff] %v984_v11  ;;  %3343 = vmatpush.bf16.msra.mxu1 %v8093_v26  ;;  %vm3135_vm0 = vmor %vm3133_vm15, %vm3134_vm14 }
 0x991   :  { %10005 = vst [vmem:[#allocation87_spill] sm:$0xff] %v8093_v26  ;;  %v3129_v63 = vmul.f32 %v4206_v56, %v3128_v59  ;;  %v3264_v11 = vadd.f32 %v3263_v9, %v3251_v17  ;;  %v1203_v9 = vld [vmem:[%s9545_s5 + $0xe0] sm:$0xff] }
 0x992   :  { %1018 = vst [vmem:[%s9554_s14 + $0x18] sm:$0xff] %v986_v46  ;;  %v3265_v55 = vpop.f32.mrf.mxu0  ;;  %v3278_v46 = vpop.f32.mrf.mxu1  ;;  %v1267_v17 = vmul.f32 %v1203_v9, %v6027_v50 }
 0x993   :  { %v3130_v28 = vmul.f32 0.5, %v3129_v63  ;;  %v3277_v37 = vadd.f32 %v3276_v6, %v3264_v11  ;;  %v1235_v46 = vld [vmem:[%s9545_s5 + $0x1e0] sm:$0xff] }
 0x995   :  { %v3131_v7 = vsub.f32 1.5, %v3130_v28 }
 0x997   :  { %v3132_v31 = vmul.f32 %v4206_v56, %v3131_v7  ;;  %v1205_v7 = vld [vmem:[%s9545_s5 + $0xf0] sm:$0xff] }
 0x998   :  { %v1269_v55 = vmul.f32 %v1205_v7, %v6027_v50  ;;  %v1108_v7 = vld [vmem:[%s9549_s9 + $0x1e8] sm:$0xff] }
 0x999   :  { %v3136_v27 = vsel %vm3135_vm0, %v4206_v56, %v3132_v31  ;;  %v1077_v56 = vld [vmem:[%s9549_s9 + $0xf0] sm:$0xff]  ;;  %v1107_v31 = vld [vmem:[%s9549_s9 + $0x1e0] sm:$0xff] }
 0x99a   :  { %v8103_v33 = vmul.f32 %v3136_v27, %v7838_v2  ;;  %v1075_v2 = vld [vmem:[%s9549_s9 + $0xe0] sm:$0xff]  ;;  %v1109_v27 = vld [vmem:[%s9549_s9 + $0x1f0] sm:$0xff]  ;;  %v1171_v11 = vmul.f32 %v1107_v31, %v6017_v52 }
 0x99b   :  { %v1139_v6 = vmul.f32 %v1075_v2, %v6017_v52 }
 0x99c   :  { %10006 = vst [vmem:[#allocation67_spill] sm:$0xff] %v8103_v33  ;;  %v4054_v59 = vmul.f32 %v8103_v33, %v8103_v33 }
 0x99e   :  { %4055 = vadd.xlane.f32.xlu1 %v4054_v59  ;;  %v1237_v59 = vld [vmem:[%s9545_s5 + $0x1f0] sm:$0xff] }
 0x9a4   :  { %v3289_v32 = vpop.f32.mrf.mxu2 }
 0x9a5   :  { %v3290_v63 = vadd.f32 %v3289_v32, %v3277_v37  ;;  %v1331_v37 = vadd.f32 %v1267_v17, %v1139_v6  ;;  %v1173_v32 = vmul.f32 %v1109_v27, %v6017_v52  ;;  %v1206_v6 = vld [vmem:[%s9545_s5 + $0xf8] sm:$0xff] }
 0x9a6   :  { %v3302_v28 = vpop.f32.mrf.mxu3  ;;  %v1110_v17 = vld [vmem:[%s9549_s9 + $0x1f8] sm:$0xff]  ;;  %v1270_v27 = vmul.f32 %v1206_v6, %v6027_v50 }
 0x9a7   :  { %v3303_v26 = vadd.f32 %v3302_v28, %v3290_v63  ;;  %v1299_v63 = vmul.f32 %v1235_v46, %v6027_v50  ;;  %v1301_v28 = vmul.f32 %v1237_v59, %v6027_v50  ;;  %v1236_v46 = vld [vmem:[%s9545_s5 + $0x1e8] sm:$0xff]  ;;  %v1238_v59 = vld [vmem:[%s9545_s5 + $0x1f8] sm:$0xff] }
 0x9a8   :  { %v1300_v33 = vmul.f32 %v1236_v46, %v6027_v50 }
 0x9a9   :  { %v3306_v5 = vpack.c.bf16 %v3303_v26, %v3303_v26  ;;  %v1141_v26 = vmul.f32 %v1077_v56, %v6017_v52  ;;  %v1365_v31 = vadd.f32 %v1301_v28, %v1173_v32  ;;  %v1172_v32 = vmul.f32 %v1108_v7, %v6017_v52  ;;  %v1199_v7 = vld [vmem:[%s9545_s5 + $0xc0] sm:$0xff] }
 0x9ab   :  { %3331 = vmatmul.bf16.vlgmr.msra.gmra.mxu0 %v3306_v5  ;;  %3344 = vmatmul.bf16.vlgmr.msra.gmra.mxu1 %v3306_v5  ;;  %v1076_v5 = vld [vmem:[%s9549_s9 + $0xe8] sm:$0xff]  ;;  %v1333_v2 = vadd.f32 %v1269_v55, %v1141_v26  ;;  %v1363_v26 = vadd.f32 %v1299_v63, %v1171_v11  ;;  %v1174_v63 = vmul.f32 %v1110_v17, %v6017_v52 }
 0x9ac   :  { %v3291_v21 = vpop.f32.mrf.mxu2  ;;  %v1140_v56 = vmul.f32 %v1076_v5, %v6017_v52 }
 0x9ad   :  { %v1078_v21 = vld [vmem:[%s9549_s9 + $0xf8] sm:$0xff]  ;;  %v8176_v11 = vpack.c.bf16 %v1333_v2, %v1331_v37 }
 0x9ae   :  { %v3304_v0 = vpop.f32.mrf.mxu3  ;;  %v1142_v9 = vmul.f32 %v1078_v21, %v6017_v52  ;;  %1395 = vst [vmem:[%s9555_s15 + $0xe0] sm:$0xff] %v1331_v37  ;;  %v8186_v21 = vpack.c.bf16 %v1365_v31, %v1363_v26  ;;  %v1302_v37 = vmul.f32 %v1238_v59, %v6027_v50 }
 0x9af   :  { %v1204_v0 = vld [vmem:[%s9545_s5 + $0xe8] sm:$0xff]  ;;  %10007 = vst [vmem:[#allocation68_spill] sm:$0xff] %v8176_v11  ;;  %3441 = vmatpush.bf16.msra.mxu2 %v8176_v11 }
 0x9b0   :  { %v1268_v55 = vmul.f32 %v1204_v0, %v6027_v50  ;;  %10008 = vst [vmem:[#allocation90_spill] sm:$0xff] %v8186_v21  ;;  %v1334_v6 = vadd.f32 %v1270_v27, %v1142_v9  ;;  %3454 = vmatpush.bf16.msra.mxu3 %v8186_v21 }
 0x9b2   :  { %v1332_v0 = vadd.f32 %v1268_v55, %v1140_v56  ;;  %v1201_v56 = vld [vmem:[%s9545_s5 + $0xd0] sm:$0xff] }
 0x9b5   :  { %v1071_v5 = vld [vmem:[%s9549_s9 + $0xc0] sm:$0xff] }
 0x9b6   :  { %1397 = vst [vmem:[%s9555_s15 + $0xf0] sm:$0xff] %v1333_v2  ;;  %v1135_v2 = vmul.f32 %v1071_v5, %v6017_v52  ;;  %v1366_v5 = vadd.f32 %v1302_v37, %v1174_v63  ;;  %v1233_v63 = vld [vmem:[%s9545_s5 + $0x1d0] sm:$0xff] }
 0x9b7   :  { %v1297_v25 = vmul.f32 %v1233_v63, %v6027_v50  ;;  %v1232_v63 = vld [vmem:[%s9545_s5 + $0x1c8] sm:$0xff] }
 0x9bd   :  { %v1073_v28 = vld [vmem:[%s9549_s9 + $0xd0] sm:$0xff] }
 0x9be   :  { %1427 = vst [vmem:[%s9555_s15 + $0x1e0] sm:$0xff] %v1363_v26  ;;  %v8209_v26 = vpack.c.bf16 %v1334_v6, %v1332_v0  ;;  %v1137_v55 = vmul.f32 %v1073_v28, %v6017_v52  ;;  %v1265_v28 = vmul.f32 %v1201_v56, %v6027_v50 }
 0x9bf   :  { %1429 = vst [vmem:[%s9555_s15 + $0x1f0] sm:$0xff] %v1365_v31  ;;  %v1364_v31 = vadd.f32 %v1300_v33, %v1172_v32  ;;  %v1231_v33 = vld [vmem:[%s9545_s5 + $0x1c0] sm:$0xff]  ;;  %v1263_v32 = vmul.f32 %v1199_v7, %v6027_v50 }
 0x9c0   :  { %1396 = vst [vmem:[%s9555_s15 + $0xe8] sm:$0xff] %v1332_v0  ;;  %3467 = vmatpush.bf16.msrb.mxu0 %v8209_v26  ;;  %v1295_v57 = vmul.f32 %v1231_v33, %v6027_v50 }
 0x9c1   :  { %10009 = vst [vmem:[#allocation71_spill] sm:$0xff] %v8209_v26  ;;  %v8243_v21 = vpack.c.bf16 %v1366_v5, %v1364_v31  ;;  %v1200_v26 = vld [vmem:[%s9545_s5 + $0xc8] sm:$0xff]  ;;  %v1327_v18 = vadd.f32 %v1263_v32, %v1135_v2 }
 0x9c3   :  { %10010 = vst [vmem:[#allocation72_spill] sm:$0xff] %v8243_v21  ;;  %3480 = vmatpush.bf16.msrb.mxu1 %v8243_v21 }
 0x9c7   :  { %v1103_v27 = vld [vmem:[%s9549_s9 + $0x1c0] sm:$0xff] }
 0x9c8   :  { %1398 = vst [vmem:[%s9555_s15 + $0xf8] sm:$0xff] %v1334_v6  ;;  %v1167_v7 = vmul.f32 %v1103_v27, %v6017_v52 }
 0x9ca   :  { %v1359_v33 = vadd.f32 %v1295_v57, %v1167_v7  ;;  %v1234_v57 = vld [vmem:[%s9545_s5 + $0x1d8] sm:$0xff] }
 0x9cf   :  { %v1105_v0 = vld [vmem:[%s9549_s9 + $0x1d0] sm:$0xff] }
 0x9d0   :  { %1428 = vst [vmem:[%s9555_s15 + $0x1e8] sm:$0xff] %v1364_v31  ;;  %v1202_v31 = vld [vmem:[%s9545_s5 + $0xd8] sm:$0xff] }
 0x9d1   :  { %v1266_v8 = vmul.f32 %v1202_v31, %v6027_v50 }
 0x9d7   :  { %v1072_v6 = vld [vmem:[%s9549_s9 + $0xc8] sm:$0xff] }
 0x9d8   :  { %1430 = vst [vmem:[%s9555_s15 + $0x1f8] sm:$0xff] %v1366_v5  ;;  %v1136_v10 = vmul.f32 %v1072_v6, %v6017_v52 }
 0x9df   :  { %v1074_v56 = vld [vmem:[%s9549_s9 + $0xd8] sm:$0xff]  ;;  %v1104_v2 = vld [vmem:[%s9549_s9 + $0x1c8] sm:$0xff] }
 0x9e0   :  { %v1138_v32 = vmul.f32 %v1074_v56, %v6017_v52  ;;  %v1168_v7 = vmul.f32 %v1104_v2, %v6017_v52  ;;  %v1296_v2 = vmul.f32 %v1232_v63, %v6027_v50 }
 0xa28   :  { %v8201_v9 = vpop.f32.mrf.mxu0  ;;  %v8203_v17 = vpop.f32.mrf.mxu1 }
 0xa29   :  { %v3349_v46 = vrot.slane %v8201_v9, 4  ;;  %v3355_v59 = vrot.slane %v8203_v17, 4 }
 0xa2b   :  { %v3350_v37 = vadd.f32 %v3349_v46, %v8201_v9  ;;  %v3356_v11 = vadd.f32 %v3355_v59, %v8203_v17  ;;  %v1329_v46 = vadd.f32 %v1265_v28, %v1137_v55  ;;  %v1169_v59 = vmul.f32 %v1105_v0, %v6017_v52  ;;  %v1106_v55 = vld [vmem:[%s9549_s9 + $0x1d8] sm:$0xff] }
 0xa2c   :  { %1391 = vst [vmem:[%s9555_s15 + $0xc0] sm:$0xff] %v1327_v18  ;;  %v1264_v28 = vmul.f32 %v1200_v26, %v6027_v50  ;;  %v1170_v56 = vmul.f32 %v1106_v55, %v6017_v52  ;;  %v1298_v55 = vmul.f32 %v1234_v57, %v6027_v50  ;;  %v1227_v57 = vld [vmem:[%s9545_s5 + $0x1a0] sm:$0xff] }
 0xa2d   :  { %v3351_v5 = vrot.slane %v3350_v37, 2  ;;  %v3357_v27 = vrot.slane %v3356_v11, 2  ;;  %v8269_v0 = vpack.c.bf16 %v1329_v46, %v1327_v18  ;;  %1393 = vst [vmem:[%s9555_s15 + $0xd0] sm:$0xff] %v1329_v46  ;;  %v1361_v29 = vadd.f32 %v1297_v25, %v1169_v59 }
 0xa2e   :  { %v1328_v25 = vadd.f32 %v1264_v28, %v1136_v10  ;;  %v1197_v10 = vld [vmem:[%s9545_s5 + $0xb0] sm:$0xff] }
 0xa2f   :  { %10011 = vst [vmem:[#allocation76_spill] sm:$0xff] %v8269_v0  ;;  %v3352_v6 = vadd.f32 %v3351_v5, %v3350_v37  ;;  %v3358_v21 = vadd.f32 %v3357_v27, %v3356_v11  ;;  %3442 = vmatpush.bf16.msra.mxu2 %v8269_v0  ;;  %v8298_v31 = vpack.c.bf16 %v1361_v29, %v1359_v33  ;;  %v1195_v27 = vld [vmem:[%s9545_s5 + $0xa0] sm:$0xff] }
 0xa30   :  { %v3334_v11 = vpop.f32.mrf.mxu0  ;;  %v3347_v37 = vpop.f32.mrf.mxu1  ;;  %v1330_v5 = vadd.f32 %v1266_v8, %v1138_v32  ;;  %v1261_v0 = vmul.f32 %v1197_v10, %v6027_v50 }
 0xa31   :  { %v3353_v46 = vrot.slane %v3352_v6, 1  ;;  %v3359_v59 = vrot.slane %v3358_v21, 1  ;;  %10012 = vst [vmem:[#allocation77_spill] sm:$0xff] %v8298_v31  ;;  %3455 = vmatpush.bf16.msra.mxu3 %v8298_v31  ;;  %v1259_v37 = vmul.f32 %v1195_v27, %v6027_v50 }
 0xa32   :  { %v8323_v63 = vpack.c.bf16 %v1330_v5, %v1328_v25 }
 0xa33   :  { %v3354_v28 = vadd.f32 %v3353_v46, %v3352_v6  ;;  %v3360_v11 = vadd.f32 %v3359_v59, %v3358_v21  ;;  %v1229_v21 = vld [vmem:[%s9545_s5 + $0x1b0] sm:$0xff] }
 0xa34   :  { %v1067_v18 = vld [vmem:[%s9549_s9 + $0xa0] sm:$0xff]  ;;  %v1069_v26 = vld [vmem:[%s9549_s9 + $0xb0] sm:$0xff]  ;;  %10013 = vst [vmem:[#allocation80_spill] sm:$0xff] %v8323_v63  ;;  %3468 = vmatpush.bf16.msrb.mxu0 %v8323_v63 }
 0xa35   :  { %1423 = vst [vmem:[%s9555_s15 + $0x1c0] sm:$0xff] %v1359_v33  ;;  %v1133_v8 = vmul.f32 %v1069_v26, %v6017_v52  ;;  %v1362_v26 = vadd.f32 %v1298_v55, %v1170_v56  ;;  %v3362_v46 = vmul.f32 %v3360_v11, %v5351_v14  ;;  %v1196_v55 = vld [vmem:[%s9545_s5 + $0xa8] sm:$0xff] }
 0xa36   :  { %1425 = vst [vmem:[%s9555_s15 + $0x1d0] sm:$0xff] %v1361_v29  ;;  %v1131_v29 = vmul.f32 %v1067_v18, %v6017_v52  ;;  %v1360_v18 = vadd.f32 %v1296_v2, %v1168_v7  ;;  %v1291_v2 = vmul.f32 %v1227_v57, %v6027_v50 }
 0xa37   :  { %1392 = vst [vmem:[%s9555_s15 + $0xc8] sm:$0xff] %v1328_v25  ;;  %v3361_v25 = vmul.f32 %v3354_v28, %v5351_v14  ;;  %v1325_v10 = vadd.f32 %v1261_v0, %v1133_v8  ;;  %v1293_v28 = vmul.f32 %v1229_v21, %v6027_v50  ;;  %v1260_v21 = vmul.f32 %v1196_v55, %v6027_v50 }
 0xa38   :  { %v1323_v27 = vadd.f32 %v1259_v37, %v1131_v29  ;;  %v1198_v29 = vld [vmem:[%s9545_s5 + $0xb8] sm:$0xff] }
 0xa3a   :  { %v8377_v8 = vpack.c.bf16 %v1325_v10, %v1323_v27 }
 0xa3c   :  { %10015 = vst [vmem:[#allocation84_spill] sm:$0xff] %v8377_v8  ;;  %3443 = vmatpush.bf16.msra.mxu2 %v8377_v8 }
 0xa3e   :  { %v1099_v33 = vld [vmem:[%s9549_s9 + $0x1a0] sm:$0xff]  ;;  %v1101_v32 = vld [vmem:[%s9549_s9 + $0x1b0] sm:$0xff] }
 0xa3f   :  { %1394 = vst [vmem:[%s9555_s15 + $0xd8] sm:$0xff] %v1330_v5  ;;  %v1163_v7 = vmul.f32 %v1099_v33, %v6017_v52  ;;  %v1165_v56 = vmul.f32 %v1101_v32, %v6017_v52  ;;  %v8347_v5 = vpack.c.bf16 %v1362_v26, %v1360_v18  ;;  %v8354_v33 = vsub.f32 %v8201_v9, %v3361_v25  ;;  %v1230_v25 = vld [vmem:[%s9545_s5 + $0x1b8] sm:$0xff] }
 0xa40   :  { %v8357_v32 = vsub.f32 %v8203_v17, %v3362_v46  ;;  %v1294_v8 = vmul.f32 %v1230_v25, %v6027_v50 }
 0xa41   :  { %10014 = vst [vmem:[#allocation81_spill] sm:$0xff] %v8347_v5  ;;  %3481 = vmatpush.bf16.msrb.mxu1 %v8347_v5  ;;  %v1355_v11 = vadd.f32 %v1291_v2, %v1163_v7  ;;  %v1357_v37 = vadd.f32 %v1293_v28, %v1165_v56  ;;  %v1262_v7 = vmul.f32 %v1198_v29, %v6027_v50  ;;  %v1191_v29 = vld [vmem:[%s9545_s5 + $0x80] sm:$0xff]  ;;  %v1193_v5 = vld [vmem:[%s9545_s5 + $0x90] sm:$0xff] }
 0xa42   :  { %v1255_v25 = vmul.f32 %v1191_v29, %v6027_v50 }
 0xa43   :  { %v8410_v55 = vpack.c.bf16 %v1357_v37, %v1355_v11 }
 0xa45   :  { %10016 = vst [vmem:[#allocation85_spill] sm:$0xff] %v8410_v55  ;;  %3456 = vmatpush.bf16.msra.mxu3 %v8410_v55  ;;  %v1225_v55 = vld [vmem:[%s9545_s5 + $0x190] sm:$0xff] }
 0xa46   :  { %v1068_v6 = vld [vmem:[%s9549_s9 + $0xa8] sm:$0xff]  ;;  %v1070_v59 = vld [vmem:[%s9549_s9 + $0xb8] sm:$0xff] }
 0xa47   :  { %1424 = vst [vmem:[%s9555_s15 + $0x1c8] sm:$0xff] %v1360_v18  ;;  %v1132_v0 = vmul.f32 %v1068_v6, %v6017_v52  ;;  %v1134_v57 = vmul.f32 %v1070_v59, %v6017_v52  ;;  %v3365_v18 = vmul.f32 %v8354_v33, %v8354_v33  ;;  %v1228_v6 = vld [vmem:[%s9545_s5 + $0x1a8] sm:$0xff] }
 0xa48   :  { %1426 = vst [vmem:[%s9555_s15 + $0x1d8] sm:$0xff] %v1362_v26  ;;  %v3366_v26 = vmul.f32 %v8357_v32, %v8357_v32 }
 0xa49   :  { %v1324_v28 = vadd.f32 %v1260_v21, %v1132_v0 }
 0xa4a   :  { %v3373_v2 = vrot.slane %v3366_v26, 4 }
 0xa4f   :  { %v1100_v9 = vld [vmem:[%s9549_s9 + $0x1a8] sm:$0xff]  ;;  %v1102_v17 = vld [vmem:[%s9549_s9 + $0x1b8] sm:$0xff] }
 0xa50   :  { %1387 = vst [vmem:[%s9555_s15 + $0xa0] sm:$0xff] %v1323_v27  ;;  %v1164_v56 = vmul.f32 %v1100_v9, %v6017_v52  ;;  %v1166_v59 = vmul.f32 %v1102_v17, %v6017_v52  ;;  %v1326_v9 = vadd.f32 %v1262_v7, %v1134_v57  ;;  %v1292_v17 = vmul.f32 %v1228_v6, %v6027_v50 }
 0xa51   :  { %1389 = vst [vmem:[%s9555_s15 + $0xb0] sm:$0xff] %v1325_v10  ;;  %v3367_v10 = vrot.slane %v3365_v18, 4 }
 0xa52   :  { %v8435_v6 = vpack.c.bf16 %v1326_v9, %v1324_v28 }
 0xa53   :  { %v3368_v0 = vadd.f32 %v3367_v10, %v3365_v18  ;;  %v1356_v18 = vadd.f32 %v1292_v17, %v1164_v56  ;;  %v1257_v10 = vmul.f32 %v1193_v5, %v6027_v50 }
 0xa54   :  { %10017 = vst [vmem:[#allocation88_spill] sm:$0xff] %v8435_v6  ;;  %3469 = vmatpush.bf16.msrb.mxu0 %v8435_v6  ;;  %v1192_v6 = vld [vmem:[%s9545_s5 + $0x88] sm:$0xff] }
 0xa55   :  { %v3369_v7 = vrot.slane %v3368_v0, 2 }
 0xa57   :  { %v3370_v29 = vadd.f32 %v3369_v7, %v3368_v0  ;;  %v1289_v0 = vmul.f32 %v1225_v55, %v6027_v50  ;;  %v1224_v55 = vld [vmem:[%s9545_s5 + $0x188] sm:$0xff] }
 0xa58   :  { %v1063_v46 = vld [vmem:[%s9549_s9 + $0x80] sm:$0xff] }
 0xa59   :  { %1419 = vst [vmem:[%s9555_s15 + $0x1a0] sm:$0xff] %v1355_v11  ;;  %v1127_v31 = vmul.f32 %v1063_v46, %v6017_v52  ;;  %v1223_v46 = vld [vmem:[%s9545_s5 + $0x180] sm:$0xff] }
 0xa60   :  { %v1065_v27 = vld [vmem:[%s9549_s9 + $0x90] sm:$0xff] }
 0xa61   :  { %1421 = vst [vmem:[%s9555_s15 + $0x1b0] sm:$0xff] %v1357_v37  ;;  %v3374_v37 = vadd.f32 %v3373_v2, %v3366_v26  ;;  %v1129_v57 = vmul.f32 %v1065_v27, %v6017_v52  ;;  %v1358_v26 = vadd.f32 %v1294_v8, %v1166_v59  ;;  %v1319_v59 = vadd.f32 %v1255_v25, %v1127_v31 }
 0xa63   :  { %v3375_v27 = vrot.slane %v3374_v37, 2  ;;  %v8456_v5 = vpack.c.bf16 %v1358_v26, %v1356_v18  ;;  %v1321_v17 = vadd.f32 %v1257_v10, %v1129_v57  ;;  %v1256_v10 = vmul.f32 %v1192_v6, %v6027_v50 }
 0xa65   :  { %10018 = vst [vmem:[#allocation89_spill] sm:$0xff] %v8456_v5  ;;  %3482 = vmatpush.bf16.msrb.mxu1 %v8456_v5  ;;  %v1226_v5 = vld [vmem:[%s9545_s5 + $0x198] sm:$0xff] }
 0xa68   :  { %v1095_v11 = vld [vmem:[%s9549_s9 + $0x180] sm:$0xff] }
 0xa69   :  { %1388 = vst [vmem:[%s9555_s15 + $0xa8] sm:$0xff] %v1324_v28  ;;  %v1159_v2 = vmul.f32 %v1095_v11, %v6017_v52  ;;  %v1287_v11 = vmul.f32 %v1223_v46, %v6027_v50  ;;  %v8485_v46 = vpack.c.bf16 %v1321_v17, %v1319_v59 }
 0xa6b   :  { %10019 = vst [vmem:[#allocation93_spill] sm:$0xff] %v8485_v46  ;;  %v1351_v7 = vadd.f32 %v1287_v11, %v1159_v2  ;;  %3444 = vmatpush.bf16.msra.mxu2 %v8485_v46 }
 0xa70   :  { %v1097_v21 = vld [vmem:[%s9549_s9 + $0x190] sm:$0xff] }
 0xa71   :  { %1390 = vst [vmem:[%s9555_s15 + $0xb8] sm:$0xff] %v1326_v9  ;;  %v1161_v28 = vmul.f32 %v1097_v21, %v6017_v52  ;;  %v3376_v9 = vadd.f32 %v3375_v27, %v3374_v37 }
 0xa73   :  { %v3377_v25 = vrot.slane %v3376_v9, 1  ;;  %v1353_v27 = vadd.f32 %v1289_v0, %v1161_v28 }
 0xa75   :  { %v8510_v11 = vpack.c.bf16 %v1353_v27, %v1351_v7 }
 0xa77   :  { %10020 = vst [vmem:[#allocation91_spill] sm:$0xff] %v8510_v11  ;;  %3457 = vmatpush.bf16.msra.mxu3 %v8510_v11 }
 0xa78   :  { %v1064_v8 = vld [vmem:[%s9549_s9 + $0x88] sm:$0xff]  ;;  %v1066_v56 = vld [vmem:[%s9549_s9 + $0x98] sm:$0xff] }
 0xa79   :  { %1420 = vst [vmem:[%s9555_s15 + $0x1a8] sm:$0xff] %v1356_v18  ;;  %v1194_v18 = vld [vmem:[%s9545_s5 + $0x98] sm:$0xff]  ;;  %v1128_v37 = vmul.f32 %v1064_v8, %v6017_v52  ;;  %v1130_v57 = vmul.f32 %v1066_v56, %v6017_v52 }
 0xa7a   :  { %1422 = vst [vmem:[%s9555_s15 + $0x1b8] sm:$0xff] %v1358_v26  ;;  %v3371_v26 = vrot.slane %v3370_v29, 1  ;;  %v1258_v8 = vmul.f32 %v1194_v18, %v6027_v50  ;;  %v1288_v18 = vmul.f32 %v1224_v55, %v6027_v50 }
 0xa7c   :  { %v3372_v2 = vadd.f32 %v3371_v26, %v3370_v29  ;;  %v1320_v29 = vadd.f32 %v1256_v10, %v1128_v37  ;;  %v1290_v26 = vmul.f32 %v1226_v5, %v6027_v50  ;;  %v1219_v10 = vld [vmem:[%s9545_s5 + $0x160] sm:$0xff] }
 0xa7d   :  { %v1283_v46 = vmul.f32 %v1219_v10, %v6027_v50 }
 0xa7e   :  { %v3379_v0 = vmul.f32 %v3372_v2, %v5351_v14 }
 0xa81   :  { %v1096_v31 = vld [vmem:[%s9549_s9 + $0x188] sm:$0xff] }
 0xa82   :  { %1383 = vst [vmem:[%s9555_s15 + $0x80] sm:$0xff] %v1319_v59  ;;  %v1160_v56 = vmul.f32 %v1096_v31, %v6017_v52  ;;  %v1187_v31 = vld [vmem:[%s9545_s5 + $0x60] sm:$0xff] }
 0xa84   :  { %v1352_v55 = vadd.f32 %v1288_v18, %v1160_v56  ;;  %v1251_v56 = vmul.f32 %v1187_v31, %v6027_v50  ;;  %v1188_v18 = vld [vmem:[%s9545_s5 + $0x68] sm:$0xff] }
 0xa89   :  { %v1098_v21 = vld [vmem:[%s9549_s9 + $0x198] sm:$0xff] }
 0xa8a   :  { %1385 = vst [vmem:[%s9555_s15 + $0x90] sm:$0xff] %v1321_v17  ;;  %v3378_v17 = vadd.f32 %v3377_v25, %v3376_v9  ;;  %v1162_v6 = vmul.f32 %v1098_v21, %v6017_v52  ;;  %v1322_v9 = vadd.f32 %v1258_v8, %v1130_v57  ;;  %v8539_v8 = vadd.f32 1e-05, %v3379_v0 }
 0xa8c   :  { %v3380_v21 = vmul.f32 %v3378_v17, %v5351_v14  ;;  %v8530_v57 = vpack.c.bf16 %v1322_v9, %v1320_v29  ;;  %v1354_v2 = vadd.f32 %v1290_v26, %v1162_v6  ;;  %v1221_v17 = vld [vmem:[%s9545_s5 + $0x170] sm:$0xff]  ;;  %4207 = vrsqrt.f32 %v8539_v8 }
 0xa8d   :  { %vm3389_vm1 = vweird.f32 %v8539_v8 }
 0xa8e   :  { %10021 = vst [vmem:[#allocation95_spill] sm:$0xff] %v8530_v57  ;;  %3470 = vmatpush.bf16.msrb.mxu0 %v8530_v57  ;;  %v8569_v31 = vpack.c.bf16 %v1354_v2, %v1352_v55 }
 0xa90   :  { %10022 = vst [vmem:[#allocation92_spill] sm:$0xff] %v8569_v31  ;;  %3483 = vmatpush.bf16.msrb.mxu1 %v8569_v31 }
 0xa91   :  { %v1059_v59 = vld [vmem:[%s9549_s9 + $0x60] sm:$0xff] }
 0xa92   :  { %1415 = vst [vmem:[%s9555_s15 + $0x180] sm:$0xff] %v1351_v7  ;;  %v1123_v25 = vmul.f32 %v1059_v59, %v6017_v52  ;;  %v1189_v7 = vld [vmem:[%s9545_s5 + $0x70] sm:$0xff]  ;;  %v8541_v59 = vadd.f32 1e-05, %v3380_v21  ;;  %v1190_v21 = vld [vmem:[%s9545_s5 + $0x78] sm:$0xff] }
 0xa94   :  { %4209 = vrsqrt.f32 %v8541_v59  ;;  %vm3399_vm5 = vweird.f32 %v8541_v59 }
 0xa99   :  { %v1061_v28 = vld [vmem:[%s9549_s9 + $0x70] sm:$0xff] }
 0xa9a   :  { %1417 = vst [vmem:[%s9555_s15 + $0x190] sm:$0xff] %v1353_v27  ;;  %v1125_v5 = vmul.f32 %v1061_v28, %v6017_v52  ;;  %v1253_v28 = vmul.f32 %v1189_v7, %v6027_v50  ;;  %v1315_v7 = vadd.f32 %v1251_v56, %v1123_v25  ;;  %v1252_v25 = vmul.f32 %v1188_v18, %v6027_v50  ;;  %v1183_v18 = vld [vmem:[%s9545_s5 + $0x40] sm:$0xff] }
 0xaa1   :  { %v1091_v37 = vld [vmem:[%s9549_s9 + $0x160] sm:$0xff] }
 0xaa2   :  { %1384 = vst [vmem:[%s9555_s15 + $0x88] sm:$0xff] %v1320_v29  ;;  %v1155_v29 = vmul.f32 %v1091_v37, %v6017_v52  ;;  %v1317_v37 = vadd.f32 %v1253_v28, %v1125_v5  ;;  %v1222_v5 = vld [vmem:[%s9545_s5 + $0x178] sm:$0xff]  ;;  %v1254_v28 = vmul.f32 %v1190_v21, %v6027_v50 }
 0xaa4   :  { %v8600_v56 = vpack.c.bf16 %v1317_v37, %v1315_v7 }
 0xaa6   :  { %10023 = vst [vmem:[#allocation97_spill] sm:$0xff] %v8600_v56  ;;  %3445 = vmatpush.bf16.msra.mxu2 %v8600_v56 }
 0xaa9   :  { %v1093_v27 = vld [vmem:[%s9549_s9 + $0x170] sm:$0xff] }
 0xaaa   :  { %1386 = vst [vmem:[%s9555_s15 + $0x98] sm:$0xff] %v1322_v9  ;;  %v1157_v0 = vmul.f32 %v1093_v27, %v6017_v52  ;;  %v1220_v27 = vld [vmem:[%s9545_s5 + $0x168] sm:$0xff] }
 0xaab   :  { %1416 = vst [vmem:[%s9555_s15 + $0x188] sm:$0xff] %v1352_v55 }
 0xab2   :  { %v1060_v6 = vld [vmem:[%s9549_s9 + $0x68] sm:$0xff]  ;;  %v1062_v9 = vld [vmem:[%s9549_s9 + $0x78] sm:$0xff] }
 0xab3   :  { %1418 = vst [vmem:[%s9555_s15 + $0x198] sm:$0xff] %v1354_v2  ;;  %v1285_v2 = vmul.f32 %v1221_v17, %v6027_v50  ;;  %v1124_v11 = vmul.f32 %v1060_v6, %v6017_v52  ;;  %v1126_v14 = vmul.f32 %v1062_v9, %v6017_v52  ;;  %v1347_v17 = vadd.f32 %v1283_v46, %v1155_v29 }
 0xab4   :  { %v1284_v29 = vmul.f32 %v1220_v27, %v6027_v50 }
 0xab5   :  { %v1349_v31 = vadd.f32 %v1285_v2, %v1157_v0  ;;  %v1318_v21 = vadd.f32 %v1254_v28, %v1126_v14  ;;  %v1185_v0 = vld [vmem:[%s9545_s5 + $0x50] sm:$0xff]  ;;  %v1247_v14 = vmul.f32 %v1183_v18, %v6027_v50  ;;  %v1215_v28 = vld [vmem:[%s9545_s5 + $0x140] sm:$0xff] }
 0xaba   :  { %v1092_v26 = vld [vmem:[%s9549_s9 + $0x168] sm:$0xff]  ;;  %v1094_v55 = vld [vmem:[%s9549_s9 + $0x178] sm:$0xff]  ;;  %v1055_v10 = vld [vmem:[%s9549_s9 + $0x40] sm:$0xff] }
 0xabb   :  { %1379 = vst [vmem:[%s9555_s15 + $0x60] sm:$0xff] %v1315_v7  ;;  %v1156_v6 = vmul.f32 %v1092_v26, %v6017_v52  ;;  %v1316_v7 = vadd.f32 %v1252_v25, %v1124_v11  ;;  %v1158_v46 = vmul.f32 %v1094_v55, %v6017_v52  ;;  %v1286_v26 = vmul.f32 %v1222_v5, %v6027_v50  ;;  %v8624_v11 = vpop.eup %4207 }
 0xabc   :  { %v1119_v57 = vmul.f32 %v1055_v10, %v6017_v52  ;;  %v8636_v25 = vpop.eup %4209  ;;  %v3384_v5 = vmul.f32 %v8624_v11, %v8539_v8  ;;  %vm3390_vm2 = vweird.f32 %v8624_v11 }
 0xabd   :  { %v1348_v55 = vadd.f32 %v1284_v29, %v1156_v6  ;;  %v1350_v10 = vadd.f32 %v1286_v26, %v1158_v46  ;;  %v3394_v6 = vmul.f32 %v8636_v25, %v8541_v59  ;;  %vm3400_vm3 = vweird.f32 %v8636_v25  ;;  %vm3391_vm4 = vmor %vm3389_vm1, %vm3390_vm2 }
 0xabe   :  { %v1311_v18 = vadd.f32 %v1247_v14, %v1119_v57  ;;  %v3385_v26 = vmul.f32 %v8624_v11, %v3384_v5  ;;  %vm8772_vm6 = vmor %vm3399_vm5, %vm3400_vm3 }
 0xabf   :  { %v8675_v57 = vpack.c.bf16 %v1350_v10, %v1348_v55  ;;  %v3395_v14 = vmul.f32 %v8636_v25, %v3394_v6  ;;  %v1216_v6 = vld [vmem:[%s9545_s5 + $0x148] sm:$0xff] }
 0xac1   :  { %10026 = vst [vmem:[#allocation96_spill] sm:$0xff] %v8675_v57  ;;  %3484 = vmatpush.bf16.msrb.mxu1 %v8675_v57 }
 0xac2   :  { %v1057_v9 = vld [vmem:[%s9549_s9 + $0x50] sm:$0xff] }
 0xac3   :  { %1381 = vst [vmem:[%s9555_s15 + $0x70] sm:$0xff] %v1317_v37  ;;  %v8629_v37 = vpack.c.bf16 %v1349_v31, %v1347_v17  ;;  %v1121_v27 = vmul.f32 %v1057_v9, %v6017_v52  ;;  %v1249_v9 = vmul.f32 %v1185_v0, %v6027_v50  ;;  %v1184_v0 = vld [vmem:[%s9545_s5 + $0x48] sm:$0xff] }
 0xac4   :  { %1411 = vst [vmem:[%s9555_s15 + $0x160] sm:$0xff] %v1347_v17 }
 0xac5   :  { %1413 = vst [vmem:[%s9555_s15 + $0x170] sm:$0xff] %v1349_v31  ;;  %v8644_v31 = vpack.c.bf16 %v1318_v21, %v1316_v7  ;;  %3458 = vmatpush.bf16.msra.mxu3 %v8629_v37  ;;  %v1313_v5 = vadd.f32 %v1249_v9, %v1121_v27  ;;  %v3396_v9 = vmul.f32 0.5, %v3395_v14 }
 0xac6   :  { %10024 = vst [vmem:[#allocation94_spill] sm:$0xff] %v8629_v37  ;;  %v1279_v37 = vmul.f32 %v1215_v28, %v6027_v50 }
 0xac7   :  { %10025 = vst [vmem:[#allocation99_spill] sm:$0xff] %v8644_v31  ;;  %3471 = vmatpush.bf16.msrb.mxu0 %v8644_v31  ;;  %v3386_v31 = vmul.f32 0.5, %v3385_v26  ;;  %v8709_v26 = vpack.c.bf16 %v1313_v5, %v1311_v18 }
 0xac9   :  { %v3387_v57 = vsub.f32 1.5, %v3386_v31  ;;  %3446 = vmatpush.bf16.msra.mxu2 %v8709_v26 }
 0xacc   :  { %v1087_v2 = vld [vmem:[%s9549_s9 + $0x140] sm:$0xff] }
 0xacd   :  { %1380 = vst [vmem:[%s9555_s15 + $0x68] sm:$0xff] %v1316_v7  ;;  %v1217_v7 = vld [vmem:[%s9545_s5 + $0x150] sm:$0xff] }
 0xace   :  { %v1281_v27 = vmul.f32 %v1217_v7, %v6027_v50 }
 0xad4   :  { %v1089_v17 = vld [vmem:[%s9549_s9 + $0x150] sm:$0xff] }
 0xad5   :  { %1382 = vst [vmem:[%s9555_s15 + $0x78] sm:$0xff] %v1318_v21  ;;  %v1151_v21 = vmul.f32 %v1087_v2, %v6017_v52  ;;  %v1153_v56 = vmul.f32 %v1089_v17, %v6017_v52 }
 0xad7   :  { %v1343_v7 = vadd.f32 %v1279_v37, %v1151_v21  ;;  %v1345_v63 = vadd.f32 %v1281_v27, %v1153_v56  ;;  %v1280_v21 = vmul.f32 %v1216_v6, %v6027_v50  ;;  %v1179_v27 = vld [vmem:[%s9545_s5 + $0x20] sm:$0xff] }
 0xadc   :  { %v1056_v46 = vld [vmem:[%s9549_s9 + $0x48] sm:$0xff]  ;;  %v1058_v29 = vld [vmem:[%s9549_s9 + $0x58] sm:$0xff] }
 0xadd   :  { %1412 = vst [vmem:[%s9555_s15 + $0x168] sm:$0xff] %v1348_v55  ;;  %v1186_v55 = vld [vmem:[%s9545_s5 + $0x58] sm:$0xff]  ;;  %v1122_v17 = vmul.f32 %v1058_v29, %v6017_v52 }
 0xade   :  { %1414 = vst [vmem:[%s9555_s15 + $0x178] sm:$0xff] %v1350_v10  ;;  %v1120_v10 = vmul.f32 %v1056_v46, %v6017_v52  ;;  %v1248_v46 = vmul.f32 %v1184_v0, %v6027_v50  ;;  %v1218_v29 = vld [vmem:[%s9545_s5 + $0x158] sm:$0xff]  ;;  %v1250_v24 = vmul.f32 %v1186_v55, %v6027_v50  ;;  %v3388_v0 = vmul.f32 %v8624_v11, %v3387_v57 }
 0xae0   :  { %v1312_v56 = vadd.f32 %v1248_v46, %v1120_v10  ;;  %v1314_v55 = vadd.f32 %v1250_v24, %v1122_v17  ;;  %v1181_v10 = vld [vmem:[%s9545_s5 + $0x30] sm:$0xff]  ;;  %v3392_v6 = vsel %vm3391_vm4, %v8624_v11, %v3388_v0  ;;  %v1243_v46 = vmul.f32 %v1179_v27, %v6027_v50  ;;  %v1182_v27 = vld [vmem:[%s9545_s5 + $0x38] sm:$0xff] }
 0xae1   :  { %v3403_v11 = vmul.f32 %v3392_v6, %v8354_v33 }
 0xae2   :  { %v8761_v8 = vpack.c.bf16 %v1314_v55, %v1312_v56 }
 0xae3   :  { %v3405_v0 = vmax.f32 %v3403_v11, 0.0  ;;  %v1214_v11 = vld [vmem:[%s9545_s5 + $0x138] sm:$0xff] }
 0xae4   :  { %3472 = vmatpush.bf16.msrb.mxu0 %v8761_v8 }
 0xae5   :  { %v1088_v2 = vld [vmem:[%s9549_s9 + $0x148] sm:$0xff] }
 0xae6   :  { %1375 = vst [vmem:[%s9555_s15 + $0x40] sm:$0xff] %v1311_v18  ;;  %v1152_v22 = vmul.f32 %v1088_v2, %v6017_v52  ;;  %v3397_v18 = vsub.f32 1.5, %v3396_v9  ;;  %v1282_v2 = vmul.f32 %v1218_v29, %v6027_v50  ;;  %v1245_v29 = vmul.f32 %v1181_v10, %v6027_v50 }
 0xae8   :  { %v3398_v57 = vmul.f32 %v8636_v25, %v3397_v18  ;;  %v1344_v24 = vadd.f32 %v1280_v21, %v1152_v22  ;;  %v1180_v21 = vld [vmem:[%s9545_s5 + $0x28] sm:$0xff] }
 0xaed   :  { %v1090_v28 = vld [vmem:[%s9549_s9 + $0x158] sm:$0xff] }
 0xaee   :  { %1377 = vst [vmem:[%s9555_s15 + $0x50] sm:$0xff] %v1313_v5  ;;  %v1154_v31 = vmul.f32 %v1090_v28, %v6017_v52  ;;  %v8733_v5 = vpack.c.bf16 %v1345_v63, %v1343_v7 }
 0xaf0   :  { %3459 = vmatpush.bf16.msra.mxu3 %v8733_v5  ;;  %v1346_v22 = vadd.f32 %v1282_v2, %v1154_v31 }
 0xaf2   :  { %v8794_v18 = vpack.c.bf16 %v1346_v22, %v1344_v24 }
 0xaf4   :  { %3485 = vmatpush.bf16.msrb.mxu1 %v8794_v18 }
 0xaf5   :  { %v1051_v14 = vld [vmem:[%s9549_s9 + $0x20] sm:$0xff]  ;;  %v1053_v37 = vld [vmem:[%s9549_s9 + $0x30] sm:$0xff] }
 0xaf6   :  { %1407 = vst [vmem:[%s9555_s15 + $0x140] sm:$0xff] %v1343_v7  ;;  %v1117_v17 = vmul.f32 %v1053_v37, %v6017_v52  ;;  %v1211_v7 = vld [vmem:[%s9545_s5 + $0x120] sm:$0xff]  ;;  %v3402_v37 = vsel %vm8772_vm6, %v8636_v25, %v3398_v57 }
 0xaf7   :  { %1409 = vst [vmem:[%s9555_s15 + $0x150] sm:$0xff] %v1345_v63  ;;  %v1115_v63 = vmul.f32 %v1051_v14, %v6017_v52  ;;  %v1213_v14 = vld [vmem:[%s9545_s5 + $0x130] sm:$0xff]  ;;  %v1275_v10 = vmul.f32 %v1211_v7, %v6027_v50  ;;  %v8821_v6 = vmul.f32 %v3402_v37, %v8357_v32  ;;  %v1244_v7 = vmul.f32 %v1180_v21, %v6027_v50  ;;  %v1175_v37 = vld [vmem:[%s9545_s5] sm:$0xff] }
 0xaf8   :  { %1376 = vst [vmem:[%s9555_s15 + $0x48] sm:$0xff] %v1312_v56  ;;  %v1277_v57 = vmul.f32 %v1213_v14, %v6027_v50  ;;  %v8836_v32 = vpack.c.bf16 %v3405_v0, %v3405_v0  ;;  %v1246_v14 = vmul.f32 %v1182_v27, %v6027_v50 }
 0xaf9   :  { %v1307_v25 = vadd.f32 %v1243_v46, %v1115_v63 }
 0xaff   :  { %v1083_v28 = vld [vmem:[%s9549_s9 + $0x120] sm:$0xff] }
 0xb00   :  { %1378 = vst [vmem:[%s9555_s15 + $0x58] sm:$0xff] %v1314_v55  ;;  %v1147_v56 = vmul.f32 %v1083_v28, %v6017_v52  ;;  %v1309_v55 = vadd.f32 %v1245_v29, %v1117_v17  ;;  %v1212_v17 = vld [vmem:[%s9545_s5 + $0x128] sm:$0xff] }
 0xb02   :  { %v1339_v46 = vadd.f32 %v1275_v10, %v1147_v56  ;;  %v1278_v10 = vmul.f32 %v1214_v11, %v6027_v50  ;;  %v1209_v11 = vld [vmem:[%s9545_s5 + $0x110] sm:$0xff] }
 0xb07   :  { %v1085_v9 = vld [vmem:[%s9549_s9 + $0x130] sm:$0xff] }
 0xb08   :  { %1408 = vst [vmem:[%s9555_s15 + $0x148] sm:$0xff] %v1344_v24  ;;  %v1149_v2 = vmul.f32 %v1085_v9, %v6017_v52 }
 0xb0a   :  { %v1341_v29 = vadd.f32 %v1277_v57, %v1149_v2 }
 0xb0c   :  { %v8861_v2 = vpack.c.bf16 %v1341_v29, %v1339_v46 }
 0xb0e   :  { %3460 = vmatpush.bf16.msra.mxu3 %v8861_v2 }
 0xb0f   :  { %v1052_v33 = vld [vmem:[%s9549_s9 + $0x28] sm:$0xff] }
 0xb10   :  { %1410 = vst [vmem:[%s9555_s15 + $0x158] sm:$0xff] %v1346_v22  ;;  %v1116_v24 = vmul.f32 %v1052_v33, %v6017_v52  ;;  %v8826_v22 = vpack.c.bf16 %v1309_v55, %v1307_v25 }
 0xb12   :  { %10029 = vst [vmem:[#allocation101_spill] sm:$0xff] %v8826_v22  ;;  %3447 = vmatpush.bf16.msra.mxu2 %v8826_v22  ;;  %v1308_v21 = vadd.f32 %v1244_v7, %v1116_v24 }
 0xb17   :  { %v1054_v31 = vld [vmem:[%s9549_s9 + $0x38] sm:$0xff]  ;;  %v1084_v28 = vld [vmem:[%s9549_s9 + $0x128] sm:$0xff] }
 0xb18   :  { %v1086_v63 = vld [vmem:[%s9549_s9 + $0x138] sm:$0xff]  ;;  %v1118_v9 = vmul.f32 %v1054_v31, %v6017_v52  ;;  %v1177_v31 = vld [vmem:[%s9545_s5 + $0x10] sm:$0xff]  ;;  %v1148_v56 = vmul.f32 %v1084_v28, %v6017_v52  ;;  %v1207_v28 = vld [vmem:[%s9545_s5 + $0x100] sm:$0xff] }
 0xb19   :  { %1371 = vst [vmem:[%s9555_s15 + $0x20] sm:$0xff] %v1307_v25  ;;  %v1150_v0 = vmul.f32 %v1086_v63, %v6017_v52  ;;  %v1276_v25 = vmul.f32 %v1212_v17, %v6027_v50  ;;  %v1241_v7 = vmul.f32 %v1177_v31, %v6027_v50 }
 0xb1a   :  { %v1310_v27 = vadd.f32 %v1246_v14, %v1118_v9  ;;  %v1239_v9 = vmul.f32 %v1175_v37, %v6027_v50  ;;  %v1176_v37 = vld [vmem:[%s9545_s5 + $0x8] sm:$0xff] }
 0xb1b   :  { %v1340_v63 = vadd.f32 %v1276_v25, %v1148_v56  ;;  %v1178_v25 = vld [vmem:[%s9545_s5 + $0x18] sm:$0xff] }
 0xb20   :  { %v1047_v59 = vld [vmem:[%s9549_s9] sm:$0xff] }
 0xb21   :  { %1373 = vst [vmem:[%s9555_s15 + $0x30] sm:$0xff] %v1309_v55  ;;  %v1111_v57 = vmul.f32 %v1047_v59, %v6017_v52 }
 0xb23   :  { %v1303_v31 = vadd.f32 %v1239_v9, %v1111_v57  ;;  %v1273_v57 = vmul.f32 %v1209_v11, %v6027_v50  ;;  %v1210_v11 = vld [vmem:[%s9545_s5 + $0x118] sm:$0xff] }
 0xb28   :  { %v1049_v33 = vld [vmem:[%s9549_s9 + $0x10] sm:$0xff]  ;;  %v1079_v55 = vld [vmem:[%s9549_s9 + $0x100] sm:$0xff] }
 0xb29   :  { %1403 = vst [vmem:[%s9555_s15 + $0x120] sm:$0xff] %v1339_v46  ;;  %v1113_v17 = vmul.f32 %v1049_v33, %v6017_v52  ;;  %v8887_v46 = vpack.c.bf16 %v1310_v27, %v1308_v21  ;;  %v1143_v14 = vmul.f32 %v1079_v55, %v6017_v52 }
 0xb2b   :  { %v1305_v56 = vadd.f32 %v1241_v7, %v1113_v17  ;;  %3473 = vmatpush.bf16.msrb.mxu0 %v8887_v46  ;;  %v1240_v7 = vmul.f32 %v1176_v37, %v6027_v50 }
 0xb2d   :  { %v8925_v17 = vpack.c.bf16 %v1305_v56, %v1303_v31 }
 0xb2f   :  { %3448 = vmatpush.bf16.msra.mxu2 %v8925_v17 }
 0xb30   :  { %v1081_v24 = vld [vmem:[%s9549_s9 + $0x110] sm:$0xff] }
 0xb31   :  { %1405 = vst [vmem:[%s9555_s15 + $0x130] sm:$0xff] %v1341_v29  ;;  %v1342_v29 = vadd.f32 %v1278_v10, %v1150_v0  ;;  %v1271_v0 = vmul.f32 %v1207_v28, %v6027_v50  ;;  %v3406_v10 = vmax.f32 %v8821_v6, 0.0  ;;  %v1208_v6 = vld [vmem:[%s9545_s5 + $0x108] sm:$0xff] }
 0xb32   :  { %v1272_v37 = vmul.f32 %v1208_v6, %v6027_v50  ;;  %3449 = vmatmul.bf16.vlgmr.msra.gmra.mxu2 %v8836_v32  ;;  %v1459_v6 = vld [vmem:[%s9550_s10 + $0xe0] sm:$0xff] }
 0xb38   :  { %v1048_v59 = vld [vmem:[%s9549_s9 + $0x8] sm:$0xff] }
 0xb39   :  { %1372 = vst [vmem:[%s9555_s15 + $0x28] sm:$0xff] %v1308_v21  ;;  %v1145_v21 = vmul.f32 %v1081_v24, %v6017_v52  ;;  %v1112_v24 = vmul.f32 %v1048_v59, %v6017_v52 }
 0xb3b   :  { %v1337_v59 = vadd.f32 %v1273_v57, %v1145_v21 }
 0xb40   :  { %v1050_v33 = vld [vmem:[%s9549_s9 + $0x18] sm:$0xff] }
 0xb41   :  { %1374 = vst [vmem:[%s9555_s15 + $0x38] sm:$0xff] %v1310_v27  ;;  %v8912_v27 = vpack.c.bf16 %v1342_v29, %v1340_v63  ;;  %v1114_v9 = vmul.f32 %v1050_v33, %v6017_v52 }
 0xb43   :  { %3486 = vmatpush.bf16.msrb.mxu1 %v8912_v27 }
 0xb48   :  { %v1080_v55 = vld [vmem:[%s9549_s9 + $0x108] sm:$0xff] }
 0xb49   :  { %1404 = vst [vmem:[%s9555_s15 + $0x128] sm:$0xff] %v1340_v63  ;;  %v1335_v63 = vadd.f32 %v1271_v0, %v1143_v14  ;;  %v1144_v22 = vmul.f32 %v1080_v55, %v6017_v52  ;;  %v1304_v14 = vadd.f32 %v1240_v7, %v1112_v24  ;;  %v1274_v0 = vmul.f32 %v1210_v11, %v6027_v50  ;;  %v10055_v24 = vld [vmem:[#allocation89_spill] sm:$0xff] }
 0xb4a   :  { %v1491_v7 = vmul.f32 %v1459_v6, %v6017_v52  ;;  %v1520_v6 = vld [vmem:[%s9546_s6 + $0xc8] sm:$0xff] }
 0xb50   :  { %v1082_v28 = vld [vmem:[%s9549_s9 + $0x118] sm:$0xff] }
 0xb51   :  { %1406 = vst [vmem:[%s9555_s15 + $0x138] sm:$0xff] %v1342_v29  ;;  %v1242_v29 = vmul.f32 %v1178_v25, %v6027_v50  ;;  %v1146_v33 = vmul.f32 %v1082_v28, %v6017_v52  ;;  %v3408_v25 = vpack.c.bf16 %v3406_v10, %v3406_v10 }
 0xb52   :  { %1367 = vst [vmem:[%s9555_s15] sm:$0xff] %v1303_v31  ;;  %v8947_v31 = vpack.c.bf16 %v1337_v59, %v1335_v63 }
 0xb53   :  { %1369 = vst [vmem:[%s9555_s15 + $0x10] sm:$0xff] %v1305_v56  ;;  %v1306_v21 = vadd.f32 %v1242_v29, %v1114_v9  ;;  %v1336_v56 = vadd.f32 %v1272_v37, %v1144_v22  ;;  %v1338_v57 = vadd.f32 %v1274_v0, %v1146_v33  ;;  %v1523_v9 = vld [vmem:[%s9546_s6 + $0xe0] sm:$0xff] }
 0xb54   :  { %1399 = vst [vmem:[%s9555_s15 + $0x100] sm:$0xff] %v1335_v63  ;;  %3461 = vmatpush.bf16.msra.mxu3 %v8947_v31  ;;  %v1460_v63 = vld [vmem:[%s9550_s10 + $0xe8] sm:$0xff]  ;;  %v1555_v29 = vmul.f32 %v1523_v9, %v6027_v50 }
 0xb55   :  { %1401 = vst [vmem:[%s9555_s15 + $0x110] sm:$0xff] %v1337_v59  ;;  %v8957_v55 = vpack.c.bf16 %v1306_v21, %v1304_v14  ;;  %v8967_v22 = vpack.c.bf16 %v1338_v57, %v1336_v56  ;;  %v1492_v11 = vmul.f32 %v1460_v63, %v6017_v52  ;;  %v1524_v59 = vld [vmem:[%s9546_s6 + $0xe8] sm:$0xff] }
 0xb56   :  { %1368 = vst [vmem:[%s9555_s15 + $0x8] sm:$0xff] %v1304_v14  ;;  %v10056_v14 = vld [vmem:[#allocation95_spill] sm:$0xff]  ;;  %v1556_v37 = vmul.f32 %v1524_v59, %v6027_v50 }
 0xb57   :  { %1370 = vst [vmem:[%s9555_s15 + $0x18] sm:$0xff] %v1306_v21  ;;  %3474 = vmatpush.bf16.msrb.mxu0 %v8957_v55  ;;  %3462 = vmatmul.bf16.vlgmr.msra.gmra.mxu3 %v3408_v25 }
 0xb58   :  { %1400 = vst [vmem:[%s9555_s15 + $0x108] sm:$0xff] %v1336_v56  ;;  %3487 = vmatpush.bf16.msrb.mxu1 %v8967_v22  ;;  %v1587_v56 = vadd.f32 %v1555_v29, %v1491_v7 }
 0xb59   :  { %1402 = vst [vmem:[%s9555_s15 + $0x118] sm:$0xff] %v1338_v57 }
 0xb5a   :  { %3475 = vmatmul.bf16.vlgmr.msrb.gmra.mxu0 %v8836_v32 }
 0xb5b   :  { %3623 = vmatpush.bf16.msra.mxu0 %v6065_v44  ;;  %3488 = vmatmul.bf16.vlgmr.msrb.gmra.mxu1 %v3408_v25  ;;  %v10032_v44 = vld [vmem:[#allocation32_spill] sm:$0xff]  ;;  %v1509_v25 = vld [vmem:[%s9546_s6 + $0x70] sm:$0xff] }
 0xb5c   :  { %3636 = vmatpush.bf16.msra.mxu1 %v6096_v53  ;;  %v10033_v53 = vld [vmem:[#allocation12_spill] sm:$0xff] }
 0xb5f   :  { %3624 = vmatpush.bf16.msra.mxu0 %v6127_v1  ;;  %v10034_v1 = vld [vmem:[#allocation74_spill] sm:$0xff] }
 0xb60   :  { %3637 = vmatpush.bf16.msra.mxu1 %v6149_v19  ;;  %v10035_v19 = vld [vmem:[#allocation13_spill] sm:$0xff] }
 0xb63   :  { %3625 = vmatpush.bf16.msra.mxu0 %v6232_v60  ;;  %v10036_v60 = vld [vmem:[#allocation35_spill] sm:$0xff] }
 0xb64   :  { %3638 = vmatpush.bf16.msra.mxu1 %v6252_v39  ;;  %v10037_v39 = vld [vmem:[#allocation36_spill] sm:$0xff] }
 0xb67   :  { %3626 = vmatpush.bf16.msra.mxu0 %v6336_v36  ;;  %v10038_v36 = vld [vmem:[#allocation78_spill] sm:$0xff] }
 0xb68   :  { %3639 = vmatpush.bf16.msra.mxu1 %v6365_v15  ;;  %v10039_v15 = vld [vmem:[#allocation79_spill] sm:$0xff] }
 0xb6b   :  { %3627 = vmatpush.bf16.msra.mxu0 %v6440_v41  ;;  %v10040_v41 = vld [vmem:[#allocation37_spill] sm:$0xff] }
 0xb6c   :  { %3640 = vmatpush.bf16.msra.mxu1 %v6465_v51  ;;  %v10041_v51 = vld [vmem:[#allocation38_spill] sm:$0xff] }
 0xb6f   :  { %3628 = vmatpush.bf16.msra.mxu0 %v6553_v35  ;;  %v10042_v35 = vld [vmem:[#allocation59_spill] sm:$0xff] }
 0xb70   :  { %3641 = vmatpush.bf16.msra.mxu1 %v6579_v45  ;;  %v10043_v45 = vld [vmem:[#allocation60_spill] sm:$0xff] }
 0xb73   :  { %3629 = vmatpush.bf16.msra.mxu0 %v6664_v34  ;;  %v10044_v34 = vld [vmem:[#allocation82_spill] sm:$0xff] }
 0xb74   :  { %3642 = vmatpush.bf16.msra.mxu1 %v6686_v62  ;;  %v10045_v62 = vld [vmem:[#allocation83_spill] sm:$0xff] }
 0xb77   :  { %3630 = vmatpush.bf16.msra.mxu0 %v6778_v23  ;;  %v10046_v23 = vld [vmem:[#allocation63_spill] sm:$0xff] }
 0xb78   :  { %3643 = vmatpush.bf16.msra.mxu1 %v6832_v13  ;;  %v10048_v13 = vld [vmem:[#allocation86_spill] sm:$0xff] }
 0xb7a   :  { %3631 = vmatmul.bf16.vlgmr.msra.gmra.mxu0 %v5830_v48  ;;  %v10030_v48 = vld [vmem:[#allocation31_spill] sm:$0xff] }
 0xb7b   :  { %3675 = vmatpush.bf16.msrb.mxu0 %v6810_v12  ;;  %3644 = vmatmul.bf16.vlgmr.msra.gmra.mxu1 %v5836_v4  ;;  %v10031_v4 = vld [vmem:[#allocation73_spill] sm:$0xff]  ;;  %v10047_v12 = vld [vmem:[#allocation64_spill] sm:$0xff] }
 0xb7c   :  { %3688 = vmatpush.bf16.msrb.mxu1 %v6905_v40  ;;  %v10049_v40 = vld [vmem:[#allocation71_spill] sm:$0xff] }
 0xb7f   :  { %3676 = vmatpush.bf16.msrb.mxu0 %v6932_v58  ;;  %v10050_v58 = vld [vmem:[#allocation87_spill] sm:$0xff] }
 0xb80   :  { %3689 = vmatpush.bf16.msrb.mxu1 %v7006_v47  ;;  %v10051_v47 = vld [vmem:[#allocation72_spill] sm:$0xff] }
 0xb83   :  { %3677 = vmatpush.bf16.msrb.mxu0 %v7083_v43  ;;  %v10052_v43 = vld [vmem:[#allocation80_spill] sm:$0xff] }
 0xb84   :  { %3690 = vmatpush.bf16.msrb.mxu1 %v7108_v38  ;;  %v10053_v38 = vld [vmem:[#allocation81_spill] sm:$0xff] }
 0xb87   :  { %3678 = vmatpush.bf16.msrb.mxu0 %v7183_v30  ;;  %v1461_v30 = vld [vmem:[%s9550_s10 + $0xf0] sm:$0xff] }
 0xb88   :  { %3691 = vmatpush.bf16.msrb.mxu1 %v7208_v49  ;;  %v1462_v49 = vld [vmem:[%s9550_s10 + $0xf8] sm:$0xff] }
 0xb8b   :  { %3679 = vmatpush.bf16.msrb.mxu0 %v7283_v3  ;;  %v1525_v3 = vld [vmem:[%s9546_s6 + $0xf0] sm:$0xff] }
 0xb8c   :  { %3692 = vmatpush.bf16.msrb.mxu1 %v7308_v54  ;;  %v1493_v54 = vmul.f32 %v1461_v30, %v6017_v52  ;;  %v1508_v30 = vld [vmem:[%s9546_s6 + $0x68] sm:$0xff] }
 0xb8f   :  { %3680 = vmatpush.bf16.msrb.mxu0 %v7383_v20  ;;  %v1494_v20 = vmul.f32 %v1462_v49, %v6017_v52 }
 0xb90   :  { %3693 = vmatpush.bf16.msrb.mxu1 %v7408_v42  ;;  %v1526_v42 = vld [vmem:[%s9546_s6 + $0xf8] sm:$0xff] }
 0xb91   :  { %v1558_v32 = vmul.f32 %v1526_v42, %v6027_v50 }
 0xb93   :  { %3681 = vmatpush.bf16.msrb.mxu0 %v7483_v61  ;;  %v1557_v61 = vmul.f32 %v1525_v3, %v6027_v50  ;;  %v1590_v28 = vadd.f32 %v1558_v32, %v1494_v20  ;;  %v1540_v20 = vmul.f32 %v1508_v30, %v6027_v50  ;;  %v10059_v32 = vld [vmem:[#allocation96_spill] sm:$0xff] }
 0xb94   :  { %3694 = vmatpush.bf16.msrb.mxu1 %v7508_v16  ;;  %v10054_v16 = vld [vmem:[#allocation88_spill] sm:$0xff] }
 0xb95   :  { %v1589_v10 = vadd.f32 %v1557_v61, %v1493_v54  ;;  %1622 = vst [vmem:[%s9556_s16 + $0xf8] sm:$0xff] %v1590_v28  ;;  %v1515_v30 = vld [vmem:[%s9546_s6 + $0xa0] sm:$0xff] }
 0xb97   :  { %3682 = vmatpush.bf16.msrb.mxu0 %v10030_v48  ;;  %1621 = vst [vmem:[%s9556_s16 + $0xf0] sm:$0xff] %v1589_v10  ;;  %v9070_v33 = vpack.c.bf16 %v1590_v28, %v1589_v10 }
 0xb98   :  { %3695 = vmatpush.bf16.msrb.mxu1 %v10032_v44  ;;  %v1541_v44 = vmul.f32 %v1509_v25, %v6027_v50  ;;  %v1506_v25 = vld [vmem:[%s9546_s6 + $0x58] sm:$0xff] }
 0xb99   :  { %3582 = vmatpush.bf16.msrb.mxu3 %v9070_v33 }
 0xb9a   :  { %3683 = vmatmul.bf16.vlgmr.msrb.gmra.mxu0 %v10033_v53  ;;  %v10057_v53 = vld [vmem:[#allocation92_spill] sm:$0xff] }
 0xb9b   :  { %3728 = vmatpush.bf16.msra.mxu0 %v10031_v4  ;;  %3696 = vmatmul.bf16.vlgmr.msrb.gmra.mxu1 %v10035_v19  ;;  %v1510_v4 = vld [vmem:[%s9546_s6 + $0x78] sm:$0xff] }
 0xb9c   :  { %3741 = vmatpush.bf16.msra.mxu1 %v10034_v1  ;;  %v1588_v1 = vadd.f32 %v1556_v37, %v1492_v11  ;;  %v1542_v19 = vmul.f32 %v1510_v4, %v6027_v50  ;;  %v1552_v11 = vmul.f32 %v1520_v6, %v6027_v50 }
 0xb9e   :  { %v1445_v21 = vld [vmem:[%s9550_s10 + $0x70] sm:$0xff]  ;;  %v1446_v0 = vld [vmem:[%s9550_s10 + $0x78] sm:$0xff] }
 0xb9f   :  { %3729 = vmatpush.bf16.msra.mxu0 %v10036_v60  ;;  %v1477_v57 = vmul.f32 %v1445_v21, %v6017_v52  ;;  %v1478_v48 = vmul.f32 %v1446_v0, %v6017_v52  ;;  %v1457_v60 = vld [vmem:[%s9550_s10 + $0xd0] sm:$0xff] }
 0xba0   :  { %3742 = vmatpush.bf16.msra.mxu1 %v10037_v39  ;;  %v1458_v39 = vld [vmem:[%s9550_s10 + $0xd8] sm:$0xff] }
 0xba1   :  { %1619 = vst [vmem:[%s9556_s16 + $0xe0] sm:$0xff] %v1587_v56 }
 0xba2   :  { %1620 = vst [vmem:[%s9556_s16 + $0xe8] sm:$0xff] %v1588_v1 }
 0xba3   :  { %3730 = vmatpush.bf16.msra.mxu0 %v10038_v36  ;;  %v1521_v36 = vld [vmem:[%s9546_s6 + $0xd0] sm:$0xff] }
 0xba4   :  { %3743 = vmatpush.bf16.msra.mxu1 %v10039_v15  ;;  %v1573_v15 = vadd.f32 %v1541_v44, %v1477_v57 }
 0xba7   :  { %3731 = vmatpush.bf16.msra.mxu0 %v10040_v41  ;;  %v1489_v41 = vmul.f32 %v1457_v60, %v6017_v52 }
 0xba8   :  { %3744 = vmatpush.bf16.msra.mxu1 %v10041_v51  ;;  %v1490_v51 = vmul.f32 %v1458_v39, %v6017_v52  ;;  %v1518_v39 = vld [vmem:[%s9546_s6 + $0xb8] sm:$0xff] }
 0xbab   :  { %3732 = vmatpush.bf16.msra.mxu0 %v10042_v35  ;;  %v1522_v35 = vld [vmem:[%s9546_s6 + $0xd8] sm:$0xff] }
 0xbac   :  { %3745 = vmatpush.bf16.msra.mxu1 %v10043_v45  ;;  %v1553_v45 = vmul.f32 %v1521_v36, %v6027_v50 }
 0xbaf   :  { %3733 = vmatpush.bf16.msra.mxu0 %v10044_v34  ;;  %v9112_v34 = vpack.c.bf16 %v1588_v1, %v1587_v56 }
 0xbb0   :  { %3746 = vmatpush.bf16.msra.mxu1 %v10045_v62  ;;  %v1574_v62 = vadd.f32 %v1542_v19, %v1478_v48  ;;  %v1538_v48 = vmul.f32 %v1506_v25, %v6027_v50 }
 0xbb1   :  { %3583 = vmatpush.bf16.msrb.mxu3 %v9112_v34 }
 0xbb2   :  { %v9138_v3 = vpack.c.bf16 %v1574_v62, %v1573_v15 }
 0xbb3   :  { %3734 = vmatpush.bf16.msra.mxu0 %v10046_v23  ;;  %v1554_v23 = vmul.f32 %v1522_v35, %v6027_v50 }
 0xbb4   :  { %3747 = vmatpush.bf16.msra.mxu1 %v10047_v12  ;;  %v1443_v12 = vld [vmem:[%s9550_s10 + $0x60] sm:$0xff]  ;;  %3569 = vmatpush.bf16.msrb.mxu2 %v9138_v3 }
 0xbb5   :  { %v1586_v54 = vadd.f32 %v1554_v23, %v1490_v51 }
 0xbb7   :  { %3735 = vmatpush.bf16.msra.mxu0 %v10048_v13  ;;  %v1444_v13 = vld [vmem:[%s9550_s10 + $0x68] sm:$0xff] }
 0xbb8   :  { %3748 = vmatpush.bf16.msra.mxu1 %v10050_v58  ;;  %v10058_v58 = vld [vmem:[#allocation99_spill] sm:$0xff]  ;;  %1605 = vst [vmem:[%s9556_s16 + $0x70] sm:$0xff] %v1573_v15 }
 0xbb9   :  { %1606 = vst [vmem:[%s9556_s16 + $0x78] sm:$0xff] %v1574_v62 }
 0xbbb   :  { %3840 = vmatpush.bf16.msrb.mxu0 %v10049_v40  ;;  %v1507_v40 = vld [vmem:[%s9546_s6 + $0x60] sm:$0xff] }
 0xbbc   :  { %3853 = vmatpush.bf16.msrb.mxu1 %v10051_v47  ;;  %v1585_v47 = vadd.f32 %v1553_v45, %v1489_v41  ;;  %v1539_v49 = vmul.f32 %v1507_v40, %v6027_v50  ;;  %v1550_v41 = vmul.f32 %v1518_v39, %v6027_v50  ;;  %v1503_v45 = vld [vmem:[%s9546_s6 + $0x40] sm:$0xff] }
 0xbbd   :  { %v1535_v40 = vmul.f32 %v1503_v45, %v6027_v50 }
 0xbbe   :  { %v9164_v9 = vpack.c.bf16 %v1586_v54, %v1585_v47 }
 0xbbf   :  { %3841 = vmatpush.bf16.msrb.mxu0 %v10052_v43  ;;  %v1475_v43 = vmul.f32 %v1443_v12, %v6017_v52 }
 0xbc0   :  { %3854 = vmatpush.bf16.msrb.mxu1 %v10053_v38  ;;  %v1476_v38 = vmul.f32 %v1444_v13, %v6017_v52  ;;  %v1455_v42 = vld [vmem:[%s9550_s10 + $0xc0] sm:$0xff]  ;;  %v1456_v61 = vld [vmem:[%s9550_s10 + $0xc8] sm:$0xff]  ;;  %3584 = vmatpush.bf16.msrb.mxu3 %v9164_v9 }
 0xbc1   :  { %1617 = vst [vmem:[%s9556_s16 + $0xd0] sm:$0xff] %v1585_v47  ;;  %v1571_v10 = vadd.f32 %v1539_v49, %v1475_v43  ;;  %v1488_v28 = vmul.f32 %v1456_v61, %v6017_v52  ;;  %v1504_v13 = vld [vmem:[%s9546_s6 + $0x48] sm:$0xff]  ;;  %v1547_v61 = vmul.f32 %v1515_v30, %v6027_v50 }
 0xbc2   :  { %1618 = vst [vmem:[%s9556_s16 + $0xd8] sm:$0xff] %v1586_v54  ;;  %v1572_v7 = vadd.f32 %v1540_v20, %v1476_v38  ;;  %v1536_v47 = vmul.f32 %v1504_v13, %v6027_v50  ;;  %v1511_v13 = vld [vmem:[%s9546_s6 + $0x80] sm:$0xff] }
 0xbc3   :  { %3842 = vmatpush.bf16.msrb.mxu0 %v10054_v16  ;;  %v1519_v16 = vld [vmem:[%s9546_s6 + $0xc0] sm:$0xff]  ;;  %v1584_v57 = vadd.f32 %v1552_v11, %v1488_v28  ;;  %v1501_v28 = vld [vmem:[%s9546_s6 + $0x30] sm:$0xff]  ;;  %v1502_v11 = vld [vmem:[%s9546_s6 + $0x38] sm:$0xff] }
 0xbc4   :  { %3855 = vmatpush.bf16.msrb.mxu1 %v10055_v24  ;;  %v1487_v24 = vmul.f32 %v1455_v42, %v6017_v52  ;;  %v1551_v63 = vmul.f32 %v1519_v16, %v6027_v50  ;;  %v1516_v42 = vld [vmem:[%s9546_s6 + $0xa8] sm:$0xff] }
 0xbc6   :  { %v1583_v37 = vadd.f32 %v1551_v63, %v1487_v24 }
 0xbc7   :  { %3843 = vmatpush.bf16.msrb.mxu0 %v10056_v14  ;;  %v1505_v14 = vld [vmem:[%s9546_s6 + $0x50] sm:$0xff] }
 0xbc8   :  { %3856 = vmatpush.bf16.msrb.mxu1 %v10057_v53  ;;  %v1537_v56 = vmul.f32 %v1505_v14, %v6027_v50  ;;  %v1517_v53 = vld [vmem:[%s9546_s6 + $0xb0] sm:$0xff]  ;;  %v1534_v14 = vmul.f32 %v1502_v11, %v6027_v50 }
 0xbc9   :  { %v1441_v59 = vld [vmem:[%s9550_s10 + $0x50] sm:$0xff]  ;;  %v1442_v29 = vld [vmem:[%s9550_s10 + $0x58] sm:$0xff]  ;;  %v1549_v36 = vmul.f32 %v1517_v53, %v6027_v50 }
 0xbca   :  { %1603 = vst [vmem:[%s9556_s16 + $0x60] sm:$0xff] %v1571_v10  ;;  %v1473_v21 = vmul.f32 %v1441_v59, %v6017_v52  ;;  %v1474_v0 = vmul.f32 %v1442_v29, %v6017_v52  ;;  %v1533_v59 = vmul.f32 %v1501_v28, %v6027_v50 }
 0xbcb   :  { %3844 = vmatpush.bf16.msrb.mxu0 %v10058_v58  ;;  %1604 = vst [vmem:[%s9556_s16 + $0x68] sm:$0xff] %v1572_v7 }
 0xbcc   :  { %3857 = vmatpush.bf16.msrb.mxu1 %v10059_v32  ;;  %v1569_v1 = vadd.f32 %v1537_v56, %v1473_v21  ;;  %v1570_v15 = vadd.f32 %v1538_v48, %v1474_v0  ;;  %v1548_v32 = vmul.f32 %v1516_v42, %v6027_v50  ;;  %v1513_v0 = vld [vmem:[%s9546_s6 + $0x90] sm:$0xff]  ;;  %v1514_v48 = vld [vmem:[%s9546_s6 + $0x98] sm:$0xff] }
 0xbcd   :  { %v1546_v53 = vmul.f32 %v1514_v48, %v6027_v50 }
 0xbcf   :  { %3845 = vmatpush.bf16.msrb.mxu0 %v8761_v8  ;;  %v9190_v8 = vpack.c.bf16 %v1572_v7, %v1571_v10 }
 0xbd0   :  { %3858 = vmatpush.bf16.msrb.mxu1 %v8794_v18  ;;  %v9216_v18 = vpack.c.bf16 %v1584_v57, %v1583_v37 }
 0xbd1   :  { %3570 = vmatpush.bf16.msrb.mxu2 %v9190_v8 }
 0xbd2   :  { %v1453_v4 = vld [vmem:[%s9550_s10 + $0xb0] sm:$0xff]  ;;  %v1454_v44 = vld [vmem:[%s9550_s10 + $0xb8] sm:$0xff]  ;;  %3585 = vmatpush.bf16.msrb.mxu3 %v9216_v18 }
 0xbd3   :  { %1615 = vst [vmem:[%s9556_s16 + $0xc0] sm:$0xff] %v1583_v37  ;;  %v1485_v19 = vmul.f32 %v1453_v4, %v6017_v52  ;;  %v1486_v60 = vmul.f32 %v1454_v44, %v6017_v52  ;;  %3846 = vmatpush.bf16.msrb.mxu0 %v8887_v46  ;;  %v9242_v46 = vpack.c.bf16 %v1570_v15, %v1569_v1 }
 0xbd4   :  { %1616 = vst [vmem:[%s9556_s16 + $0xc8] sm:$0xff] %v1584_v57  ;;  %3859 = vmatpush.bf16.msrb.mxu1 %v8912_v27  ;;  %v1545_v4 = vmul.f32 %v1513_v0, %v6027_v50 }
 0xbd5   :  { %v1581_v62 = vadd.f32 %v1549_v36, %v1485_v19  ;;  %v1582_v58 = vadd.f32 %v1550_v41, %v1486_v60  ;;  %3571 = vmatpush.bf16.msrb.mxu2 %v9242_v46  ;;  %v1499_v60 = vld [vmem:[%s9546_s6 + $0x20] sm:$0xff]  ;;  %v1500_v41 = vld [vmem:[%s9546_s6 + $0x28] sm:$0xff] }
 0xbd7   :  { %v9268_v27 = vpack.c.bf16 %v1582_v58, %v1581_v62  ;;  %3847 = vmatpush.bf16.msrb.mxu0 %v8957_v55  ;;  %v3476_v11 = vpop.f32.mrf.mxu0 }
 0xbd8   :  { %3860 = vmatpush.bf16.msrb.mxu1 %v8967_v22 }
 0xbd9   :  { %3586 = vmatpush.bf16.msrb.mxu3 %v9268_v27 }
 0xbdb   :  { %v1439_v51 = vld [vmem:[%s9550_s10 + $0x40] sm:$0xff]  ;;  %v1440_v35 = vld [vmem:[%s9550_s10 + $0x48] sm:$0xff] }
 0xbdc   :  { %1601 = vst [vmem:[%s9556_s16 + $0x50] sm:$0xff] %v1569_v1  ;;  %v1471_v23 = vmul.f32 %v1439_v51, %v6017_v52  ;;  %v1472_v12 = vmul.f32 %v1440_v35, %v6017_v52  ;;  %v1531_v51 = vmul.f32 %v1499_v60, %v6027_v50  ;;  %v3463_v60 = vpop.f32.mrf.mxu3 }
 0xbdd   :  { %1602 = vst [vmem:[%s9556_s16 + $0x58] sm:$0xff] %v1570_v15 }
 0xbde   :  { %v1567_v49 = vadd.f32 %v1535_v40, %v1471_v23  ;;  %v1568_v16 = vadd.f32 %v1536_v47, %v1472_v12 }
 0xbe0   :  { %v9294_v55 = vpack.c.bf16 %v1568_v16, %v1567_v49 }
 0xbe2   :  { %3572 = vmatpush.bf16.msrb.mxu2 %v9294_v55 }
 0xbe4   :  { %v1451_v43 = vld [vmem:[%s9550_s10 + $0xa0] sm:$0xff]  ;;  %v1452_v38 = vld [vmem:[%s9550_s10 + $0xa8] sm:$0xff] }
 0xbe5   :  { %1613 = vst [vmem:[%s9556_s16 + $0xb0] sm:$0xff] %v1581_v62  ;;  %v1483_v54 = vmul.f32 %v1451_v43, %v6017_v52  ;;  %v1484_v20 = vmul.f32 %v1452_v38, %v6017_v52  ;;  %v1532_v62 = vmul.f32 %v1500_v41, %v6027_v50  ;;  %v1512_v43 = vld [vmem:[%s9546_s6 + $0x88] sm:$0xff]  ;;  %v1543_v38 = vmul.f32 %v1511_v13, %v6027_v50 }
 0xbe6   :  { %1614 = vst [vmem:[%s9556_s16 + $0xb8] sm:$0xff] %v1582_v58 }
 0xbe7   :  { %v1579_v6 = vadd.f32 %v1547_v61, %v1483_v54  ;;  %v1580_v29 = vadd.f32 %v1548_v32, %v1484_v20  ;;  %v1544_v54 = vmul.f32 %v1512_v43, %v6027_v50  ;;  %v1497_v61 = vld [vmem:[%s9546_s6 + $0x10] sm:$0xff] }
 0xbe8   :  { %v1529_v28 = vmul.f32 %v1497_v61, %v6027_v50  ;;  %v10064_v61 = vld [vmem:[#allocation45_spill] sm:$0xff] }
 0xbe9   :  { %v9320_v22 = vpack.c.bf16 %v1580_v29, %v1579_v6 }
 0xbeb   :  { %3587 = vmatpush.bf16.msrb.mxu3 %v9320_v22 }
 0xbed   :  { %v1437_v10 = vld [vmem:[%s9550_s10 + $0x30] sm:$0xff]  ;;  %v1438_v24 = vld [vmem:[%s9550_s10 + $0x38] sm:$0xff] }
 0xbee   :  { %1599 = vst [vmem:[%s9556_s16 + $0x40] sm:$0xff] %v1567_v49  ;;  %v1469_v63 = vmul.f32 %v1437_v10, %v6017_v52  ;;  %v1470_v7 = vmul.f32 %v1438_v24, %v6017_v52  ;;  %v1498_v24 = vld [vmem:[%s9546_s6 + $0x18] sm:$0xff] }
 0xbef   :  { %1600 = vst [vmem:[%s9556_s16 + $0x48] sm:$0xff] %v1568_v16 }
 0xbf0   :  { %v1565_v25 = vadd.f32 %v1533_v59, %v1469_v63  ;;  %v1566_v44 = vadd.f32 %v1534_v14, %v1470_v7  ;;  %v1530_v7 = vmul.f32 %v1498_v24, %v6027_v50  ;;  %v10066_v24 = vld [vmem:[#allocation75_spill] sm:$0xff] }
 0xbf2   :  { %v9345_v35 = vpack.c.bf16 %v1566_v44, %v1565_v25 }
 0xbf4   :  { %3573 = vmatpush.bf16.msrb.mxu2 %v9345_v35 }
 0xbf6   :  { %v1449_v37 = vld [vmem:[%s9550_s10 + $0x90] sm:$0xff]  ;;  %v1450_v21 = vld [vmem:[%s9550_s10 + $0x98] sm:$0xff] }
 0xbf7   :  { %1611 = vst [vmem:[%s9556_s16 + $0xa0] sm:$0xff] %v1579_v6  ;;  %v1481_v56 = vmul.f32 %v1449_v37, %v6017_v52  ;;  %v1482_v57 = vmul.f32 %v1450_v21, %v6017_v52 }
 0xbf8   :  { %1612 = vst [vmem:[%s9556_s16 + $0xa8] sm:$0xff] %v1580_v29  ;;  %v3450_v29 = vpop.f32.mrf.mxu2 }
 0xbf9   :  { %v1577_v39 = vadd.f32 %v1545_v4, %v1481_v56  ;;  %v1578_v45 = vadd.f32 %v1546_v53, %v1482_v57  ;;  %v3489_v56 = vpop.f32.mrf.mxu1  ;;  %v1496_v4 = vld [vmem:[%s9546_s6 + $0x8] sm:$0xff] }
 0xbfa   :  { %v3490_v53 = vadd.f32 %v3489_v56, %v3476_v11 }
 0xbfb   :  { %v9370_v30 = vpack.c.bf16 %v1578_v45, %v1577_v39 }
 0xbfd   :  { %3588 = vmatpush.bf16.msrb.mxu3 %v9370_v30 }
 0xbff   :  { %v1435_v1 = vld [vmem:[%s9550_s10 + $0x20] sm:$0xff]  ;;  %v1436_v19 = vld [vmem:[%s9550_s10 + $0x28] sm:$0xff] }
 0xc00   :  { %1597 = vst [vmem:[%s9556_s16 + $0x30] sm:$0xff] %v1565_v25  ;;  %v1467_v36 = vmul.f32 %v1435_v1, %v6017_v52  ;;  %v1468_v15 = vmul.f32 %v1436_v19, %v6017_v52  ;;  %v1495_v25 = vld [vmem:[%s9546_s6] sm:$0xff]  ;;  %v1528_v19 = vmul.f32 %v1496_v4, %v6027_v50 }
 0xc01   :  { %1598 = vst [vmem:[%s9556_s16 + $0x38] sm:$0xff] %v1566_v44  ;;  %v1527_v44 = vmul.f32 %v1495_v25, %v6027_v50 }
 0xc02   :  { %v1563_v40 = vadd.f32 %v1531_v51, %v1467_v36  ;;  %v1564_v49 = vadd.f32 %v1532_v62, %v1468_v15  ;;  %v3499_v36 = vrot.slane %v3490_v53, 4  ;;  %v3464_v15 = vadd.f32 %v3463_v60, %v3450_v29  ;;  %v3478_v62 = vpop.f32.mrf.mxu0  ;;  %v10068_v29 = vld [vmem:[#allocation52_spill] sm:$0xff] }
 0xc04   :  { %v9395_v6 = vpack.c.bf16 %v1564_v49, %v1563_v40  ;;  %v3500_v51 = vadd.f32 %v3499_v36, %v3490_v53  ;;  %v10073_v36 = vld [vmem:[#allocation53_spill] sm:$0xff] }
 0xc06   :  { %3574 = vmatpush.bf16.msrb.mxu2 %v9395_v6 }
 0xc08   :  { %v1447_v23 = vld [vmem:[%s9550_s10 + $0x80] sm:$0xff]  ;;  %v1448_v12 = vld [vmem:[%s9550_s10 + $0x88] sm:$0xff] }
 0xc09   :  { %1609 = vst [vmem:[%s9556_s16 + $0x90] sm:$0xff] %v1577_v39  ;;  %v1479_v58 = vmul.f32 %v1447_v23, %v6017_v52  ;;  %v1480_v47 = vmul.f32 %v1448_v12, %v6017_v52  ;;  %v10060_v39 = vld [vmem:[#allocation44_spill] sm:$0xff]  ;;  %v10061_v23 = vld [vmem:[#allocation46_spill] sm:$0xff]  ;;  %v3501_v12 = vrot.slane %v3500_v51, 2 }
 0xc0a   :  { %1610 = vst [vmem:[%s9556_s16 + $0x98] sm:$0xff] %v1578_v45  ;;  %v3493_v45 = vrot.slane %v3464_v15, 4 }
 0xc0b   :  { %v1575_v16 = vadd.f32 %v1543_v38, %v1479_v58  ;;  %v1576_v63 = vadd.f32 %v1544_v54, %v1480_v47  ;;  %v3491_v58 = vpop.f32.mrf.mxu1  ;;  %v10062_v47 = vld [vmem:[#allocation43_spill] sm:$0xff]  ;;  %v3502_v43 = vadd.f32 %v3501_v12, %v3500_v51  ;;  %v10063_v54 = vld [vmem:[#allocation48_spill] sm:$0xff]  ;;  %v10074_v51 = vld [vmem:[#allocation25_spill] sm:$0xff] }
 0xc0c   :  { %v3494_v13 = vadd.f32 %v3493_v45, %v3464_v15 }
 0xc0d   :  { %v9405_v14 = vpack.c.bf16 %v1576_v63, %v1575_v16 }
 0xc0e   :  { %v3495_v38 = vrot.slane %v3494_v13, 2 }
 0xc0f   :  { %3589 = vmatpush.bf16.msrb.mxu3 %v9405_v14 }
 0xc11   :  { %v1433_v20 = vld [vmem:[%s9550_s10 + $0x10] sm:$0xff]  ;;  %v1434_v42 = vld [vmem:[%s9550_s10 + $0x18] sm:$0xff] }
 0xc12   :  { %1595 = vst [vmem:[%s9556_s16 + $0x20] sm:$0xff] %v1563_v40  ;;  %v1465_v32 = vmul.f32 %v1433_v20, %v6017_v52  ;;  %v1466_v10 = vmul.f32 %v1434_v42, %v6017_v52  ;;  %v3452_v40 = vpop.f32.mrf.mxu2  ;;  %v3503_v20 = vrot.slane %v3502_v43, 1  ;;  %v3496_v42 = vadd.f32 %v3495_v38, %v3494_v13 }
 0xc13   :  { %1596 = vst [vmem:[%s9556_s16 + $0x28] sm:$0xff] %v1564_v49  ;;  %3662 = vmatpush.bf16.msra.mxu3 %v10060_v39  ;;  %v3465_v49 = vpop.f32.mrf.mxu3  ;;  %v10072_v39 = vld [vmem:[#allocation54_spill] sm:$0xff] }
 0xc14   :  { %1607 = vst [vmem:[%s9556_s16 + $0x80] sm:$0xff] %v1575_v16  ;;  %v1561_v59 = vadd.f32 %v1529_v28, %v1465_v32  ;;  %v1562_v37 = vadd.f32 %v1530_v7, %v1466_v10  ;;  %v3504_v16 = vadd.f32 %v3503_v20, %v3502_v43  ;;  %v3497_v32 = vrot.slane %v3496_v42, 1  ;;  %v10065_v10 = vld [vmem:[#allocation50_spill] sm:$0xff]  ;;  %v10067_v7 = vld [vmem:[#allocation47_spill] sm:$0xff] }
 0xc15   :  { %1608 = vst [vmem:[%s9556_s16 + $0x88] sm:$0xff] %v1576_v63 }
 0xc16   :  { %v9429_v1 = vpack.c.bf16 %v1562_v37, %v1561_v59  ;;  %v3506_v28 = vmul.f32 %v3504_v16, %v10066_v24  ;;  %v3498_v63 = vadd.f32 %v3497_v32, %v3496_v42 }
 0xc17   :  { %3663 = vmatpush.bf16.msra.mxu3 %v10061_v23  ;;  %v10075_v23 = vld [vmem:[#allocation20_spill] sm:$0xff] }
 0xc18   :  { %3575 = vmatpush.bf16.msrb.mxu2 %v9429_v1  ;;  %v3508_v11 = vsub.f32 %v3490_v53, %v3506_v28 }
 0xc1b   :  { %3664 = vmatpush.bf16.msra.mxu3 %v10063_v54 }
 0xc1c   :  { %v1431_v21 = vld [vmem:[%s9550_s10] sm:$0xff]  ;;  %v1432_v0 = vld [vmem:[%s9550_s10 + $0x8] sm:$0xff] }
 0xc1d   :  { %1593 = vst [vmem:[%s9556_s16 + $0x10] sm:$0xff] %v1561_v59  ;;  %v1463_v57 = vmul.f32 %v1431_v21, %v6017_v52  ;;  %v1464_v48 = vmul.f32 %v1432_v0, %v6017_v52  ;;  %v3505_v59 = vmul.f32 %v3498_v63, %v10066_v24  ;;  %v10069_v0 = vld [vmem:[#allocation49_spill] sm:$0xff] }
 0xc1e   :  { %1594 = vst [vmem:[%s9556_s16 + $0x18] sm:$0xff] %v1562_v37  ;;  %v3510_v37 = vmul.f32 %v3508_v11, %v3508_v11 }
 0xc1f   :  { %v1559_v52 = vadd.f32 %v1527_v44, %v1463_v57  ;;  %v1560_v41 = vadd.f32 %v1528_v19, %v1464_v48  ;;  %3665 = vmatpush.bf16.msra.mxu3 %v10065_v10  ;;  %v3507_v21 = vsub.f32 %v3464_v15, %v3505_v59  ;;  %v10070_v57 = vld [vmem:[#allocation19_spill] sm:$0xff] }
 0xc20   :  { %v3517_v25 = vrot.slane %v3510_v37, 4  ;;  %v10071_v44 = vld [vmem:[#allocation51_spill] sm:$0xff] }
 0xc21   :  { %1591 = vst [vmem:[%s9556_s16] sm:$0xff] %v1559_v52  ;;  %v9440_v50 = vpack.c.bf16 %v1560_v41, %v1559_v52  ;;  %v3509_v56 = vmul.f32 %v3507_v21, %v3507_v21 }
 0xc22   :  { %1592 = vst [vmem:[%s9556_s16 + $0x8] sm:$0xff] %v1560_v41  ;;  %v3518_v48 = vadd.f32 %v3517_v25, %v3510_v37  ;;  %s4328_s16 = smov [#allocation8]  }
 0xc23   :  { %3576 = vmatpush.bf16.msrb.mxu2 %v9440_v50  ;;  %3666 = vmatpush.bf16.msra.mxu3 %v10068_v29  ;;  %v3511_v4 = vrot.slane %v3509_v56, 4  ;;  %s4144_s26 = sshll.u32 %s4328_s16, 4  ;;  %s4145_s26 = int_to_ptr.vmem [resolvable:$true] %s4144_s26 }
 0xc24   :  { %v3519_v19 = vrot.slane %v3518_v48, 2 }
 0xc25   :  { %v3512_v60 = vadd.f32 %v3511_v4, %v3509_v56  ;;  %v10077_v4 = vld [vmem:[#allocation56_spill] sm:$0xff] }
 0xc26   :  { %v3520_v53 = vadd.f32 %v3519_v19, %v3518_v48  ;;  %v10079_v19 = vld [vmem:[#allocation27_spill] sm:$0xff] }
 0xc27   :  { %3649 = vmatpush.bf16.msra.mxu2 %v10062_v47  ;;  %3667 = vmatpush.bf16.msra.mxu3 %v10070_v57  ;;  %v3513_v52 = vrot.slane %v3512_v60, 2  ;;  %v10076_v47 = vld [vmem:[#allocation55_spill] sm:$0xff] }
 0xc28   :  { %v3521_v41 = vrot.slane %v3520_v53, 1 }
 0xc29   :  { %v3514_v15 = vadd.f32 %v3513_v52, %v3512_v60  ;;  %v10080_v60 = vld [vmem:[#allocation57_spill] sm:$0xff]  ;;  %v10085_v52 = vld [vmem:[#allocation15_spill] sm:$0xff] }
 0xc2a   :  { %v3522_v45 = vadd.f32 %v3521_v41, %v3520_v53  ;;  %v10083_v53 = vld [vmem:[#allocation62_spill] sm:$0xff] }
 0xc2b   :  { %3650 = vmatpush.bf16.msra.mxu2 %v10064_v61  ;;  %3668 = vmatpush.bf16.msra.mxu3 %v10072_v39  ;;  %v3515_v62 = vrot.slane %v3514_v15, 1  ;;  %v10081_v39 = vld [vmem:[#allocation28_spill] sm:$0xff]  ;;  %v10087_v41 = vld [vmem:[#allocation14_spill] sm:$0xff] }
 0xc2c   :  { %v3524_v12 = vmul.f32 %v3522_v45, %v10066_v24  ;;  %v10090_v45 = vld [vmem:[#allocation30_spill] sm:$0xff] }
 0xc2d   :  { %v3516_v13 = vadd.f32 %v3515_v62, %v3514_v15  ;;  %v10088_v15 = vld [vmem:[#allocation29_spill] sm:$0xff]  ;;  %v10091_v62 = vld [vmem:[#allocation70_spill] sm:$0xff] }
 0xc2e   :  { %v3526_v40 = vadd.f32 1e-05, %v3524_v12  ;;  %v10093_v12 = vld [vmem:[#allocation34_spill] sm:$0xff] }
 0xc2f   :  { %3651 = vmatpush.bf16.msra.mxu2 %v10067_v7  ;;  %3669 = vmatpush.bf16.msra.mxu3 %v10074_v51  ;;  %v3523_v58 = vmul.f32 %v3516_v13, %v10066_v24  ;;  %v10089_v51 = vld [vmem:[#allocation66_spill] sm:$0xff] }
 0xc30   :  { %4211 = vrsqrt.f32 %v3526_v40  ;;  %vm3543_vm8 = vweird.f32 %v3526_v40  ;;  %v10094_v13 = vld [vmem:[#allocation90_spill] sm:$0xff] }
 0xc31   :  { %v3525_v43 = vadd.f32 1e-05, %v3523_v58  ;;  %v10096_v58 = vld [vmem:[#allocation17_spill] sm:$0xff] }
 0xc33   :  { %3652 = vmatpush.bf16.msra.mxu2 %v10069_v0  ;;  %4213 = vrsqrt.f32 %v3525_v43  ;;  %vm3533_vm11 = vweird.f32 %v3525_v43 }
 0xc36   :  { %v4212_v38 = vpop.eup %4211 }
 0xc37   :  { %3653 = vmatpush.bf16.msra.mxu2 %v10071_v44  ;;  %v3538_v49 = vmul.f32 %v4212_v38, %v3526_v40  ;;  %vm3544_vm7 = vweird.f32 %v4212_v38  ;;  %v10078_v44 = vld [vmem:[#allocation26_spill] sm:$0xff]  ;;  %v10095_v40 = vld [vmem:[#allocation33_spill] sm:$0xff] }
 0xc38   :  { %vm3545_vm10 = vmor %vm3543_vm8, %vm3544_vm7 }
 0xc39   :  { %v4214_v54 = vpop.eup %4213  ;;  %v3539_v20 = vmul.f32 %v4212_v38, %v3538_v49  ;;  %v10100_v49 = vld [vmem:[#allocation76_spill] sm:$0xff] }
 0xc3a   :  { %v3528_v42 = vmul.f32 %v4214_v54, %v3525_v43  ;;  %vm3534_vm9 = vweird.f32 %v4214_v54  ;;  %v10098_v43 = vld [vmem:[#allocation16_spill] sm:$0xff] }
 0xc3b   :  { %3654 = vmatpush.bf16.msra.mxu2 %v10073_v36  ;;  %v3540_v61 = vmul.f32 0.5, %v3539_v20  ;;  %vm3535_vm12 = vmor %vm3533_vm11, %vm3534_vm9  ;;  %v10086_v36 = vld [vmem:[#allocation65_spill] sm:$0xff]  ;;  %v10102_v20 = vld [vmem:[#allocation84_spill] sm:$0xff] }
 0xc3c   :  { %v3529_v16 = vmul.f32 %v4214_v54, %v3528_v42  ;;  %v10103_v42 = vld [vmem:[#allocation91_spill] sm:$0xff] }
 0xc3d   :  { %v3541_v32 = vsub.f32 1.5, %v3540_v61  ;;  %v10104_v61 = vld [vmem:[#allocation93_spill] sm:$0xff] }
 0xc3e   :  { %v3530_v10 = vmul.f32 0.5, %v3529_v16  ;;  %v10105_v16 = vld [vmem:[#allocation94_spill] sm:$0xff] }
 0xc3f   :  { %3655 = vmatpush.bf16.msra.mxu2 %v10075_v23  ;;  %v3542_v28 = vmul.f32 %v4212_v38, %v3541_v32  ;;  %v10092_v23 = vld [vmem:[#allocation69_spill] sm:$0xff] }
 0xc40   :  { %v3531_v63 = vsub.f32 1.5, %v3530_v10  ;;  %v10106_v32 = vld [vmem:[#allocation97_spill] sm:$0xff] }
 0xc41   :  { %v3546_v7 = vsel %vm3545_vm10, %v4212_v38, %v3542_v28  ;;  %v10099_v38 = vld [vmem:[#allocation77_spill] sm:$0xff] }
 0xc42   :  { %v3532_v59 = vmul.f32 %v4214_v54, %v3531_v63  ;;  %v3548_v29 = vmul.f32 %v3546_v7, %v3508_v11  ;;  %v10082_v11 = vld [vmem:[#allocation61_spill] sm:$0xff] }
 0xc43   :  { %3656 = vmatpush.bf16.msra.mxu2 %v10076_v47  ;;  %v10097_v47 = vld [vmem:[#allocation68_spill] sm:$0xff]  ;;  %v10107_v10 = vld [vmem:[#allocation101_spill] sm:$0xff] }
 0xc44   :  { %v3536_v37 = vsel %vm3535_vm12, %v4214_v54, %v3532_v59  ;;  %v3550_v0 = vmax.f32 %v3548_v29, 0.0  ;;  %v10101_v54 = vld [vmem:[#allocation85_spill] sm:$0xff] }
 0xc45   :  { %v3547_v25 = vmul.f32 %v3536_v37, %v3507_v21  ;;  %v10084_v21 = vld [vmem:[#allocation58_spill] sm:$0xff] }
 0xc46   :  { %v3552_v56 = vpack.c.bf16 %v3550_v0, %v3550_v0 }
 0xc47   :  { %v3549_v57 = vmax.f32 %v3547_v25, 0.0 }
 0xc48   :  { %3590 = vmatmul.bf16.vlgmr.msrb.gmra.mxu3 %v3552_v56 }
 0xc49   :  { %v3551_v48 = vpack.c.bf16 %v3549_v57, %v3549_v57  ;;  %3714 = vmatpush.bf16.msrb.mxu3 %v10077_v4 }
 0xc4b   :  { %3577 = vmatmul.bf16.vlgmr.msrb.gmra.mxu2 %v3551_v48 }
 0xc4c   :  { %3701 = vmatpush.bf16.msrb.mxu2 %v10078_v44 }
 0xc4d   :  { %3715 = vmatpush.bf16.msrb.mxu3 %v10079_v19 }
 0xc50   :  { %3702 = vmatpush.bf16.msrb.mxu2 %v10080_v60 }
 0xc51   :  { %3716 = vmatpush.bf16.msrb.mxu3 %v10081_v39 }
 0xc54   :  { %3703 = vmatpush.bf16.msrb.mxu2 %v10082_v11 }
 0xc55   :  { %3717 = vmatpush.bf16.msrb.mxu3 %v10083_v53 }
 0xc58   :  { %3704 = vmatpush.bf16.msrb.mxu2 %v10084_v21  ;;  %3670 = vmatmul.bf16.vlgmr.msra.gmra.mxu3 %v10085_v52 }
 0xc59   :  { %3718 = vmatpush.bf16.msrb.mxu3 %v10086_v36 }
 0xc5b   :  { %3657 = vmatmul.bf16.vlgmr.msra.gmra.mxu2 %v10087_v41 }
 0xc5c   :  { %3705 = vmatpush.bf16.msrb.mxu2 %v10088_v15 }
 0xc5d   :  { %3719 = vmatpush.bf16.msrb.mxu3 %v10089_v51 }
 0xc60   :  { %3706 = vmatpush.bf16.msrb.mxu2 %v10090_v45 }
 0xc61   :  { %3720 = vmatpush.bf16.msrb.mxu3 %v10091_v62 }
 0xc64   :  { %3707 = vmatpush.bf16.msrb.mxu2 %v10092_v23 }
 0xc65   :  { %3721 = vmatpush.bf16.msrb.mxu3 %v10093_v12 }
 0xc68   :  { %3708 = vmatpush.bf16.msrb.mxu2 %v10095_v40  ;;  %3722 = vmatmul.bf16.vlgmr.msrb.gmra.mxu3 %v10096_v58 }
 0xc69   :  { %3827 = vmatpush.bf16.msra.mxu3 %v10094_v13 }
 0xc6b   :  { %3709 = vmatmul.bf16.vlgmr.msrb.gmra.mxu2 %v10098_v43 }
 0xc6c   :  { %3814 = vmatpush.bf16.msra.mxu2 %v10097_v47 }
 0xc6d   :  { %3828 = vmatpush.bf16.msra.mxu3 %v10099_v38 }
 0xc70   :  { %3815 = vmatpush.bf16.msra.mxu2 %v10100_v49 }
 0xc71   :  { %3829 = vmatpush.bf16.msra.mxu3 %v10101_v54 }
 0xc74   :  { %3816 = vmatpush.bf16.msra.mxu2 %v10102_v20 }
 0xc75   :  { %3830 = vmatpush.bf16.msra.mxu3 %v10103_v42 }
 0xc78   :  { %3817 = vmatpush.bf16.msra.mxu2 %v10104_v61 }
 0xc79   :  { %3831 = vmatpush.bf16.msra.mxu3 %v10105_v16 }
 0xc7c   :  { %3818 = vmatpush.bf16.msra.mxu2 %v10106_v32 }
 0xc7d   :  { %3832 = vmatpush.bf16.msra.mxu3 %v8733_v5  ;;  %v3645_v5 = vpop.f32.mrf.mxu1 }
 0xc80   :  { %3819 = vmatpush.bf16.msra.mxu2 %v8709_v26  ;;  %v3632_v26 = vpop.f32.mrf.mxu0 }
 0xc81   :  { %3833 = vmatpush.bf16.msra.mxu3 %v8861_v2 }
 0xc84   :  { %3820 = vmatpush.bf16.msra.mxu2 %v10107_v10 }
 0xc85   :  { %3834 = vmatpush.bf16.msra.mxu3 %v8947_v31 }
 0xc88   :  { %3821 = vmatpush.bf16.msra.mxu2 %v8925_v17  ;;  %v3634_v2 = vpop.f32.mrf.mxu0  ;;  %v3647_v17 = vpop.f32.mrf.mxu1 }
 0xc89   :  { %3939 = vmatpush.bf16.msrb.mxu3 %v9070_v33 }
 0xc8c   :  { %3926 = vmatpush.bf16.msrb.mxu2 %v9138_v3 }
 0xc8d   :  { %3940 = vmatpush.bf16.msrb.mxu3 %v9112_v34 }
 0xc90   :  { %3927 = vmatpush.bf16.msrb.mxu2 %v9190_v8  ;;  %v3684_v31 = vpop.f32.mrf.mxu0  ;;  %v3697_v33 = vpop.f32.mrf.mxu1 }
 0xc91   :  { %3941 = vmatpush.bf16.msrb.mxu3 %v9164_v9 }
 0xc94   :  { %3928 = vmatpush.bf16.msrb.mxu2 %v9242_v46 }
 0xc95   :  { %3942 = vmatpush.bf16.msrb.mxu3 %v9216_v18 }
 0xc98   :  { %3929 = vmatpush.bf16.msrb.mxu2 %v9294_v55  ;;  %v3686_v9 = vpop.f32.mrf.mxu0  ;;  %v3699_v18 = vpop.f32.mrf.mxu1 }
 0xc99   :  { %3943 = vmatpush.bf16.msrb.mxu3 %v9268_v27 }
 0xc9c   :  { %3930 = vmatpush.bf16.msrb.mxu2 %v9345_v35  ;;  %v3646_v35 = vadd.f32 %v3645_v5, %v3632_v26 }
 0xc9d   :  { %3944 = vmatpush.bf16.msrb.mxu3 %v9320_v22 }
 0xca0   :  { %3931 = vmatpush.bf16.msrb.mxu2 %v9395_v6 }
 0xca1   :  { %3945 = vmatpush.bf16.msrb.mxu3 %v9370_v30 }
 0xca4   :  { %3932 = vmatpush.bf16.msrb.mxu2 %v9429_v1 }
 0xca5   :  { %3946 = vmatpush.bf16.msrb.mxu3 %v9405_v14 }
 0xca8   :  { %3933 = vmatpush.bf16.msrb.mxu2 %v9440_v50 }
 0xccb   :  { %v3591_v34 = vpop.f32.mrf.mxu3 }
 0xcce   :  { %v3578_v3 = vpop.f32.mrf.mxu2 }
 0xccf   :  { %v9514_v8 = vadd.f32 %v3591_v34, %v3578_v3 }
 0xcd3   :  { %v3593_v46 = vpop.f32.mrf.mxu3 }
 0xcd6   :  { %v3580_v27 = vpop.f32.mrf.mxu2 }
 0xcdb   :  { %v3671_v55 = vpop.f32.mrf.mxu3 }
 0xcde   :  { %v3658_v22 = vpop.f32.mrf.mxu2 }
 0xcdf   :  { %v3659_v30 = vadd.f32 %v3658_v22, %v3646_v35 }
 0xce1   :  { %v3672_v14 = vadd.f32 %v3671_v55, %v3659_v30 }
 0xce3   :  { %v3673_v6 = vpop.f32.mrf.mxu3  ;;  %v3685_v50 = vadd.f32 %v3684_v31, %v3672_v14 }
 0xce5   :  { %v3698_v63 = vadd.f32 %v3697_v33, %v3685_v50 }
 0xce6   :  { %v3660_v1 = vpop.f32.mrf.mxu2 }
 0xceb   :  { %v3723_v28 = vpop.f32.mrf.mxu3 }
 0xcee   :  { %v3710_v7 = vpop.f32.mrf.mxu2 }
 0xcef   :  { %v3711_v59 = vadd.f32 %v3710_v7, %v3698_v63 }
 0xcf1   :  { %v3724_v29 = vadd.f32 %v3723_v28, %v3711_v59 }
 0xcf3   :  { %v3727_v37 = vpack.c.bf16 %v3724_v29, %v3724_v29  ;;  %v3725_v0 = vpop.f32.mrf.mxu3 }
 0xcf5   :  { %3736 = vmatmul.bf16.vlgmr.msra.gmra.mxu0 %v3727_v37  ;;  %3749 = vmatmul.bf16.vlgmr.msra.gmra.mxu1 %v3727_v37 }
 0xcf6   :  { %v3712_v25 = vpop.f32.mrf.mxu2 }
 0xd72   :  { %v3737_v56 = vpop.f32.mrf.mxu0  ;;  %v3750_v57 = vpop.f32.mrf.mxu1 }
 0xd73   :  { %v3754_v48 = vrot.slane %v3737_v56, 4  ;;  %v3760_v4 = vrot.slane %v3750_v57, 4 }
 0xd75   :  { %v3755_v44 = vadd.f32 %v3754_v48, %v3737_v56  ;;  %v3761_v19 = vadd.f32 %v3760_v4, %v3750_v57 }
 0xd77   :  { %v3756_v60 = vrot.slane %v3755_v44, 2  ;;  %v3762_v39 = vrot.slane %v3761_v19, 2 }
 0xd79   :  { %v3757_v11 = vadd.f32 %v3756_v60, %v3755_v44  ;;  %v3763_v53 = vadd.f32 %v3762_v39, %v3761_v19 }
 0xd7a   :  { %v3739_v21 = vpop.f32.mrf.mxu0  ;;  %v3752_v52 = vpop.f32.mrf.mxu1 }
 0xd7b   :  { %v3758_v36 = vrot.slane %v3757_v11, 1  ;;  %v3764_v41 = vrot.slane %v3763_v53, 1 }
 0xd7d   :  { %v3759_v15 = vadd.f32 %v3758_v36, %v3757_v11  ;;  %v3765_v51 = vadd.f32 %v3764_v41, %v3763_v53 }
 0xd7f   :  { %v3766_v45 = vmul.f32 %v3759_v15, %v10066_v24  ;;  %v3767_v62 = vmul.f32 %v3765_v51, %v10066_v24 }
 0xd81   :  { %v3768_v23 = vsub.f32 %v3737_v56, %v3766_v45  ;;  %v3769_v12 = vsub.f32 %v3750_v57, %v3767_v62 }
 0xd83   :  { %v3770_v13 = vmul.f32 %v3768_v23, %v3768_v23  ;;  %v3771_v40 = vmul.f32 %v3769_v12, %v3769_v12 }
 0xd85   :  { %v3772_v58 = vrot.slane %v3770_v13, 4  ;;  %v3778_v47 = vrot.slane %v3771_v40, 4 }
 0xd87   :  { %v3773_v43 = vadd.f32 %v3772_v58, %v3770_v13  ;;  %v3779_v38 = vadd.f32 %v3778_v47, %v3771_v40 }
 0xd89   :  { %v3774_v49 = vrot.slane %v3773_v43, 2  ;;  %v3780_v54 = vrot.slane %v3779_v38, 2 }
 0xd8b   :  { %v3775_v20 = vadd.f32 %v3774_v49, %v3773_v43  ;;  %v3781_v42 = vadd.f32 %v3780_v54, %v3779_v38 }
 0xd8d   :  { %v3776_v61 = vrot.slane %v3775_v20, 1  ;;  %v3782_v16 = vrot.slane %v3781_v42, 1 }
 0xd8f   :  { %v3777_v32 = vadd.f32 %v3776_v61, %v3775_v20  ;;  %v3783_v10 = vadd.f32 %v3782_v16, %v3781_v42 }
 0xd91   :  { %v3784_v26 = vmul.f32 %v3777_v32, %v10066_v24  ;;  %v3785_v5 = vmul.f32 %v3783_v10, %v10066_v24 }
 0xd93   :  { %v3786_v2 = vadd.f32 1e-05, %v3784_v26  ;;  %v3787_v17 = vadd.f32 1e-05, %v3785_v5 }
 0xd95   :  { %4215 = vrsqrt.f32 %v3786_v2  ;;  %vm3794_vm15 = vweird.f32 %v3786_v2  ;;  %vm3804_vm1 = vweird.f32 %v3787_v17 }
 0xd96   :  { %4217 = vrsqrt.f32 %v3787_v17 }
 0xd9b   :  { %v4216_v31 = vpop.eup %4215 }
 0xd9c   :  { %v4218_v33 = vpop.eup %4217  ;;  %v3789_v34 = vmul.f32 %v4216_v31, %v3786_v2  ;;  %vm3795_vm13 = vweird.f32 %v4216_v31 }
 0xd9d   :  { %v3799_v3 = vmul.f32 %v4218_v33, %v3787_v17  ;;  %vm3805_vm14 = vweird.f32 %v4218_v33  ;;  %vm3796_vm0 = vmor %vm3794_vm15, %vm3795_vm13 }
 0xd9e   :  { %v3790_v9 = vmul.f32 %v4216_v31, %v3789_v34  ;;  %vm3806_vm2 = vmor %vm3804_vm1, %vm3805_vm14 }
 0xd9f   :  { %v3800_v18 = vmul.f32 %v4218_v33, %v3799_v3 }
 0xda0   :  { %v3791_v46 = vmul.f32 0.5, %v3790_v9 }
 0xda1   :  { %v3801_v27 = vmul.f32 0.5, %v3800_v18 }
 0xda2   :  { %v3792_v55 = vsub.f32 1.5, %v3791_v46 }
 0xda3   :  { %v3802_v22 = vsub.f32 1.5, %v3801_v27 }
 0xda4   :  { %v3793_v35 = vmul.f32 %v4216_v31, %v3792_v55 }
 0xda5   :  { %v3803_v30 = vmul.f32 %v4218_v33, %v3802_v22 }
 0xda6   :  { %v3797_v6 = vsel %vm3796_vm0, %v4216_v31, %v3793_v35 }
 0xda7   :  { %v3808_v14 = vmul.f32 %v3797_v6, %v3768_v23  ;;  %v3807_v1 = vsel %vm3806_vm2, %v4218_v33, %v3803_v30 }
 0xda8   :  { %v3809_v50 = vmul.f32 %v3807_v1, %v3769_v12 }
 0xda9   :  { %v3810_v28 = vmax.f32 %v3808_v14, 0.0 }
 0xdaa   :  { %v3811_v63 = vmax.f32 %v3809_v50, 0.0 }
 0xdab   :  { %v3812_v7 = vpack.c.bf16 %v3810_v28, %v3810_v28 }
 0xdac   :  { %v3813_v59 = vpack.c.bf16 %v3811_v63, %v3811_v63 }
 0xdad   :  { %3822 = vmatmul.bf16.vlgmr.msra.gmra.mxu2 %v3812_v7  ;;  %3848 = vmatmul.bf16.vlgmr.msrb.gmra.mxu0 %v3812_v7 }
 0xdae   :  { %3835 = vmatmul.bf16.vlgmr.msra.gmra.mxu3 %v3813_v59  ;;  %3861 = vmatmul.bf16.vlgmr.msrb.gmra.mxu1 %v3813_v59 }
 0xe2a   :  { %v3849_v29 = vpop.f32.mrf.mxu0 }
 0xe2b   :  { %v3862_v37 = vpop.f32.mrf.mxu1 }
 0xe2c   :  { %v3863_v0 = vadd.f32 %v3862_v37, %v3849_v29 }
 0xe2e   :  { %v3872_v25 = vrot.slane %v3863_v0, 4 }
 0xe30   :  { %v3873_v56 = vadd.f32 %v3872_v25, %v3863_v0  ;;  %v3823_v57 = vpop.f32.mrf.mxu2 }
 0xe31   :  { %v3836_v48 = vpop.f32.mrf.mxu3 }
 0xe32   :  { %v3874_v4 = vrot.slane %v3873_v56, 2  ;;  %v3837_v44 = vadd.f32 %v3836_v48, %v3823_v57  ;;  %v3851_v19 = vpop.f32.mrf.mxu0 }
 0xe33   :  { %v3864_v60 = vpop.f32.mrf.mxu1 }
 0xe34   :  { %v3875_v39 = vadd.f32 %v3874_v4, %v3873_v56  ;;  %v3866_v11 = vrot.slane %v3837_v44, 4 }
 0xe36   :  { %v3876_v53 = vrot.slane %v3875_v39, 1  ;;  %v3867_v21 = vadd.f32 %v3866_v11, %v3837_v44 }
 0xe38   :  { %v3877_v52 = vadd.f32 %v3876_v53, %v3875_v39  ;;  %v3868_v36 = vrot.slane %v3867_v21, 2  ;;  %v3825_v41 = vpop.f32.mrf.mxu2 }
 0xe39   :  { %v3838_v15 = vpop.f32.mrf.mxu3 }
 0xe3a   :  { %v3879_v51 = vmul.f32 %v3877_v52, %v10066_v24  ;;  %v3869_v45 = vadd.f32 %v3868_v36, %v3867_v21 }
 0xe3c   :  { %v3881_v62 = vsub.f32 %v3863_v0, %v3879_v51  ;;  %v3870_v23 = vrot.slane %v3869_v45, 1  ;;  %v3595_v0 = vrot.slane %v9514_v8, 4 }
 0xe3e   :  { %v3883_v12 = vmul.f32 %v3881_v62, %v3881_v62  ;;  %v3871_v13 = vadd.f32 %v3870_v23, %v3869_v45  ;;  %v3596_v25 = vadd.f32 %v3595_v0, %v9514_v8 }
 0xe40   :  { %v3890_v40 = vrot.slane %v3883_v12, 4  ;;  %v3878_v58 = vmul.f32 %v3871_v13, %v10066_v24  ;;  %v3597_v56 = vrot.slane %v3596_v25, 2 }
 0xe42   :  { %v3891_v47 = vadd.f32 %v3890_v40, %v3883_v12  ;;  %v3880_v43 = vsub.f32 %v3837_v44, %v3878_v58  ;;  %v3598_v57 = vadd.f32 %v3597_v56, %v3596_v25 }
 0xe44   :  { %v3892_v38 = vrot.slane %v3891_v47, 2  ;;  %v3882_v49 = vmul.f32 %v3880_v43, %v3880_v43  ;;  %v3599_v48 = vrot.slane %v3598_v57, 1 }
 0xe46   :  { %v3893_v54 = vadd.f32 %v3892_v38, %v3891_v47  ;;  %v3884_v20 = vrot.slane %v3882_v49, 4  ;;  %v3600_v4 = vadd.f32 %v3599_v48, %v3598_v57 }
 0xe48   :  { %v3894_v42 = vrot.slane %v3893_v54, 1  ;;  %v3885_v61 = vadd.f32 %v3884_v20, %v3882_v49  ;;  %v3601_v44 = vmul.f32 %v3600_v4, %v10066_v24 }
 0xe4a   :  { %v3895_v16 = vadd.f32 %v3894_v42, %v3893_v54  ;;  %v3886_v32 = vrot.slane %v3885_v61, 2  ;;  %v3602_v19 = vsub.f32 %v9514_v8, %v3601_v44 }
 0xe4c   :  { %v3897_v10 = vmul.f32 %v3895_v16, %v10066_v24  ;;  %v3887_v26 = vadd.f32 %v3886_v32, %v3885_v61  ;;  %v3603_v60 = vmul.f32 %v3602_v19, %v3602_v19 }
 0xe4e   :  { %v3899_v5 = vadd.f32 1e-05, %v3897_v10  ;;  %v3888_v2 = vrot.slane %v3887_v26, 1  ;;  %v3604_v11 = vrot.slane %v3603_v60, 4 }
 0xe50   :  { %4219 = vrsqrt.f32 %v3899_v5  ;;  %v3889_v17 = vadd.f32 %v3888_v2, %v3887_v26  ;;  %vm3916_vm4 = vweird.f32 %v3899_v5  ;;  %v3605_v21 = vadd.f32 %v3604_v11, %v3603_v60 }
 0xe52   :  { %v3896_v31 = vmul.f32 %v3889_v17, %v10066_v24  ;;  %v3606_v15 = vrot.slane %v3605_v21, 2 }
 0xe54   :  { %v3898_v33 = vadd.f32 1e-05, %v3896_v31  ;;  %v3607_v23 = vadd.f32 %v3606_v15, %v3605_v21 }
 0xe56   :  { %v4220_v34 = vpop.eup %4219  ;;  %4221 = vrsqrt.f32 %v3898_v33  ;;  %vm3906_vm7 = vweird.f32 %v3898_v33  ;;  %v3608_v40 = vrot.slane %v3607_v23, 1 }
 0xe57   :  { %v3911_v3 = vmul.f32 %v4220_v34, %v3899_v5  ;;  %vm3917_vm3 = vweird.f32 %v4220_v34 }
 0xe58   :  { %vm3918_vm5 = vmor %vm3916_vm4, %vm3917_vm3  ;;  %v3609_v8 = vadd.f32 %v3608_v40, %v3607_v23  ;;  %v10108_v40 = vld [vmem:[#allocation18_spill] sm:$0xff] }
 0xe59   :  { %v3912_v9 = vmul.f32 %v4220_v34, %v3911_v3 }
 0xe5a   :  { %v3610_v54 = vmul.f32 %v3609_v8, %v10066_v24 }
 0xe5b   :  { %v3913_v18 = vmul.f32 0.5, %v3912_v9 }
 0xe5c   :  { %v4222_v46 = vpop.eup %4221  ;;  %v3611_v61 = vadd.f32 1e-05, %v3610_v54 }
 0xe5d   :  { %v3914_v27 = vsub.f32 1.5, %v3913_v18  ;;  %v3901_v55 = vmul.f32 %v4222_v46, %v3898_v33  ;;  %vm3907_vm6 = vweird.f32 %v4222_v46 }
 0xe5e   :  { %vm3908_vm8 = vmor %vm3906_vm7, %vm3907_vm6  ;;  %4223 = vrsqrt.f32 %v3611_v61  ;;  %vm3618_vm13 = vweird.f32 %v3611_v61 }
 0xe5f   :  { %v3915_v22 = vmul.f32 %v4220_v34, %v3914_v27  ;;  %v3902_v35 = vmul.f32 %v4222_v46, %v3901_v55 }
 0xe61   :  { %v3919_v30 = vsel %vm3918_vm5, %v4220_v34, %v3915_v22  ;;  %v3903_v6 = vmul.f32 0.5, %v3902_v35 }
 0xe62   :  { %v3921_v14 = vmul.f32 %v3919_v30, %v3881_v62 }
 0xe63   :  { %v3904_v1 = vsub.f32 1.5, %v3903_v6 }
 0xe64   :  { %v3923_v50 = vmax.f32 %v3921_v14, 0.0  ;;  %v4224_v5 = vpop.eup %4223 }
 0xe65   :  { %v3905_v28 = vmul.f32 %v4222_v46, %v3904_v1  ;;  %v3613_v17 = vmul.f32 %v4224_v5, %v3611_v61  ;;  %vm3619_vm12 = vweird.f32 %v4224_v5  ;;  %v10109_v61 = vld [vmem:[#allocation67_spill] sm:$0xff] }
 0xe66   :  { %v3925_v63 = vpack.c.bf16 %v3923_v50, %v3923_v50  ;;  %vm3620_vm14 = vmor %vm3618_vm13, %vm3619_vm12  ;;  %v3982_v50 = vpop.xlane.xlu1 %3981  ;;  %vm4129_vm12 = vcmask 0  }
 0xe67   :  { %v3909_v7 = vsel %vm3908_vm8, %v4222_v46, %v3905_v28  ;;  %v3614_v31 = vmul.f32 %v4224_v5, %v3613_v17  ;;  %v3983_v28 = vmax.f32 %v3982_v50, 1e-24 }
 0xe68   :  { %v3920_v59 = vmul.f32 %v3909_v7, %v3880_v43  ;;  %3947 = vmatmul.bf16.vlgmr.msrb.gmra.mxu3 %v3925_v63 }
 0xe69   :  { %v3615_v9 = vmul.f32 0.5, %v3614_v31  ;;  %vm3990_vm0 = vweird.f32 %v3983_v28 }
 0xe6a   :  { %v3922_v29 = vmax.f32 %v3920_v59, 0.0 }
 0xe6b   :  { %v3616_v27 = vsub.f32 1.5, %v3615_v9 }
 0xe6c   :  { %v3924_v37 = vpack.c.bf16 %v3922_v29, %v3922_v29 }
 0xe6d   :  { %v3617_v35 = vmul.f32 %v4224_v5, %v3616_v27 }
 0xe6e   :  { %3934 = vmatmul.bf16.vlgmr.msrb.gmra.mxu2 %v3924_v37  ;;  %v4056_v63 = vpop.xlane.xlu1 %4055 }
 0xe6f   :  { %v3621_v6 = vsel %vm3620_vm14, %v4224_v5, %v3617_v35  ;;  %v4057_v7 = vmax.f32 %v4056_v63, 1e-24 }
 0xe70   :  { %v3622_v14 = vmul.f32 %v3621_v6, %v3602_v19 }
 0xe71   :  { %vm4064_vm6 = vweird.f32 %v4057_v7 }
 0xe72   :  { %v4069_v1 = vmul.f32 %v3622_v14, %v3622_v14 }
 0xeeb   :  { %v3948_v39 = vpop.f32.mrf.mxu3 }
 0xef1   :  { %v3935_v53 = vpop.f32.mrf.mxu2 }
 0xef2   :  { %v3949_v52 = vadd.f32 %v3948_v39, %v3935_v53 }
 0xef3   :  { %v3950_v36 = vpop.f32.mrf.mxu3 }
 0xef4   :  { %v3952_v41 = vrot.slane %v3949_v52, 4 }
 0xef6   :  { %v3953_v51 = vadd.f32 %v3952_v41, %v3949_v52 }
 0xef8   :  { %v3954_v45 = vrot.slane %v3953_v51, 2 }
 0xef9   :  { %v3937_v62 = vpop.f32.mrf.mxu2 }
 0xefa   :  { %v3955_v12 = vadd.f32 %v3954_v45, %v3953_v51 }
 0xefc   :  { %v3956_v13 = vrot.slane %v3955_v12, 1 }
 0xefe   :  { %v3957_v58 = vadd.f32 %v3956_v13, %v3955_v12 }
 0xf00   :  { %v3958_v47 = vmul.f32 %v3957_v58, %v10066_v24 }
 0xf02   :  { %v3959_v43 = vsub.f32 %v3949_v52, %v3958_v47 }
 0xf04   :  { %v3960_v38 = vmul.f32 %v3959_v43, %v3959_v43 }
 0xf06   :  { %v3961_v49 = vrot.slane %v3960_v38, 4 }
 0xf08   :  { %v3962_v20 = vadd.f32 %v3961_v49, %v3960_v38 }
 0xf0a   :  { %v3963_v42 = vrot.slane %v3962_v20, 2 }
 0xf0c   :  { %v3964_v16 = vadd.f32 %v3963_v42, %v3962_v20 }
 0xf0e   :  { %v3965_v32 = vrot.slane %v3964_v16, 1 }
 0xf10   :  { %v3966_v10 = vadd.f32 %v3965_v32, %v3964_v16 }
 0xf12   :  { %v3967_v26 = vmul.f32 %v3966_v10, %v10066_v24 }
 0xf14   :  { %v3968_v2 = vadd.f32 1e-05, %v3967_v26 }
 0xf16   :  { %4225 = vrsqrt.f32 %v3968_v2  ;;  %vm3975_vm10 = vweird.f32 %v3968_v2 }
 0xf17   :  { %4227 = vrsqrt.f32 %v3983_v28 }
 0xf18   :  { %4229 = vrsqrt.f32 %v4057_v7 }
 0xf1c   :  { %v4226_v33 = vpop.eup %4225 }
 0xf1d   :  { %v3970_v34 = vmul.f32 %v4226_v33, %v3968_v2  ;;  %vm3976_vm9 = vweird.f32 %v4226_v33  ;;  %v4228_v59 = vpop.eup %4227 }
 0xf1e   :  { %vm3977_vm11 = vmor %vm3975_vm10, %vm3976_vm9  ;;  %v3985_v29 = vmul.f32 %v4228_v59, %v3983_v28  ;;  %v4230_v56 = vpop.eup %4229  ;;  %vm3991_vm15 = vweird.f32 %v4228_v59 }
 0xf1f   :  { %v3971_v3 = vmul.f32 %v4226_v33, %v3970_v34  ;;  %v4059_v48 = vmul.f32 %v4230_v56, %v4057_v7  ;;  %vm3992_vm1 = vmor %vm3990_vm0, %vm3991_vm15  ;;  %vm4065_vm5 = vweird.f32 %v4230_v56 }
 0xf20   :  { %v3986_v0 = vmul.f32 %v4228_v59, %v3985_v29  ;;  %vm4066_vm8 = vmor %vm4064_vm6, %vm4065_vm5 }
 0xf21   :  { %v3972_v18 = vmul.f32 0.5, %v3971_v3  ;;  %v4060_v39 = vmul.f32 %v4230_v56, %v4059_v48 }
 0xf22   :  { %v3987_v57 = vmul.f32 0.5, %v3986_v0 }
 0xf23   :  { %v3973_v46 = vsub.f32 1.5, %v3972_v18  ;;  %v4061_v52 = vmul.f32 0.5, %v4060_v39 }
 0xf24   :  { %v3988_v19 = vsub.f32 1.5, %v3987_v57 }
 0xf25   :  { %v3974_v55 = vmul.f32 %v4226_v33, %v3973_v46  ;;  %v4062_v45 = vsub.f32 1.5, %v4061_v52 }
 0xf26   :  { %v3989_v21 = vmul.f32 %v4228_v59, %v3988_v19 }
 0xf27   :  { %v3978_v22 = vsel %vm3977_vm11, %v4226_v33, %v3974_v55  ;;  %v4063_v8 = vmul.f32 %v4230_v56, %v4062_v45  ;;  %vm4033_vm11 = vcmask 64512  }
 0xf28   :  { %v3979_v24 = vmul.f32 %v3978_v22, %v3959_v43  ;;  %v3993_v51 = vsel %vm3992_vm1, %v4228_v59, %v3989_v21 }
 0xf29   :  { %v3994_v58 = vmul.f32 %v3993_v51, %v10108_v40  ;;  %v4067_v54 = vsel %vm4066_vm8, %v4230_v56, %v4063_v8 }
 0xf2a   :  { %v3995_v30 = vmul.f32 %v3979_v24, %v3979_v24  ;;  %v4068_v16 = vmul.f32 %v4067_v54, %v10109_v61 }
 0xf2c   :  { %3996 = vadd.xlane.f32.xlu0 %v3995_v30 }
 0xf34   :  { %4070 = vadd.xlane.f32.xlu0 %v4069_v1 }
 0xf9f   :  { %v3997_v37 = vpop.xlane.xlu0 %3996 }
 0xfa0   :  { %v3998_v25 = vmax.f32 %v3997_v37, 1e-24 }
 0xfa2   :  { %4231 = vrsqrt.f32 %v3998_v25  ;;  %vm4005_vm3 = vweird.f32 %v3998_v25 }
 0xfa7   :  { %v4071_v4 = vpop.xlane.xlu0 %4070 }
 0xfa8   :  { %v4232_v44 = vpop.eup %4231  ;;  %v4072_v60 = vmax.f32 %v4071_v4, 1e-24 }
 0xfa9   :  { %v4000_v11 = vmul.f32 %v4232_v44, %v3998_v25  ;;  %vm4006_vm2 = vweird.f32 %v4232_v44 }
 0xfaa   :  { %4233 = vrsqrt.f32 %v4072_v60  ;;  %vm4007_vm4 = vmor %vm4005_vm3, %vm4006_vm2  ;;  %vm4079_vm9 = vweird.f32 %v4072_v60 }
 0xfab   :  { %v4001_v53 = vmul.f32 %v4232_v44, %v4000_v11 }
 0xfad   :  { %v4002_v36 = vmul.f32 0.5, %v4001_v53 }
 0xfaf   :  { %v4003_v41 = vsub.f32 1.5, %v4002_v36 }
 0xfb0   :  { %v4234_v15 = vpop.eup %4233 }
 0xfb1   :  { %v4004_v62 = vmul.f32 %v4232_v44, %v4003_v41  ;;  %v4074_v23 = vmul.f32 %v4234_v15, %v4072_v60  ;;  %vm4080_vm7 = vweird.f32 %v4234_v15 }
 0xfb2   :  { %vm4081_vm10 = vmor %vm4079_vm9, %vm4080_vm7 }
 0xfb3   :  { %v4008_v12 = vsel %vm4007_vm4, %v4232_v44, %v4004_v62  ;;  %v4075_v13 = vmul.f32 %v4234_v15, %v4074_v23 }
 0xfb4   :  { %v4009_v47 = vmul.f32 %v4008_v12, %v3979_v24 }
 0xfb5   :  { %v4076_v43 = vmul.f32 0.5, %v4075_v13 }
 0xfb6   :  { %4025 = vmatpush.xpose.msra.mxu0 %v4009_v47  ;;  %v4030_v38 = vmul.f32 %v4009_v47, %v3994_v58 }
 0xfb7   :  { %v4077_v49 = vsub.f32 1.5, %v4076_v43 }
 0xfb9   :  { %v4078_v20 = vmul.f32 %v4234_v15, %v4077_v49  ;;  %4026 = vmatmul.f32.vlgmr.msra.gmra.mxu0 %v3994_v58 }
 0xfbb   :  { %v4082_v42 = vsel %vm4081_vm10, %v4234_v15, %v4078_v20 }
 0xfbc   :  { %v4083_v32 = vmul.f32 %v4082_v42, %v3622_v14 }
 0xfbe   :  { %4099 = vmatpush.xpose.msra.mxu1 %v4083_v32  ;;  %v4104_v10 = vmul.f32 %v4083_v32, %v4068_v16 }
 0xfc1   :  { %4100 = vmatmul.f32.vlgmr.msra.gmra.mxu1 %v4068_v16 }
0x1036   :  { %v4027_v26 = vpop.f32.mrf.mxu0 }
0x1037   :  { %v4034_v5 = vsel %vm4033_vm11, %v4027_v26, -inf }
0x1038   :  { %4035 = vmax.xlane.f32.xlu2 %v4034_v5 }
0x103e   :  { %v4101_v2 = vpop.f32.mrf.mxu1 }
0x103f   :  { %v4107_v17 = vsel %vm4033_vm11, %v4101_v2, -inf }
0x1040   :  { %4108 = vmax.xlane.f32.xlu2 %v4107_v17 }
0x1048   :  { %4031 = vadd.xlane.f32.xlu2 %v4030_v38 }
0x10ab   :  { %v4036_v31 = vpop.xlane.xlu2 %4035 }
0x10ac   :  { %v4037_v33 = vsub.f32 %v4027_v26, %v4036_v31 }
0x10ae   :  { %v4038_v34 = vmul.f32 1.442695, %v4037_v33 }
0x10b0   :  { %4235 = vpow2.f32 %v4038_v34 }
0x10b3   :  { %v4109_v3 = vpop.xlane.xlu2 %4108 }
0x10b4   :  { %v4110_v9 = vsub.f32 %v4101_v2, %v4109_v3 }
0x10b6   :  { %v4236_v18 = vpop.eup %4235  ;;  %v4111_v46 = vmul.f32 1.442695, %v4110_v9 }
0x10b7   :  { %v4040_v27 = vsel %vm4033_vm11, %v4236_v18, 0.0 }
0x10b8   :  { %4237 = vpow2.f32 %v4111_v46  ;;  %4041 = vadd.xlane.f32.xlu0 %v4040_v27 }
0x10bb   :  { %v4032_v1 = vpop.xlane.xlu2 %4031 }
0x10be   :  { %v4238_v55 = vpop.eup %4237 }
0x10bf   :  { %v4113_v22 = vsel %vm4033_vm11, %v4238_v55, 0.0 }
0x10c0   :  { %4105 = vadd.xlane.f32.xlu0 %v4104_v10  ;;  %4114 = vadd.xlane.f32.xlu1 %v4113_v22 }
0x112b   :  { %v4042_v35 = vpop.xlane.xlu0 %4041 }
0x112c   :  { %4239 = vlog2.f32 %v4042_v35 }
0x1132   :  { %v4240_v24 = vpop.eup %4239 }
0x1133   :  { %v4044_v30 = vmul.f32 0.6931472, %v4240_v24  ;;  %v4115_v6 = vpop.xlane.xlu1 %4114  ;;  %v4106_v0 = vpop.xlane.xlu0 %4105 }
0x1134   :  { %4241 = vlog2.f32 %v4115_v6 }
0x1135   :  { %v4045_v14 = vadd.f32 %v4044_v30, %v4036_v31 }
0x1137   :  { %v4046_v50 = vsub.f32 %v4045_v14, %v4032_v1 }
0x1139   :  { %v4047_v28 = vrot.slane %v4046_v50, 4 }
0x113a   :  { %v4242_v63 = vpop.eup %4241 }
0x113b   :  { %v4048_v7 = vadd.f32 %v4047_v28, %v4046_v50  ;;  %v4117_v59 = vmul.f32 0.6931472, %v4242_v63 }
0x113d   :  { %v4049_v29 = vrot.slane %v4048_v7, 2  ;;  %v4118_v37 = vadd.f32 %v4117_v59, %v4109_v3 }
0x113f   :  { %v4119_v25 = vsub.f32 %v4118_v37, %v4106_v0  ;;  %v4050_v56 = vadd.f32 %v4049_v29, %v4048_v7 }
0x1141   :  { %v4120_v57 = vrot.slane %v4119_v25, 4  ;;  %v4051_v4 = vrot.slane %v4050_v56, 1 }
0x1143   :  { %v4121_v48 = vadd.f32 %v4120_v57, %v4119_v25  ;;  %v4052_v39 = vadd.f32 %v4051_v4, %v4050_v56 }
0x1145   :  { %v4122_v44 = vrot.slane %v4121_v48, 2  ;;  %v4053_v53 = vmul.f32 0.125, %v4052_v39 }
0x1147   :  { %v4123_v19 = vadd.f32 %v4122_v44, %v4121_v48 }
0x1149   :  { %v4124_v60 = vrot.slane %v4123_v19, 1 }
0x114b   :  { %v4125_v11 = vadd.f32 %v4124_v60, %v4123_v19 }
0x114d   :  { %v4126_v21 = vmul.f32 0.125, %v4125_v11 }
0x114f   :  { %v4127_v52 = vadd.f32 %v4126_v21, %v4053_v53 }
0x1151   :  { %v4128_v36 = vmul.f32 2.0, %v4127_v52 }
0x1153   :  { %4130 = vst.msk [vmem:[#allocation8] sm:$0x1] %vm4129_vm12, %v4128_v36 }
0x1154   :  { %4149 = dma.vmem_to_hbm [thread:$0]  %s4145_s26, 16, %s4147_s28, [#allocation5]  }
0x1155   :  { %4319 = dma.done.wait [#allocation5], 16  }
0x1156   :  { %4320 = vsyncadd [#allocation5], 4294967280 }
0x1157   :  { %4162 = vsyncpa [#allocation4], 1 }
0x1158   :  { %4163 = vsyncpa [#allocation7], 1 }
0x1159   :  { %4164 = vsyncpa [#allocation5], 1 }

</bundles_post_ra>
